<compile_context>
chip_gen: v6e
topology: v6e:2x2x1
jax: 0.10.0
libtpu: 0.0.40
codegen_flags: <defaults>
</compile_context>

<pallas_src>
import functools

import numpy as np
import jax
import jax.numpy as jnp
from jax.experimental import pallas as pl
from jax.experimental.pallas import tpu as pltpu


# ---- config (mirrors the PyTorch `config` object) ----
class Config:
    latent_dim = 32
    output_size = 32        # multiple of 16
    output_channels = 3


config = Config()

_CHANS = [(64, 64), (64, 32), (32, 16), (16, config.output_channels)]


def _layer_dims():
    """Per deconv layer: (input spatial size H=W, Cin, Cout)."""
    s0 = config.output_size // 16
    dims, h = [], s0
    for cin, cout in _CHANS:
        dims.append((h, cin, cout))
        h *= 2
    return s0, dims


# ----------------- host-side, one-time weight re-layout -----------------
def _build_row_gemm_weight(w, width):
    """ConvTranspose2d(k=4, s=2, p=1) as a full-row GEMM matrix.

    w:     [Cin, Cout, 4, 4]  (PyTorch ConvTranspose2d weight layout)
    width: input spatial width W (= H) of this layer.

    Returns G with shape [3*W*Cin, 4*W*Cout]: for GEMM row (b, i) whose K entries are the
    three zero-padded input rows (i-1, i, i+1) flattened channels-last, `patch @ G` yields
    output rows 2i and 2i+1 flattened as (row-parity ph, output column J, Cout).
    """
    cin, cout = w.shape[0], w.shape[1]
    g = np.zeros((3 * width * cin, 2 * (2 * width) * cout), np.float32)
    for ph in range(2):                    # output-row parity
        for rh in range(3):                # which of the 3 K rows (input row i-1+rh)
            dh = rh - ph
            if dh not in (0, 1):
                continue
            kh = 3 - ph - 2 * dh
            for j in range(width):
                for pw in range(2):        # output-column parity
                    for dw in range(2):
                        jc = j + pw - 1 + dw
                        if not 0 <= jc < width:
                            continue
                        kw = 3 - pw - 2 * dw
                        krow = (rh * width + jc) * cin
                        ncol = (ph * 2 * width + 2 * j + pw) * cout
                        g[krow:krow + cin, ncol:ncol + cout] = w[:, :, kh, kw]
    return g


def prepare_params(params):
    """One-time (outside jit) conversion of PyTorch-layout params to the fused GEMM layout."""
    s0, dims = _layer_dims()
    c0 = dims[0][1]                                      # 64
    fc_w = np.asarray(params["fc_w"])                    # [64*s0*s0, latent]
    fc_b = np.asarray(params["fc_b"])
    # fc output features are ordered (ci, ih, iw); the kernel wants rows=ih, cols=(iw, ci).
    perm = np.arange(c0 * s0 * s0).reshape(c0, s0, s0).transpose(1, 2, 0).reshape(-1)
    prep = {
        "fc_w": jnp.asarray(np.ascontiguousarray(fc_w.T[:, perm])),   # [latent, s0*s0*64]
        "fc_b": jnp.asarray(fc_b[perm][None, :]),
    }
    for l, (h, _cin, _cout) in enumerate(dims):
        w = np.asarray(params[f"w{l}"])
        b = np.asarray(params[f"b{l}"])
        prep[f"g{l}"] = jnp.asarray(_build_row_gemm_weight(w, h))
        prep[f"bv{l}"] = jnp.asarray(np.tile(b, 2 * 2 * h)[None, :])  # matches (ph, J, co)
    return prep


# ----------------- fused Pallas kernel -----------------
def _decoder_kernel(latent_ref, fcw_ref, fcb_ref,
                    g0_ref, bv0_ref, g1_ref, bv1_ref,
                    g2_ref, bv2_ref, g3_ref, bv3_ref,
                    out_ref,
                    a0, a1, a2, a3,
                    *, batch, s0, dims):
    acts = (a0, a1, a2, a3)
    g_refs = (g0_ref, g1_ref, g2_ref, g3_ref)
    b_refs = (bv0_ref, bv1_ref, bv2_ref, bv3_ref)

    # Border rows of every padded activation buffer must be zero (H padding of the conv).
    for a in acts:
        a[...] = jnp.zeros_like(a)

    # fc (Linear, no activation); scatter its output rows into the layer-0 activation buffer
    # laid out [batch, 1 + H + 1, W*C] channels-last ("padded full rows").
    yfc = jnp.dot(latent_ref[...], fcw_ref[...],
                  preferred_element_type=jnp.float32) + fcb_ref[...]
    rw0 = s0 * dims[0][1]
    for b in range(batch):
        for r in range(s0):
            a0[b, 1 + r:2 + r, :] = yfc[b:b + 1, r * rw0:(r + 1) * rw0]

    # Four ConvTranspose2d(k=4, s=2, p=1) layers as full-row GEMMs (all data stays in VMEM).
    n_layers = len(dims)
    for l, (h, _cin, cout) in enumerate(dims):
        ain = acts[l]
        g = g_refs[l][...]
        bias = b_refs[l][...]
        last = (l == n_layers - 1)
        rw_out = 2 * h * cout                         # one full output row, channels-last
        for b in range(batch):
            # patch row i = input rows (i-1, i, i+1); the zero border rows supply the padding.
            patch = jnp.concatenate(
                [ain[b, rh:rh + h, :] for rh in range(3)], axis=1)     # [h, 3*h*cin]
            y = jnp.dot(patch, g, preferred_element_type=jnp.float32) + bias
            if not last:
                y = jnp.maximum(y, 0.0)
                aout = acts[l + 1]
                for i in range(h):
                    for ph in range(2):
                        aout[b, 1 + 2 * i + ph:2 + 2 * i + ph, :] = (
                            y[i:i + 1, ph * rw_out:(ph + 1) * rw_out])
            else:
                out_ref[b, :, :] = y                   # phase-packed; unpacked by XLA outside


def decoder_forward(prep, latent):
    batch = latent.shape[0]
    s0, dims = _layer_dims()
    out_size = config.output_size
    out_ch = config.output_channels
    h_last = dims[-1][0]                      # 16
    n_last = 4 * h_last * out_ch              # 192

    kernel = functools.partial(_decoder_kernel, batch=batch, s0=s0, dims=tuple(dims))
    scratch = [pltpu.VMEM((batch, h + 2, h * cin), jnp.float32) for (h, cin, _) in dims]

    out2d = pl.pallas_call(
        kernel,
        out_shape=jax.ShapeDtypeStruct((batch, h_last, n_last), jnp.float32),
        in_specs=[pl.BlockSpec(memory_space=pltpu.MemorySpace.VMEM)] * 11,
        out_specs=pl.BlockSpec(memory_space=pltpu.MemorySpace.VMEM),
        scratch_shapes=scratch,
    )(latent, prep["fc_w"], prep["fc_b"],
      prep["g0"], prep["bv0"], prep["g1"], prep["bv1"],
      prep["g2"], prep["bv2"], prep["g3"], prep["bv3"])

    # Unpack (row-pair, phase, width, channel) -> NCHW.  Tiny (~8 KiB) relayout left to XLA.
    o = out2d.reshape(batch, h_last, 2, out_size, out_ch)
    o = o.transpose(0, 4, 1, 2, 3).reshape(batch, out_ch, out_size, out_size)
    return o.reshape(-1, out_ch, out_size, out_size)


# ----------------- parameters (deterministic, PyTorch-style uniform init) -----------------
def init_params(key):
    ld = config.latent_dim
    s0 = config.output_size // 16
    fc_out = 64 * s0 * s0
    keys = jax.random.split(key, 2 + 2 * len(_CHANS))
    params = {}
    lim = 1.0 / jnp.sqrt(float(ld))
    params["fc_w"] = jax.random.uniform(keys[0], (fc_out, ld), jnp.float32, -lim, lim)
    params["fc_b"] = jax.random.uniform(keys[1], (fc_out,), jnp.float32, -lim, lim)
    for i, (cin, cout) in enumerate(_CHANS):
        lim = 1.0 / jnp.sqrt(cin * 16.0)
        params[f"w{i}"] = jax.random.uniform(keys[2 + 2 * i], (cin, cout, 4, 4),
                                             jnp.float32, -lim, lim)
        params[f"b{i}"] = jax.random.uniform(keys[3 + 2 * i], (cout,),
                                             jnp.float32, -lim, lim)
    return params


# ----------------- pure-JAX reference (PyTorch semantics) for validation -----------------
def reference_forward(params, latent):
    s0, dims = _layer_dims()
    batch = latent.shape[0]
    x = jnp.dot(latent, params["fc_w"].T, precision=jax.lax.Precision.HIGHEST) + params["fc_b"]
    x = x.reshape(batch, 64, s0, s0)
    for l in range(len(dims)):
        w = params[f"w{l}"]                                  # [Cin, Cout, 4, 4]
        wf = jnp.flip(w, (2, 3)).transpose(1, 0, 2, 3)       # [Cout, Cin, 4, 4]
        x = jax.lax.conv_general_dilated(
            x, wf, window_strides=(1, 1), padding=[(2, 2), (2, 2)],
            lhs_dilation=(2, 2), rhs_dilation=(1, 1),
            dimension_numbers=("NCHW", "OIHW", "NCHW"),
            precision=jax.lax.Precision.HIGHEST)
        x = x + params[f"b{l}"][None, :, None, None]
        if l < len(dims) - 1:
            x = jnp.maximum(x, 0.0)
    return x.reshape(-1, config.output_channels, config.output_size, config.output_size)


if __name__ == "__main__":
    key = jax.random.PRNGKey(0)
    pkey, xkey = jax.random.split(key)
    params = init_params(pkey)
    latent = jax.random.normal(xkey, (2, config.latent_dim), jnp.float32)

    prep = prepare_params(params)          # one-time host-side weight re-layout (outside jit)
    fwd = jax.jit(decoder_forward)
    out = jax.block_until_ready(fwd(prep, latent))

    assert out.shape == (2, config.output_channels, config.output_size, config.output_size)
    assert out.dtype == jnp.float32

    ref = jax.block_until_ready(reference_forward(params, latent))
    max_err = float(jnp.max(jnp.abs(out - ref)))
    assert max_err < 2e-3, f"mismatch vs reference: max abs err {max_err}"

    print("KERNEL_OK")
</pallas_src>

<mosaic_0001>
module attributes {stable_mosaic.version = 11 : i64} {
  func.func @_decoder_kernel(%arg0: memref<2x32xf32, #tpu.memory_space<vmem>>, %arg1: memref<32x256xf32, #tpu.memory_space<vmem>>, %arg2: memref<1x256xf32, #tpu.memory_space<vmem>>, %arg3: memref<384x512xf32, #tpu.memory_space<vmem>>, %arg4: memref<1x512xf32, #tpu.memory_space<vmem>>, %arg5: memref<768x512xf32, #tpu.memory_space<vmem>>, %arg6: memref<1x512xf32, #tpu.memory_space<vmem>>, %arg7: memref<768x512xf32, #tpu.memory_space<vmem>>, %arg8: memref<1x512xf32, #tpu.memory_space<vmem>>, %arg9: memref<768x192xf32, #tpu.memory_space<vmem>>, %arg10: memref<1x192xf32, #tpu.memory_space<vmem>>, %arg11: memref<2x16x192xf32, #tpu.memory_space<vmem>>, %arg12: memref<2x4x128xf32, #tpu.memory_space<vmem>>, %arg13: memref<2x6x256xf32, #tpu.memory_space<vmem>>, %arg14: memref<2x10x256xf32, #tpu.memory_space<vmem>>, %arg15: memref<2x18x256xf32, #tpu.memory_space<vmem>>) attributes {dimension_semantics = [], scalar_prefetch = 0 : i64, scratch_operands = 4 : i64, tpu.core_type = #tpu.core_type<tc>} {
    %cst = arith.constant 0.000000e+00 : f32
    %0 = vector.broadcast %cst : f32 to vector<2x4x128xf32>
    %c0 = arith.constant 0 : index
    %c0_0 = arith.constant 0 : index
    %c0_1 = arith.constant 0 : index
    %1 = vector.load %arg12[%c0, %c0_0, %c0_1] : memref<2x4x128xf32, #tpu.memory_space<vmem>>, vector<2x4x128xf32>
    tpu.vector_store %arg12[%c0, %c0_0, %c0_1], %0 {strides = array<i32>} : memref<2x4x128xf32, #tpu.memory_space<vmem>>, vector<2x4x128xf32>,
    %cst_2 = arith.constant 0.000000e+00 : f32
    %2 = vector.broadcast %cst_2 : f32 to vector<2x6x256xf32>
    %c0_3 = arith.constant 0 : index
    %c0_4 = arith.constant 0 : index
    %c0_5 = arith.constant 0 : index
    %3 = vector.load %arg13[%c0_3, %c0_4, %c0_5] : memref<2x6x256xf32, #tpu.memory_space<vmem>>, vector<2x6x256xf32>
    tpu.vector_store %arg13[%c0_3, %c0_4, %c0_5], %2 {strides = array<i32>} : memref<2x6x256xf32, #tpu.memory_space<vmem>>, vector<2x6x256xf32>,
    %cst_6 = arith.constant 0.000000e+00 : f32
    %4 = vector.broadcast %cst_6 : f32 to vector<2x10x256xf32>
    %c0_7 = arith.constant 0 : index
    %c0_8 = arith.constant 0 : index
    %c0_9 = arith.constant 0 : index
    %5 = vector.load %arg14[%c0_7, %c0_8, %c0_9] : memref<2x10x256xf32, #tpu.memory_space<vmem>>, vector<2x10x256xf32>
    tpu.vector_store %arg14[%c0_7, %c0_8, %c0_9], %4 {strides = array<i32>} : memref<2x10x256xf32, #tpu.memory_space<vmem>>, vector<2x10x256xf32>,
    %cst_10 = arith.constant 0.000000e+00 : f32
    %6 = vector.broadcast %cst_10 : f32 to vector<2x18x256xf32>
    %c0_11 = arith.constant 0 : index
    %c0_12 = arith.constant 0 : index
    %c0_13 = arith.constant 0 : index
    %7 = vector.load %arg15[%c0_11, %c0_12, %c0_13] : memref<2x18x256xf32, #tpu.memory_space<vmem>>, vector<2x18x256xf32>
    tpu.vector_store %arg15[%c0_11, %c0_12, %c0_13], %6 {strides = array<i32>} : memref<2x18x256xf32, #tpu.memory_space<vmem>>, vector<2x18x256xf32>,
    %c0_14 = arith.constant 0 : index
    %c0_15 = arith.constant 0 : index
    %8 = vector.load %arg0[%c0_14, %c0_15] : memref<2x32xf32, #tpu.memory_space<vmem>>, vector<2x32xf32>
    %c0_16 = arith.constant 0 : index
    %c0_17 = arith.constant 0 : index
    %9 = vector.load %arg1[%c0_16, %c0_17] : memref<32x256xf32, #tpu.memory_space<vmem>>, vector<32x256xf32>
    %cst_18 = arith.constant dense<0.000000e+00> : vector<2x256xf32>
    %10 = tpu.matmul %8, %9, %cst_18 {dimension_numbers = #tpu.dot_dimension_numbers<[1], [0], [0], [1], [0, 0, 1, 1], [], []>} : vector<2x32xf32>, vector<32x256xf32>, vector<2x256xf32> -> vector<2x256xf32>
    %c0_19 = arith.constant 0 : index
    %c0_20 = arith.constant 0 : index
    %11 = vector.load %arg2[%c0_19, %c0_20] : memref<1x256xf32, #tpu.memory_space<vmem>>, vector<1x256xf32>
    %12 = vector.broadcast %11 : vector<1x256xf32> to vector<2x256xf32>
    %13 = arith.addf %10, %12 : vector<2x256xf32>
    %14 = vector.extract_strided_slice %13 {offsets = [0, 0], sizes = [1, 128], strides = [1, 1]} : vector<2x256xf32> to vector<1x128xf32>
    %c0_21 = arith.constant 0 : index
    %c1 = arith.constant 1 : index
    %c0_22 = arith.constant 0 : index
    %15 = vector.load %arg12[%c0_21, %c1, %c0_22] : memref<2x4x128xf32, #tpu.memory_space<vmem>>, vector<1x1x128xf32>
    %16 = vector.shape_cast %15 : vector<1x1x128xf32> to vector<1x128xf32>
    %17 = vector.shape_cast %14 : vector<1x128xf32> to vector<1x1x128xf32>
    tpu.vector_store %arg12[%c0_21, %c1, %c0_22], %17 {strides = array<i32>} : memref<2x4x128xf32, #tpu.memory_space<vmem>>, vector<1x1x128xf32>,
    %18 = vector.extract_strided_slice %13 {offsets = [0, 128], sizes = [1, 128], strides = [1, 1]} : vector<2x256xf32> to vector<1x128xf32>
    %c0_23 = arith.constant 0 : index
    %c2 = arith.constant 2 : index
    %c0_24 = arith.constant 0 : index
    %19 = vector.load %arg12[%c0_23, %c2, %c0_24] : memref<2x4x128xf32, #tpu.memory_space<vmem>>, vector<1x1x128xf32>
    %20 = vector.shape_cast %19 : vector<1x1x128xf32> to vector<1x128xf32>
    %21 = vector.shape_cast %18 : vector<1x128xf32> to vector<1x1x128xf32>
    tpu.vector_store %arg12[%c0_23, %c2, %c0_24], %21 {strides = array<i32>} : memref<2x4x128xf32, #tpu.memory_space<vmem>>, vector<1x1x128xf32>,
    %22 = vector.extract_strided_slice %13 {offsets = [1, 0], sizes = [1, 128], strides = [1, 1]} : vector<2x256xf32> to vector<1x128xf32>
    %c1_25 = arith.constant 1 : index
    %c1_26 = arith.constant 1 : index
    %c0_27 = arith.constant 0 : index
    %23 = vector.load %arg12[%c1_25, %c1_26, %c0_27] : memref<2x4x128xf32, #tpu.memory_space<vmem>>, vector<1x1x128xf32>
    %24 = vector.shape_cast %23 : vector<1x1x128xf32> to vector<1x128xf32>
    %25 = vector.shape_cast %22 : vector<1x128xf32> to vector<1x1x128xf32>
    tpu.vector_store %arg12[%c1_25, %c1_26, %c0_27], %25 {strides = array<i32>} : memref<2x4x128xf32, #tpu.memory_space<vmem>>, vector<1x1x128xf32>,
    %26 = vector.extract_strided_slice %13 {offsets = [1, 128], sizes = [1, 128], strides = [1, 1]} : vector<2x256xf32> to vector<1x128xf32>
    %c1_28 = arith.constant 1 : index
    %c2_29 = arith.constant 2 : index
    %c0_30 = arith.constant 0 : index
    %27 = vector.load %arg12[%c1_28, %c2_29, %c0_30] : memref<2x4x128xf32, #tpu.memory_space<vmem>>, vector<1x1x128xf32>
    %28 = vector.shape_cast %27 : vector<1x1x128xf32> to vector<1x128xf32>
    %29 = vector.shape_cast %26 : vector<1x128xf32> to vector<1x1x128xf32>
    tpu.vector_store %arg12[%c1_28, %c2_29, %c0_30], %29 {strides = array<i32>} : memref<2x4x128xf32, #tpu.memory_space<vmem>>, vector<1x1x128xf32>,
    %c0_31 = arith.constant 0 : index
    %c0_32 = arith.constant 0 : index
    %30 = vector.load %arg3[%c0_31, %c0_32] : memref<384x512xf32, #tpu.memory_space<vmem>>, vector<384x512xf32>
    %c0_33 = arith.constant 0 : index
    %c0_34 = arith.constant 0 : index
    %31 = vector.load %arg4[%c0_33, %c0_34] : memref<1x512xf32, #tpu.memory_space<vmem>>, vector<1x512xf32>
    %c0_35 = arith.constant 0 : index
    %c0_36 = arith.constant 0 : index
    %c0_37 = arith.constant 0 : index
    %32 = vector.load %arg12[%c0_35, %c0_36, %c0_37] : memref<2x4x128xf32, #tpu.memory_space<vmem>>, vector<1x2x128xf32>
    %33 = vector.shape_cast %32 : vector<1x2x128xf32> to vector<2x128xf32>
    %c0_38 = arith.constant 0 : index
    %c1_39 = arith.constant 1 : index
    %c0_40 = arith.constant 0 : index
    %34 = vector.load %arg12[%c0_38, %c1_39, %c0_40] : memref<2x4x128xf32, #tpu.memory_space<vmem>>, vector<1x2x128xf32>
    %35 = vector.shape_cast %34 : vector<1x2x128xf32> to vector<2x128xf32>
    %c0_41 = arith.constant 0 : index
    %c2_42 = arith.constant 2 : index
    %c0_43 = arith.constant 0 : index
    %36 = vector.load %arg12[%c0_41, %c2_42, %c0_43] : memref<2x4x128xf32, #tpu.memory_space<vmem>>, vector<1x2x128xf32>
    %37 = vector.shape_cast %36 : vector<1x2x128xf32> to vector<2x128xf32>
    %38 = tpu.concatenate %33, %35, %37 in 1 : vector<2x128xf32>, vector<2x128xf32>, vector<2x128xf32> -> vector<2x384xf32>
    %cst_44 = arith.constant dense<0.000000e+00> : vector<2x512xf32>
    %39 = tpu.matmul %38, %30, %cst_44 {dimension_numbers = #tpu.dot_dimension_numbers<[1], [0], [0], [1], [0, 0, 1, 1], [], []>} : vector<2x384xf32>, vector<384x512xf32>, vector<2x512xf32> -> vector<2x512xf32>
    %40 = vector.broadcast %31 : vector<1x512xf32> to vector<2x512xf32>
    %41 = arith.addf %39, %40 : vector<2x512xf32>
    %cst_45 = arith.constant 0.000000e+00 : f32
    %42 = vector.broadcast %cst_45 : f32 to vector<2x512xf32>
    %43 = arith.maximumf %41, %42 : vector<2x512xf32>
    %44 = vector.extract_strided_slice %43 {offsets = [0, 0], sizes = [1, 256], strides = [1, 1]} : vector<2x512xf32> to vector<1x256xf32>
    %c0_46 = arith.constant 0 : index
    %c1_47 = arith.constant 1 : index
    %c0_48 = arith.constant 0 : index
    %45 = vector.load %arg13[%c0_46, %c1_47, %c0_48] : memref<2x6x256xf32, #tpu.memory_space<vmem>>, vector<1x1x256xf32>
    %46 = vector.shape_cast %45 : vector<1x1x256xf32> to vector<1x256xf32>
    %47 = vector.shape_cast %44 : vector<1x256xf32> to vector<1x1x256xf32>
    tpu.vector_store %arg13[%c0_46, %c1_47, %c0_48], %47 {strides = array<i32>} : memref<2x6x256xf32, #tpu.memory_space<vmem>>, vector<1x1x256xf32>,
    %48 = vector.extract_strided_slice %43 {offsets = [0, 256], sizes = [1, 256], strides = [1, 1]} : vector<2x512xf32> to vector<1x256xf32>
    %c0_49 = arith.constant 0 : index
    %c2_50 = arith.constant 2 : index
    %c0_51 = arith.constant 0 : index
    %49 = vector.load %arg13[%c0_49, %c2_50, %c0_51] : memref<2x6x256xf32, #tpu.memory_space<vmem>>, vector<1x1x256xf32>
    %50 = vector.shape_cast %49 : vector<1x1x256xf32> to vector<1x256xf32>
    %51 = vector.shape_cast %48 : vector<1x256xf32> to vector<1x1x256xf32>
    tpu.vector_store %arg13[%c0_49, %c2_50, %c0_51], %51 {strides = array<i32>} : memref<2x6x256xf32, #tpu.memory_space<vmem>>, vector<1x1x256xf32>,
    %52 = vector.extract_strided_slice %43 {offsets = [1, 0], sizes = [1, 256], strides = [1, 1]} : vector<2x512xf32> to vector<1x256xf32>
    %c0_52 = arith.constant 0 : index
    %c3 = arith.constant 3 : index
    %c0_53 = arith.constant 0 : index
    %53 = vector.load %arg13[%c0_52, %c3, %c0_53] : memref<2x6x256xf32, #tpu.memory_space<vmem>>, vector<1x1x256xf32>
    %54 = vector.shape_cast %53 : vector<1x1x256xf32> to vector<1x256xf32>
    %55 = vector.shape_cast %52 : vector<1x256xf32> to vector<1x1x256xf32>
    tpu.vector_store %arg13[%c0_52, %c3, %c0_53], %55 {strides = array<i32>} : memref<2x6x256xf32, #tpu.memory_space<vmem>>, vector<1x1x256xf32>,
    %56 = vector.extract_strided_slice %43 {offsets = [1, 256], sizes = [1, 256], strides = [1, 1]} : vector<2x512xf32> to vector<1x256xf32>
    %c0_54 = arith.constant 0 : index
    %c4 = arith.constant 4 : index
    %c0_55 = arith.constant 0 : index
    %57 = vector.load %arg13[%c0_54, %c4, %c0_55] : memref<2x6x256xf32, #tpu.memory_space<vmem>>, vector<1x1x256xf32>
    %58 = vector.shape_cast %57 : vector<1x1x256xf32> to vector<1x256xf32>
    %59 = vector.shape_cast %56 : vector<1x256xf32> to vector<1x1x256xf32>
    tpu.vector_store %arg13[%c0_54, %c4, %c0_55], %59 {strides = array<i32>} : memref<2x6x256xf32, #tpu.memory_space<vmem>>, vector<1x1x256xf32>,
    %c1_56 = arith.constant 1 : index
    %c0_57 = arith.constant 0 : index
    %c0_58 = arith.constant 0 : index
    %60 = vector.load %arg12[%c1_56, %c0_57, %c0_58] : memref<2x4x128xf32, #tpu.memory_space<vmem>>, vector<1x2x128xf32>
    %61 = vector.shape_cast %60 : vector<1x2x128xf32> to vector<2x128xf32>
    %c1_59 = arith.constant 1 : index
    %c1_60 = arith.constant 1 : index
    %c0_61 = arith.constant 0 : index
    %62 = vector.load %arg12[%c1_59, %c1_60, %c0_61] : memref<2x4x128xf32, #tpu.memory_space<vmem>>, vector<1x2x128xf32>
    %63 = vector.shape_cast %62 : vector<1x2x128xf32> to vector<2x128xf32>
    %c1_62 = arith.constant 1 : index
    %c2_63 = arith.constant 2 : index
    %c0_64 = arith.constant 0 : index
    %64 = vector.load %arg12[%c1_62, %c2_63, %c0_64] : memref<2x4x128xf32, #tpu.memory_space<vmem>>, vector<1x2x128xf32>
    %65 = vector.shape_cast %64 : vector<1x2x128xf32> to vector<2x128xf32>
    %66 = tpu.concatenate %61, %63, %65 in 1 : vector<2x128xf32>, vector<2x128xf32>, vector<2x128xf32> -> vector<2x384xf32>
    %cst_65 = arith.constant dense<0.000000e+00> : vector<2x512xf32>
    %67 = tpu.matmul %66, %30, %cst_65 {dimension_numbers = #tpu.dot_dimension_numbers<[1], [0], [0], [1], [0, 0, 1, 1], [], []>} : vector<2x384xf32>, vector<384x512xf32>, vector<2x512xf32> -> vector<2x512xf32>
    %68 = vector.broadcast %31 : vector<1x512xf32> to vector<2x512xf32>
    %69 = arith.addf %67, %68 : vector<2x512xf32>
    %cst_66 = arith.constant 0.000000e+00 : f32
    %70 = vector.broadcast %cst_66 : f32 to vector<2x512xf32>
    %71 = arith.maximumf %69, %70 : vector<2x512xf32>
    %72 = vector.extract_strided_slice %71 {offsets = [0, 0], sizes = [1, 256], strides = [1, 1]} : vector<2x512xf32> to vector<1x256xf32>
    %c1_67 = arith.constant 1 : index
    %c1_68 = arith.constant 1 : index
    %c0_69 = arith.constant 0 : index
    %73 = vector.load %arg13[%c1_67, %c1_68, %c0_69] : memref<2x6x256xf32, #tpu.memory_space<vmem>>, vector<1x1x256xf32>
    %74 = vector.shape_cast %73 : vector<1x1x256xf32> to vector<1x256xf32>
    %75 = vector.shape_cast %72 : vector<1x256xf32> to vector<1x1x256xf32>
    tpu.vector_store %arg13[%c1_67, %c1_68, %c0_69], %75 {strides = array<i32>} : memref<2x6x256xf32, #tpu.memory_space<vmem>>, vector<1x1x256xf32>,
    %76 = vector.extract_strided_slice %71 {offsets = [0, 256], sizes = [1, 256], strides = [1, 1]} : vector<2x512xf32> to vector<1x256xf32>
    %c1_70 = arith.constant 1 : index
    %c2_71 = arith.constant 2 : index
    %c0_72 = arith.constant 0 : index
    %77 = vector.load %arg13[%c1_70, %c2_71, %c0_72] : memref<2x6x256xf32, #tpu.memory_space<vmem>>, vector<1x1x256xf32>
    %78 = vector.shape_cast %77 : vector<1x1x256xf32> to vector<1x256xf32>
    %79 = vector.shape_cast %76 : vector<1x256xf32> to vector<1x1x256xf32>
    tpu.vector_store %arg13[%c1_70, %c2_71, %c0_72], %79 {strides = array<i32>} : memref<2x6x256xf32, #tpu.memory_space<vmem>>, vector<1x1x256xf32>,
    %80 = vector.extract_strided_slice %71 {offsets = [1, 0], sizes = [1, 256], strides = [1, 1]} : vector<2x512xf32> to vector<1x256xf32>
    %c1_73 = arith.constant 1 : index
    %c3_74 = arith.constant 3 : index
    %c0_75 = arith.constant 0 : index
    %81 = vector.load %arg13[%c1_73, %c3_74, %c0_75] : memref<2x6x256xf32, #tpu.memory_space<vmem>>, vector<1x1x256xf32>
    %82 = vector.shape_cast %81 : vector<1x1x256xf32> to vector<1x256xf32>
    %83 = vector.shape_cast %80 : vector<1x256xf32> to vector<1x1x256xf32>
    tpu.vector_store %arg13[%c1_73, %c3_74, %c0_75], %83 {strides = array<i32>} : memref<2x6x256xf32, #tpu.memory_space<vmem>>, vector<1x1x256xf32>,
    %84 = vector.extract_strided_slice %71 {offsets = [1, 256], sizes = [1, 256], strides = [1, 1]} : vector<2x512xf32> to vector<1x256xf32>
    %c1_76 = arith.constant 1 : index
    %c4_77 = arith.constant 4 : index
    %c0_78 = arith.constant 0 : index
    %85 = vector.load %arg13[%c1_76, %c4_77, %c0_78] : memref<2x6x256xf32, #tpu.memory_space<vmem>>, vector<1x1x256xf32>
    %86 = vector.shape_cast %85 : vector<1x1x256xf32> to vector<1x256xf32>
    %87 = vector.shape_cast %84 : vector<1x256xf32> to vector<1x1x256xf32>
    tpu.vector_store %arg13[%c1_76, %c4_77, %c0_78], %87 {strides = array<i32>} : memref<2x6x256xf32, #tpu.memory_space<vmem>>, vector<1x1x256xf32>,
    %c0_79 = arith.constant 0 : index
    %c0_80 = arith.constant 0 : index
    %88 = vector.load %arg5[%c0_79, %c0_80] : memref<768x512xf32, #tpu.memory_space<vmem>>, vector<768x512xf32>
    %c0_81 = arith.constant 0 : index
    %c0_82 = arith.constant 0 : index
    %89 = vector.load %arg6[%c0_81, %c0_82] : memref<1x512xf32, #tpu.memory_space<vmem>>, vector<1x512xf32>
    %c0_83 = arith.constant 0 : index
    %c0_84 = arith.constant 0 : index
    %c0_85 = arith.constant 0 : index
    %90 = vector.load %arg13[%c0_83, %c0_84, %c0_85] : memref<2x6x256xf32, #tpu.memory_space<vmem>>, vector<1x4x256xf32>
    %91 = vector.shape_cast %90 : vector<1x4x256xf32> to vector<4x256xf32>
    %c0_86 = arith.constant 0 : index
    %c1_87 = arith.constant 1 : index
    %c0_88 = arith.constant 0 : index
    %92 = vector.load %arg13[%c0_86, %c1_87, %c0_88] : memref<2x6x256xf32, #tpu.memory_space<vmem>>, vector<1x4x256xf32>
    %93 = vector.shape_cast %92 : vector<1x4x256xf32> to vector<4x256xf32>
    %c0_89 = arith.constant 0 : index
    %c2_90 = arith.constant 2 : index
    %c0_91 = arith.constant 0 : index
    %94 = vector.load %arg13[%c0_89, %c2_90, %c0_91] : memref<2x6x256xf32, #tpu.memory_space<vmem>>, vector<1x4x256xf32>
    %95 = vector.shape_cast %94 : vector<1x4x256xf32> to vector<4x256xf32>
    %96 = tpu.concatenate %91, %93, %95 in 1 : vector<4x256xf32>, vector<4x256xf32>, vector<4x256xf32> -> vector<4x768xf32>
    %cst_92 = arith.constant dense<0.000000e+00> : vector<4x512xf32>
    %97 = tpu.matmul %96, %88, %cst_92 {dimension_numbers = #tpu.dot_dimension_numbers<[1], [0], [0], [1], [0, 0, 1, 1], [], []>} : vector<4x768xf32>, vector<768x512xf32>, vector<4x512xf32> -> vector<4x512xf32>
    %98 = vector.broadcast %89 : vector<1x512xf32> to vector<4x512xf32>
    %99 = arith.addf %97, %98 : vector<4x512xf32>
    %cst_93 = arith.constant 0.000000e+00 : f32
    %100 = vector.broadcast %cst_93 : f32 to vector<4x512xf32>
    %101 = arith.maximumf %99, %100 : vector<4x512xf32>
    %102 = vector.extract_strided_slice %101 {offsets = [0, 0], sizes = [1, 256], strides = [1, 1]} : vector<4x512xf32> to vector<1x256xf32>
    %c0_94 = arith.constant 0 : index
    %c1_95 = arith.constant 1 : index
    %c0_96 = arith.constant 0 : index
    %103 = vector.load %arg14[%c0_94, %c1_95, %c0_96] : memref<2x10x256xf32, #tpu.memory_space<vmem>>, vector<1x1x256xf32>
    %104 = vector.shape_cast %103 : vector<1x1x256xf32> to vector<1x256xf32>
    %105 = vector.shape_cast %102 : vector<1x256xf32> to vector<1x1x256xf32>
    tpu.vector_store %arg14[%c0_94, %c1_95, %c0_96], %105 {strides = array<i32>} : memref<2x10x256xf32, #tpu.memory_space<vmem>>, vector<1x1x256xf32>,
    %106 = vector.extract_strided_slice %101 {offsets = [0, 256], sizes = [1, 256], strides = [1, 1]} : vector<4x512xf32> to vector<1x256xf32>
    %c0_97 = arith.constant 0 : index
    %c2_98 = arith.constant 2 : index
    %c0_99 = arith.constant 0 : index
    %107 = vector.load %arg14[%c0_97, %c2_98, %c0_99] : memref<2x10x256xf32, #tpu.memory_space<vmem>>, vector<1x1x256xf32>
    %108 = vector.shape_cast %107 : vector<1x1x256xf32> to vector<1x256xf32>
    %109 = vector.shape_cast %106 : vector<1x256xf32> to vector<1x1x256xf32>
    tpu.vector_store %arg14[%c0_97, %c2_98, %c0_99], %109 {strides = array<i32>} : memref<2x10x256xf32, #tpu.memory_space<vmem>>, vector<1x1x256xf32>,
    %110 = vector.extract_strided_slice %101 {offsets = [1, 0], sizes = [1, 256], strides = [1, 1]} : vector<4x512xf32> to vector<1x256xf32>
    %c0_100 = arith.constant 0 : index
    %c3_101 = arith.constant 3 : index
    %c0_102 = arith.constant 0 : index
    %111 = vector.load %arg14[%c0_100, %c3_101, %c0_102] : memref<2x10x256xf32, #tpu.memory_space<vmem>>, vector<1x1x256xf32>
    %112 = vector.shape_cast %111 : vector<1x1x256xf32> to vector<1x256xf32>
    %113 = vector.shape_cast %110 : vector<1x256xf32> to vector<1x1x256xf32>
    tpu.vector_store %arg14[%c0_100, %c3_101, %c0_102], %113 {strides = array<i32>} : memref<2x10x256xf32, #tpu.memory_space<vmem>>, vector<1x1x256xf32>,
    %114 = vector.extract_strided_slice %101 {offsets = [1, 256], sizes = [1, 256], strides = [1, 1]} : vector<4x512xf32> to vector<1x256xf32>
    %c0_103 = arith.constant 0 : index
    %c4_104 = arith.constant 4 : index
    %c0_105 = arith.constant 0 : index
    %115 = vector.load %arg14[%c0_103, %c4_104, %c0_105] : memref<2x10x256xf32, #tpu.memory_space<vmem>>, vector<1x1x256xf32>
    %116 = vector.shape_cast %115 : vector<1x1x256xf32> to vector<1x256xf32>
    %117 = vector.shape_cast %114 : vector<1x256xf32> to vector<1x1x256xf32>
    tpu.vector_store %arg14[%c0_103, %c4_104, %c0_105], %117 {strides = array<i32>} : memref<2x10x256xf32, #tpu.memory_space<vmem>>, vector<1x1x256xf32>,
    %118 = vector.extract_strided_slice %101 {offsets = [2, 0], sizes = [1, 256], strides = [1, 1]} : vector<4x512xf32> to vector<1x256xf32>
    %c0_106 = arith.constant 0 : index
    %c5 = arith.constant 5 : index
    %c0_107 = arith.constant 0 : index
    %119 = vector.load %arg14[%c0_106, %c5, %c0_107] : memref<2x10x256xf32, #tpu.memory_space<vmem>>, vector<1x1x256xf32>
    %120 = vector.shape_cast %119 : vector<1x1x256xf32> to vector<1x256xf32>
    %121 = vector.shape_cast %118 : vector<1x256xf32> to vector<1x1x256xf32>
    tpu.vector_store %arg14[%c0_106, %c5, %c0_107], %121 {strides = array<i32>} : memref<2x10x256xf32, #tpu.memory_space<vmem>>, vector<1x1x256xf32>,
    %122 = vector.extract_strided_slice %101 {offsets = [2, 256], sizes = [1, 256], strides = [1, 1]} : vector<4x512xf32> to vector<1x256xf32>
    %c0_108 = arith.constant 0 : index
    %c6 = arith.constant 6 : index
    %c0_109 = arith.constant 0 : index
    %123 = vector.load %arg14[%c0_108, %c6, %c0_109] : memref<2x10x256xf32, #tpu.memory_space<vmem>>, vector<1x1x256xf32>
    %124 = vector.shape_cast %123 : vector<1x1x256xf32> to vector<1x256xf32>
    %125 = vector.shape_cast %122 : vector<1x256xf32> to vector<1x1x256xf32>
    tpu.vector_store %arg14[%c0_108, %c6, %c0_109], %125 {strides = array<i32>} : memref<2x10x256xf32, #tpu.memory_space<vmem>>, vector<1x1x256xf32>,
    %126 = vector.extract_strided_slice %101 {offsets = [3, 0], sizes = [1, 256], strides = [1, 1]} : vector<4x512xf32> to vector<1x256xf32>
    %c0_110 = arith.constant 0 : index
    %c7 = arith.constant 7 : index
    %c0_111 = arith.constant 0 : index
    %127 = vector.load %arg14[%c0_110, %c7, %c0_111] : memref<2x10x256xf32, #tpu.memory_space<vmem>>, vector<1x1x256xf32>
    %128 = vector.shape_cast %127 : vector<1x1x256xf32> to vector<1x256xf32>
    %129 = vector.shape_cast %126 : vector<1x256xf32> to vector<1x1x256xf32>
    tpu.vector_store %arg14[%c0_110, %c7, %c0_111], %129 {strides = array<i32>} : memref<2x10x256xf32, #tpu.memory_space<vmem>>, vector<1x1x256xf32>,
    %130 = vector.extract_strided_slice %101 {offsets = [3, 256], sizes = [1, 256], strides = [1, 1]} : vector<4x512xf32> to vector<1x256xf32>
    %c0_112 = arith.constant 0 : index
    %c8 = arith.constant 8 : index
    %c0_113 = arith.constant 0 : index
    %131 = vector.load %arg14[%c0_112, %c8, %c0_113] : memref<2x10x256xf32, #tpu.memory_space<vmem>>, vector<1x1x256xf32>
    %132 = vector.shape_cast %131 : vector<1x1x256xf32> to vector<1x256xf32>
    %133 = vector.shape_cast %130 : vector<1x256xf32> to vector<1x1x256xf32>
    tpu.vector_store %arg14[%c0_112, %c8, %c0_113], %133 {strides = array<i32>} : memref<2x10x256xf32, #tpu.memory_space<vmem>>, vector<1x1x256xf32>,
    %c1_114 = arith.constant 1 : index
    %c0_115 = arith.constant 0 : index
    %c0_116 = arith.constant 0 : index
    %134 = vector.load %arg13[%c1_114, %c0_115, %c0_116] : memref<2x6x256xf32, #tpu.memory_space<vmem>>, vector<1x4x256xf32>
    %135 = vector.shape_cast %134 : vector<1x4x256xf32> to vector<4x256xf32>
    %c1_117 = arith.constant 1 : index
    %c1_118 = arith.constant 1 : index
    %c0_119 = arith.constant 0 : index
    %136 = vector.load %arg13[%c1_117, %c1_118, %c0_119] : memref<2x6x256xf32, #tpu.memory_space<vmem>>, vector<1x4x256xf32>
    %137 = vector.shape_cast %136 : vector<1x4x256xf32> to vector<4x256xf32>
    %c1_120 = arith.constant 1 : index
    %c2_121 = arith.constant 2 : index
    %c0_122 = arith.constant 0 : index
    %138 = vector.load %arg13[%c1_120, %c2_121, %c0_122] : memref<2x6x256xf32, #tpu.memory_space<vmem>>, vector<1x4x256xf32>
    %139 = vector.shape_cast %138 : vector<1x4x256xf32> to vector<4x256xf32>
    %140 = tpu.concatenate %135, %137, %139 in 1 : vector<4x256xf32>, vector<4x256xf32>, vector<4x256xf32> -> vector<4x768xf32>
    %cst_123 = arith.constant dense<0.000000e+00> : vector<4x512xf32>
    %141 = tpu.matmul %140, %88, %cst_123 {dimension_numbers = #tpu.dot_dimension_numbers<[1], [0], [0], [1], [0, 0, 1, 1], [], []>} : vector<4x768xf32>, vector<768x512xf32>, vector<4x512xf32> -> vector<4x512xf32>
    %142 = vector.broadcast %89 : vector<1x512xf32> to vector<4x512xf32>
    %143 = arith.addf %141, %142 : vector<4x512xf32>
    %cst_124 = arith.constant 0.000000e+00 : f32
    %144 = vector.broadcast %cst_124 : f32 to vector<4x512xf32>
    %145 = arith.maximumf %143, %144 : vector<4x512xf32>
    %146 = vector.extract_strided_slice %145 {offsets = [0, 0], sizes = [1, 256], strides = [1, 1]} : vector<4x512xf32> to vector<1x256xf32>
    %c1_125 = arith.constant 1 : index
    %c1_126 = arith.constant 1 : index
    %c0_127 = arith.constant 0 : index
    %147 = vector.load %arg14[%c1_125, %c1_126, %c0_127] : memref<2x10x256xf32, #tpu.memory_space<vmem>>, vector<1x1x256xf32>
    %148 = vector.shape_cast %147 : vector<1x1x256xf32> to vector<1x256xf32>
    %149 = vector.shape_cast %146 : vector<1x256xf32> to vector<1x1x256xf32>
    tpu.vector_store %arg14[%c1_125, %c1_126, %c0_127], %149 {strides = array<i32>} : memref<2x10x256xf32, #tpu.memory_space<vmem>>, vector<1x1x256xf32>,
    %150 = vector.extract_strided_slice %145 {offsets = [0, 256], sizes = [1, 256], strides = [1, 1]} : vector<4x512xf32> to vector<1x256xf32>
    %c1_128 = arith.constant 1 : index
    %c2_129 = arith.constant 2 : index
    %c0_130 = arith.constant 0 : index
    %151 = vector.load %arg14[%c1_128, %c2_129, %c0_130] : memref<2x10x256xf32, #tpu.memory_space<vmem>>, vector<1x1x256xf32>
    %152 = vector.shape_cast %151 : vector<1x1x256xf32> to vector<1x256xf32>
    %153 = vector.shape_cast %150 : vector<1x256xf32> to vector<1x1x256xf32>
    tpu.vector_store %arg14[%c1_128, %c2_129, %c0_130], %153 {strides = array<i32>} : memref<2x10x256xf32, #tpu.memory_space<vmem>>, vector<1x1x256xf32>,
    %154 = vector.extract_strided_slice %145 {offsets = [1, 0], sizes = [1, 256], strides = [1, 1]} : vector<4x512xf32> to vector<1x256xf32>
    %c1_131 = arith.constant 1 : index
    %c3_132 = arith.constant 3 : index
    %c0_133 = arith.constant 0 : index
    %155 = vector.load %arg14[%c1_131, %c3_132, %c0_133] : memref<2x10x256xf32, #tpu.memory_space<vmem>>, vector<1x1x256xf32>
    %156 = vector.shape_cast %155 : vector<1x1x256xf32> to vector<1x256xf32>
    %157 = vector.shape_cast %154 : vector<1x256xf32> to vector<1x1x256xf32>
    tpu.vector_store %arg14[%c1_131, %c3_132, %c0_133], %157 {strides = array<i32>} : memref<2x10x256xf32, #tpu.memory_space<vmem>>, vector<1x1x256xf32>,
    %158 = vector.extract_strided_slice %145 {offsets = [1, 256], sizes = [1, 256], strides = [1, 1]} : vector<4x512xf32> to vector<1x256xf32>
    %c1_134 = arith.constant 1 : index
    %c4_135 = arith.constant 4 : index
    %c0_136 = arith.constant 0 : index
    %159 = vector.load %arg14[%c1_134, %c4_135, %c0_136] : memref<2x10x256xf32, #tpu.memory_space<vmem>>, vector<1x1x256xf32>
    %160 = vector.shape_cast %159 : vector<1x1x256xf32> to vector<1x256xf32>
    %161 = vector.shape_cast %158 : vector<1x256xf32> to vector<1x1x256xf32>
    tpu.vector_store %arg14[%c1_134, %c4_135, %c0_136], %161 {strides = array<i32>} : memref<2x10x256xf32, #tpu.memory_space<vmem>>, vector<1x1x256xf32>,
    %162 = vector.extract_strided_slice %145 {offsets = [2, 0], sizes = [1, 256], strides = [1, 1]} : vector<4x512xf32> to vector<1x256xf32>
    %c1_137 = arith.constant 1 : index
    %c5_138 = arith.constant 5 : index
    %c0_139 = arith.constant 0 : index
    %163 = vector.load %arg14[%c1_137, %c5_138, %c0_139] : memref<2x10x256xf32, #tpu.memory_space<vmem>>, vector<1x1x256xf32>
    %164 = vector.shape_cast %163 : vector<1x1x256xf32> to vector<1x256xf32>
    %165 = vector.shape_cast %162 : vector<1x256xf32> to vector<1x1x256xf32>
    tpu.vector_store %arg14[%c1_137, %c5_138, %c0_139], %165 {strides = array<i32>} : memref<2x10x256xf32, #tpu.memory_space<vmem>>, vector<1x1x256xf32>,
    %166 = vector.extract_strided_slice %145 {offsets = [2, 256], sizes = [1, 256], strides = [1, 1]} : vector<4x512xf32> to vector<1x256xf32>
    %c1_140 = arith.constant 1 : index
    %c6_141 = arith.constant 6 : index
    %c0_142 = arith.constant 0 : index
    %167 = vector.load %arg14[%c1_140, %c6_141, %c0_142] : memref<2x10x256xf32, #tpu.memory_space<vmem>>, vector<1x1x256xf32>
    %168 = vector.shape_cast %167 : vector<1x1x256xf32> to vector<1x256xf32>
    %169 = vector.shape_cast %166 : vector<1x256xf32> to vector<1x1x256xf32>
    tpu.vector_store %arg14[%c1_140, %c6_141, %c0_142], %169 {strides = array<i32>} : memref<2x10x256xf32, #tpu.memory_space<vmem>>, vector<1x1x256xf32>,
    %170 = vector.extract_strided_slice %145 {offsets = [3, 0], sizes = [1, 256], strides = [1, 1]} : vector<4x512xf32> to vector<1x256xf32>
    %c1_143 = arith.constant 1 : index
    %c7_144 = arith.constant 7 : index
    %c0_145 = arith.constant 0 : index
    %171 = vector.load %arg14[%c1_143, %c7_144, %c0_145] : memref<2x10x256xf32, #tpu.memory_space<vmem>>, vector<1x1x256xf32>
    %172 = vector.shape_cast %171 : vector<1x1x256xf32> to vector<1x256xf32>
    %173 = vector.shape_cast %170 : vector<1x256xf32> to vector<1x1x256xf32>
    tpu.vector_store %arg14[%c1_143, %c7_144, %c0_145], %173 {strides = array<i32>} : memref<2x10x256xf32, #tpu.memory_space<vmem>>, vector<1x1x256xf32>,
    %174 = vector.extract_strided_slice %145 {offsets = [3, 256], sizes = [1, 256], strides = [1, 1]} : vector<4x512xf32> to vector<1x256xf32>
    %c1_146 = arith.constant 1 : index
    %c8_147 = arith.constant 8 : index
    %c0_148 = arith.constant 0 : index
    %175 = vector.load %arg14[%c1_146, %c8_147, %c0_148] : memref<2x10x256xf32, #tpu.memory_space<vmem>>, vector<1x1x256xf32>
    %176 = vector.shape_cast %175 : vector<1x1x256xf32> to vector<1x256xf32>
    %177 = vector.shape_cast %174 : vector<1x256xf32> to vector<1x1x256xf32>
    tpu.vector_store %arg14[%c1_146, %c8_147, %c0_148], %177 {strides = array<i32>} : memref<2x10x256xf32, #tpu.memory_space<vmem>>, vector<1x1x256xf32>,
    %c0_149 = arith.constant 0 : index
    %c0_150 = arith.constant 0 : index
    %178 = vector.load %arg7[%c0_149, %c0_150] : memref<768x512xf32, #tpu.memory_space<vmem>>, vector<768x512xf32>
    %c0_151 = arith.constant 0 : index
    %c0_152 = arith.constant 0 : index
    %179 = vector.load %arg8[%c0_151, %c0_152] : memref<1x512xf32, #tpu.memory_space<vmem>>, vector<1x512xf32>
    %c0_153 = arith.constant 0 : index
    %c0_154 = arith.constant 0 : index
    %c0_155 = arith.constant 0 : index
    %180 = vector.load %arg14[%c0_153, %c0_154, %c0_155] : memref<2x10x256xf32, #tpu.memory_space<vmem>>, vector<1x8x256xf32>
    %181 = vector.shape_cast %180 : vector<1x8x256xf32> to vector<8x256xf32>
    %c0_156 = arith.constant 0 : index
    %c1_157 = arith.constant 1 : index
    %c0_158 = arith.constant 0 : index
    %182 = vector.load %arg14[%c0_156, %c1_157, %c0_158] : memref<2x10x256xf32, #tpu.memory_space<vmem>>, vector<1x8x256xf32>
    %183 = vector.shape_cast %182 : vector<1x8x256xf32> to vector<8x256xf32>
    %c0_159 = arith.constant 0 : index
    %c2_160 = arith.constant 2 : index
    %c0_161 = arith.constant 0 : index
    %184 = vector.load %arg14[%c0_159, %c2_160, %c0_161] : memref<2x10x256xf32, #tpu.memory_space<vmem>>, vector<1x8x256xf32>
    %185 = vector.shape_cast %184 : vector<1x8x256xf32> to vector<8x256xf32>
    %186 = tpu.concatenate %181, %183, %185 in 1 : vector<8x256xf32>, vector<8x256xf32>, vector<8x256xf32> -> vector<8x768xf32>
    %cst_162 = arith.constant dense<0.000000e+00> : vector<8x512xf32>
    %187 = tpu.matmul %186, %178, %cst_162 {dimension_numbers = #tpu.dot_dimension_numbers<[1], [0], [0], [1], [0, 0, 1, 1], [], []>} : vector<8x768xf32>, vector<768x512xf32>, vector<8x512xf32> -> vector<8x512xf32>
    %188 = vector.broadcast %179 : vector<1x512xf32> to vector<8x512xf32>
    %189 = arith.addf %187, %188 : vector<8x512xf32>
    %cst_163 = arith.constant 0.000000e+00 : f32
    %190 = vector.broadcast %cst_163 : f32 to vector<8x512xf32>
    %191 = arith.maximumf %189, %190 : vector<8x512xf32>
    %192 = vector.extract_strided_slice %191 {offsets = [0, 0], sizes = [1, 256], strides = [1, 1]} : vector<8x512xf32> to vector<1x256xf32>
    %c0_164 = arith.constant 0 : index
    %c1_165 = arith.constant 1 : index
    %c0_166 = arith.constant 0 : index
    %193 = vector.load %arg15[%c0_164, %c1_165, %c0_166] : memref<2x18x256xf32, #tpu.memory_space<vmem>>, vector<1x1x256xf32>
    %194 = vector.shape_cast %193 : vector<1x1x256xf32> to vector<1x256xf32>
    %195 = vector.shape_cast %192 : vector<1x256xf32> to vector<1x1x256xf32>
    tpu.vector_store %arg15[%c0_164, %c1_165, %c0_166], %195 {strides = array<i32>} : memref<2x18x256xf32, #tpu.memory_space<vmem>>, vector<1x1x256xf32>,
    %196 = vector.extract_strided_slice %191 {offsets = [0, 256], sizes = [1, 256], strides = [1, 1]} : vector<8x512xf32> to vector<1x256xf32>
    %c0_167 = arith.constant 0 : index
    %c2_168 = arith.constant 2 : index
    %c0_169 = arith.constant 0 : index
    %197 = vector.load %arg15[%c0_167, %c2_168, %c0_169] : memref<2x18x256xf32, #tpu.memory_space<vmem>>, vector<1x1x256xf32>
    %198 = vector.shape_cast %197 : vector<1x1x256xf32> to vector<1x256xf32>
    %199 = vector.shape_cast %196 : vector<1x256xf32> to vector<1x1x256xf32>
    tpu.vector_store %arg15[%c0_167, %c2_168, %c0_169], %199 {strides = array<i32>} : memref<2x18x256xf32, #tpu.memory_space<vmem>>, vector<1x1x256xf32>,
    %200 = vector.extract_strided_slice %191 {offsets = [1, 0], sizes = [1, 256], strides = [1, 1]} : vector<8x512xf32> to vector<1x256xf32>
    %c0_170 = arith.constant 0 : index
    %c3_171 = arith.constant 3 : index
    %c0_172 = arith.constant 0 : index
    %201 = vector.load %arg15[%c0_170, %c3_171, %c0_172] : memref<2x18x256xf32, #tpu.memory_space<vmem>>, vector<1x1x256xf32>
    %202 = vector.shape_cast %201 : vector<1x1x256xf32> to vector<1x256xf32>
    %203 = vector.shape_cast %200 : vector<1x256xf32> to vector<1x1x256xf32>
    tpu.vector_store %arg15[%c0_170, %c3_171, %c0_172], %203 {strides = array<i32>} : memref<2x18x256xf32, #tpu.memory_space<vmem>>, vector<1x1x256xf32>,
    %204 = vector.extract_strided_slice %191 {offsets = [1, 256], sizes = [1, 256], strides = [1, 1]} : vector<8x512xf32> to vector<1x256xf32>
    %c0_173 = arith.constant 0 : index
    %c4_174 = arith.constant 4 : index
    %c0_175 = arith.constant 0 : index
    %205 = vector.load %arg15[%c0_173, %c4_174, %c0_175] : memref<2x18x256xf32, #tpu.memory_space<vmem>>, vector<1x1x256xf32>
    %206 = vector.shape_cast %205 : vector<1x1x256xf32> to vector<1x256xf32>
    %207 = vector.shape_cast %204 : vector<1x256xf32> to vector<1x1x256xf32>
    tpu.vector_store %arg15[%c0_173, %c4_174, %c0_175], %207 {strides = array<i32>} : memref<2x18x256xf32, #tpu.memory_space<vmem>>, vector<1x1x256xf32>,
    %208 = vector.extract_strided_slice %191 {offsets = [2, 0], sizes = [1, 256], strides = [1, 1]} : vector<8x512xf32> to vector<1x256xf32>
    %c0_176 = arith.constant 0 : index
    %c5_177 = arith.constant 5 : index
    %c0_178 = arith.constant 0 : index
    %209 = vector.load %arg15[%c0_176, %c5_177, %c0_178] : memref<2x18x256xf32, #tpu.memory_space<vmem>>, vector<1x1x256xf32>
    %210 = vector.shape_cast %209 : vector<1x1x256xf32> to vector<1x256xf32>
    %211 = vector.shape_cast %208 : vector<1x256xf32> to vector<1x1x256xf32>
    tpu.vector_store %arg15[%c0_176, %c5_177, %c0_178], %211 {strides = array<i32>} : memref<2x18x256xf32, #tpu.memory_space<vmem>>, vector<1x1x256xf32>,
    %212 = vector.extract_strided_slice %191 {offsets = [2, 256], sizes = [1, 256], strides = [1, 1]} : vector<8x512xf32> to vector<1x256xf32>
    %c0_179 = arith.constant 0 : index
    %c6_180 = arith.constant 6 : index
    %c0_181 = arith.constant 0 : index
    %213 = vector.load %arg15[%c0_179, %c6_180, %c0_181] : memref<2x18x256xf32, #tpu.memory_space<vmem>>, vector<1x1x256xf32>
    %214 = vector.shape_cast %213 : vector<1x1x256xf32> to vector<1x256xf32>
    %215 = vector.shape_cast %212 : vector<1x256xf32> to vector<1x1x256xf32>
    tpu.vector_store %arg15[%c0_179, %c6_180, %c0_181], %215 {strides = array<i32>} : memref<2x18x256xf32, #tpu.memory_space<vmem>>, vector<1x1x256xf32>,
    %216 = vector.extract_strided_slice %191 {offsets = [3, 0], sizes = [1, 256], strides = [1, 1]} : vector<8x512xf32> to vector<1x256xf32>
    %c0_182 = arith.constant 0 : index
    %c7_183 = arith.constant 7 : index
    %c0_184 = arith.constant 0 : index
    %217 = vector.load %arg15[%c0_182, %c7_183, %c0_184] : memref<2x18x256xf32, #tpu.memory_space<vmem>>, vector<1x1x256xf32>
    %218 = vector.shape_cast %217 : vector<1x1x256xf32> to vector<1x256xf32>
    %219 = vector.shape_cast %216 : vector<1x256xf32> to vector<1x1x256xf32>
    tpu.vector_store %arg15[%c0_182, %c7_183, %c0_184], %219 {strides = array<i32>} : memref<2x18x256xf32, #tpu.memory_space<vmem>>, vector<1x1x256xf32>,
    %220 = vector.extract_strided_slice %191 {offsets = [3, 256], sizes = [1, 256], strides = [1, 1]} : vector<8x512xf32> to vector<1x256xf32>
    %c0_185 = arith.constant 0 : index
    %c8_186 = arith.constant 8 : index
    %c0_187 = arith.constant 0 : index
    %221 = vector.load %arg15[%c0_185, %c8_186, %c0_187] : memref<2x18x256xf32, #tpu.memory_space<vmem>>, vector<1x1x256xf32>
    %222 = vector.shape_cast %221 : vector<1x1x256xf32> to vector<1x256xf32>
    %223 = vector.shape_cast %220 : vector<1x256xf32> to vector<1x1x256xf32>
    tpu.vector_store %arg15[%c0_185, %c8_186, %c0_187], %223 {strides = array<i32>} : memref<2x18x256xf32, #tpu.memory_space<vmem>>, vector<1x1x256xf32>,
    %224 = vector.extract_strided_slice %191 {offsets = [4, 0], sizes = [1, 256], strides = [1, 1]} : vector<8x512xf32> to vector<1x256xf32>
    %c0_188 = arith.constant 0 : index
    %c9 = arith.constant 9 : index
    %c0_189 = arith.constant 0 : index
    %225 = vector.load %arg15[%c0_188, %c9, %c0_189] : memref<2x18x256xf32, #tpu.memory_space<vmem>>, vector<1x1x256xf32>
    %226 = vector.shape_cast %225 : vector<1x1x256xf32> to vector<1x256xf32>
    %227 = vector.shape_cast %224 : vector<1x256xf32> to vector<1x1x256xf32>
    tpu.vector_store %arg15[%c0_188, %c9, %c0_189], %227 {strides = array<i32>} : memref<2x18x256xf32, #tpu.memory_space<vmem>>, vector<1x1x256xf32>,
    %228 = vector.extract_strided_slice %191 {offsets = [4, 256], sizes = [1, 256], strides = [1, 1]} : vector<8x512xf32> to vector<1x256xf32>
    %c0_190 = arith.constant 0 : index
    %c10 = arith.constant 10 : index
    %c0_191 = arith.constant 0 : index
    %229 = vector.load %arg15[%c0_190, %c10, %c0_191] : memref<2x18x256xf32, #tpu.memory_space<vmem>>, vector<1x1x256xf32>
    %230 = vector.shape_cast %229 : vector<1x1x256xf32> to vector<1x256xf32>
    %231 = vector.shape_cast %228 : vector<1x256xf32> to vector<1x1x256xf32>
    tpu.vector_store %arg15[%c0_190, %c10, %c0_191], %231 {strides = array<i32>} : memref<2x18x256xf32, #tpu.memory_space<vmem>>, vector<1x1x256xf32>,
    %232 = vector.extract_strided_slice %191 {offsets = [5, 0], sizes = [1, 256], strides = [1, 1]} : vector<8x512xf32> to vector<1x256xf32>
    %c0_192 = arith.constant 0 : index
    %c11 = arith.constant 11 : index
    %c0_193 = arith.constant 0 : index
    %233 = vector.load %arg15[%c0_192, %c11, %c0_193] : memref<2x18x256xf32, #tpu.memory_space<vmem>>, vector<1x1x256xf32>
    %234 = vector.shape_cast %233 : vector<1x1x256xf32> to vector<1x256xf32>
    %235 = vector.shape_cast %232 : vector<1x256xf32> to vector<1x1x256xf32>
    tpu.vector_store %arg15[%c0_192, %c11, %c0_193], %235 {strides = array<i32>} : memref<2x18x256xf32, #tpu.memory_space<vmem>>, vector<1x1x256xf32>,
    %236 = vector.extract_strided_slice %191 {offsets = [5, 256], sizes = [1, 256], strides = [1, 1]} : vector<8x512xf32> to vector<1x256xf32>
    %c0_194 = arith.constant 0 : index
    %c12 = arith.constant 12 : index
    %c0_195 = arith.constant 0 : index
    %237 = vector.load %arg15[%c0_194, %c12, %c0_195] : memref<2x18x256xf32, #tpu.memory_space<vmem>>, vector<1x1x256xf32>
    %238 = vector.shape_cast %237 : vector<1x1x256xf32> to vector<1x256xf32>
    %239 = vector.shape_cast %236 : vector<1x256xf32> to vector<1x1x256xf32>
    tpu.vector_store %arg15[%c0_194, %c12, %c0_195], %239 {strides = array<i32>} : memref<2x18x256xf32, #tpu.memory_space<vmem>>, vector<1x1x256xf32>,
    %240 = vector.extract_strided_slice %191 {offsets = [6, 0], sizes = [1, 256], strides = [1, 1]} : vector<8x512xf32> to vector<1x256xf32>
    %c0_196 = arith.constant 0 : index
    %c13 = arith.constant 13 : index
    %c0_197 = arith.constant 0 : index
    %241 = vector.load %arg15[%c0_196, %c13, %c0_197] : memref<2x18x256xf32, #tpu.memory_space<vmem>>, vector<1x1x256xf32>
    %242 = vector.shape_cast %241 : vector<1x1x256xf32> to vector<1x256xf32>
    %243 = vector.shape_cast %240 : vector<1x256xf32> to vector<1x1x256xf32>
    tpu.vector_store %arg15[%c0_196, %c13, %c0_197], %243 {strides = array<i32>} : memref<2x18x256xf32, #tpu.memory_space<vmem>>, vector<1x1x256xf32>,
    %244 = vector.extract_strided_slice %191 {offsets = [6, 256], sizes = [1, 256], strides = [1, 1]} : vector<8x512xf32> to vector<1x256xf32>
    %c0_198 = arith.constant 0 : index
    %c14 = arith.constant 14 : index
    %c0_199 = arith.constant 0 : index
    %245 = vector.load %arg15[%c0_198, %c14, %c0_199] : memref<2x18x256xf32, #tpu.memory_space<vmem>>, vector<1x1x256xf32>
    %246 = vector.shape_cast %245 : vector<1x1x256xf32> to vector<1x256xf32>
    %247 = vector.shape_cast %244 : vector<1x256xf32> to vector<1x1x256xf32>
    tpu.vector_store %arg15[%c0_198, %c14, %c0_199], %247 {strides = array<i32>} : memref<2x18x256xf32, #tpu.memory_space<vmem>>, vector<1x1x256xf32>,
    %248 = vector.extract_strided_slice %191 {offsets = [7, 0], sizes = [1, 256], strides = [1, 1]} : vector<8x512xf32> to vector<1x256xf32>
    %c0_200 = arith.constant 0 : index
    %c15 = arith.constant 15 : index
    %c0_201 = arith.constant 0 : index
    %249 = vector.load %arg15[%c0_200, %c15, %c0_201] : memref<2x18x256xf32, #tpu.memory_space<vmem>>, vector<1x1x256xf32>
    %250 = vector.shape_cast %249 : vector<1x1x256xf32> to vector<1x256xf32>
    %251 = vector.shape_cast %248 : vector<1x256xf32> to vector<1x1x256xf32>
    tpu.vector_store %arg15[%c0_200, %c15, %c0_201], %251 {strides = array<i32>} : memref<2x18x256xf32, #tpu.memory_space<vmem>>, vector<1x1x256xf32>,
    %252 = vector.extract_strided_slice %191 {offsets = [7, 256], sizes = [1, 256], strides = [1, 1]} : vector<8x512xf32> to vector<1x256xf32>
    %c0_202 = arith.constant 0 : index
    %c16 = arith.constant 16 : index
    %c0_203 = arith.constant 0 : index
    %253 = vector.load %arg15[%c0_202, %c16, %c0_203] : memref<2x18x256xf32, #tpu.memory_space<vmem>>, vector<1x1x256xf32>
    %254 = vector.shape_cast %253 : vector<1x1x256xf32> to vector<1x256xf32>
    %255 = vector.shape_cast %252 : vector<1x256xf32> to vector<1x1x256xf32>
    tpu.vector_store %arg15[%c0_202, %c16, %c0_203], %255 {strides = array<i32>} : memref<2x18x256xf32, #tpu.memory_space<vmem>>, vector<1x1x256xf32>,
    %c1_204 = arith.constant 1 : index
    %c0_205 = arith.constant 0 : index
    %c0_206 = arith.constant 0 : index
    %256 = vector.load %arg14[%c1_204, %c0_205, %c0_206] : memref<2x10x256xf32, #tpu.memory_space<vmem>>, vector<1x8x256xf32>
    %257 = vector.shape_cast %256 : vector<1x8x256xf32> to vector<8x256xf32>
    %c1_207 = arith.constant 1 : index
    %c1_208 = arith.constant 1 : index
    %c0_209 = arith.constant 0 : index
    %258 = vector.load %arg14[%c1_207, %c1_208, %c0_209] : memref<2x10x256xf32, #tpu.memory_space<vmem>>, vector<1x8x256xf32>
    %259 = vector.shape_cast %258 : vector<1x8x256xf32> to vector<8x256xf32>
    %c1_210 = arith.constant 1 : index
    %c2_211 = arith.constant 2 : index
    %c0_212 = arith.constant 0 : index
    %260 = vector.load %arg14[%c1_210, %c2_211, %c0_212] : memref<2x10x256xf32, #tpu.memory_space<vmem>>, vector<1x8x256xf32>
    %261 = vector.shape_cast %260 : vector<1x8x256xf32> to vector<8x256xf32>
    %262 = tpu.concatenate %257, %259, %261 in 1 : vector<8x256xf32>, vector<8x256xf32>, vector<8x256xf32> -> vector<8x768xf32>
    %cst_213 = arith.constant dense<0.000000e+00> : vector<8x512xf32>
    %263 = tpu.matmul %262, %178, %cst_213 {dimension_numbers = #tpu.dot_dimension_numbers<[1], [0], [0], [1], [0, 0, 1, 1], [], []>} : vector<8x768xf32>, vector<768x512xf32>, vector<8x512xf32> -> vector<8x512xf32>
    %264 = vector.broadcast %179 : vector<1x512xf32> to vector<8x512xf32>
    %265 = arith.addf %263, %264 : vector<8x512xf32>
    %cst_214 = arith.constant 0.000000e+00 : f32
    %266 = vector.broadcast %cst_214 : f32 to vector<8x512xf32>
    %267 = arith.maximumf %265, %266 : vector<8x512xf32>
    %268 = vector.extract_strided_slice %267 {offsets = [0, 0], sizes = [1, 256], strides = [1, 1]} : vector<8x512xf32> to vector<1x256xf32>
    %c1_215 = arith.constant 1 : index
    %c1_216 = arith.constant 1 : index
    %c0_217 = arith.constant 0 : index
    %269 = vector.load %arg15[%c1_215, %c1_216, %c0_217] : memref<2x18x256xf32, #tpu.memory_space<vmem>>, vector<1x1x256xf32>
    %270 = vector.shape_cast %269 : vector<1x1x256xf32> to vector<1x256xf32>
    %271 = vector.shape_cast %268 : vector<1x256xf32> to vector<1x1x256xf32>
    tpu.vector_store %arg15[%c1_215, %c1_216, %c0_217], %271 {strides = array<i32>} : memref<2x18x256xf32, #tpu.memory_space<vmem>>, vector<1x1x256xf32>,
    %272 = vector.extract_strided_slice %267 {offsets = [0, 256], sizes = [1, 256], strides = [1, 1]} : vector<8x512xf32> to vector<1x256xf32>
    %c1_218 = arith.constant 1 : index
    %c2_219 = arith.constant 2 : index
    %c0_220 = arith.constant 0 : index
    %273 = vector.load %arg15[%c1_218, %c2_219, %c0_220] : memref<2x18x256xf32, #tpu.memory_space<vmem>>, vector<1x1x256xf32>
    %274 = vector.shape_cast %273 : vector<1x1x256xf32> to vector<1x256xf32>
    %275 = vector.shape_cast %272 : vector<1x256xf32> to vector<1x1x256xf32>
    tpu.vector_store %arg15[%c1_218, %c2_219, %c0_220], %275 {strides = array<i32>} : memref<2x18x256xf32, #tpu.memory_space<vmem>>, vector<1x1x256xf32>,
    %276 = vector.extract_strided_slice %267 {offsets = [1, 0], sizes = [1, 256], strides = [1, 1]} : vector<8x512xf32> to vector<1x256xf32>
    %c1_221 = arith.constant 1 : index
    %c3_222 = arith.constant 3 : index
    %c0_223 = arith.constant 0 : index
    %277 = vector.load %arg15[%c1_221, %c3_222, %c0_223] : memref<2x18x256xf32, #tpu.memory_space<vmem>>, vector<1x1x256xf32>
    %278 = vector.shape_cast %277 : vector<1x1x256xf32> to vector<1x256xf32>
    %279 = vector.shape_cast %276 : vector<1x256xf32> to vector<1x1x256xf32>
    tpu.vector_store %arg15[%c1_221, %c3_222, %c0_223], %279 {strides = array<i32>} : memref<2x18x256xf32, #tpu.memory_space<vmem>>, vector<1x1x256xf32>,
    %280 = vector.extract_strided_slice %267 {offsets = [1, 256], sizes = [1, 256], strides = [1, 1]} : vector<8x512xf32> to vector<1x256xf32>
    %c1_224 = arith.constant 1 : index
    %c4_225 = arith.constant 4 : index
    %c0_226 = arith.constant 0 : index
    %281 = vector.load %arg15[%c1_224, %c4_225, %c0_226] : memref<2x18x256xf32, #tpu.memory_space<vmem>>, vector<1x1x256xf32>
    %282 = vector.shape_cast %281 : vector<1x1x256xf32> to vector<1x256xf32>
    %283 = vector.shape_cast %280 : vector<1x256xf32> to vector<1x1x256xf32>
    tpu.vector_store %arg15[%c1_224, %c4_225, %c0_226], %283 {strides = array<i32>} : memref<2x18x256xf32, #tpu.memory_space<vmem>>, vector<1x1x256xf32>,
    %284 = vector.extract_strided_slice %267 {offsets = [2, 0], sizes = [1, 256], strides = [1, 1]} : vector<8x512xf32> to vector<1x256xf32>
    %c1_227 = arith.constant 1 : index
    %c5_228 = arith.constant 5 : index
    %c0_229 = arith.constant 0 : index
    %285 = vector.load %arg15[%c1_227, %c5_228, %c0_229] : memref<2x18x256xf32, #tpu.memory_space<vmem>>, vector<1x1x256xf32>
    %286 = vector.shape_cast %285 : vector<1x1x256xf32> to vector<1x256xf32>
    %287 = vector.shape_cast %284 : vector<1x256xf32> to vector<1x1x256xf32>
    tpu.vector_store %arg15[%c1_227, %c5_228, %c0_229], %287 {strides = array<i32>} : memref<2x18x256xf32, #tpu.memory_space<vmem>>, vector<1x1x256xf32>,
    %288 = vector.extract_strided_slice %267 {offsets = [2, 256], sizes = [1, 256], strides = [1, 1]} : vector<8x512xf32> to vector<1x256xf32>
    %c1_230 = arith.constant 1 : index
    %c6_231 = arith.constant 6 : index
    %c0_232 = arith.constant 0 : index
    %289 = vector.load %arg15[%c1_230, %c6_231, %c0_232] : memref<2x18x256xf32, #tpu.memory_space<vmem>>, vector<1x1x256xf32>
    %290 = vector.shape_cast %289 : vector<1x1x256xf32> to vector<1x256xf32>
    %291 = vector.shape_cast %288 : vector<1x256xf32> to vector<1x1x256xf32>
    tpu.vector_store %arg15[%c1_230, %c6_231, %c0_232], %291 {strides = array<i32>} : memref<2x18x256xf32, #tpu.memory_space<vmem>>, vector<1x1x256xf32>,
    %292 = vector.extract_strided_slice %267 {offsets = [3, 0], sizes = [1, 256], strides = [1, 1]} : vector<8x512xf32> to vector<1x256xf32>
    %c1_233 = arith.constant 1 : index
    %c7_234 = arith.constant 7 : index
    %c0_235 = arith.constant 0 : index
    %293 = vector.load %arg15[%c1_233, %c7_234, %c0_235] : memref<2x18x256xf32, #tpu.memory_space<vmem>>, vector<1x1x256xf32>
    %294 = vector.shape_cast %293 : vector<1x1x256xf32> to vector<1x256xf32>
    %295 = vector.shape_cast %292 : vector<1x256xf32> to vector<1x1x256xf32>
    tpu.vector_store %arg15[%c1_233, %c7_234, %c0_235], %295 {strides = array<i32>} : memref<2x18x256xf32, #tpu.memory_space<vmem>>, vector<1x1x256xf32>,
    %296 = vector.extract_strided_slice %267 {offsets = [3, 256], sizes = [1, 256], strides = [1, 1]} : vector<8x512xf32> to vector<1x256xf32>
    %c1_236 = arith.constant 1 : index
    %c8_237 = arith.constant 8 : index
    %c0_238 = arith.constant 0 : index
    %297 = vector.load %arg15[%c1_236, %c8_237, %c0_238] : memref<2x18x256xf32, #tpu.memory_space<vmem>>, vector<1x1x256xf32>
    %298 = vector.shape_cast %297 : vector<1x1x256xf32> to vector<1x256xf32>
    %299 = vector.shape_cast %296 : vector<1x256xf32> to vector<1x1x256xf32>
    tpu.vector_store %arg15[%c1_236, %c8_237, %c0_238], %299 {strides = array<i32>} : memref<2x18x256xf32, #tpu.memory_space<vmem>>, vector<1x1x256xf32>,
    %300 = vector.extract_strided_slice %267 {offsets = [4, 0], sizes = [1, 256], strides = [1, 1]} : vector<8x512xf32> to vector<1x256xf32>
    %c1_239 = arith.constant 1 : index
    %c9_240 = arith.constant 9 : index
    %c0_241 = arith.constant 0 : index
    %301 = vector.load %arg15[%c1_239, %c9_240, %c0_241] : memref<2x18x256xf32, #tpu.memory_space<vmem>>, vector<1x1x256xf32>
    %302 = vector.shape_cast %301 : vector<1x1x256xf32> to vector<1x256xf32>
    %303 = vector.shape_cast %300 : vector<1x256xf32> to vector<1x1x256xf32>
    tpu.vector_store %arg15[%c1_239, %c9_240, %c0_241], %303 {strides = array<i32>} : memref<2x18x256xf32, #tpu.memory_space<vmem>>, vector<1x1x256xf32>,
    %304 = vector.extract_strided_slice %267 {offsets = [4, 256], sizes = [1, 256], strides = [1, 1]} : vector<8x512xf32> to vector<1x256xf32>
    %c1_242 = arith.constant 1 : index
    %c10_243 = arith.constant 10 : index
    %c0_244 = arith.constant 0 : index
    %305 = vector.load %arg15[%c1_242, %c10_243, %c0_244] : memref<2x18x256xf32, #tpu.memory_space<vmem>>, vector<1x1x256xf32>
    %306 = vector.shape_cast %305 : vector<1x1x256xf32> to vector<1x256xf32>
    %307 = vector.shape_cast %304 : vector<1x256xf32> to vector<1x1x256xf32>
    tpu.vector_store %arg15[%c1_242, %c10_243, %c0_244], %307 {strides = array<i32>} : memref<2x18x256xf32, #tpu.memory_space<vmem>>, vector<1x1x256xf32>,
    %308 = vector.extract_strided_slice %267 {offsets = [5, 0], sizes = [1, 256], strides = [1, 1]} : vector<8x512xf32> to vector<1x256xf32>
    %c1_245 = arith.constant 1 : index
    %c11_246 = arith.constant 11 : index
    %c0_247 = arith.constant 0 : index
    %309 = vector.load %arg15[%c1_245, %c11_246, %c0_247] : memref<2x18x256xf32, #tpu.memory_space<vmem>>, vector<1x1x256xf32>
    %310 = vector.shape_cast %309 : vector<1x1x256xf32> to vector<1x256xf32>
    %311 = vector.shape_cast %308 : vector<1x256xf32> to vector<1x1x256xf32>
    tpu.vector_store %arg15[%c1_245, %c11_246, %c0_247], %311 {strides = array<i32>} : memref<2x18x256xf32, #tpu.memory_space<vmem>>, vector<1x1x256xf32>,
    %312 = vector.extract_strided_slice %267 {offsets = [5, 256], sizes = [1, 256], strides = [1, 1]} : vector<8x512xf32> to vector<1x256xf32>
    %c1_248 = arith.constant 1 : index
    %c12_249 = arith.constant 12 : index
    %c0_250 = arith.constant 0 : index
    %313 = vector.load %arg15[%c1_248, %c12_249, %c0_250] : memref<2x18x256xf32, #tpu.memory_space<vmem>>, vector<1x1x256xf32>
    %314 = vector.shape_cast %313 : vector<1x1x256xf32> to vector<1x256xf32>
    %315 = vector.shape_cast %312 : vector<1x256xf32> to vector<1x1x256xf32>
    tpu.vector_store %arg15[%c1_248, %c12_249, %c0_250], %315 {strides = array<i32>} : memref<2x18x256xf32, #tpu.memory_space<vmem>>, vector<1x1x256xf32>,
    %316 = vector.extract_strided_slice %267 {offsets = [6, 0], sizes = [1, 256], strides = [1, 1]} : vector<8x512xf32> to vector<1x256xf32>
    %c1_251 = arith.constant 1 : index
    %c13_252 = arith.constant 13 : index
    %c0_253 = arith.constant 0 : index
    %317 = vector.load %arg15[%c1_251, %c13_252, %c0_253] : memref<2x18x256xf32, #tpu.memory_space<vmem>>, vector<1x1x256xf32>
    %318 = vector.shape_cast %317 : vector<1x1x256xf32> to vector<1x256xf32>
    %319 = vector.shape_cast %316 : vector<1x256xf32> to vector<1x1x256xf32>
    tpu.vector_store %arg15[%c1_251, %c13_252, %c0_253], %319 {strides = array<i32>} : memref<2x18x256xf32, #tpu.memory_space<vmem>>, vector<1x1x256xf32>,
    %320 = vector.extract_strided_slice %267 {offsets = [6, 256], sizes = [1, 256], strides = [1, 1]} : vector<8x512xf32> to vector<1x256xf32>
    %c1_254 = arith.constant 1 : index
    %c14_255 = arith.constant 14 : index
    %c0_256 = arith.constant 0 : index
    %321 = vector.load %arg15[%c1_254, %c14_255, %c0_256] : memref<2x18x256xf32, #tpu.memory_space<vmem>>, vector<1x1x256xf32>
    %322 = vector.shape_cast %321 : vector<1x1x256xf32> to vector<1x256xf32>
    %323 = vector.shape_cast %320 : vector<1x256xf32> to vector<1x1x256xf32>
    tpu.vector_store %arg15[%c1_254, %c14_255, %c0_256], %323 {strides = array<i32>} : memref<2x18x256xf32, #tpu.memory_space<vmem>>, vector<1x1x256xf32>,
    %324 = vector.extract_strided_slice %267 {offsets = [7, 0], sizes = [1, 256], strides = [1, 1]} : vector<8x512xf32> to vector<1x256xf32>
    %c1_257 = arith.constant 1 : index
    %c15_258 = arith.constant 15 : index
    %c0_259 = arith.constant 0 : index
    %325 = vector.load %arg15[%c1_257, %c15_258, %c0_259] : memref<2x18x256xf32, #tpu.memory_space<vmem>>, vector<1x1x256xf32>
    %326 = vector.shape_cast %325 : vector<1x1x256xf32> to vector<1x256xf32>
    %327 = vector.shape_cast %324 : vector<1x256xf32> to vector<1x1x256xf32>
    tpu.vector_store %arg15[%c1_257, %c15_258, %c0_259], %327 {strides = array<i32>} : memref<2x18x256xf32, #tpu.memory_space<vmem>>, vector<1x1x256xf32>,
    %328 = vector.extract_strided_slice %267 {offsets = [7, 256], sizes = [1, 256], strides = [1, 1]} : vector<8x512xf32> to vector<1x256xf32>
    %c1_260 = arith.constant 1 : index
    %c16_261 = arith.constant 16 : index
    %c0_262 = arith.constant 0 : index
    %329 = vector.load %arg15[%c1_260, %c16_261, %c0_262] : memref<2x18x256xf32, #tpu.memory_space<vmem>>, vector<1x1x256xf32>
    %330 = vector.shape_cast %329 : vector<1x1x256xf32> to vector<1x256xf32>
    %331 = vector.shape_cast %328 : vector<1x256xf32> to vector<1x1x256xf32>
    tpu.vector_store %arg15[%c1_260, %c16_261, %c0_262], %331 {strides = array<i32>} : memref<2x18x256xf32, #tpu.memory_space<vmem>>, vector<1x1x256xf32>,
    %c0_263 = arith.constant 0 : index
    %c0_264 = arith.constant 0 : index
    %332 = vector.load %arg9[%c0_263, %c0_264] : memref<768x192xf32, #tpu.memory_space<vmem>>, vector<768x192xf32>
    %c0_265 = arith.constant 0 : index
    %c0_266 = arith.constant 0 : index
    %333 = vector.load %arg10[%c0_265, %c0_266] : memref<1x192xf32, #tpu.memory_space<vmem>>, vector<1x192xf32>
    %c0_267 = arith.constant 0 : index
    %c0_268 = arith.constant 0 : index
    %c0_269 = arith.constant 0 : index
    %334 = vector.load %arg15[%c0_267, %c0_268, %c0_269] : memref<2x18x256xf32, #tpu.memory_space<vmem>>, vector<1x16x256xf32>
    %335 = vector.shape_cast %334 : vector<1x16x256xf32> to vector<16x256xf32>
    %c0_270 = arith.constant 0 : index
    %c1_271 = arith.constant 1 : index
    %c0_272 = arith.constant 0 : index
    %336 = vector.load %arg15[%c0_270, %c1_271, %c0_272] : memref<2x18x256xf32, #tpu.memory_space<vmem>>, vector<1x16x256xf32>
    %337 = vector.shape_cast %336 : vector<1x16x256xf32> to vector<16x256xf32>
    %c0_273 = arith.constant 0 : index
    %c2_274 = arith.constant 2 : index
    %c0_275 = arith.constant 0 : index
    %338 = vector.load %arg15[%c0_273, %c2_274, %c0_275] : memref<2x18x256xf32, #tpu.memory_space<vmem>>, vector<1x16x256xf32>
    %339 = vector.shape_cast %338 : vector<1x16x256xf32> to vector<16x256xf32>
    %340 = tpu.concatenate %335, %337, %339 in 1 : vector<16x256xf32>, vector<16x256xf32>, vector<16x256xf32> -> vector<16x768xf32>
    %cst_276 = arith.constant dense<0.000000e+00> : vector<16x192xf32>
    %341 = tpu.matmul %340, %332, %cst_276 {dimension_numbers = #tpu.dot_dimension_numbers<[1], [0], [0], [1], [0, 0, 1, 1], [], []>} : vector<16x768xf32>, vector<768x192xf32>, vector<16x192xf32> -> vector<16x192xf32>
    %342 = vector.broadcast %333 : vector<1x192xf32> to vector<16x192xf32>
    %343 = arith.addf %341, %342 : vector<16x192xf32>
    %c0_277 = arith.constant 0 : index
    %c0_278 = arith.constant 0 : index
    %c0_279 = arith.constant 0 : index
    %344 = vector.load %arg11[%c0_277, %c0_278, %c0_279] : memref<2x16x192xf32, #tpu.memory_space<vmem>>, vector<1x16x192xf32>
    %345 = vector.shape_cast %344 : vector<1x16x192xf32> to vector<16x192xf32>
    %346 = vector.shape_cast %343 : vector<16x192xf32> to vector<1x16x192xf32>
    tpu.vector_store %arg11[%c0_277, %c0_278, %c0_279], %346 {strides = array<i32>} : memref<2x16x192xf32, #tpu.memory_space<vmem>>, vector<1x16x192xf32>,
    %c1_280 = arith.constant 1 : index
    %c0_281 = arith.constant 0 : index
    %c0_282 = arith.constant 0 : index
    %347 = vector.load %arg15[%c1_280, %c0_281, %c0_282] : memref<2x18x256xf32, #tpu.memory_space<vmem>>, vector<1x16x256xf32>
    %348 = vector.shape_cast %347 : vector<1x16x256xf32> to vector<16x256xf32>
    %c1_283 = arith.constant 1 : index
    %c1_284 = arith.constant 1 : index
    %c0_285 = arith.constant 0 : index
    %349 = vector.load %arg15[%c1_283, %c1_284, %c0_285] : memref<2x18x256xf32, #tpu.memory_space<vmem>>, vector<1x16x256xf32>
    %350 = vector.shape_cast %349 : vector<1x16x256xf32> to vector<16x256xf32>
    %c1_286 = arith.constant 1 : index
    %c2_287 = arith.constant 2 : index
    %c0_288 = arith.constant 0 : index
    %351 = vector.load %arg15[%c1_286, %c2_287, %c0_288] : memref<2x18x256xf32, #tpu.memory_space<vmem>>, vector<1x16x256xf32>
    %352 = vector.shape_cast %351 : vector<1x16x256xf32> to vector<16x256xf32>
    %353 = tpu.concatenate %348, %350, %352 in 1 : vector<16x256xf32>, vector<16x256xf32>, vector<16x256xf32> -> vector<16x768xf32>
    %cst_289 = arith.constant dense<0.000000e+00> : vector<16x192xf32>
    %354 = tpu.matmul %353, %332, %cst_289 {dimension_numbers = #tpu.dot_dimension_numbers<[1], [0], [0], [1], [0, 0, 1, 1], [], []>} : vector<16x768xf32>, vector<768x192xf32>, vector<16x192xf32> -> vector<16x192xf32>
    %355 = vector.broadcast %333 : vector<1x192xf32> to vector<16x192xf32>
    %356 = arith.addf %354, %355 : vector<16x192xf32>
    %c1_290 = arith.constant 1 : index
    %c0_291 = arith.constant 0 : index
    %c0_292 = arith.constant 0 : index
    %357 = vector.load %arg11[%c1_290, %c0_291, %c0_292] : memref<2x16x192xf32, #tpu.memory_space<vmem>>, vector<1x16x192xf32>
    %358 = vector.shape_cast %357 : vector<1x16x192xf32> to vector<16x192xf32>
    %359 = vector.shape_cast %356 : vector<16x192xf32> to vector<1x16x192xf32>
    tpu.vector_store %arg11[%c1_290, %c0_291, %c0_292], %359 {strides = array<i32>} : memref<2x16x192xf32, #tpu.memory_space<vmem>>, vector<1x16x192xf32>,
    return
  }
}

</mosaic_0001>

<bundles_post_ra>
// kernel: decoder_forward.1
= control target key start
LH: loop header
LB: loop body
LE: loop exit
PB: predicated region body
PF: predicated region fallthrough
CT: control target
= control target key end

     0   :  { %16 = vsyncpa [#allocation7], 0  ;;  %s9738_s0 = inlined_call_operand.hbm [shape: f32[2,32], index: 0, kind: input, shape index: {}]   ;;  %s9739_s1 = inlined_call_operand.hbm [shape: f32[32,256], index: 1, kind: input, shape index: {}]   ;;  %s9740_s2 = inlined_call_operand.hbm [shape: f32[1,256], index: 2, kind: input, shape index: {}]   ;;  %s9741_s3 = inlined_call_operand.vmem [shape: f32[384,512], index: 3, kind: input, shape index: {}]   ;;  %s9742_s4 = inlined_call_operand.hbm [shape: f32[1,512], index: 4, kind: input, shape index: {}]   ;;  %s9743_s5 = inlined_call_operand.hbm [shape: f32[768,512], index: 5, kind: input, shape index: {}]   ;;  %s9744_s6 = inlined_call_operand.hbm [shape: f32[1,512], index: 6, kind: input, shape index: {}]   ;;  %s9745_s7 = inlined_call_operand.hbm [shape: f32[768,512], index: 7, kind: input, shape index: {}]   ;;  %s9746_s8 = inlined_call_operand.hbm [shape: f32[1,512], index: 8, kind: input, shape index: {}]   ;;  %s9747_s9 = inlined_call_operand.vmem [shape: f32[768,192], index: 9, kind: input, shape index: {}]   ;;  %s9748_s10 = inlined_call_operand.hbm [shape: f32[1,192], index: 10, kind: input, shape index: {}]   ;;  %s9749_s11 = inlined_call_operand.vmem [shape: f32[2,16,192], index: 11, kind: output, shape index: {}]  }
   0x1   :  { %17 = vsyncpa [#allocation9], 0 }
   0x2   :  { %18 = vsyncpa [#allocation12], 0 }
   0x3   :  { %19 = vsyncpa [#allocation15], 0 }
   0x4   :  { %20 = vsyncpa [#allocation18], 0  ;;  %s6056_s17 = smov [#allocation8]  }
   0x5   :  { %s36_s18 = sshll.u32 %s6056_s17, 4  ;;  %s37_s18 = int_to_ptr.vmem [resolvable:$true] %s36_s18 }
   0x6   :  { %s5874_s19 = scalar_lea.vmem %s37_s18, 1024  ;;  %p5879_p1 = scmp.lt.s32.totalorder %s37_s18, %s37_s18 }
   0x7   :  { %p5875_p0 = scmp.ne.s32.totalorder %s37_s18, %s5874_s19  ;;  %p5880_p2 = scmp.lt.s32.totalorder %s5874_s19, %s5874_s19 }
   0x9   :  { %p5881_p3 = por %p5880_p2, %p5879_p1 }
   0xb   :  { %p5882_p4 = pnand %p5881_p3, %p5875_p0 }
   0xd   :  { %5885 = shalt.err (!%p5882_p4)
}
   0xe   :  { %s6057_s20 = smov 256   ;;  %s6058_s21 = smov 16  }
   0xf   :  { %42 = dma.hbm_to_vmem [thread:$0]  %s9739_s1, 1024, %s37_s18, [#allocation9], %s6057_s20, %s6057_s20, %s6058_s21  }
  0x10   :  { %s6059_s24 = smov [#allocation11]   ;;  %s6060_s26 = smov [#allocation14]  }
  0x11   :  { %s61_s25 = sshll.u32 %s6059_s24, 4  ;;  %s83_s27 = sshll.u32 %s6060_s26, 4  ;;  %s62_s25 = int_to_ptr.vmem [resolvable:$true] %s61_s25  ;;  %s84_s27 = int_to_ptr.vmem [resolvable:$true] %s83_s27 }
  0x12   :  { %s5894_s28 = scalar_lea.vmem %s62_s25, 64  ;;  %p5899_p6 = scmp.lt.s32.totalorder %s62_s25, %s62_s25 }
  0x13   :  { %p5895_p5 = scmp.ne.s32.totalorder %s62_s25, %s5894_s28  ;;  %p5900_p7 = scmp.lt.s32.totalorder %s5894_s28, %s5894_s28 }
  0x15   :  { %p5901_p8 = por %p5900_p7, %p5899_p6 }
  0x17   :  { %p5902_p9 = pnand %p5901_p8, %p5895_p5 }
  0x19   :  { %5905 = shalt.err (!%p5902_p9)
}
  0x1a   :  { %64 = dma.hbm_to_vmem [thread:$0]  %s9742_s4, 64, %s62_s25, [#allocation12]  }
  0x1b   :  { %s5914_s12 = scalar_lea.vmem %s84_s27, 64  ;;  %p5919_p11 = scmp.lt.s32.totalorder %s84_s27, %s84_s27 }
  0x1c   :  { %p5915_p10 = scmp.ne.s32.totalorder %s84_s27, %s5914_s12  ;;  %p5920_p12 = scmp.lt.s32.totalorder %s5914_s12, %s5914_s12 }
  0x1e   :  { %p5921_p13 = por %p5920_p12, %p5919_p11 }
  0x20   :  { %p5922_p0 = pnand %p5921_p13, %p5915_p10 }
  0x22   :  { %5925 = shalt.err (!%p5922_p0)
}
  0x23   :  { %86 = dma.hbm_to_vmem [thread:$0]  %s9744_s6, 64, %s84_s27, [#allocation15]  }
  0x24   :  { %s6061_s14 = smov [#allocation17]   ;;  %s6062_s16 = smov [#allocation6]  }
  0x25   :  { %s105_s15 = sshll.u32 %s6061_s14, 4  ;;  %s27_s17 = sshll.u32 %s6062_s16, 4  ;;  %s106_s15 = int_to_ptr.vmem [resolvable:$true] %s105_s15  ;;  %s28_s17 = int_to_ptr.vmem [resolvable:$true] %s27_s17 }
  0x26   :  { %s5934_s18 = scalar_lea.vmem %s106_s15, 64  ;;  %p5939_p2 = scmp.lt.s32.totalorder %s106_s15, %s106_s15 }
  0x27   :  { %p5935_p1 = scmp.ne.s32.totalorder %s106_s15, %s5934_s18  ;;  %p5940_p3 = scmp.lt.s32.totalorder %s5934_s18, %s5934_s18 }
  0x29   :  { %p5941_p4 = por %p5940_p3, %p5939_p2 }
  0x2b   :  { %p5942_p5 = pnand %p5941_p4, %p5935_p1 }
  0x2d   :  { %5945 = shalt.err (!%p5942_p5)
}
  0x2e   :  { %108 = dma.hbm_to_vmem [thread:$0]  %s9746_s8, 64, %s106_s15, [#allocation18]  }
  0x2f   :  { %s5954_s20 = scalar_lea.vmem %s28_s17, 32  ;;  %p5959_p7 = scmp.lt.s32.totalorder %s28_s17, %s28_s17 }
  0x30   :  { %p5955_p6 = scmp.ne.s32.totalorder %s28_s17, %s5954_s20  ;;  %p5960_p8 = scmp.lt.s32.totalorder %s5954_s20, %s5954_s20 }
  0x32   :  { %p5961_p9 = por %p5960_p8, %p5959_p7 }
  0x34   :  { %p5962_p10 = pnand %p5961_p9, %p5955_p6 }
  0x36   :  { %5965 = shalt.err (!%p5962_p10)
}
  0x37   :  { %30 = dma.hbm_to_vmem [thread:$0]  %s9738_s0, 32, %s28_s17, [#allocation7]  }
  0x38   :  { %s6063_s22 = smov [#allocation10]   ;;  %s6064_s24 = smov [#allocation13]  }
  0x39   :  { %s49_s23 = sshll.u32 %s6063_s22, 4  ;;  %s70_s25 = sshll.u32 %s6064_s24, 4  ;;  %s50_s23 = int_to_ptr.vmem [resolvable:$true] %s49_s23  ;;  %s71_s25 = int_to_ptr.vmem [resolvable:$true] %s70_s25 }
  0x3a   :  { %s5974_s26 = scalar_lea.vmem %s50_s23, 32  ;;  %p5979_p12 = scmp.lt.s32.totalorder %s50_s23, %s50_s23 }
  0x3b   :  { %p5975_p11 = scmp.ne.s32.totalorder %s50_s23, %s5974_s26  ;;  %p5980_p13 = scmp.lt.s32.totalorder %s5974_s26, %s5974_s26 }
  0x3d   :  { %p5981_p0 = por %p5980_p13, %p5979_p12 }
  0x3f   :  { %p5982_p1 = pnand %p5981_p0, %p5975_p11 }
  0x41   :  { %5985 = shalt.err (!%p5982_p1)
}
  0x42   :  { %52 = dma.hbm_to_vmem [thread:$0]  %s9740_s2, 32, %s50_s23, [#allocation9]  }
  0x43   :  { %s5994_s28 = scalar_lea.vmem %s71_s25, 49152  ;;  %p5999_p3 = scmp.lt.s32.totalorder %s71_s25, %s71_s25 }
  0x44   :  { %p5995_p2 = scmp.ne.s32.totalorder %s71_s25, %s5994_s28  ;;  %p6000_p4 = scmp.lt.s32.totalorder %s5994_s28, %s5994_s28 }
  0x46   :  { %p6001_p5 = por %p6000_p4, %p5999_p3 }
  0x48   :  { %p6002_p6 = pnand %p6001_p5, %p5995_p2 }
  0x4a   :  { %6005 = shalt.err (!%p6002_p6)
}
  0x4b   :  { %s6065_s0 = smov 512   ;;  %s6066_s29 = smov 32  }
  0x4c   :  { %76 = dma.hbm_to_vmem [thread:$0]  %s9743_s5, 49152, %s71_s25, [#allocation12], %s6065_s0, %s6065_s0, %s6066_s29  }
  0x4d   :  { %s6067_s1 = smov [#allocation16]   ;;  %s6068_s14 = smov [#allocation19]  }
  0x4e   :  { %s92_s13 = sshll.u32 %s6067_s1, 4  ;;  %s117_s15 = sshll.u32 %s6068_s14, 4  ;;  %s93_s13 = int_to_ptr.vmem [resolvable:$true] %s92_s13  ;;  %s118_s15 = int_to_ptr.vmem [resolvable:$true] %s117_s15 }
  0x4f   :  { %s6014_s2 = scalar_lea.vmem %s93_s13, 49152  ;;  %p6019_p8 = scmp.lt.s32.totalorder %s93_s13, %s93_s13 }
  0x50   :  { %p6015_p7 = scmp.ne.s32.totalorder %s93_s13, %s6014_s2  ;;  %p6020_p9 = scmp.lt.s32.totalorder %s6014_s2, %s6014_s2 }
  0x52   :  { %p6021_p10 = por %p6020_p9, %p6019_p8 }
  0x54   :  { %p6022_p11 = pnand %p6021_p10, %p6015_p7 }
  0x56   :  { %6025 = shalt.err (!%p6022_p11)
}
  0x57   :  { %98 = dma.hbm_to_vmem [thread:$0]  %s9745_s7, 49152, %s93_s13, [#allocation15], %s6065_s0, %s6065_s0, %s6066_s29  }
  0x58   :  { %s6034_s18 = scalar_lea.vmem %s118_s15, 32  ;;  %p6039_p13 = scmp.lt.s32.totalorder %s118_s15, %s118_s15 }
  0x59   :  { %p6035_p12 = scmp.ne.s32.totalorder %s118_s15, %s6034_s18  ;;  %p6040_p0 = scmp.lt.s32.totalorder %s6034_s18, %s6034_s18 }
  0x5b   :  { %p6041_p1 = por %p6040_p0, %p6039_p13 }
  0x5d   :  { %p6042_p2 = pnand %p6041_p1, %p6035_p12 }
  0x5f   :  { %6045 = shalt.err (!%p6042_p2)
}
  0x60   :  { %120 = dma.hbm_to_vmem [thread:$0]  %s9748_s10, 32, %s118_s15, [#allocation18]  }
  0x61   :  { %6046 = dma.done.wait [#allocation7], 32  }
  0x62   :  { %6047 = vsyncadd [#allocation7], 4294967264 }
  0x63   :  { %6048 = dma.done.wait [#allocation9], 1056  }
  0x64   :  { %6049 = vsyncadd [#allocation9], 4294966240 }
  0x65   :  { %6050 = dma.done.wait [#allocation12], 49216  }
  0x66   :  { %6051 = vsyncadd [#allocation12], 4294918080 }
  0x67   :  { %6052 = dma.done.wait [#allocation15], 49216  }
  0x68   :  { %6053 = vsyncadd [#allocation15], 4294918080 }
  0x69   :  { %6054 = dma.done.wait [#allocation18], 96  }
  0x6a   :  { %6055 = vsyncadd [#allocation18], 4294967200  ;;  %v9750_v0 = vmov 0.0   ;;  %v182_v1 = vld [vmem:[#allocation8 + $0x38] sm:$0xff]  ;;  %v181_v2 = vld [vmem:[#allocation8 + $0x30] sm:$0xff]  ;;  %vm195_vm0 = vcmask 261120  }
  0x6b   :  { %263 = vmatprep.mubr.f32.mxu0 %v9750_v0  ;;  %148 = vst [vmem:[#allocation2] sm:$0xf] %v9750_v0  ;;  %149 = vst [vmem:[#allocation2 + $0x4] sm:$0xf] %v9750_v0  ;;  %v180_v3 = vld [vmem:[#allocation8 + $0x28] sm:$0xff]  ;;  %223 = vmatprep.subr.mxu0 %v182_v1  ;;  %v179_v4 = vld [vmem:[#allocation8 + $0x20] sm:$0xff] }
  0x6c   :  { %150 = vst [vmem:[#allocation3] sm:$0x3f] %v9750_v0  ;;  %151 = vst [vmem:[#allocation3 + $0x8] sm:$0x3f] %v9750_v0  ;;  %224 = vmatpush1.msra.mxu0 %v181_v2  ;;  %v178_v5 = vld [vmem:[#allocation8 + $0x18] sm:$0xff]  ;;  %v177_v6 = vld [vmem:[#allocation8 + $0x10] sm:$0xff] }
  0x6d   :  { %152 = vst [vmem:[#allocation3 + $0x10] sm:$0x3f] %v9750_v0  ;;  %153 = vst [vmem:[#allocation3 + $0x18] sm:$0x3f] %v9750_v0  ;;  %225 = vmatprep.subr.mxu0 %v180_v3  ;;  %v6188_v7 = vld [vmem:[%s9741_s3 + $0x1e8] sm:$0xff]  ;;  %v6193_v8 = vld [vmem:[%s9741_s3 + $0x1e0] sm:$0xff] }
  0x6e   :  { %154 = vst [vmem:[#allocation4] sm:$0xff] %v9750_v0  ;;  %155 = vst [vmem:[#allocation4 + $0x8] sm:$0xff] %v9750_v0  ;;  %v6198_v9 = vld [vmem:[%s9741_s3 + $0x1c8] sm:$0xff]  ;;  %226 = vmatpush1.msra.mxu0 %v179_v4  ;;  %v176_v10 = vld [vmem:[#allocation8 + $0x8] sm:$0xff]  ;;  %492 = vmatprep.subr.mxu1 %v6188_v7  ;;  %vm3082_vm2 = vcmask 1046528   ;;  %vm3095_vm3 = vcmask 1045504  }
  0x6f   :  { %156 = vst [vmem:[#allocation4 + $0x10] sm:$0x3] %v9750_v0  ;;  %157 = vst [vmem:[#allocation4 + $0x18] sm:$0x3] %v9750_v0  ;;  %v6204_v11 = vld [vmem:[%s9741_s3 + $0x1c0] sm:$0xff]  ;;  %227 = vmatprep.subr.mxu0 %v178_v5  ;;  %v175_v12 = vld [vmem:[#allocation8] sm:$0xff]  ;;  %493 = vmatpush1.msra.mxu1 %v6193_v8 }
  0x70   :  { %158 = vst [vmem:[#allocation4 + $0x20] sm:$0xff] %v9750_v0  ;;  %159 = vst [vmem:[#allocation4 + $0x28] sm:$0xff] %v9750_v0  ;;  %v6210_v13 = vld [vmem:[%s9741_s3 + $0x1a8] sm:$0xff]  ;;  %228 = vmatpush1.msra.mxu0 %v177_v6  ;;  %494 = vmatprep.subr.mxu1 %v6198_v9  ;;  %v6216_v15 = vld [vmem:[%s9741_s3 + $0x1a0] sm:$0xff]  ;;  %vm4842_vm4 = vcmask 523264  }
  0x71   :  { %160 = vst [vmem:[#allocation4 + $0x30] sm:$0x3] %v9750_v0  ;;  %161 = vst [vmem:[#allocation4 + $0x38] sm:$0x3] %v9750_v0  ;;  %v174_v14 = vld [vmem:[#allocation6] sm:$0x3]  ;;  %229 = vmatprep.subr.mxu0 %v176_v10  ;;  %495 = vmatpush1.msra.mxu1 %v6204_v11 }
  0x72   :  { %162 = vst [vmem:[#allocation5] sm:$0xff] %v9750_v0  ;;  %163 = vst [vmem:[#allocation5 + $0x8] sm:$0xff] %v9750_v0  ;;  %v6222_v16 = vld [vmem:[%s9741_s3 + $0x188] sm:$0xff]  ;;  %230 = vmatpush1.msra.mxu0 %v175_v12  ;;  %496 = vmatprep.subr.mxu1 %v6210_v13  ;;  %v6228_v17 = vld [vmem:[%s9741_s3 + $0x180] sm:$0xff] }
  0x73   :  { %164 = vst [vmem:[#allocation5 + $0x10] sm:$0xff] %v9750_v0  ;;  %165 = vst [vmem:[#allocation5 + $0x18] sm:$0xff] %v9750_v0  ;;  %5169 = vmatmul.mubr.msk.f32.vlgmr.msra.gmra.mxu0 %vm195_vm0, %v174_v14  ;;  %497 = vmatpush1.msra.mxu1 %v6216_v15  ;;  %v6234_v18 = vld [vmem:[%s9741_s3 + $0x168] sm:$0xff]  ;;  %v6240_v19 = vld [vmem:[%s9741_s3 + $0x160] sm:$0xff] }
  0x74   :  { %166 = vst [vmem:[#allocation5 + $0x20] sm:$0x3] %v9750_v0  ;;  %167 = vst [vmem:[#allocation5 + $0x28] sm:$0x3] %v9750_v0  ;;  %498 = vmatprep.subr.mxu1 %v6222_v16  ;;  %627 = vmatprep.mubr.f32.mxu0 %v9750_v0  ;;  %v6247_v20 = vld [vmem:[%s9741_s3 + $0x148] sm:$0xff]  ;;  %v6253_v21 = vld [vmem:[%s9741_s3 + $0x140] sm:$0xff] }
  0x75   :  { %168 = vst [vmem:[#allocation5 + $0x30] sm:$0xff] %v9750_v0  ;;  %169 = vst [vmem:[#allocation5 + $0x38] sm:$0xff] %v9750_v0  ;;  %499 = vmatpush1.msra.mxu1 %v6228_v17  ;;  %v6259_v22 = vld [vmem:[%s9741_s3 + $0x128] sm:$0xff]  ;;  %v6270_v24 = vld [vmem:[%s9741_s3 + $0x120] sm:$0xff] }
  0x76   :  { %170 = vst [vmem:[#allocation5 + $0x40] sm:$0xff] %v9750_v0  ;;  %171 = vst [vmem:[#allocation5 + $0x48] sm:$0xff] %v9750_v0  ;;  %500 = vmatprep.subr.mxu1 %v6234_v18  ;;  %v6264_v23 = vld [vmem:[%s9741_s3 + $0x5e8] sm:$0xff]  ;;  %v6276_v25 = vld [vmem:[%s9741_s3 + $0x5e0] sm:$0xff] }
  0x77   :  { %172 = vst [vmem:[#allocation5 + $0x50] sm:$0x3] %v9750_v0  ;;  %173 = vst [vmem:[#allocation5 + $0x58] sm:$0x3] %v9750_v0  ;;  %501 = vmatpush1.msra.mxu1 %v6240_v19  ;;  %563 = vmatprep.subr.mxu0 %v6264_v23  ;;  %v6282_v26 = vld [vmem:[%s9741_s3 + $0x108] sm:$0xff]  ;;  %v6293_v28 = vld [vmem:[%s9741_s3 + $0x5c0] sm:$0xff] }
  0x78   :  { %502 = vmatprep.subr.mxu1 %v6247_v20  ;;  %564 = vmatpush1.msra.mxu0 %v6276_v25  ;;  %v6288_v27 = vld [vmem:[%s9741_s3 + $0x5c8] sm:$0xff]  ;;  %v6299_v29 = vld [vmem:[%s9741_s3 + $0x100] sm:$0xff] }
  0x79   :  { %503 = vmatpush1.msra.mxu1 %v6253_v21  ;;  %565 = vmatprep.subr.mxu0 %v6288_v27  ;;  %v6305_v30 = vld [vmem:[%s9741_s3 + $0x5a8] sm:$0xff]  ;;  %v6317_v32 = vld [vmem:[%s9741_s3 + $0x5a0] sm:$0xff] }
  0x7a   :  { %504 = vmatprep.subr.mxu1 %v6259_v22  ;;  %v6311_v31 = vld [vmem:[%s9741_s3 + $0xe8] sm:$0xff]  ;;  %566 = vmatpush1.msra.mxu0 %v6293_v28  ;;  %v6328_v34 = vld [vmem:[%s9741_s3 + $0xe0] sm:$0xff] }
  0x7b   :  { %505 = vmatpush1.msra.mxu1 %v6270_v24  ;;  %v6322_v33 = vld [vmem:[%s9741_s3 + $0x588] sm:$0xff]  ;;  %567 = vmatprep.subr.mxu0 %v6305_v30  ;;  %v6334_v35 = vld [vmem:[%s9741_s3 + $0x580] sm:$0xff] }
  0x7c   :  { %506 = vmatprep.subr.mxu1 %v6282_v26  ;;  %v6340_v36 = vld [vmem:[%s9741_s3 + $0xc8] sm:$0xff]  ;;  %568 = vmatpush1.msra.mxu0 %v6317_v32  ;;  %v6352_v38 = vld [vmem:[%s9741_s3 + $0xc0] sm:$0xff] }
  0x7d   :  { %507 = vmatpush1.msra.mxu1 %v6299_v29  ;;  %v6346_v37 = vld [vmem:[%s9741_s3 + $0x568] sm:$0xff]  ;;  %569 = vmatprep.subr.mxu0 %v6322_v33  ;;  %v6358_v39 = vld [vmem:[%s9741_s3 + $0x560] sm:$0xff] }
  0x7e   :  { %508 = vmatprep.subr.mxu1 %v6311_v31  ;;  %v6364_v40 = vld [vmem:[%s9741_s3 + $0xa8] sm:$0xff]  ;;  %570 = vmatpush1.msra.mxu0 %v6334_v35  ;;  %v6376_v42 = vld [vmem:[%s9741_s3 + $0xa0] sm:$0xff] }
  0x7f   :  { %509 = vmatpush1.msra.mxu1 %v6328_v34  ;;  %v6370_v41 = vld [vmem:[%s9741_s3 + $0x548] sm:$0xff]  ;;  %571 = vmatprep.subr.mxu0 %v6346_v37  ;;  %v6382_v43 = vld [vmem:[%s9741_s3 + $0x540] sm:$0xff] }
  0x80   :  { %10016 = vst [vmem:[#allocation25_spill] sm:$0xff] %v6370_v41  ;;  %510 = vmatprep.subr.mxu1 %v6340_v36  ;;  %10017 = vst [vmem:[#allocation26_spill] sm:$0xff] %v6382_v43  ;;  %v6388_v44 = vld [vmem:[%s9741_s3 + $0x88] sm:$0xff]  ;;  %572 = vmatpush1.msra.mxu0 %v6358_v39  ;;  %v6400_v46 = vld [vmem:[%s9741_s3 + $0x80] sm:$0xff] }
  0x81   :  { %511 = vmatpush1.msra.mxu1 %v6352_v38  ;;  %v6394_v45 = vld [vmem:[%s9741_s3 + $0x528] sm:$0xff]  ;;  %573 = vmatprep.subr.mxu0 %v6370_v41  ;;  %v6406_v47 = vld [vmem:[%s9741_s3 + $0x520] sm:$0xff] }
  0x82   :  { %10018 = vst [vmem:[#allocation27_spill] sm:$0xff] %v6394_v45  ;;  %512 = vmatprep.subr.mxu1 %v6364_v40  ;;  %10019 = vst [vmem:[#allocation28_spill] sm:$0xff] %v6406_v47  ;;  %v6412_v48 = vld [vmem:[%s9741_s3 + $0x68] sm:$0xff]  ;;  %574 = vmatpush1.msra.mxu0 %v6382_v43  ;;  %v6424_v50 = vld [vmem:[%s9741_s3 + $0x60] sm:$0xff] }
  0x83   :  { %513 = vmatpush1.msra.mxu1 %v6376_v42  ;;  %v6418_v49 = vld [vmem:[%s9741_s3 + $0x508] sm:$0xff]  ;;  %575 = vmatprep.subr.mxu0 %v6394_v45  ;;  %v6430_v51 = vld [vmem:[%s9741_s3 + $0x500] sm:$0xff] }
  0x84   :  { %10020 = vst [vmem:[#allocation29_spill] sm:$0xff] %v6418_v49  ;;  %514 = vmatprep.subr.mxu1 %v6388_v44  ;;  %10021 = vst [vmem:[#allocation30_spill] sm:$0xff] %v6430_v51  ;;  %v6436_v52 = vld [vmem:[%s9741_s3 + $0x48] sm:$0xff]  ;;  %576 = vmatpush1.msra.mxu0 %v6406_v47  ;;  %v6448_v54 = vld [vmem:[%s9741_s3 + $0x40] sm:$0xff] }
  0x85   :  { %515 = vmatpush1.msra.mxu1 %v6400_v46  ;;  %v6442_v53 = vld [vmem:[%s9741_s3 + $0x4e8] sm:$0xff]  ;;  %577 = vmatprep.subr.mxu0 %v6418_v49  ;;  %v6454_v55 = vld [vmem:[%s9741_s3 + $0x4e0] sm:$0xff] }
  0x86   :  { %10022 = vst [vmem:[#allocation31_spill] sm:$0xff] %v6442_v53  ;;  %516 = vmatprep.subr.mxu1 %v6412_v48  ;;  %10023 = vst [vmem:[#allocation32_spill] sm:$0xff] %v6454_v55  ;;  %v6460_v56 = vld [vmem:[%s9741_s3 + $0x28] sm:$0xff]  ;;  %578 = vmatpush1.msra.mxu0 %v6430_v51  ;;  %v6472_v58 = vld [vmem:[%s9741_s3 + $0x20] sm:$0xff] }
  0x87   :  { %517 = vmatpush1.msra.mxu1 %v6424_v50  ;;  %v6466_v57 = vld [vmem:[%s9741_s3 + $0x4c8] sm:$0xff]  ;;  %579 = vmatprep.subr.mxu0 %v6442_v53  ;;  %v6478_v59 = vld [vmem:[%s9741_s3 + $0x4c0] sm:$0xff] }
  0x88   :  { %10024 = vst [vmem:[#allocation33_spill] sm:$0xff] %v6466_v57  ;;  %518 = vmatprep.subr.mxu1 %v6436_v52  ;;  %10025 = vst [vmem:[#allocation34_spill] sm:$0xff] %v6478_v59  ;;  %v6484_v60 = vld [vmem:[%s9741_s3 + $0x8] sm:$0xff]  ;;  %580 = vmatpush1.msra.mxu0 %v6454_v55  ;;  %v6491_v61 = vld [vmem:[%s9741_s3] sm:$0xff] }
  0x89   :  { %519 = vmatpush1.msra.mxu1 %v6448_v54  ;;  %581 = vmatprep.subr.mxu0 %v6466_v57  ;;  %v6498_v62 = vld [vmem:[%s9741_s3 + $0x3e8] sm:$0xff]  ;;  %v6505_v63 = vld [vmem:[%s9741_s3 + $0x3e0] sm:$0xff] }
  0x8a   :  { %520 = vmatprep.subr.mxu1 %v6460_v56  ;;  %582 = vmatpush1.msra.mxu0 %v6478_v59  ;;  %v6511_v1 = vld [vmem:[%s9741_s3 + $0x3c8] sm:$0xff]  ;;  %v6517_v2 = vld [vmem:[%s9741_s3 + $0x3c0] sm:$0xff] }
  0x8b   :  { %521 = vmatpush1.msra.mxu1 %v6472_v58  ;;  %v6523_v3 = vld [vmem:[%s9741_s3 + $0x3a8] sm:$0xff]  ;;  %v6529_v4 = vld [vmem:[%s9741_s3 + $0x3a0] sm:$0xff] }
  0x8c   :  { %522 = vmatprep.subr.mxu1 %v6484_v60  ;;  %v6535_v5 = vld [vmem:[%s9741_s3 + $0x388] sm:$0xff]  ;;  %v6541_v6 = vld [vmem:[%s9741_s3 + $0x380] sm:$0xff] }
  0x8d   :  { %523 = vmatpush1.msra.mxu1 %v6491_v61  ;;  %v6547_v10 = vld [vmem:[%s9741_s3 + $0x368] sm:$0xff]  ;;  %v6553_v12 = vld [vmem:[%s9741_s3 + $0x360] sm:$0xff] }
  0x8e   :  { %524 = vmatprep.subr.mxu1 %v6498_v62  ;;  %v6559_v14 = vld [vmem:[%s9741_s3 + $0x348] sm:$0xff]  ;;  %v6565_v0 = vld [vmem:[%s9741_s3 + $0x340] sm:$0xff] }
  0x8f   :  { %525 = vmatpush2.msra.mxu1 %v6505_v63  ;;  %10026 = vst [vmem:[#allocation35_spill] sm:$0xff] %v6559_v14  ;;  %10027 = vst [vmem:[#allocation36_spill] sm:$0xff] %v6565_v0  ;;  %v6571_v59 = vld [vmem:[%s9741_s3 + $0x328] sm:$0xff]  ;;  %v6577_v57 = vld [vmem:[%s9741_s3 + $0x320] sm:$0xff] }
  0x90   :  { %526 = vmatprep.subr.mxu1 %v6511_v1  ;;  %10028 = vst [vmem:[#allocation37_spill] sm:$0xff] %v6571_v59  ;;  %10029 = vst [vmem:[#allocation38_spill] sm:$0xff] %v6577_v57  ;;  %v6583_v55 = vld [vmem:[%s9741_s3 + $0x308] sm:$0xff]  ;;  %v6589_v53 = vld [vmem:[%s9741_s3 + $0x300] sm:$0xff] }
  0x91   :  { %527 = vmatpush2.msra.mxu1 %v6517_v2  ;;  %10030 = vst [vmem:[#allocation39_spill] sm:$0xff] %v6583_v55  ;;  %10031 = vst [vmem:[#allocation40_spill] sm:$0xff] %v6589_v53  ;;  %v6595_v51 = vld [vmem:[%s9741_s3 + $0x2e8] sm:$0xff]  ;;  %v6601_v49 = vld [vmem:[%s9741_s3 + $0x2e0] sm:$0xff] }
  0x92   :  { %528 = vmatprep.subr.mxu1 %v6523_v3  ;;  %10032 = vst [vmem:[#allocation41_spill] sm:$0xff] %v6595_v51  ;;  %10033 = vst [vmem:[#allocation42_spill] sm:$0xff] %v6601_v49  ;;  %v6607_v47 = vld [vmem:[%s9741_s3 + $0x2c8] sm:$0xff]  ;;  %v6748_v45 = vld [vmem:[%s9741_s3 + $0x400] sm:$0xff] }
  0x93   :  { %529 = vmatpush2.msra.mxu1 %v6529_v4  ;;  %10034 = vst [vmem:[#allocation43_spill] sm:$0xff] %v6607_v47  ;;  %10058 = vst [vmem:[#allocation67_spill] sm:$0xff] %v6748_v45 }
  0x94   :  { %530 = vmatprep.subr.mxu1 %v6535_v5 }
  0x95   :  { %531 = vmatpush2.msra.mxu1 %v6541_v6 }
  0x96   :  { %532 = vmatprep.subr.mxu1 %v6547_v10 }
  0x97   :  { %533 = vmatpush2.msra.mxu1 %v6553_v12 }
  0x98   :  { %534 = vmatprep.subr.mxu1 %v6559_v14 }
  0x99   :  { %535 = vmatpush2.msra.mxu1 %v6565_v0 }
  0x9a   :  { %536 = vmatprep.subr.mxu1 %v6571_v59  ;;  %v6731_v59 = vld [vmem:[%s9741_s3 + $0x220] sm:$0xff] }
  0x9b   :  { %537 = vmatpush2.msra.mxu1 %v6577_v57  ;;  %v6714_v57 = vld [vmem:[%s9741_s3 + $0x428] sm:$0xff]  ;;  %10055 = vst [vmem:[#allocation64_spill] sm:$0xff] %v6731_v59 }
  0x9c   :  { %538 = vmatprep.subr.mxu1 %v6583_v55  ;;  %v6615_v55 = vld [vmem:[%s9741_s3 + $0x2c0] sm:$0xff]  ;;  %10052 = vst [vmem:[#allocation61_spill] sm:$0xff] %v6714_v57 }
  0x9d   :  { %539 = vmatpush2.msra.mxu1 %v6589_v53  ;;  %10035 = vst [vmem:[#allocation44_spill] sm:$0xff] %v6615_v55  ;;  %v6620_v53 = vld [vmem:[%s9741_s3 + $0x4a8] sm:$0xff] }
  0x9e   :  { %540 = vmatprep.subr.mxu1 %v6595_v51  ;;  %10036 = vst [vmem:[#allocation45_spill] sm:$0xff] %v6620_v53  ;;  %583 = vmatprep.subr.mxu0 %v6620_v53  ;;  %v6644_v53 = vld [vmem:[%s9741_s3 + $0x488] sm:$0xff] }
  0x9f   :  { %541 = vmatpush2.msra.mxu1 %v6601_v49  ;;  %v6627_v49 = vld [vmem:[%s9741_s3 + $0x2a8] sm:$0xff]  ;;  %10040 = vst [vmem:[#allocation49_spill] sm:$0xff] %v6644_v53 }
  0xa0   :  { %542 = vmatprep.subr.mxu1 %v6607_v47  ;;  %10037 = vst [vmem:[#allocation46_spill] sm:$0xff] %v6627_v49  ;;  %v6632_v47 = vld [vmem:[%s9741_s3 + $0x4a0] sm:$0xff]  ;;  %v6697_v51 = vld [vmem:[%s9741_s3 + $0x248] sm:$0xff] }
  0xa1   :  { %543 = vmatpush2.msra.mxu1 %v6615_v55  ;;  %10038 = vst [vmem:[#allocation47_spill] sm:$0xff] %v6632_v47  ;;  %584 = vmatpush1.msra.mxu0 %v6632_v47  ;;  %v6639_v55 = vld [vmem:[%s9741_s3 + $0x2a0] sm:$0xff]  ;;  %10049 = vst [vmem:[#allocation58_spill] sm:$0xff] %v6697_v51 }
  0xa2   :  { %544 = vmatprep.subr.mxu1 %v6627_v49  ;;  %10039 = vst [vmem:[#allocation48_spill] sm:$0xff] %v6639_v55  ;;  %585 = vmatprep.subr.mxu0 %v6644_v53  ;;  %v6651_v49 = vld [vmem:[%s9741_s3 + $0x288] sm:$0xff]  ;;  %v6656_v47 = vld [vmem:[%s9741_s3 + $0x480] sm:$0xff] }
  0xa3   :  { %545 = vmatpush2.msra.mxu1 %v6639_v55  ;;  %10041 = vst [vmem:[#allocation50_spill] sm:$0xff] %v6651_v49  ;;  %10042 = vst [vmem:[#allocation51_spill] sm:$0xff] %v6656_v47  ;;  %586 = vmatpush1.msra.mxu0 %v6656_v47  ;;  %v6663_v55 = vld [vmem:[%s9741_s3 + $0x280] sm:$0xff]  ;;  %v6668_v53 = vld [vmem:[%s9741_s3 + $0x468] sm:$0xff] }
  0xa4   :  { %546 = vmatprep.subr.mxu1 %v6651_v49  ;;  %10043 = vst [vmem:[#allocation52_spill] sm:$0xff] %v6663_v55  ;;  %10044 = vst [vmem:[#allocation53_spill] sm:$0xff] %v6668_v53  ;;  %587 = vmatprep.subr.mxu0 %v6668_v53  ;;  %v6675_v49 = vld [vmem:[%s9741_s3 + $0x268] sm:$0xff]  ;;  %v6680_v47 = vld [vmem:[%s9741_s3 + $0x460] sm:$0xff] }
  0xa5   :  { %547 = vmatpush2.msra.mxu1 %v6663_v55  ;;  %10045 = vst [vmem:[#allocation54_spill] sm:$0xff] %v6675_v49  ;;  %10046 = vst [vmem:[#allocation55_spill] sm:$0xff] %v6680_v47  ;;  %588 = vmatpush1.msra.mxu0 %v6680_v47  ;;  %v6687_v55 = vld [vmem:[%s9741_s3 + $0x260] sm:$0xff]  ;;  %v6692_v53 = vld [vmem:[%s9741_s3 + $0x448] sm:$0xff] }
  0xa6   :  { %548 = vmatprep.subr.mxu1 %v6675_v49  ;;  %10047 = vst [vmem:[#allocation56_spill] sm:$0xff] %v6687_v55  ;;  %10048 = vst [vmem:[#allocation57_spill] sm:$0xff] %v6692_v53  ;;  %589 = vmatprep.subr.mxu0 %v6692_v53  ;;  %v6704_v47 = vld [vmem:[%s9741_s3 + $0x440] sm:$0xff]  ;;  %v6721_v53 = vld [vmem:[%s9741_s3 + $0x228] sm:$0xff] }
  0xa7   :  { %549 = vmatpush2.msra.mxu1 %v6687_v55  ;;  %10050 = vst [vmem:[#allocation59_spill] sm:$0xff] %v6704_v47  ;;  %v6709_v49 = vld [vmem:[%s9741_s3 + $0x240] sm:$0xff]  ;;  %590 = vmatpush1.msra.mxu0 %v6704_v47  ;;  %10053 = vst [vmem:[#allocation62_spill] sm:$0xff] %v6721_v53  ;;  %v6738_v47 = vld [vmem:[%s9741_s3 + $0x408] sm:$0xff] }
  0xa8   :  { %10051 = vst [vmem:[#allocation60_spill] sm:$0xff] %v6709_v49  ;;  %550 = vmatprep.subr.mxu1 %v6697_v51  ;;  %v6726_v55 = vld [vmem:[%s9741_s3 + $0x420] sm:$0xff]  ;;  %591 = vmatprep.subr.mxu0 %v6714_v57  ;;  %10056 = vst [vmem:[#allocation65_spill] sm:$0xff] %v6738_v47  ;;  %v6743_v51 = vld [vmem:[%s9741_s3 + $0x208] sm:$0xff] }
  0xa9   :  { %10054 = vst [vmem:[#allocation63_spill] sm:$0xff] %v6726_v55  ;;  %551 = vmatpush2.msra.mxu1 %v6709_v49  ;;  %10057 = vst [vmem:[#allocation66_spill] sm:$0xff] %v6743_v51  ;;  %592 = vmatpush1.msra.mxu0 %v6726_v55  ;;  %v6755_v57 = vld [vmem:[%s9741_s3 + $0x200] sm:$0xff]  ;;  %v6760_v49 = vld [vmem:[%s9741_s3 + $0x1f8] sm:$0xff] }
  0xaa   :  { %552 = vmatprep.subr.mxu1 %v6721_v53  ;;  %10059 = vst [vmem:[#allocation68_spill] sm:$0xff] %v6755_v57  ;;  %10060 = vst [vmem:[#allocation69_spill] sm:$0xff] %v6760_v49  ;;  %593 = vmatprep.subr.mxu0 %v6738_v47  ;;  %v6771_v55 = vld [vmem:[%s9741_s3 + $0x5f8] sm:$0xff]  ;;  %v9796_v53 = vlaneseq }
  0xab   :  { %553 = vmatpush2.msra.mxu1 %v6731_v59  ;;  %594 = vmatpush1.msra.mxu0 %v6748_v45  ;;  %10061 = vst [vmem:[#allocation70_spill] sm:$0xff] %v6771_v55 }
  0xac   :  { %554 = vmatprep.subr.mxu1 %v6743_v51  ;;  %634 = vmatprep.subr.mxu0 %v6760_v49  ;;  %v6775_v59 = vshrl.u32 %v9796_v53, 7  ;;  %v183_v51 = vld [vmem:[#allocation10] sm:$0x3]  ;;  %v6788_v53 = vld [vmem:[%s9741_s3 + $0x1f0] sm:$0xff] }
  0xad   :  { %555 = vmatpush2.msra.mxu1 %v6755_v57 }
  0xae   :  { %705 = vmatprep.subr.mxu1 %v6771_v55  ;;  %10062 = vst [vmem:[#allocation71_spill] sm:$0xff] %v6775_v59  ;;  %v6778_v47 = vsub.s32 0, %v6775_v59  ;;  %v6781_v45 = vsub.s32 1, %v6775_v59 }
  0xb0   :  { %10063 = vst [vmem:[#allocation72_spill] sm:$0xff] %v6778_v47  ;;  %10064 = vst [vmem:[#allocation73_spill] sm:$0xff] %v6781_v45  ;;  %v188_v49 = vrot.slane %v183_v51, %v6778_v47  ;;  %v192_v57 = vrot.slane %v183_v51, %v6781_v45  ;;  %v6795_v51 = vld [vmem:[%s9741_s3 + $0x1d8] sm:$0xff]  ;;  %v6831_v45 = vld [vmem:[%s9741_s3 + $0x1b0] sm:$0xff] }
  0xb1   :  { %10070 = vst [vmem:[#allocation79_spill] sm:$0xff] %v6831_v45  ;;  %v6838_v47 = vld [vmem:[%s9741_s3 + $0x5b8] sm:$0xff] }
  0xb2   :  { %10071 = vst [vmem:[#allocation80_spill] sm:$0xff] %v6838_v47 }
 0x133   :  { %v265_v0 = vpop.f32.mrf.mxu0 }
 0x134   :  { %v266_v43 = vadd.f32 %v265_v0, %v188_v49  ;;  %v6808_v49 = vld [vmem:[%s9741_s3 + $0x1d0] sm:$0xff] }
 0x135   :  { %v267_v14 = vpop.f32.mrf.mxu0  ;;  %10066 = vst [vmem:[#allocation75_spill] sm:$0xff] %v6808_v49 }
 0x136   :  { %270 = vst [vmem:[#allocation2 + $0x1] sm:$0x1] %v266_v43  ;;  %273 = vst [vmem:[#allocation2 + $0x4] sm:$0x2] %v266_v43  ;;  %v268_v55 = vadd.f32 %v267_v14, %v192_v57  ;;  %v6803_v43 = vld [vmem:[%s9741_s3 + $0x5f0] sm:$0xff]  ;;  %v6820_v57 = vld [vmem:[%s9741_s3 + $0x1b8] sm:$0xff] }
 0x137   :  { %10065 = vst [vmem:[#allocation74_spill] sm:$0xff] %v6803_v43  ;;  %10068 = vst [vmem:[#allocation77_spill] sm:$0xff] %v6820_v57  ;;  %v6826_v14 = vld [vmem:[%s9741_s3 + $0x5d0] sm:$0xff] }
 0x138   :  { %271 = vst [vmem:[#allocation2 + $0x2] sm:$0x1] %v268_v55  ;;  %274 = vst [vmem:[#allocation2 + $0x5] sm:$0x2] %v268_v55  ;;  %v6815_v55 = vld [vmem:[%s9741_s3 + $0x5d8] sm:$0xff] }
 0x139   :  { %10067 = vst [vmem:[#allocation76_spill] sm:$0xff] %v6815_v55  ;;  %10069 = vst [vmem:[#allocation78_spill] sm:$0xff] %v6826_v14 }
 0x13d   :  { %v6798_v0 = vld [vmem:[#allocation2] sm:$0x3] }
 0x13f   :  { %v469_v41 = vld [vmem:[#allocation2 + $0x1] sm:$0x3] }
 0x140   :  { %v6790_v59 = vld [vmem:[#allocation2 + $0x2] sm:$0x3]  ;;  %556 = vmatprep.mubr.f32.mxu1 %v469_v41 }
 0x141   :  { %628 = vmatmul.mubr.f32.vlgmr.msra.gmra.mxu0 %v6790_v59  ;;  %557 = vmatmul.mubr.f32.vlgmr.msra.gmra.mxu1 %v6798_v0 }
 0x142   :  { %635 = vmatpush1.msra.mxu0 %v6788_v53  ;;  %698 = vmatprep.mubr.f32.mxu0 %v469_v41  ;;  %v6843_v41 = vld [vmem:[%s9741_s3 + $0x198] sm:$0xff] }
 0x143   :  { %636 = vmatprep.subr.mxu0 %v6795_v51  ;;  %706 = vmatpush1.msra.mxu1 %v6803_v43  ;;  %10072 = vst [vmem:[#allocation81_spill] sm:$0xff] %v6843_v41  ;;  %v6850_v43 = vld [vmem:[%s9741_s3 + $0x5b0] sm:$0xff] }
 0x144   :  { %637 = vmatpush1.msra.mxu0 %v6808_v49  ;;  %707 = vmatprep.subr.mxu1 %v6815_v55  ;;  %10073 = vst [vmem:[#allocation82_spill] sm:$0xff] %v6850_v43  ;;  %v6855_v49 = vld [vmem:[%s9741_s3 + $0x190] sm:$0xff]  ;;  %v6862_v55 = vld [vmem:[%s9741_s3 + $0x598] sm:$0xff] }
 0x145   :  { %638 = vmatprep.subr.mxu0 %v6820_v57  ;;  %10074 = vst [vmem:[#allocation83_spill] sm:$0xff] %v6855_v49  ;;  %708 = vmatpush1.msra.mxu1 %v6826_v14  ;;  %10075 = vst [vmem:[#allocation84_spill] sm:$0xff] %v6862_v55  ;;  %v6867_v57 = vld [vmem:[%s9741_s3 + $0x178] sm:$0xff]  ;;  %v6874_v14 = vld [vmem:[%s9741_s3 + $0x590] sm:$0xff] }
 0x146   :  { %639 = vmatpush1.msra.mxu0 %v6831_v45  ;;  %10076 = vst [vmem:[#allocation85_spill] sm:$0xff] %v6867_v57  ;;  %709 = vmatprep.subr.mxu1 %v6838_v47  ;;  %10077 = vst [vmem:[#allocation86_spill] sm:$0xff] %v6874_v14  ;;  %v6879_v45 = vld [vmem:[%s9741_s3 + $0x170] sm:$0xff]  ;;  %v6886_v47 = vld [vmem:[%s9741_s3 + $0x578] sm:$0xff] }
 0x147   :  { %640 = vmatprep.subr.mxu0 %v6843_v41  ;;  %10078 = vst [vmem:[#allocation87_spill] sm:$0xff] %v6879_v45  ;;  %710 = vmatpush1.msra.mxu1 %v6850_v43  ;;  %10079 = vst [vmem:[#allocation88_spill] sm:$0xff] %v6886_v47  ;;  %v6891_v41 = vld [vmem:[%s9741_s3 + $0x158] sm:$0xff]  ;;  %v6898_v43 = vld [vmem:[%s9741_s3 + $0x570] sm:$0xff] }
 0x148   :  { %641 = vmatpush1.msra.mxu0 %v6855_v49  ;;  %10080 = vst [vmem:[#allocation89_spill] sm:$0xff] %v6891_v41  ;;  %711 = vmatprep.subr.mxu1 %v6862_v55  ;;  %10081 = vst [vmem:[#allocation90_spill] sm:$0xff] %v6898_v43  ;;  %v6903_v49 = vld [vmem:[%s9741_s3 + $0x150] sm:$0xff]  ;;  %v6910_v55 = vld [vmem:[%s9741_s3 + $0x558] sm:$0xff] }
 0x149   :  { %642 = vmatprep.subr.mxu0 %v6867_v57  ;;  %10082 = vst [vmem:[#allocation91_spill] sm:$0xff] %v6903_v49  ;;  %712 = vmatpush1.msra.mxu1 %v6874_v14  ;;  %10083 = vst [vmem:[#allocation92_spill] sm:$0xff] %v6910_v55  ;;  %v6915_v57 = vld [vmem:[%s9741_s3 + $0x138] sm:$0xff]  ;;  %v6922_v14 = vld [vmem:[%s9741_s3 + $0x550] sm:$0xff] }
 0x14a   :  { %643 = vmatpush1.msra.mxu0 %v6879_v45  ;;  %10084 = vst [vmem:[#allocation93_spill] sm:$0xff] %v6915_v57  ;;  %713 = vmatprep.subr.mxu1 %v6886_v47  ;;  %10085 = vst [vmem:[#allocation94_spill] sm:$0xff] %v6922_v14  ;;  %v6927_v45 = vld [vmem:[%s9741_s3 + $0x130] sm:$0xff]  ;;  %v6934_v47 = vld [vmem:[%s9741_s3 + $0x538] sm:$0xff] }
 0x14b   :  { %644 = vmatprep.subr.mxu0 %v6891_v41  ;;  %10086 = vst [vmem:[#allocation95_spill] sm:$0xff] %v6927_v45  ;;  %714 = vmatpush1.msra.mxu1 %v6898_v43  ;;  %10087 = vst [vmem:[#allocation96_spill] sm:$0xff] %v6934_v47  ;;  %v6939_v41 = vld [vmem:[%s9741_s3 + $0x118] sm:$0xff]  ;;  %v6946_v43 = vld [vmem:[%s9741_s3 + $0x530] sm:$0xff] }
 0x14c   :  { %645 = vmatpush1.msra.mxu0 %v6903_v49  ;;  %10088 = vst [vmem:[#allocation97_spill] sm:$0xff] %v6939_v41  ;;  %715 = vmatprep.subr.mxu1 %v6910_v55  ;;  %10089 = vst [vmem:[#allocation98_spill] sm:$0xff] %v6946_v43  ;;  %v6951_v49 = vld [vmem:[%s9741_s3 + $0x110] sm:$0xff]  ;;  %v6958_v55 = vld [vmem:[%s9741_s3 + $0x518] sm:$0xff] }
 0x14d   :  { %646 = vmatprep.subr.mxu0 %v6915_v57  ;;  %10090 = vst [vmem:[#allocation99_spill] sm:$0xff] %v6951_v49  ;;  %716 = vmatpush1.msra.mxu1 %v6922_v14  ;;  %10091 = vst [vmem:[#allocation100_spill] sm:$0xff] %v6958_v55  ;;  %v6963_v57 = vld [vmem:[%s9741_s3 + $0xf8] sm:$0xff]  ;;  %v6970_v14 = vld [vmem:[%s9741_s3 + $0x510] sm:$0xff] }
 0x14e   :  { %647 = vmatpush1.msra.mxu0 %v6927_v45  ;;  %10092 = vst [vmem:[#allocation101_spill] sm:$0xff] %v6963_v57  ;;  %717 = vmatprep.subr.mxu1 %v6934_v47  ;;  %10093 = vst [vmem:[#allocation102_spill] sm:$0xff] %v6970_v14  ;;  %v6975_v45 = vld [vmem:[%s9741_s3 + $0xf0] sm:$0xff]  ;;  %v6982_v47 = vld [vmem:[%s9741_s3 + $0x4f8] sm:$0xff] }
 0x14f   :  { %648 = vmatprep.subr.mxu0 %v6939_v41  ;;  %10094 = vst [vmem:[#allocation103_spill] sm:$0xff] %v6975_v45  ;;  %718 = vmatpush1.msra.mxu1 %v6946_v43  ;;  %10095 = vst [vmem:[#allocation104_spill] sm:$0xff] %v6982_v47  ;;  %v6987_v41 = vld [vmem:[%s9741_s3 + $0xd8] sm:$0xff]  ;;  %v6994_v43 = vld [vmem:[%s9741_s3 + $0x4f0] sm:$0xff] }
 0x150   :  { %649 = vmatpush1.msra.mxu0 %v6951_v49  ;;  %10096 = vst [vmem:[#allocation105_spill] sm:$0xff] %v6987_v41  ;;  %719 = vmatprep.subr.mxu1 %v6958_v55  ;;  %10097 = vst [vmem:[#allocation106_spill] sm:$0xff] %v6994_v43  ;;  %v6999_v49 = vld [vmem:[%s9741_s3 + $0xd0] sm:$0xff]  ;;  %v7006_v55 = vld [vmem:[%s9741_s3 + $0x4d8] sm:$0xff] }
 0x151   :  { %650 = vmatprep.subr.mxu0 %v6963_v57  ;;  %10098 = vst [vmem:[#allocation107_spill] sm:$0xff] %v6999_v49  ;;  %720 = vmatpush1.msra.mxu1 %v6970_v14  ;;  %10099 = vst [vmem:[#allocation108_spill] sm:$0xff] %v7006_v55  ;;  %v7011_v57 = vld [vmem:[%s9741_s3 + $0xb8] sm:$0xff]  ;;  %v7018_v14 = vld [vmem:[%s9741_s3 + $0x4d0] sm:$0xff] }
 0x152   :  { %651 = vmatpush1.msra.mxu0 %v6975_v45  ;;  %10100 = vst [vmem:[#allocation109_spill] sm:$0xff] %v7011_v57  ;;  %721 = vmatprep.subr.mxu1 %v6982_v47  ;;  %10101 = vst [vmem:[#allocation110_spill] sm:$0xff] %v7018_v14  ;;  %v7023_v45 = vld [vmem:[%s9741_s3 + $0xb0] sm:$0xff]  ;;  %v7030_v47 = vld [vmem:[%s9741_s3 + $0x4b8] sm:$0xff] }
 0x153   :  { %652 = vmatprep.subr.mxu0 %v6987_v41  ;;  %10102 = vst [vmem:[#allocation111_spill] sm:$0xff] %v7023_v45  ;;  %722 = vmatpush1.msra.mxu1 %v6994_v43  ;;  %10103 = vst [vmem:[#allocation112_spill] sm:$0xff] %v7030_v47  ;;  %v7035_v41 = vld [vmem:[%s9741_s3 + $0x98] sm:$0xff]  ;;  %v7042_v43 = vld [vmem:[%s9741_s3 + $0x4b0] sm:$0xff] }
 0x154   :  { %653 = vmatpush1.msra.mxu0 %v6999_v49  ;;  %10104 = vst [vmem:[#allocation113_spill] sm:$0xff] %v7035_v41  ;;  %723 = vmatprep.subr.mxu1 %v7006_v55  ;;  %10105 = vst [vmem:[#allocation114_spill] sm:$0xff] %v7042_v43  ;;  %v7047_v49 = vld [vmem:[%s9741_s3 + $0x90] sm:$0xff]  ;;  %v7054_v55 = vld [vmem:[%s9741_s3 + $0x498] sm:$0xff] }
 0x155   :  { %654 = vmatprep.subr.mxu0 %v7011_v57  ;;  %10106 = vst [vmem:[#allocation115_spill] sm:$0xff] %v7047_v49  ;;  %724 = vmatpush1.msra.mxu1 %v7018_v14  ;;  %10107 = vst [vmem:[#allocation116_spill] sm:$0xff] %v7054_v55  ;;  %v7059_v57 = vld [vmem:[%s9741_s3 + $0x78] sm:$0xff]  ;;  %v7066_v14 = vld [vmem:[%s9741_s3 + $0x490] sm:$0xff] }
 0x156   :  { %655 = vmatpush1.msra.mxu0 %v7023_v45  ;;  %10108 = vst [vmem:[#allocation117_spill] sm:$0xff] %v7059_v57  ;;  %725 = vmatprep.subr.mxu1 %v7030_v47  ;;  %10109 = vst [vmem:[#allocation118_spill] sm:$0xff] %v7066_v14  ;;  %v7071_v45 = vld [vmem:[%s9741_s3 + $0x70] sm:$0xff]  ;;  %v7078_v47 = vld [vmem:[%s9741_s3 + $0x478] sm:$0xff] }
 0x157   :  { %656 = vmatprep.subr.mxu0 %v7035_v41  ;;  %10110 = vst [vmem:[#allocation119_spill] sm:$0xff] %v7071_v45  ;;  %726 = vmatpush1.msra.mxu1 %v7042_v43  ;;  %10111 = vst [vmem:[#allocation120_spill] sm:$0xff] %v7078_v47  ;;  %v7083_v41 = vld [vmem:[%s9741_s3 + $0x58] sm:$0xff]  ;;  %v7090_v43 = vld [vmem:[%s9741_s3 + $0x470] sm:$0xff] }
 0x158   :  { %657 = vmatpush1.msra.mxu0 %v7047_v49  ;;  %10112 = vst [vmem:[#allocation121_spill] sm:$0xff] %v7083_v41  ;;  %727 = vmatprep.subr.mxu1 %v7054_v55  ;;  %10113 = vst [vmem:[#allocation122_spill] sm:$0xff] %v7090_v43  ;;  %v7095_v49 = vld [vmem:[%s9741_s3 + $0x50] sm:$0xff]  ;;  %v7102_v55 = vld [vmem:[%s9741_s3 + $0x458] sm:$0xff] }
 0x159   :  { %658 = vmatprep.subr.mxu0 %v7059_v57  ;;  %10114 = vst [vmem:[#allocation123_spill] sm:$0xff] %v7095_v49  ;;  %728 = vmatpush1.msra.mxu1 %v7066_v14  ;;  %10115 = vst [vmem:[#allocation124_spill] sm:$0xff] %v7102_v55  ;;  %v7107_v57 = vld [vmem:[%s9741_s3 + $0x38] sm:$0xff]  ;;  %v7114_v14 = vld [vmem:[%s9741_s3 + $0x450] sm:$0xff] }
 0x15a   :  { %659 = vmatpush1.msra.mxu0 %v7071_v45  ;;  %10116 = vst [vmem:[#allocation125_spill] sm:$0xff] %v7107_v57  ;;  %729 = vmatprep.subr.mxu1 %v7078_v47  ;;  %10117 = vst [vmem:[#allocation126_spill] sm:$0xff] %v7114_v14  ;;  %v7119_v45 = vld [vmem:[%s9741_s3 + $0x30] sm:$0xff]  ;;  %v7126_v47 = vld [vmem:[%s9741_s3 + $0x438] sm:$0xff] }
 0x15b   :  { %660 = vmatprep.subr.mxu0 %v7083_v41  ;;  %10118 = vst [vmem:[#allocation127_spill] sm:$0xff] %v7119_v45  ;;  %730 = vmatpush1.msra.mxu1 %v7090_v43  ;;  %10119 = vst [vmem:[#allocation128_spill] sm:$0xff] %v7126_v47  ;;  %v7131_v41 = vld [vmem:[%s9741_s3 + $0x18] sm:$0xff]  ;;  %v7138_v43 = vld [vmem:[%s9741_s3 + $0x430] sm:$0xff] }
 0x15c   :  { %661 = vmatpush1.msra.mxu0 %v7095_v49  ;;  %10120 = vst [vmem:[#allocation129_spill] sm:$0xff] %v7131_v41  ;;  %731 = vmatprep.subr.mxu1 %v7102_v55  ;;  %v7143_v49 = vld [vmem:[%s9741_s3 + $0x10] sm:$0xff]  ;;  %v7150_v55 = vld [vmem:[%s9741_s3 + $0x418] sm:$0xff] }
 0x15d   :  { %662 = vmatprep.subr.mxu0 %v7107_v57  ;;  %10121 = vst [vmem:[#allocation130_spill] sm:$0xff] %v7143_v49  ;;  %732 = vmatpush1.msra.mxu1 %v7114_v14  ;;  %v7155_v57 = vld [vmem:[%s9741_s3 + $0x3f8] sm:$0xff]  ;;  %v7162_v14 = vld [vmem:[%s9741_s3 + $0x410] sm:$0xff] }
 0x15e   :  { %663 = vmatpush1.msra.mxu0 %v7119_v45  ;;  %10122 = vst [vmem:[#allocation131_spill] sm:$0xff] %v7155_v57  ;;  %733 = vmatprep.subr.mxu1 %v7126_v47  ;;  %10123 = vst [vmem:[#allocation132_spill] sm:$0xff] %v7162_v14  ;;  %v7169_v45 = vld [vmem:[%s9741_s3 + $0x3f0] sm:$0xff]  ;;  %v10124_v47 = vmov 0.0  }
 0x15f   :  { %664 = vmatprep.subr.mxu0 %v7131_v41  ;;  %734 = vmatpush1.msra.mxu1 %v7138_v43  ;;  %v7176_v41 = vld [vmem:[%s9741_s3 + $0x3d8] sm:$0xff] }
 0x160   :  { %665 = vmatpush1.msra.mxu0 %v7143_v49  ;;  %735 = vmatprep.subr.mxu1 %v7150_v55  ;;  %v7185_v49 = vld [vmem:[%s9741_s3 + $0x3d0] sm:$0xff] }
 0x161   :  { %666 = vmatprep.subr.mxu0 %v7155_v57  ;;  %736 = vmatpush1.msra.mxu1 %v7162_v14  ;;  %v7189_v57 = vld [vmem:[#allocation2 + $0x5] sm:$0x3]  ;;  %v7194_v14 = vld [vmem:[%s9741_s3 + $0x3b8] sm:$0xff] }
 0x162   :  { %769 = vmatprep.mubr.f32.mxu1 %v10124_v47  ;;  %667 = vmatpush2.msra.mxu0 %v7169_v45  ;;  %v7201_v47 = vld [vmem:[%s9741_s3 + $0x3b0] sm:$0xff] }
 0x163   :  { %770 = vmatmul.mubr.f32.vlgmr.msra.gmra.mxu1 %v6790_v59  ;;  %853 = vmatprep.subr.mxu1 %v6188_v7  ;;  %v7208_v7 = vld [vmem:[%s9741_s3 + $0x398] sm:$0xff] }
 0x164   :  { %668 = vmatprep.subr.mxu0 %v7176_v41  ;;  %854 = vmatpush1.msra.mxu1 %v6193_v8  ;;  %v7215_v8 = vld [vmem:[%s9741_s3 + $0x390] sm:$0xff] }
 0x165   :  { %917 = vmatprep.mubr.f32.mxu1 %v7189_v57  ;;  %669 = vmatpush2.msra.mxu0 %v7185_v49  ;;  %v10139_v59 = vld [vmem:[#allocation32_spill] sm:$0xff] }
 0x166   :  { %855 = vmatprep.subr.mxu1 %v6198_v9  ;;  %670 = vmatprep.subr.mxu0 %v7194_v14  ;;  %v7222_v9 = vld [vmem:[%s9741_s3 + $0x378] sm:$0xff] }
 0x167   :  { %856 = vmatpush1.msra.mxu1 %v6204_v11  ;;  %671 = vmatpush2.msra.mxu0 %v7201_v47  ;;  %v7229_v11 = vld [vmem:[%s9741_s3 + $0x370] sm:$0xff] }
 0x168   :  { %857 = vmatprep.subr.mxu1 %v6210_v13  ;;  %672 = vmatprep.subr.mxu0 %v7208_v7  ;;  %v7236_v13 = vld [vmem:[%s9741_s3 + $0x358] sm:$0xff] }
 0x169   :  { %858 = vmatpush1.msra.mxu1 %v6216_v15  ;;  %673 = vmatpush2.msra.mxu0 %v7215_v8  ;;  %v7243_v15 = vld [vmem:[%s9741_s3 + $0x350] sm:$0xff] }
 0x16a   :  { %859 = vmatprep.subr.mxu1 %v6222_v16  ;;  %674 = vmatprep.subr.mxu0 %v7222_v9  ;;  %v7250_v16 = vld [vmem:[%s9741_s3 + $0x338] sm:$0xff] }
 0x16b   :  { %860 = vmatpush1.msra.mxu1 %v6228_v17  ;;  %675 = vmatpush2.msra.mxu0 %v7229_v11  ;;  %v7257_v17 = vld [vmem:[%s9741_s3 + $0x330] sm:$0xff] }
 0x16c   :  { %861 = vmatprep.subr.mxu1 %v6234_v18  ;;  %676 = vmatprep.subr.mxu0 %v7236_v13  ;;  %v7264_v18 = vld [vmem:[%s9741_s3 + $0x318] sm:$0xff] }
 0x16d   :  { %862 = vmatpush1.msra.mxu1 %v6240_v19  ;;  %677 = vmatpush2.msra.mxu0 %v7243_v15  ;;  %v7271_v19 = vld [vmem:[%s9741_s3 + $0x310] sm:$0xff] }
 0x16e   :  { %863 = vmatprep.subr.mxu1 %v6247_v20  ;;  %678 = vmatprep.subr.mxu0 %v7250_v16  ;;  %v7278_v20 = vld [vmem:[%s9741_s3 + $0x2f8] sm:$0xff] }
 0x16f   :  { %864 = vmatpush1.msra.mxu1 %v6253_v21  ;;  %679 = vmatpush2.msra.mxu0 %v7257_v17  ;;  %v7285_v21 = vld [vmem:[%s9741_s3 + $0x2f0] sm:$0xff] }
 0x170   :  { %865 = vmatprep.subr.mxu1 %v6259_v22  ;;  %680 = vmatprep.subr.mxu0 %v7264_v18  ;;  %v7292_v22 = vld [vmem:[%s9741_s3 + $0x2d8] sm:$0xff] }
 0x171   :  { %866 = vmatpush1.msra.mxu1 %v6270_v24  ;;  %681 = vmatpush2.msra.mxu0 %v7271_v19  ;;  %v7299_v24 = vld [vmem:[%s9741_s3 + $0x2d0] sm:$0xff] }
 0x172   :  { %867 = vmatprep.subr.mxu1 %v6282_v26  ;;  %682 = vmatprep.subr.mxu0 %v7278_v20  ;;  %v7306_v26 = vld [vmem:[%s9741_s3 + $0x2b8] sm:$0xff] }
 0x173   :  { %868 = vmatpush1.msra.mxu1 %v6299_v29  ;;  %683 = vmatpush2.msra.mxu0 %v7285_v21  ;;  %v7313_v29 = vld [vmem:[%s9741_s3 + $0x2b0] sm:$0xff] }
 0x174   :  { %869 = vmatprep.subr.mxu1 %v6311_v31  ;;  %684 = vmatprep.subr.mxu0 %v7292_v22  ;;  %v7320_v31 = vld [vmem:[%s9741_s3 + $0x298] sm:$0xff] }
 0x175   :  { %870 = vmatpush1.msra.mxu1 %v6328_v34  ;;  %685 = vmatpush2.msra.mxu0 %v7299_v24  ;;  %v7327_v34 = vld [vmem:[%s9741_s3 + $0x290] sm:$0xff] }
 0x176   :  { %871 = vmatprep.subr.mxu1 %v6340_v36  ;;  %686 = vmatprep.subr.mxu0 %v7306_v26  ;;  %v7334_v36 = vld [vmem:[%s9741_s3 + $0x278] sm:$0xff] }
 0x177   :  { %872 = vmatpush1.msra.mxu1 %v6352_v38  ;;  %687 = vmatpush2.msra.mxu0 %v7313_v29  ;;  %v7341_v38 = vld [vmem:[%s9741_s3 + $0x270] sm:$0xff] }
 0x178   :  { %873 = vmatprep.subr.mxu1 %v6364_v40  ;;  %688 = vmatprep.subr.mxu0 %v7320_v31  ;;  %v7348_v40 = vld [vmem:[%s9741_s3 + $0x258] sm:$0xff] }
 0x179   :  { %874 = vmatpush1.msra.mxu1 %v6376_v42  ;;  %689 = vmatpush2.msra.mxu0 %v7327_v34  ;;  %v7355_v42 = vld [vmem:[%s9741_s3 + $0x250] sm:$0xff] }
 0x17a   :  { %875 = vmatprep.subr.mxu1 %v6388_v44  ;;  %690 = vmatprep.subr.mxu0 %v7334_v36  ;;  %v7362_v44 = vld [vmem:[%s9741_s3 + $0x238] sm:$0xff] }
 0x17b   :  { %876 = vmatpush1.msra.mxu1 %v6400_v46  ;;  %691 = vmatpush2.msra.mxu0 %v7341_v38  ;;  %v7369_v46 = vld [vmem:[%s9741_s3 + $0x230] sm:$0xff] }
 0x17c   :  { %877 = vmatprep.subr.mxu1 %v6412_v48  ;;  %692 = vmatprep.subr.mxu0 %v7348_v40  ;;  %v7376_v48 = vld [vmem:[%s9741_s3 + $0x218] sm:$0xff] }
 0x17d   :  { %878 = vmatpush1.msra.mxu1 %v6424_v50  ;;  %693 = vmatpush2.msra.mxu0 %v7355_v42  ;;  %v7383_v50 = vld [vmem:[%s9741_s3 + $0x210] sm:$0xff] }
 0x17e   :  { %879 = vmatprep.subr.mxu1 %v6436_v52  ;;  %694 = vmatprep.subr.mxu0 %v7362_v44  ;;  %v10135_v52 = vld [vmem:[#allocation30_spill] sm:$0xff] }
 0x17f   :  { %880 = vmatpush1.msra.mxu1 %v6448_v54  ;;  %695 = vmatpush2.msra.mxu0 %v7369_v46  ;;  %v10136_v54 = vld [vmem:[#allocation40_spill] sm:$0xff] }
 0x180   :  { %881 = vmatprep.subr.mxu1 %v6460_v56  ;;  %696 = vmatprep.subr.mxu0 %v7376_v48  ;;  %v10137_v56 = vld [vmem:[#allocation31_spill] sm:$0xff] }
 0x181   :  { %882 = vmatpush1.msra.mxu1 %v6472_v58  ;;  %697 = vmatpush2.msra.mxu0 %v7383_v50  ;;  %v10138_v58 = vld [vmem:[#allocation41_spill] sm:$0xff] }
 0x182   :  { %883 = vmatprep.subr.mxu1 %v6484_v60  ;;  %699 = vmatmul.mubr.f32.vlgmr.msra.gmra.mxu0 %v6798_v0  ;;  %v10140_v60 = vld [vmem:[#allocation42_spill] sm:$0xff]  ;;  %v10152_v0 = vld [vmem:[#allocation52_spill] sm:$0xff] }
 0x183   :  { %884 = vmatpush1.msra.mxu1 %v6491_v61  ;;  %924 = vmatprep.subr.mxu0 %v6264_v23  ;;  %v10125_v23 = vld [vmem:[#allocation25_spill] sm:$0xff] }
 0x184   :  { %885 = vmatprep.subr.mxu1 %v6498_v62  ;;  %925 = vmatpush1.msra.mxu0 %v6276_v25  ;;  %v10126_v25 = vld [vmem:[#allocation35_spill] sm:$0xff]  ;;  %v10141_v61 = vld [vmem:[#allocation33_spill] sm:$0xff] }
 0x185   :  { %886 = vmatpush2.msra.mxu1 %v6505_v63  ;;  %926 = vmatprep.subr.mxu0 %v6288_v27  ;;  %v10127_v27 = vld [vmem:[#allocation26_spill] sm:$0xff]  ;;  %v10142_v62 = vld [vmem:[#allocation43_spill] sm:$0xff] }
 0x186   :  { %887 = vmatprep.subr.mxu1 %v6511_v1  ;;  %927 = vmatpush1.msra.mxu0 %v6293_v28  ;;  %v10128_v28 = vld [vmem:[#allocation36_spill] sm:$0xff]  ;;  %v10143_v63 = vld [vmem:[#allocation34_spill] sm:$0xff] }
 0x187   :  { %888 = vmatpush2.msra.mxu1 %v6517_v2  ;;  %928 = vmatprep.subr.mxu0 %v6305_v30  ;;  %v10129_v30 = vld [vmem:[#allocation27_spill] sm:$0xff]  ;;  %v10144_v1 = vld [vmem:[#allocation44_spill] sm:$0xff]  ;;  %v10145_v2 = vld [vmem:[#allocation45_spill] sm:$0xff] }
 0x188   :  { %889 = vmatprep.subr.mxu1 %v6523_v3  ;;  %929 = vmatpush1.msra.mxu0 %v6317_v32  ;;  %v10130_v32 = vld [vmem:[#allocation37_spill] sm:$0xff]  ;;  %v10146_v3 = vld [vmem:[#allocation46_spill] sm:$0xff] }
 0x189   :  { %890 = vmatpush2.msra.mxu1 %v6529_v4  ;;  %930 = vmatprep.subr.mxu0 %v6322_v33  ;;  %v10131_v33 = vld [vmem:[#allocation28_spill] sm:$0xff]  ;;  %v10147_v4 = vld [vmem:[#allocation47_spill] sm:$0xff] }
 0x18a   :  { %891 = vmatprep.subr.mxu1 %v6535_v5  ;;  %931 = vmatpush1.msra.mxu0 %v6334_v35  ;;  %v10132_v35 = vld [vmem:[#allocation38_spill] sm:$0xff]  ;;  %v10148_v5 = vld [vmem:[#allocation48_spill] sm:$0xff] }
 0x18b   :  { %892 = vmatpush2.msra.mxu1 %v6541_v6  ;;  %932 = vmatprep.subr.mxu0 %v6346_v37  ;;  %v10133_v37 = vld [vmem:[#allocation29_spill] sm:$0xff] }
 0x18c   :  { %893 = vmatprep.subr.mxu1 %v6547_v10  ;;  %933 = vmatpush1.msra.mxu0 %v6358_v39  ;;  %v10134_v39 = vld [vmem:[#allocation39_spill] sm:$0xff]  ;;  %v10149_v6 = vld [vmem:[#allocation49_spill] sm:$0xff]  ;;  %v10150_v10 = vld [vmem:[#allocation50_spill] sm:$0xff] }
 0x18d   :  { %894 = vmatpush2.msra.mxu1 %v6553_v12  ;;  %934 = vmatprep.subr.mxu0 %v10125_v23  ;;  %v10151_v12 = vld [vmem:[#allocation51_spill] sm:$0xff]  ;;  %v10153_v23 = vld [vmem:[#allocation53_spill] sm:$0xff] }
 0x18e   :  { %895 = vmatprep.subr.mxu1 %v10126_v25  ;;  %935 = vmatpush1.msra.mxu0 %v10127_v27  ;;  %v10154_v25 = vld [vmem:[#allocation54_spill] sm:$0xff]  ;;  %v10155_v27 = vld [vmem:[#allocation55_spill] sm:$0xff] }
 0x18f   :  { %896 = vmatpush2.msra.mxu1 %v10128_v28  ;;  %936 = vmatprep.subr.mxu0 %v10129_v30  ;;  %v10156_v28 = vld [vmem:[#allocation56_spill] sm:$0xff]  ;;  %v10157_v30 = vld [vmem:[#allocation57_spill] sm:$0xff] }
 0x190   :  { %897 = vmatprep.subr.mxu1 %v10130_v32  ;;  %937 = vmatpush1.msra.mxu0 %v10131_v33  ;;  %v10158_v32 = vld [vmem:[#allocation58_spill] sm:$0xff]  ;;  %v10159_v33 = vld [vmem:[#allocation59_spill] sm:$0xff] }
 0x191   :  { %898 = vmatpush2.msra.mxu1 %v10132_v35  ;;  %938 = vmatprep.subr.mxu0 %v10133_v37  ;;  %v10160_v35 = vld [vmem:[#allocation60_spill] sm:$0xff]  ;;  %v10161_v37 = vld [vmem:[#allocation61_spill] sm:$0xff] }
 0x192   :  { %899 = vmatprep.subr.mxu1 %v10134_v39  ;;  %939 = vmatpush1.msra.mxu0 %v10135_v52  ;;  %v10162_v39 = vld [vmem:[#allocation62_spill] sm:$0xff]  ;;  %v10163_v52 = vld [vmem:[#allocation63_spill] sm:$0xff] }
 0x193   :  { %900 = vmatpush2.msra.mxu1 %v10136_v54  ;;  %940 = vmatprep.subr.mxu0 %v10137_v56  ;;  %v10164_v54 = vld [vmem:[#allocation64_spill] sm:$0xff]  ;;  %v10165_v56 = vld [vmem:[#allocation65_spill] sm:$0xff] }
 0x194   :  { %901 = vmatprep.subr.mxu1 %v10138_v58  ;;  %941 = vmatpush1.msra.mxu0 %v10139_v59  ;;  %v10166_v58 = vld [vmem:[#allocation66_spill] sm:$0xff]  ;;  %v10167_v59 = vld [vmem:[#allocation67_spill] sm:$0xff] }
 0x195   :  { %902 = vmatpush2.msra.mxu1 %v10140_v60  ;;  %942 = vmatprep.subr.mxu0 %v10141_v61  ;;  %v7456_v60 = vld [vmem:[#allocation4] sm:$0xff]  ;;  %v7459_v61 = vld [vmem:[#allocation2 + $0x6] sm:$0x3] }
 0x196   :  { %903 = vmatprep.subr.mxu1 %v10142_v62  ;;  %943 = vmatpush1.msra.mxu0 %v10143_v63  ;;  %v10168_v62 = vld [vmem:[#allocation68_spill] sm:$0xff]  ;;  %v7463_v63 = vld [vmem:[#allocation2 + $0x4] sm:$0x3] }
 0x197   :  { %904 = vmatpush2.msra.mxu1 %v10144_v1  ;;  %944 = vmatprep.subr.mxu0 %v10145_v2  ;;  %v10169_v1 = vld [vmem:[#allocation69_spill] sm:$0xff]  ;;  %v10170_v2 = vld [vmem:[#allocation70_spill] sm:$0xff] }
 0x198   :  { %905 = vmatprep.subr.mxu1 %v10146_v3  ;;  %945 = vmatpush1.msra.mxu0 %v10147_v4  ;;  %v10171_v3 = vld [vmem:[#allocation74_spill] sm:$0xff]  ;;  %v10172_v4 = vld [vmem:[#allocation75_spill] sm:$0xff] }
 0x199   :  { %906 = vmatpush2.msra.mxu1 %v10148_v5  ;;  %946 = vmatprep.subr.mxu0 %v10149_v6  ;;  %v10173_v5 = vld [vmem:[#allocation76_spill] sm:$0xff]  ;;  %v10174_v6 = vld [vmem:[#allocation77_spill] sm:$0xff] }
 0x19a   :  { %907 = vmatprep.subr.mxu1 %v10150_v10  ;;  %947 = vmatpush1.msra.mxu0 %v10151_v12  ;;  %v10175_v10 = vld [vmem:[#allocation78_spill] sm:$0xff]  ;;  %v10176_v12 = vld [vmem:[#allocation79_spill] sm:$0xff] }
 0x19b   :  { %908 = vmatpush2.msra.mxu1 %v10152_v0  ;;  %948 = vmatprep.subr.mxu0 %v10153_v23  ;;  %v10177_v0 = vld [vmem:[#allocation80_spill] sm:$0xff]  ;;  %v10180_v23 = vld [vmem:[#allocation83_spill] sm:$0xff] }
 0x19c   :  { %909 = vmatprep.subr.mxu1 %v10154_v25  ;;  %949 = vmatpush1.msra.mxu0 %v10155_v27  ;;  %v10182_v25 = vld [vmem:[#allocation85_spill] sm:$0xff]  ;;  %v10183_v27 = vld [vmem:[#allocation86_spill] sm:$0xff] }
 0x19d   :  { %910 = vmatpush2.msra.mxu1 %v10156_v28  ;;  %950 = vmatprep.subr.mxu0 %v10157_v30  ;;  %v10184_v28 = vld [vmem:[#allocation87_spill] sm:$0xff]  ;;  %v10185_v30 = vld [vmem:[#allocation88_spill] sm:$0xff] }
 0x19e   :  { %911 = vmatprep.subr.mxu1 %v10158_v32  ;;  %951 = vmatpush1.msra.mxu0 %v10159_v33  ;;  %v10186_v32 = vld [vmem:[#allocation89_spill] sm:$0xff]  ;;  %v10187_v33 = vld [vmem:[#allocation90_spill] sm:$0xff] }
 0x19f   :  { %912 = vmatpush2.msra.mxu1 %v10160_v35  ;;  %952 = vmatprep.subr.mxu0 %v10161_v37  ;;  %v10188_v35 = vld [vmem:[#allocation91_spill] sm:$0xff]  ;;  %v10189_v37 = vld [vmem:[#allocation92_spill] sm:$0xff] }
 0x1a0   :  { %913 = vmatprep.subr.mxu1 %v10162_v39  ;;  %953 = vmatpush1.msra.mxu0 %v10163_v52  ;;  %v10190_v39 = vld [vmem:[#allocation93_spill] sm:$0xff]  ;;  %v10191_v52 = vld [vmem:[#allocation94_spill] sm:$0xff] }
 0x1a1   :  { %914 = vmatpush2.msra.mxu1 %v10164_v54  ;;  %954 = vmatprep.subr.mxu0 %v10165_v56  ;;  %v10192_v54 = vld [vmem:[#allocation95_spill] sm:$0xff]  ;;  %v10193_v56 = vld [vmem:[#allocation96_spill] sm:$0xff] }
 0x1a2   :  { %915 = vmatprep.subr.mxu1 %v10166_v58  ;;  %955 = vmatpush1.msra.mxu0 %v10167_v59  ;;  %v10194_v58 = vld [vmem:[#allocation97_spill] sm:$0xff]  ;;  %v10195_v59 = vld [vmem:[#allocation98_spill] sm:$0xff] }
 0x1a3   :  { %988 = vmatprep.mubr.f32.mxu0 %v7456_v60  ;;  %916 = vmatpush2.msra.mxu1 %v10168_v62  ;;  %v10196_v62 = vld [vmem:[#allocation99_spill] sm:$0xff] }
 0x1a4   :  { %989 = vmatmul.mubr.f32.vlgmr.msra.gmra.mxu0 %v7459_v61  ;;  %995 = vmatprep.subr.mxu0 %v10169_v1  ;;  %v10197_v1 = vld [vmem:[#allocation100_spill] sm:$0xff] }
 0x1a5   :  { %918 = vmatmul.mubr.f32.vlgmr.msra.gmra.mxu1 %v7463_v63  ;;  %996 = vmatpush1.msra.mxu0 %v6788_v53  ;;  %v10178_v53 = vld [vmem:[#allocation81_spill] sm:$0xff] }
 0x1a6   :  { %1059 = vmatprep.mubr.f32.mxu0 %v7189_v57  ;;  %1066 = vmatprep.subr.mxu1 %v10170_v2  ;;  %v10179_v57 = vld [vmem:[#allocation82_spill] sm:$0xff]  ;;  %v10198_v2 = vld [vmem:[#allocation101_spill] sm:$0xff] }
 0x1a7   :  { %997 = vmatprep.subr.mxu0 %v6795_v51  ;;  %1067 = vmatpush1.msra.mxu1 %v10171_v3  ;;  %v10181_v51 = vld [vmem:[#allocation84_spill] sm:$0xff]  ;;  %v10199_v3 = vld [vmem:[#allocation102_spill] sm:$0xff] }
 0x1a8   :  { %998 = vmatpush1.msra.mxu0 %v10172_v4  ;;  %1068 = vmatprep.subr.mxu1 %v10173_v5  ;;  %v10200_v4 = vld [vmem:[#allocation103_spill] sm:$0xff]  ;;  %v10201_v5 = vld [vmem:[#allocation104_spill] sm:$0xff] }
 0x1a9   :  { %999 = vmatprep.subr.mxu0 %v10174_v6  ;;  %1069 = vmatpush1.msra.mxu1 %v10175_v10  ;;  %v10202_v6 = vld [vmem:[#allocation105_spill] sm:$0xff]  ;;  %v10203_v10 = vld [vmem:[#allocation106_spill] sm:$0xff] }
 0x1aa   :  { %1000 = vmatpush1.msra.mxu0 %v10176_v12  ;;  %1070 = vmatprep.subr.mxu1 %v10177_v0  ;;  %v10204_v12 = vld [vmem:[#allocation107_spill] sm:$0xff]  ;;  %v10205_v0 = vld [vmem:[#allocation108_spill] sm:$0xff] }
 0x1ab   :  { %1001 = vmatprep.subr.mxu0 %v10178_v53  ;;  %1071 = vmatpush1.msra.mxu1 %v10179_v57  ;;  %v10206_v53 = vld [vmem:[#allocation109_spill] sm:$0xff]  ;;  %v10207_v57 = vld [vmem:[#allocation110_spill] sm:$0xff] }
 0x1ac   :  { %1002 = vmatpush1.msra.mxu0 %v10180_v23  ;;  %1072 = vmatprep.subr.mxu1 %v10181_v51  ;;  %v10208_v23 = vld [vmem:[#allocation111_spill] sm:$0xff]  ;;  %v10209_v51 = vld [vmem:[#allocation112_spill] sm:$0xff] }
 0x1ad   :  { %1003 = vmatprep.subr.mxu0 %v10182_v25  ;;  %1073 = vmatpush1.msra.mxu1 %v10183_v27  ;;  %v10210_v25 = vld [vmem:[#allocation113_spill] sm:$0xff]  ;;  %v10211_v27 = vld [vmem:[#allocation114_spill] sm:$0xff] }
 0x1ae   :  { %1004 = vmatpush1.msra.mxu0 %v10184_v28  ;;  %1074 = vmatprep.subr.mxu1 %v10185_v30  ;;  %v10212_v28 = vld [vmem:[#allocation115_spill] sm:$0xff]  ;;  %v10213_v30 = vld [vmem:[#allocation116_spill] sm:$0xff] }
 0x1af   :  { %1005 = vmatprep.subr.mxu0 %v10186_v32  ;;  %1075 = vmatpush1.msra.mxu1 %v10187_v33  ;;  %v10214_v32 = vld [vmem:[#allocation117_spill] sm:$0xff]  ;;  %v10215_v33 = vld [vmem:[#allocation118_spill] sm:$0xff] }
 0x1b0   :  { %1006 = vmatpush1.msra.mxu0 %v10188_v35  ;;  %1076 = vmatprep.subr.mxu1 %v10189_v37  ;;  %v10216_v35 = vld [vmem:[#allocation119_spill] sm:$0xff]  ;;  %v10217_v37 = vld [vmem:[#allocation120_spill] sm:$0xff] }
 0x1b1   :  { %1007 = vmatprep.subr.mxu0 %v10190_v39  ;;  %1077 = vmatpush1.msra.mxu1 %v10191_v52  ;;  %v10218_v39 = vld [vmem:[#allocation121_spill] sm:$0xff]  ;;  %v10219_v52 = vld [vmem:[#allocation122_spill] sm:$0xff] }
 0x1b2   :  { %1008 = vmatpush1.msra.mxu0 %v10192_v54  ;;  %1078 = vmatprep.subr.mxu1 %v10193_v56  ;;  %v10220_v54 = vld [vmem:[#allocation123_spill] sm:$0xff]  ;;  %v10221_v56 = vld [vmem:[#allocation124_spill] sm:$0xff] }
 0x1b3   :  { %1009 = vmatprep.subr.mxu0 %v10194_v58  ;;  %1079 = vmatpush1.msra.mxu1 %v10195_v59  ;;  %v10222_v58 = vld [vmem:[#allocation125_spill] sm:$0xff]  ;;  %v10223_v59 = vld [vmem:[#allocation126_spill] sm:$0xff] }
 0x1b4   :  { %1010 = vmatpush1.msra.mxu0 %v10196_v62  ;;  %1080 = vmatprep.subr.mxu1 %v10197_v1  ;;  %v10224_v62 = vld [vmem:[#allocation127_spill] sm:$0xff]  ;;  %v10225_v1 = vld [vmem:[#allocation128_spill] sm:$0xff] }
 0x1b5   :  { %1011 = vmatprep.subr.mxu0 %v10198_v2  ;;  %1081 = vmatpush1.msra.mxu1 %v10199_v3  ;;  %v10226_v2 = vld [vmem:[#allocation129_spill] sm:$0xff]  ;;  %v10227_v3 = vld [vmem:[#allocation130_spill] sm:$0xff] }
 0x1b6   :  { %1012 = vmatpush1.msra.mxu0 %v10200_v4  ;;  %1082 = vmatprep.subr.mxu1 %v10201_v5  ;;  %v10228_v4 = vld [vmem:[#allocation131_spill] sm:$0xff]  ;;  %v1269_v5 = vld [vmem:[#allocation13 + $0x1e8] sm:$0xff] }
 0x1b7   :  { %1013 = vmatprep.subr.mxu0 %v10202_v6  ;;  %1083 = vmatpush1.msra.mxu1 %v10203_v10  ;;  %v10229_v6 = vld [vmem:[#allocation132_spill] sm:$0xff] }
 0x1b8   :  { %1014 = vmatpush1.msra.mxu0 %v10204_v12  ;;  %1084 = vmatprep.subr.mxu1 %v10205_v0  ;;  %v1268_v10 = vld [vmem:[#allocation13 + $0x1e0] sm:$0xff]  ;;  %v1265_v12 = vld [vmem:[#allocation13 + $0x1c8] sm:$0xff] }
 0x1b9   :  { %1015 = vmatprep.subr.mxu0 %v10206_v53  ;;  %1085 = vmatpush1.msra.mxu1 %v10207_v57  ;;  %v1260_v0 = vld [vmem:[#allocation13 + $0x1a0] sm:$0xff]  ;;  %v1333_v53 = vld [vmem:[#allocation13 + $0x3e8] sm:$0xff] }
 0x1ba   :  { %1016 = vmatpush1.msra.mxu0 %v10208_v23  ;;  %1086 = vmatprep.subr.mxu1 %v10209_v51  ;;  %v1389_v57 = vld [vmem:[#allocation13 + $0x5a8] sm:$0xff]  ;;  %v1388_v23 = vld [vmem:[#allocation13 + $0x5a0] sm:$0xff] }
 0x1bb   :  { %1017 = vmatprep.subr.mxu0 %v10210_v25  ;;  %1087 = vmatpush1.msra.mxu1 %v10211_v27  ;;  %v1385_v51 = vld [vmem:[#allocation13 + $0x588] sm:$0xff]  ;;  %v1384_v25 = vld [vmem:[#allocation13 + $0x580] sm:$0xff] }
 0x1bc   :  { %1018 = vmatpush1.msra.mxu0 %v10212_v28  ;;  %1088 = vmatprep.subr.mxu1 %v10213_v30  ;;  %v1325_v27 = vld [vmem:[#allocation13 + $0x3a8] sm:$0xff]  ;;  %v1324_v28 = vld [vmem:[#allocation13 + $0x3a0] sm:$0xff] }
 0x1bd   :  { %1019 = vmatprep.subr.mxu0 %v10214_v32  ;;  %1089 = vmatpush1.msra.mxu1 %v10215_v33  ;;  %v1380_v30 = vld [vmem:[#allocation13 + $0x560] sm:$0xff]  ;;  %v1321_v32 = vld [vmem:[#allocation13 + $0x388] sm:$0xff] }
 0x1be   :  { %1020 = vmatpush1.msra.mxu0 %v10216_v35  ;;  %1090 = vmatprep.subr.mxu1 %v10217_v37  ;;  %v1377_v33 = vld [vmem:[#allocation13 + $0x548] sm:$0xff]  ;;  %v1320_v35 = vld [vmem:[#allocation13 + $0x380] sm:$0xff] }
 0x1bf   :  { %1021 = vmatprep.subr.mxu0 %v10218_v39  ;;  %1091 = vmatpush1.msra.mxu1 %v10219_v52  ;;  %v1376_v37 = vld [vmem:[#allocation13 + $0x540] sm:$0xff]  ;;  %v1317_v39 = vld [vmem:[#allocation13 + $0x368] sm:$0xff] }
 0x1c0   :  { %1022 = vmatpush1.msra.mxu0 %v10220_v54  ;;  %1092 = vmatprep.subr.mxu1 %v10221_v56  ;;  %v1373_v52 = vld [vmem:[#allocation13 + $0x528] sm:$0xff]  ;;  %v1316_v54 = vld [vmem:[#allocation13 + $0x360] sm:$0xff] }
 0x1c1   :  { %1023 = vmatprep.subr.mxu0 %v10222_v58  ;;  %1093 = vmatpush1.msra.mxu1 %v10223_v59  ;;  %v1372_v56 = vld [vmem:[#allocation13 + $0x520] sm:$0xff]  ;;  %v1313_v58 = vld [vmem:[#allocation13 + $0x348] sm:$0xff] }
 0x1c2   :  { %1024 = vmatpush1.msra.mxu0 %v10224_v62  ;;  %1094 = vmatprep.subr.mxu1 %v10225_v1  ;;  %v1369_v59 = vld [vmem:[#allocation13 + $0x508] sm:$0xff]  ;;  %v1312_v62 = vld [vmem:[#allocation13 + $0x340] sm:$0xff] }
 0x1c3   :  { %1025 = vmatprep.subr.mxu0 %v10226_v2  ;;  %1095 = vmatpush1.msra.mxu1 %v7138_v43  ;;  %v1264_v43 = vld [vmem:[#allocation13 + $0x1c0] sm:$0xff]  ;;  %v1309_v2 = vld [vmem:[#allocation13 + $0x328] sm:$0xff] }
 0x1c4   :  { %1026 = vmatpush1.msra.mxu0 %v10227_v3  ;;  %1096 = vmatprep.subr.mxu1 %v7150_v55  ;;  %v1261_v55 = vld [vmem:[#allocation13 + $0x1a8] sm:$0xff]  ;;  %v1368_v1 = vld [vmem:[#allocation13 + $0x500] sm:$0xff] }
 0x1c5   :  { %1027 = vmatprep.subr.mxu0 %v10228_v4  ;;  %1097 = vmatpush1.msra.mxu1 %v10229_v6  ;;  %v1365_v3 = vld [vmem:[#allocation13 + $0x4e8] sm:$0xff]  ;;  %v1308_v4 = vld [vmem:[#allocation13 + $0x320] sm:$0xff] }
 0x1c6   :  { %1130 = vmatprep.mubr.f32.mxu1 %v7456_v60  ;;  %1028 = vmatpush2.msra.mxu0 %v7169_v45  ;;  %v1257_v60 = vld [vmem:[#allocation13 + $0x188] sm:$0xff]  ;;  %v1256_v45 = vld [vmem:[#allocation13 + $0x180] sm:$0xff] }
 0x1c7   :  { %1131 = vmatmul.mubr.f32.vlgmr.msra.gmra.mxu1 %v7459_v61  ;;  %1029 = vmatprep.subr.mxu0 %v7176_v41  ;;  %v1253_v41 = vld [vmem:[#allocation13 + $0x168] sm:$0xff] }
 0x1c8   :  { %1632 = vmatprep.subr.mxu1 %v1269_v5  ;;  %1030 = vmatpush2.msra.mxu0 %v7185_v49  ;;  %v1252_v49 = vld [vmem:[#allocation13 + $0x160] sm:$0xff]  ;;  %v1209_v61 = vld [vmem:[#allocation13 + $0x8] sm:$0xff] }
 0x1c9   :  { %1633 = vmatpush1.msra.mxu1 %v1268_v10  ;;  %1031 = vmatprep.subr.mxu0 %v7194_v14  ;;  %v1249_v14 = vld [vmem:[#allocation13 + $0x148] sm:$0xff]  ;;  %v1364_v5 = vld [vmem:[#allocation13 + $0x4e0] sm:$0xff] }
 0x1ca   :  { %1634 = vmatprep.subr.mxu1 %v1265_v12  ;;  %1032 = vmatpush2.msra.mxu0 %v7201_v47  ;;  %v1248_v47 = vld [vmem:[#allocation13 + $0x140] sm:$0xff]  ;;  %v1305_v6 = vld [vmem:[#allocation13 + $0x308] sm:$0xff] }
 0x1cb   :  { %1635 = vmatpush1.msra.mxu1 %v1264_v43  ;;  %1033 = vmatprep.subr.mxu0 %v7208_v7  ;;  %v1245_v7 = vld [vmem:[#allocation13 + $0x128] sm:$0xff]  ;;  %v1304_v12 = vld [vmem:[#allocation13 + $0x300] sm:$0xff] }
 0x1cc   :  { %1636 = vmatprep.subr.mxu1 %v1261_v55  ;;  %1034 = vmatpush2.msra.mxu0 %v7215_v8  ;;  %v1244_v8 = vld [vmem:[#allocation13 + $0x120] sm:$0xff]  ;;  %v1361_v10 = vld [vmem:[#allocation13 + $0x4c8] sm:$0xff] }
 0x1cd   :  { %1637 = vmatpush1.msra.mxu1 %v1260_v0  ;;  %1035 = vmatprep.subr.mxu0 %v7222_v9  ;;  %v1241_v9 = vld [vmem:[#allocation13 + $0x108] sm:$0xff]  ;;  %v1360_v43 = vld [vmem:[#allocation13 + $0x4c0] sm:$0xff] }
 0x1ce   :  { %1638 = vmatprep.subr.mxu1 %v1257_v60  ;;  %1036 = vmatpush2.msra.mxu0 %v7229_v11  ;;  %v1240_v11 = vld [vmem:[#allocation13 + $0x100] sm:$0xff]  ;;  %v1301_v55 = vld [vmem:[#allocation13 + $0x2e8] sm:$0xff] }
 0x1cf   :  { %1639 = vmatpush1.msra.mxu1 %v1256_v45  ;;  %1037 = vmatprep.subr.mxu0 %v7236_v13  ;;  %v1237_v13 = vld [vmem:[#allocation13 + $0xe8] sm:$0xff]  ;;  %v1300_v60 = vld [vmem:[#allocation13 + $0x2e0] sm:$0xff] }
 0x1d0   :  { %1640 = vmatprep.subr.mxu1 %v1253_v41  ;;  %1038 = vmatpush2.msra.mxu0 %v7243_v15  ;;  %v1236_v15 = vld [vmem:[#allocation13 + $0xe0] sm:$0xff]  ;;  %v1357_v0 = vld [vmem:[#allocation13 + $0x4a8] sm:$0xff] }
 0x1d1   :  { %1641 = vmatpush1.msra.mxu1 %v1252_v49  ;;  %1039 = vmatprep.subr.mxu0 %v7250_v16  ;;  %v1233_v16 = vld [vmem:[#allocation13 + $0xc8] sm:$0xff]  ;;  %v1356_v45 = vld [vmem:[#allocation13 + $0x4a0] sm:$0xff] }
 0x1d2   :  { %1642 = vmatprep.subr.mxu1 %v1249_v14  ;;  %1040 = vmatpush2.msra.mxu0 %v7257_v17  ;;  %v1232_v17 = vld [vmem:[#allocation13 + $0xc0] sm:$0xff]  ;;  %v1297_v41 = vld [vmem:[#allocation13 + $0x2c8] sm:$0xff] }
 0x1d3   :  { %1643 = vmatpush1.msra.mxu1 %v1248_v47  ;;  %1041 = vmatprep.subr.mxu0 %v7264_v18  ;;  %v1229_v18 = vld [vmem:[#allocation13 + $0xa8] sm:$0xff]  ;;  %v1296_v14 = vld [vmem:[#allocation13 + $0x2c0] sm:$0xff] }
 0x1d4   :  { %1644 = vmatprep.subr.mxu1 %v1245_v7  ;;  %1042 = vmatpush2.msra.mxu0 %v7271_v19  ;;  %v1228_v19 = vld [vmem:[#allocation13 + $0xa0] sm:$0xff]  ;;  %v1353_v49 = vld [vmem:[#allocation13 + $0x488] sm:$0xff] }
 0x1d5   :  { %1645 = vmatpush1.msra.mxu1 %v1244_v8  ;;  %1043 = vmatprep.subr.mxu0 %v7278_v20  ;;  %v1225_v20 = vld [vmem:[#allocation13 + $0x88] sm:$0xff]  ;;  %v1352_v47 = vld [vmem:[#allocation13 + $0x480] sm:$0xff] }
 0x1d6   :  { %1646 = vmatprep.subr.mxu1 %v1241_v9  ;;  %1044 = vmatpush2.msra.mxu0 %v7285_v21  ;;  %v1224_v21 = vld [vmem:[#allocation13 + $0x80] sm:$0xff]  ;;  %v1293_v7 = vld [vmem:[#allocation13 + $0x2a8] sm:$0xff] }
 0x1d7   :  { %1647 = vmatpush1.msra.mxu1 %v1240_v11  ;;  %1045 = vmatprep.subr.mxu0 %v7292_v22  ;;  %v1221_v22 = vld [vmem:[#allocation13 + $0x68] sm:$0xff]  ;;  %v1292_v9 = vld [vmem:[#allocation13 + $0x2a0] sm:$0xff]  ;;  %v7566_v11 = vld [vmem:[#allocation11] sm:$0xf] }
 0x1d8   :  { %1648 = vmatprep.subr.mxu1 %v1237_v13  ;;  %1046 = vmatpush2.msra.mxu0 %v7299_v24  ;;  %v1220_v24 = vld [vmem:[#allocation13 + $0x60] sm:$0xff]  ;;  %v1349_v8 = vld [vmem:[#allocation13 + $0x468] sm:$0xff] }
 0x1d9   :  { %1649 = vmatpush1.msra.mxu1 %v1236_v15  ;;  %1047 = vmatprep.subr.mxu0 %v7306_v26  ;;  %v1217_v26 = vld [vmem:[#allocation13 + $0x48] sm:$0xff]  ;;  %v1348_v13 = vld [vmem:[#allocation13 + $0x460] sm:$0xff] }
 0x1da   :  { %1650 = vmatprep.subr.mxu1 %v1233_v16  ;;  %1048 = vmatpush2.msra.mxu0 %v7313_v29  ;;  %v1216_v29 = vld [vmem:[#allocation13 + $0x40] sm:$0xff]  ;;  %v1289_v15 = vld [vmem:[#allocation13 + $0x288] sm:$0xff] }
 0x1db   :  { %1651 = vmatpush1.msra.mxu1 %v1232_v17  ;;  %1049 = vmatprep.subr.mxu0 %v7320_v31  ;;  %v1213_v31 = vld [vmem:[#allocation13 + $0x28] sm:$0xff]  ;;  %v1288_v17 = vld [vmem:[#allocation13 + $0x280] sm:$0xff] }
 0x1dc   :  { %1652 = vmatprep.subr.mxu1 %v1229_v18  ;;  %1050 = vmatpush2.msra.mxu0 %v7327_v34  ;;  %v1212_v34 = vld [vmem:[#allocation13 + $0x20] sm:$0xff]  ;;  %v1345_v16 = vld [vmem:[#allocation13 + $0x448] sm:$0xff] }
 0x1dd   :  { %1653 = vmatpush1.msra.mxu1 %v1228_v19  ;;  %1051 = vmatprep.subr.mxu0 %v7334_v36  ;;  %v1397_v36 = vld [vmem:[#allocation13 + $0x5e8] sm:$0xff]  ;;  %v1344_v18 = vld [vmem:[#allocation13 + $0x440] sm:$0xff] }
 0x1de   :  { %1654 = vmatprep.subr.mxu1 %v1225_v20  ;;  %1052 = vmatpush2.msra.mxu0 %v7341_v38  ;;  %v1396_v38 = vld [vmem:[#allocation13 + $0x5e0] sm:$0xff]  ;;  %v1285_v19 = vld [vmem:[#allocation13 + $0x268] sm:$0xff] }
 0x1df   :  { %1655 = vmatpush1.msra.mxu1 %v1224_v21  ;;  %1053 = vmatprep.subr.mxu0 %v7348_v40  ;;  %v1393_v40 = vld [vmem:[#allocation13 + $0x5c8] sm:$0xff] }
 0x1e0   :  { %1656 = vmatprep.subr.mxu1 %v1221_v22  ;;  %1054 = vmatpush2.msra.mxu0 %v7355_v42  ;;  %v1208_v42 = vld [vmem:[#allocation13] sm:$0xff]  ;;  %v1341_v22 = vld [vmem:[#allocation13 + $0x428] sm:$0xff] }
 0x1e1   :  { %1657 = vmatpush1.msra.mxu1 %v1220_v24  ;;  %1055 = vmatprep.subr.mxu0 %v7362_v44  ;;  %v1392_v44 = vld [vmem:[#allocation13 + $0x5c0] sm:$0xff] }
 0x1e2   :  { %1658 = vmatprep.subr.mxu1 %v1217_v26  ;;  %1056 = vmatpush2.msra.mxu0 %v7369_v46  ;;  %v1332_v46 = vld [vmem:[#allocation13 + $0x3e0] sm:$0xff] }
 0x1e3   :  { %1659 = vmatpush1.msra.mxu1 %v1216_v29  ;;  %1057 = vmatprep.subr.mxu0 %v7376_v48  ;;  %v1329_v48 = vld [vmem:[#allocation13 + $0x3c8] sm:$0xff]  ;;  %v1284_v24 = vld [vmem:[#allocation13 + $0x260] sm:$0xff] }
 0x1e4   :  { %1660 = vmatprep.subr.mxu1 %v1213_v31  ;;  %1058 = vmatpush2.msra.mxu0 %v7383_v50  ;;  %v1328_v50 = vld [vmem:[#allocation13 + $0x3c0] sm:$0xff]  ;;  %v1281_v29 = vld [vmem:[#allocation13 + $0x248] sm:$0xff]  ;;  %v6070_v31 = vmov 1966171168  }
 0x1e5   :  { %1661 = vmatpush1.msra.mxu1 %v1212_v34  ;;  %1060 = vmatmul.mubr.f32.vlgmr.msra.gmra.mxu0 %v7463_v63  ;;  %v1381_v63 = vld [vmem:[#allocation13 + $0x568] sm:$0xff]  ;;  %v1340_v26 = vld [vmem:[#allocation13 + $0x420] sm:$0xff]  ;;  %v784_v34 = vunpack.c.l.s4 %v6070_v31 }
 0x1e6   :  { %1703 = vmatprep.subr.mxu0 %v1397_v36  ;;  %1662 = vmatprep.subr.mxu1 %v1209_v61  ;;  %v10230_v20 = vld [vmem:[#allocation72_spill] sm:$0xff]  ;;  %v10231_v36 = vld [vmem:[#allocation73_spill] sm:$0xff] }
 0x1e7   :  { %1704 = vmatpush1.msra.mxu0 %v1396_v38  ;;  %1663 = vmatpush1.msra.mxu1 %v1208_v42  ;;  %v7570_v21 = vrot.slane %v7566_v11, %v10230_v20  ;;  %v7574_v38 = vrot.slane %v7566_v11, %v10231_v36  ;;  %v1337_v61 = vld [vmem:[#allocation13 + $0x408] sm:$0xff]  ;;  %v1404_v31 = vld [vmem:[#allocation13 + $0x620] sm:$0xff] }
 0x1e8   :  { %1705 = vmatprep.subr.mxu0 %v1393_v40  ;;  %1664 = vmatprep.subr.mxu1 %v1333_v53  ;;  %v1280_v40 = vld [vmem:[#allocation13 + $0x240] sm:$0xff] }
 0x1e9   :  { %1706 = vmatpush1.msra.mxu0 %v1392_v44  ;;  %1665 = vmatpush2.msra.mxu1 %v1332_v46  ;;  %v1336_v53 = vld [vmem:[#allocation13 + $0x400] sm:$0xff] }
 0x1ea   :  { %1707 = vmatprep.subr.mxu0 %v1389_v57  ;;  %1666 = vmatprep.subr.mxu1 %v1329_v48  ;;  %v1277_v57 = vld [vmem:[#allocation13 + $0x228] sm:$0xff]  ;;  %v1276_v48 = vld [vmem:[#allocation13 + $0x220] sm:$0xff] }
 0x1eb   :  { %1708 = vmatpush1.msra.mxu0 %v1388_v23  ;;  %1667 = vmatpush2.msra.mxu1 %v1328_v50  ;;  %v1461_v23 = vld [vmem:[#allocation13 + $0x7e8] sm:$0xff]  ;;  %v1460_v50 = vld [vmem:[#allocation13 + $0x7e0] sm:$0xff] }
 0x1ec   :  { %1709 = vmatprep.subr.mxu0 %v1385_v51  ;;  %1668 = vmatprep.subr.mxu1 %v1325_v27  ;;  %v785_v27 = vunpack.c.0.s8 %v784_v34  ;;  %v1401_v34 = vld [vmem:[#allocation13 + $0x608] sm:$0xff] }
 0x1ed   :  { %1710 = vmatpush1.msra.mxu0 %v1384_v25  ;;  %1669 = vmatpush2.msra.mxu1 %v1324_v28  ;;  %v1273_v25 = vld [vmem:[#allocation13 + $0x208] sm:$0xff] }
 0x1ee   :  { %1711 = vmatprep.subr.mxu0 %v1381_v63  ;;  %1670 = vmatprep.subr.mxu1 %v1321_v32  ;;  %v1272_v32 = vld [vmem:[#allocation13 + $0x200] sm:$0xff] }
 0x1ef   :  { %1712 = vmatpush1.msra.mxu0 %v1380_v30  ;;  %1671 = vmatpush2.msra.mxu1 %v1320_v35  ;;  %v1457_v30 = vld [vmem:[#allocation13 + $0x7c8] sm:$0xff]  ;;  %v1456_v35 = vld [vmem:[#allocation13 + $0x7c0] sm:$0xff] }
 0x1f0   :  { %1713 = vmatprep.subr.mxu0 %v1377_v33  ;;  %1672 = vmatprep.subr.mxu1 %v1317_v39 }
 0x1f1   :  { %1714 = vmatpush1.msra.mxu0 %v1376_v37  ;;  %1673 = vmatpush2.msra.mxu1 %v1316_v54  ;;  %v1525_v37 = vld [vmem:[#allocation13 + $0x9e8] sm:$0xff]  ;;  %v1452_v54 = vld [vmem:[#allocation13 + $0x7a0] sm:$0xff] }
 0x1f2   :  { %1715 = vmatprep.subr.mxu0 %v1373_v52  ;;  %1674 = vmatprep.subr.mxu1 %v1313_v58  ;;  %v1453_v52 = vld [vmem:[#allocation13 + $0x7a8] sm:$0xff] }
 0x1f3   :  { %1716 = vmatpush1.msra.mxu0 %v1372_v56  ;;  %1675 = vmatpush2.msra.mxu1 %v1312_v62  ;;  %v10232_v56 = vld [vmem:[#allocation71_spill] sm:$0xff] }
 0x1f4   :  { %1717 = vmatprep.subr.mxu0 %v1369_v59  ;;  %1676 = vmatprep.subr.mxu1 %v1309_v2  ;;  %v7579_v58 = vsub.s32 %v785_v27, %v10232_v56  ;;  %v1448_v2 = vld [vmem:[#allocation13 + $0x780] sm:$0xff] }
 0x1f5   :  { %1718 = vmatpush1.msra.mxu0 %v1368_v1  ;;  %1677 = vmatpush2.msra.mxu1 %v1308_v4  ;;  %v1449_v1 = vld [vmem:[#allocation13 + $0x788] sm:$0xff] }
 0x1f6   :  { %1719 = vmatprep.subr.mxu0 %v1365_v3  ;;  %1678 = vmatprep.subr.mxu1 %v1305_v6  ;;  %10233 = vst [vmem:[#allocation25_spill] sm:$0xff] %v7579_v58  ;;  %v1445_v4 = vld [vmem:[#allocation13 + $0x768] sm:$0xff] }
 0x1f7   :  { %1720 = vmatpush1.msra.mxu0 %v1364_v5  ;;  %1679 = vmatpush2.msra.mxu1 %v1304_v12  ;;  %v1444_v5 = vld [vmem:[#allocation13 + $0x760] sm:$0xff]  ;;  %v10234_v12 = vlaneseq }
 0x1f8   :  { %1721 = vmatprep.subr.mxu0 %v1361_v10  ;;  %1680 = vmatprep.subr.mxu1 %v1301_v55  ;;  %v1441_v10 = vld [vmem:[#allocation13 + $0x748] sm:$0xff]  ;;  %v1440_v55 = vld [vmem:[#allocation13 + $0x740] sm:$0xff] }
 0x1f9   :  { %1722 = vmatpush1.msra.mxu0 %v1360_v43  ;;  %1681 = vmatpush2.msra.mxu1 %v1300_v60  ;;  %vm7583_vm1 = vcmp.lt.s32.totalorder %v10234_v12, 256  ;;  %v10235_v43 = vmov 0  ;;  %v1270_v12 = vld [vmem:[#allocation13 + $0x1f0] sm:$0xff] }
 0x1fa   :  { %1723 = vmatprep.subr.mxu0 %v1357_v0  ;;  %1682 = vmatprep.subr.mxu1 %v1297_v41  ;;  %v10236_v43 = vsel %vm7583_vm1, 4294967295, %v10235_v43  ;;  %v1436_v41 = vld [vmem:[#allocation13 + $0x720] sm:$0xff] }
 0x1fb   :  { %1724 = vmatpush1.msra.mxu0 %v1356_v45  ;;  %1683 = vmatpush2.msra.mxu1 %v1296_v14  ;;  %10237 = vst [vmem:[#allocation35_spill] sm:$0xff] %v10236_v43  ;;  %v1437_v45 = vld [vmem:[#allocation13 + $0x728] sm:$0xff] }
 0x1fc   :  { %1725 = vmatprep.subr.mxu0 %v1353_v49  ;;  %1684 = vmatprep.subr.mxu1 %v1293_v7  ;;  %v1433_v14 = vld [vmem:[#allocation13 + $0x708] sm:$0xff] }
 0x1fd   :  { %1726 = vmatpush1.msra.mxu0 %v1352_v47  ;;  %1685 = vmatpush2.msra.mxu1 %v1292_v9  ;;  %v1432_v47 = vld [vmem:[#allocation13 + $0x700] sm:$0xff]  ;;  %v1429_v7 = vld [vmem:[#allocation13 + $0x6e8] sm:$0xff] }
 0x1fe   :  { %1727 = vmatprep.subr.mxu0 %v1349_v8  ;;  %1686 = vmatprep.subr.mxu1 %v1289_v15  ;;  %v1428_v8 = vld [vmem:[#allocation13 + $0x6e0] sm:$0xff]  ;;  %v1425_v9 = vld [vmem:[#allocation13 + $0x6c8] sm:$0xff] }
 0x1ff   :  { %1728 = vmatpush1.msra.mxu0 %v1348_v13  ;;  %1687 = vmatpush2.msra.mxu1 %v1288_v17  ;;  %v1424_v13 = vld [vmem:[#allocation13 + $0x6c0] sm:$0xff]  ;;  %v1421_v15 = vld [vmem:[#allocation13 + $0x6a8] sm:$0xff] }
 0x200   :  { %1729 = vmatprep.subr.mxu0 %v1345_v16  ;;  %1688 = vmatprep.subr.mxu1 %v1285_v19  ;;  %v1420_v16 = vld [vmem:[#allocation13 + $0x6a0] sm:$0xff]  ;;  %v1417_v17 = vld [vmem:[#allocation13 + $0x688] sm:$0xff] }
 0x201   :  { %1730 = vmatpush1.msra.mxu0 %v1344_v18  ;;  %v629_v42 = vpop.f32.mrf.mxu0  ;;  %v558_v44 = vpop.f32.mrf.mxu1  ;;  %1689 = vmatpush2.msra.mxu1 %v1284_v24  ;;  %v1416_v18 = vld [vmem:[#allocation13 + $0x680] sm:$0xff]  ;;  %v1413_v19 = vld [vmem:[#allocation13 + $0x668] sm:$0xff] }
 0x202   :  { %1731 = vmatprep.subr.mxu0 %v1341_v22  ;;  %v559_v46 = vadd.f32 %v558_v44, %v7570_v21  ;;  %1690 = vmatprep.subr.mxu1 %v1281_v29  ;;  %v1412_v22 = vld [vmem:[#allocation13 + $0x660] sm:$0xff]  ;;  %v1409_v24 = vld [vmem:[#allocation13 + $0x648] sm:$0xff]  ;;  %v7597_v44 = vsub.s32 3, %v10232_v56 }
 0x203   :  { %1732 = vmatpush1.msra.mxu0 %v1340_v26  ;;  %v560_v51 = vpop.f32.mrf.mxu1  ;;  %1691 = vmatpush2.msra.mxu1 %v1280_v40  ;;  %v631_v33 = vpop.f32.mrf.mxu0  ;;  %v1408_v26 = vld [vmem:[#allocation13 + $0x640] sm:$0xff]  ;;  %v1405_v29 = vld [vmem:[#allocation13 + $0x628] sm:$0xff]  ;;  %v1271_v40 = vld [vmem:[#allocation13 + $0x1f8] sm:$0xff] }
 0x204   :  { %1733 = vmatprep.subr.mxu0 %v1337_v61  ;;  %v630_v63 = vadd.f32 %v629_v42, %v559_v46  ;;  %v561_v28 = vadd.f32 %v560_v51, %v7574_v38  ;;  %1692 = vmatprep.subr.mxu1 %v1277_v57  ;;  %v1400_v61 = vld [vmem:[#allocation13 + $0x600] sm:$0xff]  ;;  %v7594_v42 = vsub.s32 2, %v10232_v56  ;;  %10239 = vst [vmem:[#allocation36_spill] sm:$0xff] %v7597_v44  ;;  %v1521_v56 = vld [vmem:[#allocation13 + $0x9c8] sm:$0xff] }
 0x205   :  { %1734 = vmatpush1.msra.mxu0 %v1336_v53  ;;  %1693 = vmatpush2.msra.mxu1 %v1276_v48  ;;  %v7605_v57 = vrot.slane %v7566_v11, %v7597_v44  ;;  %v7826_v44 = vld [vmem:[#allocation13 + $0x658] sm:$0xff]  ;;  %v8869_v43 = vld [vmem:[%s9747_s9 + $0x158] sm:$0xff] }
 0x206   :  { %1735 = vmatprep.subr.mxu0 %v1461_v23  ;;  %v632_v39 = vadd.f32 %v631_v33, %v561_v28  ;;  %1694 = vmatprep.subr.mxu1 %v1273_v25  ;;  %v776_v59 = vmax.f32 %v630_v63, 0.0  ;;  %10238 = vst [vmem:[#allocation26_spill] sm:$0xff] %v7594_v42  ;;  %v7601_v53 = vrot.slane %v7566_v11, %v7594_v42  ;;  %10255 = vst [vmem:[#allocation44_spill] sm:$0xff] %v7826_v44  ;;  %v7828_v42 = vld [vmem:[#allocation13 + $0xa98] sm:$0xff] }
 0x207   :  { %1736 = vmatpush2.msra.mxu0 %v1460_v50  ;;  %1695 = vmatpush2.msra.mxu1 %v1272_v32  ;;  %10256 = vst [vmem:[#allocation45_spill] sm:$0xff] %v7828_v42  ;;  %10373 = vst [vmem:[#allocation121_spill] sm:$0xff] %v8869_v43 }
 0x208   :  { %1737 = vmatprep.subr.mxu0 %v1457_v30  ;;  %v777_v62 = vmax.f32 %v632_v39, 0.0  ;;  %1774 = vmatprep.subr.mxu1 %v1525_v37 }
 0x209   :  { %1738 = vmatpush2.msra.mxu0 %v1456_v35 }
 0x20a   :  { %1739 = vmatprep.subr.mxu0 %v1453_v52  ;;  %v782_v3 = vcombine.low %v776_v59, %v777_v62  ;;  %v1520_v59 = vld [vmem:[#allocation13 + $0x9c0] sm:$0xff] }
 0x20b   :  { %1740 = vmatpush2.msra.mxu0 %v1452_v54  ;;  %v1524_v54 = vld [vmem:[#allocation13 + $0x9e0] sm:$0xff] }
 0x20c   :  { %1741 = vmatprep.subr.mxu0 %v1449_v1  ;;  %v789_v6 = vrot.slane %v782_v3, %v7579_v58 }
 0x20d   :  { %1742 = vmatpush2.msra.mxu0 %v1448_v2 }
 0x20e   :  { %1743 = vmatprep.subr.mxu0 %v1445_v4  ;;  %v796_v0 = vrot.slane %v789_v6, %v7579_v58  ;;  %v826_v60 = vcombine.high %v789_v6, %v789_v6  ;;  %v1517_v4 = vld [vmem:[#allocation13 + $0x9a8] sm:$0xff] }
 0x20f   :  { %1744 = vmatpush2.msra.mxu0 %v1444_v5 }
 0x210   :  { %1745 = vmatprep.subr.mxu0 %v1441_v10  ;;  %803 = vst.msk [vmem:[#allocation3 + $0x1] ss:$8 sm:$0x3] %vm7583_vm1, %v796_v0  ;;  %v833_v49 = vrot.slane %v826_v60, %v7579_v58  ;;  %v1516_v10 = vld [vmem:[#allocation13 + $0x9a0] sm:$0xff]  ;;  %v1267_v0 = vld [vmem:[#allocation13 + $0x1d8] sm:$0xff] }
 0x211   :  { %1746 = vmatpush2.msra.mxu0 %v1440_v55  ;;  %v1513_v55 = vld [vmem:[#allocation13 + $0x988] sm:$0xff]  ;;  %v1512_v60 = vld [vmem:[#allocation13 + $0x980] sm:$0xff] }
 0x212   :  { %1747 = vmatprep.subr.mxu0 %v1437_v45  ;;  %836 = vst.msk [vmem:[#allocation3 + $0x3] ss:$8 sm:$0x3] %vm7583_vm1, %v833_v49  ;;  %v1266_v45 = vld [vmem:[#allocation13 + $0x1d0] sm:$0xff]  ;;  %v1263_v49 = vld [vmem:[#allocation13 + $0x1b8] sm:$0xff] }
 0x213   :  { %1748 = vmatpush2.msra.mxu0 %v1436_v41  ;;  %v1509_v41 = vld [vmem:[#allocation13 + $0x968] sm:$0xff] }
 0x214   :  { %1749 = vmatprep.subr.mxu0 %v1433_v14  ;;  %v1508_v14 = vld [vmem:[#allocation13 + $0x960] sm:$0xff] }
 0x215   :  { %1750 = vmatpush2.msra.mxu0 %v1432_v47  ;;  %v1262_v47 = vld [vmem:[#allocation13 + $0x1b0] sm:$0xff] }
 0x216   :  { %1751 = vmatprep.subr.mxu0 %v1429_v7  ;;  %v1505_v7 = vld [vmem:[#allocation13 + $0x948] sm:$0xff] }
 0x217   :  { %1752 = vmatpush2.msra.mxu0 %v1428_v8  ;;  %v1259_v8 = vld [vmem:[#allocation13 + $0x198] sm:$0xff] }
 0x218   :  { %1753 = vmatprep.subr.mxu0 %v1425_v9  ;;  %v1504_v9 = vld [vmem:[#allocation13 + $0x940] sm:$0xff] }
 0x219   :  { %1754 = vmatpush2.msra.mxu0 %v1424_v13  ;;  %v1258_v13 = vld [vmem:[#allocation13 + $0x190] sm:$0xff] }
 0x21a   :  { %1755 = vmatprep.subr.mxu0 %v1421_v15 }
 0x21b   :  { %1756 = vmatpush2.msra.mxu0 %v1420_v16 }
 0x21c   :  { %1757 = vmatprep.subr.mxu0 %v1417_v17  ;;  %v1501_v17 = vld [vmem:[#allocation13 + $0x928] sm:$0xff] }
 0x21d   :  { %1758 = vmatpush2.msra.mxu0 %v1416_v18  ;;  %v1255_v18 = vld [vmem:[#allocation13 + $0x178] sm:$0xff] }
 0x21e   :  { %1759 = vmatprep.subr.mxu0 %v1413_v19 }
 0x21f   :  { %1760 = vmatpush2.msra.mxu0 %v1412_v22  ;;  %v1500_v22 = vld [vmem:[#allocation13 + $0x920] sm:$0xff] }
 0x220   :  { %1761 = vmatprep.subr.mxu0 %v1409_v24  ;;  %v1254_v24 = vld [vmem:[#allocation13 + $0x170] sm:$0xff] }
 0x221   :  { %1762 = vmatpush2.msra.mxu0 %v1408_v26 }
 0x222   :  { %1763 = vmatprep.subr.mxu0 %v1405_v29  ;;  %v1497_v29 = vld [vmem:[#allocation13 + $0x908] sm:$0xff] }
 0x223   :  { %1764 = vmatpush2.msra.mxu0 %v1404_v31  ;;  %v771_v46 = vpop.f32.mrf.mxu1  ;;  %v1251_v31 = vld [vmem:[#allocation13 + $0x158] sm:$0xff] }
 0x224   :  { %1765 = vmatprep.subr.mxu0 %v1401_v34 }
 0x225   :  { %1766 = vmatpush2.msra.mxu0 %v1400_v61  ;;  %v773_v27 = vpop.f32.mrf.mxu1 }
 0x226   :  { %1845 = vmatprep.subr.mxu0 %v1271_v40  ;;  %v1496_v40 = vld [vmem:[#allocation13 + $0x900] sm:$0xff] }
 0x242   :  { %v700_v23 = vpop.f32.mrf.mxu0 }
 0x243   :  { %v701_v48 = vadd.f32 %v700_v23, %v7601_v53 }
 0x244   :  { %v702_v51 = vpop.f32.mrf.mxu0 }
 0x245   :  { %v772_v50 = vadd.f32 %v771_v46, %v701_v48  ;;  %v703_v25 = vadd.f32 %v702_v51, %v7605_v57  ;;  %v1250_v46 = vld [vmem:[#allocation13 + $0x150] sm:$0xff]  ;;  %v1247_v48 = vld [vmem:[#allocation13 + $0x138] sm:$0xff] }
 0x247   :  { %v774_v63 = vadd.f32 %v773_v27, %v703_v25  ;;  %v778_v28 = vmax.f32 %v772_v50, 0.0  ;;  %v1492_v50 = vld [vmem:[#allocation13 + $0x8e0] sm:$0xff]  ;;  %v1246_v25 = vld [vmem:[#allocation13 + $0x130] sm:$0xff]  ;;  %v1489_v27 = vld [vmem:[#allocation13 + $0x8c8] sm:$0xff] }
 0x249   :  { %v779_v30 = vmax.f32 %v774_v63, 0.0  ;;  %v1243_v63 = vld [vmem:[#allocation13 + $0x118] sm:$0xff] }
 0x24b   :  { %v807_v32 = vcombine.low %v778_v28, %v779_v30  ;;  %v1488_v30 = vld [vmem:[#allocation13 + $0x8c0] sm:$0xff] }
 0x24d   :  { %v814_v33 = vrot.slane %v807_v32, %v7579_v58  ;;  %v1242_v32 = vld [vmem:[#allocation13 + $0x110] sm:$0xff] }
 0x24f   :  { %v821_v35 = vrot.slane %v814_v33, %v7579_v58  ;;  %v838_v37 = vcombine.high %v814_v33, %v814_v33  ;;  %v1485_v33 = vld [vmem:[#allocation13 + $0x8a8] sm:$0xff] }
 0x251   :  { %824 = vst.msk [vmem:[#allocation3 + $0x2] ss:$8 sm:$0x3] %vm7583_vm1, %v821_v35  ;;  %v845_v11 = vrot.slane %v838_v37, %v7579_v58  ;;  %v1239_v35 = vld [vmem:[#allocation13 + $0xf8] sm:$0xff] }
 0x253   :  { %848 = vst.msk [vmem:[#allocation3 + $0x4] ss:$8 sm:$0x3] %vm7583_vm1, %v845_v11  ;;  %v1484_v11 = vld [vmem:[#allocation13 + $0x8a0] sm:$0xff] }
 0x258   :  { %v1594_v39 = vld [vmem:[#allocation3 + $0x8] sm:$0xf]  ;;  %v7616_v52 = vld [vmem:[#allocation3] sm:$0xf] }
 0x259   :  { %1696 = vmatprep.mubr.f32.mxu1 %v1594_v39 }
 0x25a   :  { %1697 = vmatmul.mubr.f32.vlgmr.msra.gmra.mxu1 %v7616_v52  ;;  %v7619_v62 = vld [vmem:[#allocation3 + $0x8] sm:$0x1e]  ;;  %v7623_v2 = vld [vmem:[#allocation3] sm:$0x1e] }
 0x25b   :  { %v7621_v1 = vld [vmem:[#allocation3 + $0x8] sm:$0x3c]  ;;  %1775 = vmatpush1.msra.mxu1 %v1524_v54  ;;  %v1602_v3 = vrot.slane %v7619_v62, 1  ;;  %v9864_v6 = vrot.slane %v7623_v2, 1  ;;  %v1481_v54 = vld [vmem:[#allocation13 + $0x888] sm:$0xff]  ;;  %v1383_v62 = vld [vmem:[#allocation13 + $0x578] sm:$0xff] }
 0x25c   :  { %v1608_v5 = vrot.slane %v7621_v1, 2  ;;  %1776 = vmatprep.subr.mxu1 %v1521_v56  ;;  %v1235_v56 = vld [vmem:[#allocation13 + $0xd8] sm:$0xff] }
 0x25d   :  { %1777 = vmatpush1.msra.mxu1 %v1520_v59  ;;  %1767 = vmatprep.mubr.f32.mxu0 %v1602_v3  ;;  %v1375_v1 = vld [vmem:[#allocation13 + $0x538] sm:$0xff] }
 0x25e   :  { %1778 = vmatprep.subr.mxu1 %v1517_v4  ;;  %1838 = vmatprep.mubr.f32.mxu1 %v1608_v5  ;;  %v1480_v4 = vld [vmem:[#allocation13 + $0x880] sm:$0xff] }
 0x25f   :  { %1768 = vmatmul.mubr.f32.vlgmr.msra.gmra.mxu0 %v9864_v6  ;;  %1779 = vmatpush1.msra.mxu1 %v1516_v10  ;;  %v1234_v10 = vld [vmem:[#allocation13 + $0xd0] sm:$0xff] }
 0x260   :  { %1846 = vmatpush1.msra.mxu0 %v1270_v12  ;;  %1780 = vmatprep.subr.mxu1 %v1513_v55  ;;  %v1477_v12 = vld [vmem:[#allocation13 + $0x868] sm:$0xff]  ;;  %v1231_v55 = vld [vmem:[#allocation13 + $0xb8] sm:$0xff]  ;;  %v7822_v6 = vld [vmem:[#allocation13 + $0xab0] sm:$0xff] }
 0x261   :  { %1847 = vmatprep.subr.mxu0 %v1267_v0  ;;  %1909 = vmatprep.mubr.f32.mxu0 %v1594_v39  ;;  %v1238_v39 = vld [vmem:[#allocation13 + $0xf0] sm:$0xff]  ;;  %10254 = vst [vmem:[#allocation34_spill] sm:$0xff] %v7822_v6 }
 0x262   :  { %1781 = vmatpush1.msra.mxu1 %v1512_v60  ;;  %1848 = vmatpush1.msra.mxu0 %v1266_v45  ;;  %v1476_v45 = vld [vmem:[#allocation13 + $0x860] sm:$0xff] }
 0x263   :  { %1782 = vmatprep.subr.mxu1 %v1509_v41  ;;  %1849 = vmatprep.subr.mxu0 %v1263_v49  ;;  %v1230_v41 = vld [vmem:[#allocation13 + $0xb0] sm:$0xff]  ;;  %v1473_v49 = vld [vmem:[#allocation13 + $0x848] sm:$0xff] }
 0x264   :  { %v990_v15 = vpop.f32.mrf.mxu0  ;;  %1783 = vmatpush1.msra.mxu1 %v1508_v14  ;;  %1850 = vmatpush1.msra.mxu0 %v1262_v47  ;;  %v1227_v14 = vld [vmem:[#allocation13 + $0x98] sm:$0xff] }
 0x265   :  { %v919_v16 = vpop.f32.mrf.mxu1  ;;  %1784 = vmatprep.subr.mxu1 %v1505_v7  ;;  %1851 = vmatprep.subr.mxu0 %v1259_v8  ;;  %v1472_v7 = vld [vmem:[#allocation13 + $0x840] sm:$0xff]  ;;  %v1226_v8 = vld [vmem:[#allocation13 + $0x90] sm:$0xff] }
 0x266   :  { %v920_v19 = vadd.f32 %v919_v16, %v7570_v21  ;;  %1785 = vmatpush1.msra.mxu1 %v1504_v9  ;;  %1852 = vmatpush1.msra.mxu0 %v1258_v13  ;;  %v992_v23 = vpop.f32.mrf.mxu0  ;;  %v1493_v21 = vld [vmem:[#allocation13 + $0x8e8] sm:$0xff]  ;;  %v1223_v13 = vld [vmem:[#allocation13 + $0x78] sm:$0xff]  ;;  %v1222_v16 = vld [vmem:[#allocation13 + $0x70] sm:$0xff] }
 0x267   :  { %v921_v26 = vpop.f32.mrf.mxu1  ;;  %1786 = vmatprep.subr.mxu1 %v1501_v17  ;;  %1853 = vmatprep.subr.mxu0 %v1255_v18  ;;  %v1469_v9 = vld [vmem:[#allocation13 + $0x828] sm:$0xff]  ;;  %v1219_v18 = vld [vmem:[#allocation13 + $0x58] sm:$0xff] }
 0x268   :  { %v991_v34 = vadd.f32 %v990_v15, %v920_v19  ;;  %v922_v61 = vadd.f32 %v921_v26, %v7574_v38  ;;  %1787 = vmatpush1.msra.mxu1 %v1500_v22  ;;  %1854 = vmatpush1.msra.mxu0 %v1254_v24  ;;  %v1468_v15 = vld [vmem:[#allocation13 + $0x820] sm:$0xff]  ;;  %v1465_v17 = vld [vmem:[#allocation13 + $0x808] sm:$0xff]  ;;  %v1218_v22 = vld [vmem:[#allocation13 + $0x50] sm:$0xff] }
 0x269   :  { %1788 = vmatprep.subr.mxu1 %v1497_v29  ;;  %1855 = vmatprep.subr.mxu0 %v1251_v31  ;;  %v1464_v19 = vld [vmem:[#allocation13 + $0x800] sm:$0xff]  ;;  %v1589_v24 = vld [vmem:[#allocation13 + $0xbe8] sm:$0xff]  ;;  %v1215_v26 = vld [vmem:[#allocation13 + $0x38] sm:$0xff] }
 0x26a   :  { %v993_v51 = vadd.f32 %v992_v23, %v922_v61  ;;  %1789 = vmatpush1.msra.mxu1 %v1496_v40  ;;  %1856 = vmatpush1.msra.mxu0 %v1250_v46  ;;  %v1137_v28 = vmax.f32 %v991_v34, 0.0  ;;  %v1588_v29 = vld [vmem:[#allocation13 + $0xbe0] sm:$0xff]  ;;  %v1214_v31 = vld [vmem:[#allocation13 + $0x30] sm:$0xff]  ;;  %v1585_v34 = vld [vmem:[#allocation13 + $0xbc8] sm:$0xff] }
 0x26b   :  { %1790 = vmatprep.subr.mxu1 %v1493_v21  ;;  %1857 = vmatprep.subr.mxu0 %v1247_v48  ;;  %v1211_v61 = vld [vmem:[#allocation13 + $0x18] sm:$0xff]  ;;  %v1584_v40 = vld [vmem:[#allocation13 + $0xbc0] sm:$0xff]  ;;  %v1210_v46 = vld [vmem:[#allocation13 + $0x10] sm:$0xff] }
 0x26c   :  { %v1138_v38 = vmax.f32 %v993_v51, 0.0  ;;  %1791 = vmatpush1.msra.mxu1 %v1492_v50  ;;  %1858 = vmatpush1.msra.mxu0 %v1246_v25  ;;  %v1581_v23 = vld [vmem:[#allocation13 + $0xba8] sm:$0xff]  ;;  %v1335_v21 = vld [vmem:[#allocation13 + $0x3f8] sm:$0xff]  ;;  %v1580_v48 = vld [vmem:[#allocation13 + $0xba0] sm:$0xff] }
 0x26d   :  { %1792 = vmatprep.subr.mxu1 %v1489_v27  ;;  %1859 = vmatprep.subr.mxu0 %v1243_v63  ;;  %v1334_v51 = vld [vmem:[#allocation13 + $0x3f0] sm:$0xff]  ;;  %v1577_v50 = vld [vmem:[#allocation13 + $0xb88] sm:$0xff]  ;;  %v1331_v25 = vld [vmem:[#allocation13 + $0x3d8] sm:$0xff] }
 0x26e   :  { %v1143_v37 = vcombine.low %v1137_v28, %v1138_v38  ;;  %1793 = vmatpush1.msra.mxu1 %v1488_v30  ;;  %1860 = vmatpush1.msra.mxu0 %v1242_v32  ;;  %v1576_v27 = vld [vmem:[#allocation13 + $0xb80] sm:$0xff]  ;;  %v1330_v63 = vld [vmem:[#allocation13 + $0x3d0] sm:$0xff]  ;;  %v1573_v28 = vld [vmem:[#allocation13 + $0xb68] sm:$0xff] }
 0x26f   :  { %1794 = vmatprep.subr.mxu1 %v1485_v33  ;;  %1861 = vmatprep.subr.mxu0 %v1239_v35  ;;  %v1327_v38 = vld [vmem:[#allocation13 + $0x3b8] sm:$0xff]  ;;  %v1572_v30 = vld [vmem:[#allocation13 + $0xb60] sm:$0xff]  ;;  %v1326_v32 = vld [vmem:[#allocation13 + $0x3b0] sm:$0xff] }
 0x270   :  { %v1150_v59 = vrot.slane %v1143_v37, %v7579_v58  ;;  %1795 = vmatpush1.msra.mxu1 %v1484_v11  ;;  %1862 = vmatpush1.msra.mxu0 %v1238_v39  ;;  %v1569_v33 = vld [vmem:[#allocation13 + $0xb48] sm:$0xff]  ;;  %v1323_v35 = vld [vmem:[#allocation13 + $0x398] sm:$0xff]  ;;  %v1568_v37 = vld [vmem:[#allocation13 + $0xb40] sm:$0xff] }
 0x271   :  { %1796 = vmatprep.subr.mxu1 %v1481_v54  ;;  %1863 = vmatprep.subr.mxu0 %v1235_v56  ;;  %v1322_v11 = vld [vmem:[#allocation13 + $0x390] sm:$0xff]  ;;  %v1565_v39 = vld [vmem:[#allocation13 + $0xb28] sm:$0xff]  ;;  %v1319_v54 = vld [vmem:[#allocation13 + $0x378] sm:$0xff] }
 0x272   :  { %v1157_v0 = vrot.slane %v1150_v59, %v7579_v58  ;;  %v1184_v60 = vcombine.high %v1150_v59, %v1150_v59  ;;  %1797 = vmatpush1.msra.mxu1 %v1480_v4  ;;  %1864 = vmatpush1.msra.mxu0 %v1234_v10  ;;  %v1564_v56 = vld [vmem:[#allocation13 + $0xb20] sm:$0xff]  ;;  %v1318_v59 = vld [vmem:[#allocation13 + $0x370] sm:$0xff]  ;;  %v1561_v4 = vld [vmem:[#allocation13 + $0xb08] sm:$0xff] }
 0x273   :  { %1798 = vmatprep.subr.mxu1 %v1477_v12  ;;  %1865 = vmatprep.subr.mxu0 %v1231_v55  ;;  %v1315_v10 = vld [vmem:[#allocation13 + $0x358] sm:$0xff]  ;;  %v1560_v12 = vld [vmem:[#allocation13 + $0xb00] sm:$0xff]  ;;  %v1314_v55 = vld [vmem:[#allocation13 + $0x350] sm:$0xff] }
 0x274   :  { %1161 = vst.msk [vmem:[#allocation3 + $0x11] ss:$8 sm:$0x3] %vm7583_vm1, %v1157_v0  ;;  %v1191_v47 = vrot.slane %v1184_v60, %v7579_v58  ;;  %1799 = vmatpush1.msra.mxu1 %v1476_v45  ;;  %1866 = vmatpush1.msra.mxu0 %v1230_v41  ;;  %v1557_v0 = vld [vmem:[#allocation13 + $0xae8] sm:$0xff]  ;;  %v1311_v60 = vld [vmem:[#allocation13 + $0x338] sm:$0xff]  ;;  %v1556_v45 = vld [vmem:[#allocation13 + $0xae0] sm:$0xff] }
 0x275   :  { %1800 = vmatprep.subr.mxu1 %v1473_v49  ;;  %1867 = vmatprep.subr.mxu0 %v1227_v14  ;;  %v1310_v41 = vld [vmem:[#allocation13 + $0x330] sm:$0xff]  ;;  %v1553_v49 = vld [vmem:[#allocation13 + $0xac8] sm:$0xff]  ;;  %v1307_v14 = vld [vmem:[#allocation13 + $0x318] sm:$0xff] }
 0x276   :  { %1194 = vst.msk [vmem:[#allocation3 + $0x13] ss:$8 sm:$0x3] %vm7583_vm1, %v1191_v47  ;;  %1801 = vmatpush1.msra.mxu1 %v1472_v7  ;;  %1868 = vmatpush1.msra.mxu0 %v1226_v8  ;;  %v1552_v47 = vld [vmem:[#allocation13 + $0xac0] sm:$0xff]  ;;  %v1306_v7 = vld [vmem:[#allocation13 + $0x310] sm:$0xff]  ;;  %v1549_v8 = vld [vmem:[#allocation13 + $0xaa8] sm:$0xff] }
 0x277   :  { %1802 = vmatprep.subr.mxu1 %v1469_v9  ;;  %1869 = vmatprep.subr.mxu0 %v1223_v13  ;;  %v1303_v9 = vld [vmem:[#allocation13 + $0x2f8] sm:$0xff]  ;;  %v1548_v13 = vld [vmem:[#allocation13 + $0xaa0] sm:$0xff] }
 0x278   :  { %1803 = vmatpush1.msra.mxu1 %v1468_v15  ;;  %1870 = vmatpush1.msra.mxu0 %v1222_v16  ;;  %v1302_v15 = vld [vmem:[#allocation13 + $0x2f0] sm:$0xff]  ;;  %v1545_v16 = vld [vmem:[#allocation13 + $0xa88] sm:$0xff] }
 0x279   :  { %1804 = vmatprep.subr.mxu1 %v1465_v17  ;;  %1871 = vmatprep.subr.mxu0 %v1219_v18  ;;  %v1299_v17 = vld [vmem:[#allocation13 + $0x2d8] sm:$0xff]  ;;  %v1544_v18 = vld [vmem:[#allocation13 + $0xa80] sm:$0xff] }
 0x27a   :  { %1805 = vmatpush1.msra.mxu1 %v1464_v19  ;;  %1872 = vmatpush1.msra.mxu0 %v1218_v22  ;;  %v1298_v19 = vld [vmem:[#allocation13 + $0x2d0] sm:$0xff]  ;;  %v1541_v22 = vld [vmem:[#allocation13 + $0xa68] sm:$0xff] }
 0x27b   :  { %1806 = vmatprep.subr.mxu1 %v1589_v24  ;;  %1873 = vmatprep.subr.mxu0 %v1215_v26  ;;  %v1295_v24 = vld [vmem:[#allocation13 + $0x2b8] sm:$0xff]  ;;  %v1540_v26 = vld [vmem:[#allocation13 + $0xa60] sm:$0xff] }
 0x27c   :  { %1807 = vmatpush2.msra.mxu1 %v1588_v29  ;;  %1874 = vmatpush1.msra.mxu0 %v1214_v31  ;;  %v1294_v29 = vld [vmem:[#allocation13 + $0x2b0] sm:$0xff]  ;;  %v1537_v31 = vld [vmem:[#allocation13 + $0xa48] sm:$0xff] }
 0x27d   :  { %1808 = vmatprep.subr.mxu1 %v1585_v34  ;;  %1875 = vmatprep.subr.mxu0 %v1211_v61  ;;  %v1291_v34 = vld [vmem:[#allocation13 + $0x298] sm:$0xff]  ;;  %v1536_v61 = vld [vmem:[#allocation13 + $0xa40] sm:$0xff] }
 0x27e   :  { %1809 = vmatpush2.msra.mxu1 %v1584_v40  ;;  %1876 = vmatpush1.msra.mxu0 %v1210_v46  ;;  %v1290_v40 = vld [vmem:[#allocation13 + $0x290] sm:$0xff]  ;;  %v1533_v46 = vld [vmem:[#allocation13 + $0xa28] sm:$0xff] }
 0x27f   :  { %1810 = vmatprep.subr.mxu1 %v1581_v23  ;;  %1877 = vmatprep.subr.mxu0 %v1335_v21  ;;  %v1287_v23 = vld [vmem:[#allocation13 + $0x278] sm:$0xff]  ;;  %v1532_v21 = vld [vmem:[#allocation13 + $0xa20] sm:$0xff] }
 0x280   :  { %1811 = vmatpush2.msra.mxu1 %v1580_v48  ;;  %1878 = vmatpush2.msra.mxu0 %v1334_v51  ;;  %v1286_v48 = vld [vmem:[#allocation13 + $0x270] sm:$0xff]  ;;  %v1529_v51 = vld [vmem:[#allocation13 + $0xa08] sm:$0xff] }
 0x281   :  { %1812 = vmatprep.subr.mxu1 %v1577_v50  ;;  %1879 = vmatprep.subr.mxu0 %v1331_v25  ;;  %v1283_v50 = vld [vmem:[#allocation13 + $0x258] sm:$0xff] }
 0x282   :  { %1813 = vmatpush2.msra.mxu1 %v1576_v27  ;;  %1880 = vmatpush2.msra.mxu0 %v1330_v63  ;;  %v7643_v25 = vld [vmem:[#allocation3] sm:$0x3c]  ;;  %v1528_v27 = vld [vmem:[#allocation13 + $0xa00] sm:$0xff]  ;;  %v1282_v63 = vld [vmem:[#allocation13 + $0x250] sm:$0xff] }
 0x283   :  { %1814 = vmatprep.subr.mxu1 %v1573_v28  ;;  %1881 = vmatprep.subr.mxu0 %v1327_v38  ;;  %v1279_v28 = vld [vmem:[#allocation13 + $0x238] sm:$0xff]  ;;  %v9863_v38 = vrot.slane %v7643_v25, 2 }
 0x284   :  { %1815 = vmatpush2.msra.mxu1 %v1572_v30  ;;  %1882 = vmatpush2.msra.mxu0 %v1326_v32  ;;  %v1399_v30 = vld [vmem:[#allocation13 + $0x5f8] sm:$0xff]  ;;  %v1278_v32 = vld [vmem:[#allocation13 + $0x230] sm:$0xff] }
 0x285   :  { %1816 = vmatprep.subr.mxu1 %v1569_v33  ;;  %1883 = vmatprep.subr.mxu0 %v1323_v35  ;;  %v1398_v33 = vld [vmem:[#allocation13 + $0x5f0] sm:$0xff]  ;;  %v1275_v35 = vld [vmem:[#allocation13 + $0x218] sm:$0xff] }
 0x286   :  { %1817 = vmatpush2.msra.mxu1 %v1568_v37  ;;  %1884 = vmatpush2.msra.mxu0 %v1322_v11  ;;  %v1395_v37 = vld [vmem:[#allocation13 + $0x5d8] sm:$0xff]  ;;  %v1274_v11 = vld [vmem:[#allocation13 + $0x210] sm:$0xff] }
 0x287   :  { %1818 = vmatprep.subr.mxu1 %v1565_v39  ;;  %1885 = vmatprep.subr.mxu0 %v1319_v54  ;;  %v1394_v39 = vld [vmem:[#allocation13 + $0x5d0] sm:$0xff]  ;;  %v1391_v54 = vld [vmem:[#allocation13 + $0x5b8] sm:$0xff] }
 0x288   :  { %1819 = vmatpush2.msra.mxu1 %v1564_v56  ;;  %1886 = vmatpush2.msra.mxu0 %v1318_v59  ;;  %v1527_v56 = vld [vmem:[#allocation13 + $0x9f8] sm:$0xff]  ;;  %v1390_v59 = vld [vmem:[#allocation13 + $0x5b0] sm:$0xff] }
 0x289   :  { %1820 = vmatprep.subr.mxu1 %v1561_v4  ;;  %1887 = vmatprep.subr.mxu0 %v1315_v10  ;;  %v1526_v4 = vld [vmem:[#allocation13 + $0x9f0] sm:$0xff]  ;;  %v1387_v10 = vld [vmem:[#allocation13 + $0x598] sm:$0xff] }
 0x28a   :  { %1821 = vmatpush2.msra.mxu1 %v1560_v12  ;;  %1888 = vmatpush2.msra.mxu0 %v1314_v55  ;;  %v1523_v12 = vld [vmem:[#allocation13 + $0x9d8] sm:$0xff]  ;;  %v1386_v55 = vld [vmem:[#allocation13 + $0x590] sm:$0xff] }
 0x28b   :  { %1822 = vmatprep.subr.mxu1 %v1557_v0  ;;  %1889 = vmatprep.subr.mxu0 %v1311_v60  ;;  %v1522_v0 = vld [vmem:[#allocation13 + $0x9d0] sm:$0xff] }
 0x28c   :  { %1823 = vmatpush2.msra.mxu1 %v1556_v45  ;;  %1890 = vmatpush2.msra.mxu0 %v1310_v41  ;;  %v1382_v60 = vld [vmem:[#allocation13 + $0x570] sm:$0xff]  ;;  %v1515_v41 = vld [vmem:[#allocation13 + $0x998] sm:$0xff] }
 0x28d   :  { %1824 = vmatprep.subr.mxu1 %v1553_v49  ;;  %1891 = vmatprep.subr.mxu0 %v1307_v14  ;;  %v1518_v45 = vld [vmem:[#allocation13 + $0x9b0] sm:$0xff]  ;;  %v1132_v49 = vpop.f32.mrf.mxu1 }
 0x28e   :  { %1825 = vmatpush2.msra.mxu1 %v1552_v47  ;;  %1892 = vmatpush2.msra.mxu0 %v1306_v7  ;;  %v1378_v47 = vld [vmem:[#allocation13 + $0x550] sm:$0xff] }
 0x28f   :  { %1826 = vmatprep.subr.mxu1 %v1549_v8  ;;  %1893 = vmatprep.subr.mxu0 %v1303_v9  ;;  %v1514_v7 = vld [vmem:[#allocation13 + $0x990] sm:$0xff] }
 0x290   :  { %1827 = vmatpush2.msra.mxu1 %v1548_v13  ;;  %1894 = vmatpush2.msra.mxu0 %v1302_v15  ;;  %v1374_v13 = vld [vmem:[#allocation13 + $0x530] sm:$0xff] }
 0x291   :  { %1828 = vmatprep.subr.mxu1 %v1545_v16  ;;  %1895 = vmatprep.subr.mxu0 %v1299_v17  ;;  %v1510_v15 = vld [vmem:[#allocation13 + $0x970] sm:$0xff] }
 0x292   :  { %1829 = vmatpush2.msra.mxu1 %v1544_v18  ;;  %1896 = vmatpush2.msra.mxu0 %v1298_v19  ;;  %v1371_v18 = vld [vmem:[#allocation13 + $0x518] sm:$0xff] }
 0x293   :  { %1830 = vmatprep.subr.mxu1 %v1541_v22  ;;  %1897 = vmatprep.subr.mxu0 %v1295_v24  ;;  %v1507_v19 = vld [vmem:[#allocation13 + $0x958] sm:$0xff]  ;;  %v1134_v22 = vpop.f32.mrf.mxu1  ;;  %v1506_v24 = vld [vmem:[#allocation13 + $0x950] sm:$0xff] }
 0x294   :  { %1831 = vmatpush2.msra.mxu1 %v1540_v26  ;;  %1898 = vmatpush2.msra.mxu0 %v1294_v29  ;;  %v1367_v29 = vld [vmem:[#allocation13 + $0x4f8] sm:$0xff] }
 0x295   :  { %1832 = vmatprep.subr.mxu1 %v1537_v31  ;;  %1899 = vmatprep.subr.mxu0 %v1291_v34  ;;  %v1503_v31 = vld [vmem:[#allocation13 + $0x938] sm:$0xff]  ;;  %v1366_v34 = vld [vmem:[#allocation13 + $0x4f0] sm:$0xff] }
 0x296   :  { %1833 = vmatpush2.msra.mxu1 %v1536_v61  ;;  %1900 = vmatpush2.msra.mxu0 %v1290_v40  ;;  %v1502_v61 = vld [vmem:[#allocation13 + $0x930] sm:$0xff] }
 0x297   :  { %1834 = vmatprep.subr.mxu1 %v1533_v46  ;;  %1901 = vmatprep.subr.mxu0 %v1287_v23  ;;  %v1363_v46 = vld [vmem:[#allocation13 + $0x4d8] sm:$0xff] }
 0x298   :  { %1835 = vmatpush2.msra.mxu1 %v1532_v21  ;;  %1902 = vmatpush2.msra.mxu0 %v1286_v48  ;;  %v1499_v23 = vld [vmem:[#allocation13 + $0x918] sm:$0xff]  ;;  %v1362_v21 = vld [vmem:[#allocation13 + $0x4d0] sm:$0xff] }
 0x299   :  { %1836 = vmatprep.subr.mxu1 %v1529_v51  ;;  %1903 = vmatprep.subr.mxu0 %v1283_v50  ;;  %v1498_v48 = vld [vmem:[#allocation13 + $0x910] sm:$0xff]  ;;  %v1359_v50 = vld [vmem:[#allocation13 + $0x4b8] sm:$0xff] }
 0x29a   :  { %1837 = vmatpush2.msra.mxu1 %v1528_v27  ;;  %1904 = vmatpush2.msra.mxu0 %v1282_v63  ;;  %v1495_v27 = vld [vmem:[#allocation13 + $0x8f8] sm:$0xff]  ;;  %v1358_v63 = vld [vmem:[#allocation13 + $0x4b0] sm:$0xff] }
 0x29b   :  { %1839 = vmatmul.mubr.f32.vlgmr.msra.gmra.mxu1 %v9863_v38  ;;  %1905 = vmatprep.subr.mxu0 %v1279_v28  ;;  %v1494_v28 = vld [vmem:[#allocation13 + $0x8f0] sm:$0xff] }
 0x29c   :  { %1916 = vmatprep.subr.mxu1 %v1399_v30  ;;  %1906 = vmatpush2.msra.mxu0 %v1278_v32  ;;  %v1355_v32 = vld [vmem:[#allocation13 + $0x498] sm:$0xff]  ;;  %v7820_v38 = vld [vmem:[#allocation13 + $0x670] sm:$0xff] }
 0x29d   :  { %1917 = vmatpush1.msra.mxu1 %v1398_v33  ;;  %1980 = vmatprep.mubr.f32.mxu1 %v1602_v3  ;;  %v1519_v3 = vld [vmem:[#allocation13 + $0x9b8] sm:$0xff]  ;;  %10253 = vst [vmem:[#allocation43_spill] sm:$0xff] %v7820_v38 }
 0x29e   :  { %1907 = vmatprep.subr.mxu0 %v1275_v35  ;;  %1918 = vmatprep.subr.mxu1 %v1395_v37  ;;  %v1491_v33 = vld [vmem:[#allocation13 + $0x8d8] sm:$0xff]  ;;  %v1354_v35 = vld [vmem:[#allocation13 + $0x490] sm:$0xff] }
 0x29f   :  { %1908 = vmatpush2.msra.mxu0 %v1274_v11  ;;  %1919 = vmatpush1.msra.mxu1 %v1394_v39  ;;  %v1490_v37 = vld [vmem:[#allocation13 + $0x8d0] sm:$0xff] }
 0x2a0   :  { %1910 = vmatmul.mubr.f32.vlgmr.msra.gmra.mxu0 %v7616_v52  ;;  %1920 = vmatprep.subr.mxu1 %v1391_v54  ;;  %v1379_v52 = vld [vmem:[#allocation13 + $0x558] sm:$0xff] }
 0x2a1   :  { %1987 = vmatprep.subr.mxu0 %v1527_v56  ;;  %1921 = vmatpush1.msra.mxu1 %v1390_v59  ;;  %v1351_v54 = vld [vmem:[#allocation13 + $0x478] sm:$0xff]  ;;  %v1350_v59 = vld [vmem:[#allocation13 + $0x470] sm:$0xff] }
 0x2a2   :  { %1988 = vmatpush1.msra.mxu0 %v1526_v4  ;;  %2051 = vmatprep.mubr.f32.mxu0 %v1608_v5  ;;  %v1511_v5 = vld [vmem:[#allocation13 + $0x978] sm:$0xff]  ;;  %v1486_v4 = vld [vmem:[#allocation13 + $0x8b0] sm:$0xff] }
 0x2a3   :  { %1922 = vmatprep.subr.mxu1 %v1387_v10  ;;  %1989 = vmatprep.subr.mxu0 %v1523_v12  ;;  %v1487_v56 = vld [vmem:[#allocation13 + $0x8b8] sm:$0xff] }
 0x2a4   :  { %1923 = vmatpush1.msra.mxu1 %v1386_v55  ;;  %1990 = vmatpush1.msra.mxu0 %v1522_v0  ;;  %v1347_v12 = vld [vmem:[#allocation13 + $0x458] sm:$0xff]  ;;  %v1346_v0 = vld [vmem:[#allocation13 + $0x450] sm:$0xff] }
 0x2a5   :  { %1924 = vmatprep.subr.mxu1 %v1383_v62  ;;  %1991 = vmatprep.subr.mxu0 %v1519_v3  ;;  %v1061_v14 = vpop.f32.mrf.mxu0  ;;  %v1483_v55 = vld [vmem:[#allocation13 + $0x898] sm:$0xff]  ;;  %v1482_v62 = vld [vmem:[#allocation13 + $0x890] sm:$0xff] }
 0x2a6   :  { %v1062_v8 = vadd.f32 %v1061_v14, %v7601_v53  ;;  %1925 = vmatpush1.msra.mxu1 %v1382_v60  ;;  %1992 = vmatpush1.msra.mxu0 %v1518_v45  ;;  %v1370_v53 = vld [vmem:[#allocation13 + $0x510] sm:$0xff]  ;;  %v1343_v3 = vld [vmem:[#allocation13 + $0x438] sm:$0xff] }
 0x2a7   :  { %1926 = vmatprep.subr.mxu1 %v1379_v52  ;;  %1993 = vmatprep.subr.mxu0 %v1515_v41  ;;  %v1063_v9 = vpop.f32.mrf.mxu0  ;;  %v1479_v60 = vld [vmem:[#allocation13 + $0x878] sm:$0xff]  ;;  %v1342_v45 = vld [vmem:[#allocation13 + $0x430] sm:$0xff] }
 0x2a8   :  { %v1133_v16 = vadd.f32 %v1132_v49, %v1062_v8  ;;  %v1064_v17 = vadd.f32 %v1063_v9, %v7605_v57  ;;  %1927 = vmatpush1.msra.mxu1 %v1378_v47  ;;  %1994 = vmatpush1.msra.mxu0 %v1514_v7  ;;  %v1478_v52 = vld [vmem:[#allocation13 + $0x870] sm:$0xff]  ;;  %v7662_v41 = vld [vmem:[#allocation13 + $0x418] sm:$0xff] }
 0x2a9   :  { %1928 = vmatprep.subr.mxu1 %v1375_v1  ;;  %1995 = vmatprep.subr.mxu0 %v1511_v5  ;;  %v7664_v49 = vld [vmem:[#allocation13 + $0x858] sm:$0xff]  ;;  %v7666_v14 = vld [vmem:[#allocation13 + $0x410] sm:$0xff] }
 0x2aa   :  { %v1135_v26 = vadd.f32 %v1134_v22, %v1064_v17  ;;  %1929 = vmatpush1.msra.mxu1 %v1374_v13  ;;  %1996 = vmatpush1.msra.mxu0 %v1510_v15  ;;  %v1139_v40 = vmax.f32 %v1133_v16, 0.0  ;;  %v7668_v47 = vld [vmem:[#allocation13 + $0x850] sm:$0xff]  ;;  %v7670_v7 = vld [vmem:[#allocation13 + $0x7f8] sm:$0xff] }
 0x2ab   :  { %1930 = vmatprep.subr.mxu1 %v1371_v18  ;;  %1997 = vmatprep.subr.mxu0 %v1507_v19  ;;  %v7672_v8 = vld [vmem:[#allocation13 + $0x838] sm:$0xff]  ;;  %v7676_v1 = vld [vmem:[#allocation13 + $0x7f0] sm:$0xff] }
 0x2ac   :  { %v1140_v57 = vmax.f32 %v1135_v26, 0.0  ;;  %1931 = vmatpush1.msra.mxu1 %v1370_v53  ;;  %1998 = vmatpush1.msra.mxu0 %v1506_v24  ;;  %v7678_v5 = vld [vmem:[#allocation13 + $0x830] sm:$0xff]  ;;  %v7682_v9 = vld [vmem:[#allocation13 + $0x7d8] sm:$0xff] }
 0x2ad   :  { %1932 = vmatprep.subr.mxu1 %v1367_v29  ;;  %1999 = vmatprep.subr.mxu0 %v1503_v31  ;;  %v7684_v13 = vld [vmem:[#allocation13 + $0x818] sm:$0xff]  ;;  %v7688_v15 = vld [vmem:[#allocation13 + $0x7d0] sm:$0xff] }
 0x2ae   :  { %v1165_v51 = vcombine.low %v1139_v40, %v1140_v57  ;;  %1933 = vmatpush1.msra.mxu1 %v1366_v34  ;;  %2000 = vmatpush1.msra.mxu0 %v1502_v61  ;;  %v7690_v16 = vld [vmem:[#allocation13 + $0x810] sm:$0xff]  ;;  %v7694_v17 = vld [vmem:[#allocation13 + $0x7b8] sm:$0xff] }
 0x2af   :  { %1934 = vmatprep.subr.mxu1 %v1363_v46  ;;  %2001 = vmatprep.subr.mxu0 %v1499_v23  ;;  %v7696_v18 = vld [vmem:[#allocation13 + $0xbf8] sm:$0xff]  ;;  %v7700_v19 = vld [vmem:[#allocation13 + $0x7b0] sm:$0xff] }
 0x2b0   :  { %v1172_v30 = vrot.slane %v1165_v51, %v7579_v58  ;;  %1935 = vmatpush1.msra.mxu1 %v1362_v21  ;;  %2002 = vmatpush1.msra.mxu0 %v1498_v48  ;;  %v7702_v22 = vld [vmem:[#allocation13 + $0xbf0] sm:$0xff]  ;;  %v7706_v53 = vld [vmem:[#allocation13 + $0x798] sm:$0xff] }
 0x2b1   :  { %1936 = vmatprep.subr.mxu1 %v1359_v50  ;;  %2003 = vmatprep.subr.mxu0 %v1495_v27  ;;  %v7708_v24 = vld [vmem:[#allocation13 + $0xbd8] sm:$0xff]  ;;  %v7712_v26 = vld [vmem:[#allocation13 + $0x790] sm:$0xff] }
 0x2b2   :  { %v1179_v11 = vrot.slane %v1172_v30, %v7579_v58  ;;  %v1196_v39 = vcombine.high %v1172_v30, %v1172_v30  ;;  %1937 = vmatpush1.msra.mxu1 %v1358_v63  ;;  %2004 = vmatpush1.msra.mxu0 %v1494_v28  ;;  %v7714_v29 = vld [vmem:[#allocation13 + $0xbd0] sm:$0xff]  ;;  %v7718_v31 = vld [vmem:[#allocation13 + $0x778] sm:$0xff] }
 0x2b3   :  { %1938 = vmatprep.subr.mxu1 %v1355_v32  ;;  %2005 = vmatprep.subr.mxu0 %v1491_v33  ;;  %v7720_v34 = vld [vmem:[#allocation13 + $0xbb8] sm:$0xff]  ;;  %v7724_v61 = vld [vmem:[#allocation13 + $0x770] sm:$0xff] }
 0x2b4   :  { %1182 = vst.msk [vmem:[#allocation3 + $0x12] ss:$8 sm:$0x3] %vm7583_vm1, %v1179_v11  ;;  %v1203_v10 = vrot.slane %v1196_v39, %v7579_v58  ;;  %1939 = vmatpush1.msra.mxu1 %v1354_v35  ;;  %2006 = vmatpush1.msra.mxu0 %v1490_v37  ;;  %v7726_v40 = vld [vmem:[#allocation13 + $0xbb0] sm:$0xff]  ;;  %v7730_v57 = vld [vmem:[#allocation13 + $0x758] sm:$0xff] }
 0x2b5   :  { %1940 = vmatprep.subr.mxu1 %v1351_v54  ;;  %2007 = vmatprep.subr.mxu0 %v1487_v56  ;;  %v7732_v46 = vld [vmem:[#allocation13 + $0xb98] sm:$0xff]  ;;  %v7736_v23 = vld [vmem:[#allocation13 + $0x750] sm:$0xff] }
 0x2b6   :  { %1206 = vst.msk [vmem:[#allocation3 + $0x14] ss:$8 sm:$0x3] %vm7583_vm1, %v1203_v10  ;;  %1941 = vmatpush1.msra.mxu1 %v1350_v59  ;;  %2008 = vmatpush1.msra.mxu0 %v1486_v4  ;;  %v7738_v21 = vld [vmem:[#allocation13 + $0xb90] sm:$0xff]  ;;  %v7742_v48 = vld [vmem:[#allocation13 + $0x738] sm:$0xff] }
 0x2b7   :  { %1942 = vmatprep.subr.mxu1 %v1347_v12  ;;  %2009 = vmatprep.subr.mxu0 %v1483_v55  ;;  %v7744_v51 = vld [vmem:[#allocation13 + $0xb78] sm:$0xff]  ;;  %v7748_v50 = vld [vmem:[#allocation13 + $0x730] sm:$0xff] }
 0x2b8   :  { %1943 = vmatpush1.msra.mxu1 %v1346_v0  ;;  %2010 = vmatpush1.msra.mxu0 %v1482_v62  ;;  %v7750_v27 = vld [vmem:[#allocation13 + $0xb70] sm:$0xff]  ;;  %v7754_v63 = vld [vmem:[#allocation13 + $0x718] sm:$0xff] }
 0x2b9   :  { %1944 = vmatprep.subr.mxu1 %v1343_v3  ;;  %2011 = vmatprep.subr.mxu0 %v1479_v60  ;;  %v7756_v28 = vld [vmem:[#allocation13 + $0xb58] sm:$0xff]  ;;  %v7760_v30 = vld [vmem:[#allocation13 + $0x710] sm:$0xff] }
 0x2ba   :  { %1945 = vmatpush1.msra.mxu1 %v1342_v45  ;;  %2012 = vmatpush1.msra.mxu0 %v1478_v52  ;;  %v7762_v32 = vld [vmem:[#allocation13 + $0xb50] sm:$0xff]  ;;  %v7766_v33 = vld [vmem:[#allocation13 + $0x6f8] sm:$0xff] }
 0x2bb   :  { %1946 = vmatprep.subr.mxu1 %v7662_v41  ;;  %2013 = vmatprep.subr.mxu0 %v7664_v49  ;;  %v7768_v35 = vld [vmem:[#allocation13 + $0xb38] sm:$0xff]  ;;  %v7772_v37 = vld [vmem:[#allocation13 + $0x6f0] sm:$0xff] }
 0x2bc   :  { %1947 = vmatpush1.msra.mxu1 %v7666_v14  ;;  %2014 = vmatpush1.msra.mxu0 %v7668_v47  ;;  %v7774_v11 = vld [vmem:[#allocation13 + $0xb30] sm:$0xff]  ;;  %v7778_v39 = vld [vmem:[#allocation13 + $0x6d8] sm:$0xff] }
 0x2bd   :  { %1948 = vmatprep.subr.mxu1 %v7670_v7  ;;  %2015 = vmatprep.subr.mxu0 %v7672_v8  ;;  %v7780_v54 = vld [vmem:[#allocation13 + $0xb18] sm:$0xff]  ;;  %v7784_v56 = vld [vmem:[#allocation13 + $0x6d0] sm:$0xff] }
 0x2be   :  { %1949 = vmatpush2.msra.mxu1 %v7676_v1  ;;  %2016 = vmatpush1.msra.mxu0 %v7678_v5  ;;  %10240 = vst [vmem:[#allocation27_spill] sm:$0xff] %v7780_v54  ;;  %10241 = vst [vmem:[#allocation37_spill] sm:$0xff] %v7784_v56  ;;  %v7786_v59 = vld [vmem:[#allocation13 + $0xb10] sm:$0xff]  ;;  %v7790_v4 = vld [vmem:[#allocation13 + $0x6b8] sm:$0xff] }
 0x2bf   :  { %1950 = vmatprep.subr.mxu1 %v7682_v9  ;;  %2017 = vmatprep.subr.mxu0 %v7684_v13  ;;  %10242 = vst [vmem:[#allocation28_spill] sm:$0xff] %v7786_v59  ;;  %10243 = vst [vmem:[#allocation38_spill] sm:$0xff] %v7790_v4  ;;  %v7792_v10 = vld [vmem:[#allocation13 + $0xaf8] sm:$0xff]  ;;  %v7796_v12 = vld [vmem:[#allocation13 + $0x6b0] sm:$0xff] }
 0x2c0   :  { %1951 = vmatpush2.msra.mxu1 %v7688_v15  ;;  %2018 = vmatpush1.msra.mxu0 %v7690_v16  ;;  %10244 = vst [vmem:[#allocation29_spill] sm:$0xff] %v7792_v10  ;;  %10245 = vst [vmem:[#allocation39_spill] sm:$0xff] %v7796_v12  ;;  %v7798_v55 = vld [vmem:[#allocation13 + $0xaf0] sm:$0xff]  ;;  %v7802_v0 = vld [vmem:[#allocation13 + $0x698] sm:$0xff] }
 0x2c1   :  { %1952 = vmatprep.subr.mxu1 %v7694_v17  ;;  %2019 = vmatprep.subr.mxu0 %v7696_v18  ;;  %10246 = vst [vmem:[#allocation30_spill] sm:$0xff] %v7798_v55  ;;  %10247 = vst [vmem:[#allocation40_spill] sm:$0xff] %v7802_v0  ;;  %v7804_v62 = vld [vmem:[#allocation13 + $0xad8] sm:$0xff]  ;;  %v7808_v3 = vld [vmem:[#allocation13 + $0x690] sm:$0xff] }
 0x2c2   :  { %1953 = vmatpush2.msra.mxu1 %v7700_v19  ;;  %2020 = vmatpush2.msra.mxu0 %v7702_v22  ;;  %10248 = vst [vmem:[#allocation31_spill] sm:$0xff] %v7804_v62  ;;  %10249 = vst [vmem:[#allocation41_spill] sm:$0xff] %v7808_v3  ;;  %v7810_v60 = vld [vmem:[#allocation13 + $0xad0] sm:$0xff]  ;;  %v7814_v45 = vld [vmem:[#allocation13 + $0x678] sm:$0xff] }
 0x2c3   :  { %1954 = vmatprep.subr.mxu1 %v7706_v53  ;;  %2021 = vmatprep.subr.mxu0 %v7708_v24  ;;  %10250 = vst [vmem:[#allocation32_spill] sm:$0xff] %v7810_v60  ;;  %10251 = vst [vmem:[#allocation42_spill] sm:$0xff] %v7814_v45  ;;  %v7816_v52 = vld [vmem:[#allocation13 + $0xab8] sm:$0xff] }
 0x2c4   :  { %1955 = vmatpush2.msra.mxu1 %v7712_v26  ;;  %2022 = vmatpush2.msra.mxu0 %v7714_v29  ;;  %10252 = vst [vmem:[#allocation33_spill] sm:$0xff] %v7816_v52 }
 0x2c5   :  { %1956 = vmatprep.subr.mxu1 %v7718_v31  ;;  %2023 = vmatprep.subr.mxu0 %v7720_v34 }
 0x2c6   :  { %1957 = vmatpush2.msra.mxu1 %v7724_v61  ;;  %2024 = vmatpush2.msra.mxu0 %v7726_v40 }
 0x2c7   :  { %1958 = vmatprep.subr.mxu1 %v7730_v57  ;;  %2025 = vmatprep.subr.mxu0 %v7732_v46 }
 0x2c8   :  { %1959 = vmatpush2.msra.mxu1 %v7736_v23  ;;  %2026 = vmatpush2.msra.mxu0 %v7738_v21 }
 0x2c9   :  { %1960 = vmatprep.subr.mxu1 %v7742_v48  ;;  %2027 = vmatprep.subr.mxu0 %v7744_v51 }
 0x2ca   :  { %1961 = vmatpush2.msra.mxu1 %v7748_v50  ;;  %2028 = vmatpush2.msra.mxu0 %v7750_v27 }
 0x2cb   :  { %1962 = vmatprep.subr.mxu1 %v7754_v63  ;;  %2029 = vmatprep.subr.mxu0 %v7756_v28 }
 0x2cc   :  { %1963 = vmatpush2.msra.mxu1 %v7760_v30  ;;  %2030 = vmatpush2.msra.mxu0 %v7762_v32 }
 0x2cd   :  { %1964 = vmatprep.subr.mxu1 %v7766_v33  ;;  %2031 = vmatprep.subr.mxu0 %v7768_v35 }
 0x2ce   :  { %1965 = vmatpush2.msra.mxu1 %v7772_v37  ;;  %2032 = vmatpush2.msra.mxu0 %v7774_v11 }
 0x2cf   :  { %1966 = vmatprep.subr.mxu1 %v7778_v39  ;;  %2033 = vmatprep.subr.mxu0 %v7780_v54  ;;  %v7916_v54 = vld [vmem:[#allocation3 + $0x10] sm:$0x3c] }
 0x2d0   :  { %1967 = vmatpush2.msra.mxu1 %v7784_v56  ;;  %2034 = vmatpush2.msra.mxu0 %v7786_v59  ;;  %v5426_v59 = vld [vmem:[#allocation13 + $0xa68] sm:$0xff]  ;;  %v5429_v56 = vld [vmem:[#allocation13 + $0x2b0] sm:$0xff] }
 0x2d1   :  { %1968 = vmatprep.subr.mxu1 %v7790_v4  ;;  %2035 = vmatprep.subr.mxu0 %v7792_v10  ;;  %v5418_v10 = vld [vmem:[#allocation13 + $0xaa8] sm:$0xff]  ;;  %v5423_v4 = vld [vmem:[#allocation13 + $0x2d8] sm:$0xff] }
 0x2d2   :  { %1969 = vmatpush2.msra.mxu1 %v7796_v12  ;;  %2036 = vmatpush2.msra.mxu0 %v7798_v55  ;;  %v7832_v55 = vld [vmem:[#allocation13 + $0x650] sm:$0xff]  ;;  %v5321_v12 = vld [vmem:[#allocation13 + $0x9c0] sm:$0xff] }
 0x2d3   :  { %1970 = vmatprep.subr.mxu1 %v7802_v0  ;;  %2037 = vmatprep.subr.mxu0 %v7804_v62  ;;  %10257 = vst [vmem:[#allocation46_spill] sm:$0xff] %v7832_v55  ;;  %v7834_v0 = vld [vmem:[#allocation13 + $0xa90] sm:$0xff]  ;;  %v7838_v62 = vld [vmem:[#allocation13 + $0x638] sm:$0xff] }
 0x2d4   :  { %1971 = vmatpush2.msra.mxu1 %v7808_v3  ;;  %2038 = vmatpush2.msra.mxu0 %v7810_v60  ;;  %10258 = vst [vmem:[#allocation47_spill] sm:$0xff] %v7834_v0  ;;  %10259 = vst [vmem:[#allocation48_spill] sm:$0xff] %v7838_v62  ;;  %v7840_v3 = vld [vmem:[#allocation13 + $0xa78] sm:$0xff]  ;;  %v7844_v60 = vld [vmem:[#allocation13 + $0x630] sm:$0xff] }
 0x2d5   :  { %1972 = vmatprep.subr.mxu1 %v7814_v45  ;;  %2039 = vmatprep.subr.mxu0 %v7816_v52  ;;  %10260 = vst [vmem:[#allocation49_spill] sm:$0xff] %v7840_v3  ;;  %10261 = vst [vmem:[#allocation50_spill] sm:$0xff] %v7844_v60  ;;  %v7846_v45 = vld [vmem:[#allocation13 + $0xa70] sm:$0xff]  ;;  %v7850_v52 = vld [vmem:[#allocation13 + $0x618] sm:$0xff] }
 0x2d6   :  { %1973 = vmatpush2.msra.mxu1 %v7820_v38  ;;  %2040 = vmatpush2.msra.mxu0 %v7822_v6  ;;  %10262 = vst [vmem:[#allocation51_spill] sm:$0xff] %v7846_v45  ;;  %10263 = vst [vmem:[#allocation52_spill] sm:$0xff] %v7850_v52  ;;  %v7852_v38 = vld [vmem:[#allocation13 + $0xa58] sm:$0xff]  ;;  %v7856_v6 = vld [vmem:[#allocation13 + $0x610] sm:$0xff] }
 0x2d7   :  { %1974 = vmatprep.subr.mxu1 %v7826_v44  ;;  %2041 = vmatprep.subr.mxu0 %v7828_v42  ;;  %10264 = vst [vmem:[#allocation53_spill] sm:$0xff] %v7852_v38  ;;  %10265 = vst [vmem:[#allocation54_spill] sm:$0xff] %v7856_v6  ;;  %v7858_v44 = vld [vmem:[#allocation13 + $0xa50] sm:$0xff]  ;;  %v7862_v42 = vld [vmem:[#allocation13 + $0xa38] sm:$0xff] }
 0x2d8   :  { %1975 = vmatpush2.msra.mxu1 %v7832_v55  ;;  %2042 = vmatpush2.msra.mxu0 %v7834_v0  ;;  %10266 = vst [vmem:[#allocation55_spill] sm:$0xff] %v7858_v44  ;;  %10267 = vst [vmem:[#allocation56_spill] sm:$0xff] %v7862_v42  ;;  %v7866_v0 = vld [vmem:[#allocation13 + $0xa30] sm:$0xff]  ;;  %v5197_v55 = vld [vmem:[#allocation13 + $0x5e0] sm:$0xff] }
 0x2d9   :  { %1976 = vmatprep.subr.mxu1 %v7838_v62  ;;  %2043 = vmatprep.subr.mxu0 %v7840_v3  ;;  %10268 = vst [vmem:[#allocation57_spill] sm:$0xff] %v7866_v0  ;;  %v10269_v3 = vrot.slane %v7623_v2, 1  ;;  %v5191_v62 = vld [vmem:[#allocation13 + $0x1e0] sm:$0xff]  ;;  %v5192_v2 = vld [vmem:[#allocation13 + $0x1c8] sm:$0xff] }
 0x2da   :  { %1977 = vmatpush2.msra.mxu1 %v7844_v60  ;;  %2044 = vmatpush2.msra.mxu0 %v7846_v45  ;;  %v7873_v60 = vld [vmem:[#allocation13 + $0xa18] sm:$0xff]  ;;  %v5190_v45 = vld [vmem:[#allocation13 + $0x1e8] sm:$0xff] }
 0x2db   :  { %1978 = vmatprep.subr.mxu1 %v7850_v52  ;;  %2045 = vmatprep.subr.mxu0 %v7852_v38  ;;  %10270 = vst [vmem:[#allocation58_spill] sm:$0xff] %v7873_v60  ;;  %v7876_v52 = vld [vmem:[#allocation3 + $0x18] sm:$0xf] }
 0x2dc   :  { %1979 = vmatpush2.msra.mxu1 %v7856_v6  ;;  %2046 = vmatpush2.msra.mxu0 %v7858_v44  ;;  %v7878_v38 = vld [vmem:[#allocation13 + $0xa10] sm:$0xff]  ;;  %v5196_v6 = vld [vmem:[#allocation13 + $0x1a0] sm:$0xff] }
 0x2dd   :  { %1981 = vmatmul.mubr.f32.vlgmr.msra.gmra.mxu1 %v10269_v3  ;;  %2047 = vmatprep.subr.mxu0 %v7862_v42  ;;  %10271 = vst [vmem:[#allocation59_spill] sm:$0xff] %v7878_v38  ;;  %v7881_v44 = vld [vmem:[#allocation3 + $0x18] sm:$0x1e]  ;;  %v5193_v3 = vld [vmem:[#allocation13 + $0x1c0] sm:$0xff] }
 0x2de   :  { %2166 = vmatprep.subr.mxu1 %v5190_v45  ;;  %2048 = vmatpush2.msra.mxu0 %v7866_v0  ;;  %v10272_v45 = vrot.slane %v7643_v25, 2  ;;  %v5194_v0 = vld [vmem:[#allocation13 + $0x1a8] sm:$0xff]  ;;  %v9894_v42 = vrot.slane %v7881_v44, 1  ;;  %v5201_v25 = vld [vmem:[#allocation13 + $0x5c0] sm:$0xff] }
 0x2df   :  { %2167 = vmatpush1.msra.mxu1 %v5191_v62  ;;  %2230 = vmatprep.mubr.f32.mxu1 %v7876_v52  ;;  %v5195_v62 = vld [vmem:[#allocation13 + $0x5e8] sm:$0xff] }
 0x2e0   :  { %2049 = vmatprep.subr.mxu0 %v7873_v60  ;;  %2168 = vmatprep.subr.mxu1 %v5192_v2  ;;  %v5198_v2 = vld [vmem:[#allocation13 + $0x188] sm:$0xff] }
 0x2e1   :  { %2050 = vmatpush2.msra.mxu0 %v7878_v38  ;;  %2169 = vmatpush1.msra.mxu1 %v5193_v3  ;;  %v5199_v38 = vld [vmem:[#allocation13 + $0x5c8] sm:$0xff]  ;;  %v5200_v3 = vld [vmem:[#allocation13 + $0x180] sm:$0xff] }
 0x2e2   :  { %2052 = vmatmul.mubr.f32.vlgmr.msra.gmra.mxu0 %v10272_v45  ;;  %2170 = vmatprep.subr.mxu1 %v5194_v0  ;;  %v5202_v0 = vld [vmem:[#allocation13 + $0x168] sm:$0xff] }
 0x2e3   :  { %2237 = vmatprep.subr.mxu0 %v5195_v62  ;;  %2171 = vmatpush1.msra.mxu1 %v5196_v6  ;;  %v5203_v45 = vld [vmem:[#allocation13 + $0x5a8] sm:$0xff]  ;;  %v5204_v62 = vld [vmem:[#allocation13 + $0x160] sm:$0xff] }
 0x2e4   :  { %2238 = vmatpush1.msra.mxu0 %v5197_v55  ;;  %2301 = vmatprep.mubr.f32.mxu0 %v9894_v42  ;;  %v5205_v6 = vld [vmem:[#allocation13 + $0x5a0] sm:$0xff]  ;;  %v5206_v55 = vld [vmem:[#allocation13 + $0x148] sm:$0xff] }
 0x2e5   :  { %2172 = vmatprep.subr.mxu1 %v5198_v2  ;;  %2239 = vmatprep.subr.mxu0 %v5199_v38  ;;  %v5207_v60 = vld [vmem:[#allocation13 + $0x588] sm:$0xff]  ;;  %v5208_v42 = vld [vmem:[#allocation13 + $0x140] sm:$0xff] }
 0x2e6   :  { %2173 = vmatpush1.msra.mxu1 %v5200_v3  ;;  %2240 = vmatpush1.msra.mxu0 %v5201_v25  ;;  %v5209_v2 = vld [vmem:[#allocation13 + $0x580] sm:$0xff]  ;;  %v5210_v38 = vld [vmem:[#allocation13 + $0x128] sm:$0xff] }
 0x2e7   :  { %2174 = vmatprep.subr.mxu1 %v5202_v0  ;;  %2241 = vmatprep.subr.mxu0 %v5203_v45  ;;  %v5211_v3 = vld [vmem:[#allocation13 + $0x568] sm:$0xff]  ;;  %v5212_v25 = vld [vmem:[#allocation13 + $0x120] sm:$0xff] }
 0x2e8   :  { %2175 = vmatpush1.msra.mxu1 %v5204_v62  ;;  %2242 = vmatpush1.msra.mxu0 %v5205_v6  ;;  %v5213_v0 = vld [vmem:[#allocation13 + $0x560] sm:$0xff]  ;;  %v5214_v45 = vld [vmem:[#allocation13 + $0x108] sm:$0xff] }
 0x2e9   :  { %2176 = vmatprep.subr.mxu1 %v5206_v55  ;;  %2243 = vmatprep.subr.mxu0 %v5207_v60  ;;  %v5215_v62 = vld [vmem:[#allocation13 + $0x548] sm:$0xff]  ;;  %v5216_v6 = vld [vmem:[#allocation13 + $0x100] sm:$0xff] }
 0x2ea   :  { %2177 = vmatpush1.msra.mxu1 %v5208_v42  ;;  %2244 = vmatpush1.msra.mxu0 %v5209_v2  ;;  %v5217_v55 = vld [vmem:[#allocation13 + $0x540] sm:$0xff]  ;;  %v5218_v60 = vld [vmem:[#allocation13 + $0xe8] sm:$0xff] }
 0x2eb   :  { %2178 = vmatprep.subr.mxu1 %v5210_v38  ;;  %2245 = vmatprep.subr.mxu0 %v5211_v3  ;;  %v5219_v42 = vld [vmem:[#allocation13 + $0x528] sm:$0xff]  ;;  %v5220_v2 = vld [vmem:[#allocation13 + $0xe0] sm:$0xff] }
 0x2ec   :  { %2179 = vmatpush1.msra.mxu1 %v5212_v25  ;;  %2246 = vmatpush1.msra.mxu0 %v5213_v0  ;;  %v5221_v38 = vld [vmem:[#allocation13 + $0x520] sm:$0xff]  ;;  %v5222_v3 = vld [vmem:[#allocation13 + $0xc8] sm:$0xff] }
 0x2ed   :  { %2180 = vmatprep.subr.mxu1 %v5214_v45  ;;  %2247 = vmatprep.subr.mxu0 %v5215_v62  ;;  %v5223_v25 = vld [vmem:[#allocation13 + $0x508] sm:$0xff]  ;;  %v5224_v0 = vld [vmem:[#allocation13 + $0xc0] sm:$0xff] }
 0x2ee   :  { %2181 = vmatpush1.msra.mxu1 %v5216_v6  ;;  %2248 = vmatpush1.msra.mxu0 %v5217_v55  ;;  %v5225_v45 = vld [vmem:[#allocation13 + $0x500] sm:$0xff]  ;;  %v5226_v62 = vld [vmem:[#allocation13 + $0xa8] sm:$0xff] }
 0x2ef   :  { %2182 = vmatprep.subr.mxu1 %v5218_v60  ;;  %2249 = vmatprep.subr.mxu0 %v5219_v42  ;;  %v5227_v6 = vld [vmem:[#allocation13 + $0x4e8] sm:$0xff]  ;;  %v5228_v55 = vld [vmem:[#allocation13 + $0xa0] sm:$0xff] }
 0x2f0   :  { %2183 = vmatpush1.msra.mxu1 %v5220_v2  ;;  %2250 = vmatpush1.msra.mxu0 %v5221_v38  ;;  %v5229_v60 = vld [vmem:[#allocation13 + $0x4e0] sm:$0xff]  ;;  %v5230_v42 = vld [vmem:[#allocation13 + $0x88] sm:$0xff] }
 0x2f1   :  { %2184 = vmatprep.subr.mxu1 %v5222_v3  ;;  %2251 = vmatprep.subr.mxu0 %v5223_v25  ;;  %v5231_v2 = vld [vmem:[#allocation13 + $0x4c8] sm:$0xff]  ;;  %v5232_v38 = vld [vmem:[#allocation13 + $0x80] sm:$0xff] }
 0x2f2   :  { %2185 = vmatpush1.msra.mxu1 %v5224_v0  ;;  %2252 = vmatpush1.msra.mxu0 %v5225_v45  ;;  %v5233_v3 = vld [vmem:[#allocation13 + $0x4c0] sm:$0xff]  ;;  %v5234_v25 = vld [vmem:[#allocation13 + $0x68] sm:$0xff] }
 0x2f3   :  { %2186 = vmatprep.subr.mxu1 %v5226_v62  ;;  %2253 = vmatprep.subr.mxu0 %v5227_v6  ;;  %v5235_v0 = vld [vmem:[#allocation13 + $0x4a8] sm:$0xff]  ;;  %v5236_v45 = vld [vmem:[#allocation13 + $0x60] sm:$0xff] }
 0x2f4   :  { %2187 = vmatpush1.msra.mxu1 %v5228_v55  ;;  %2254 = vmatpush1.msra.mxu0 %v5229_v60  ;;  %v5237_v62 = vld [vmem:[#allocation13 + $0x4a0] sm:$0xff]  ;;  %v5238_v6 = vld [vmem:[#allocation13 + $0x48] sm:$0xff] }
 0x2f5   :  { %2188 = vmatprep.subr.mxu1 %v5230_v42  ;;  %2255 = vmatprep.subr.mxu0 %v5231_v2  ;;  %v5239_v55 = vld [vmem:[#allocation13 + $0x488] sm:$0xff]  ;;  %v5240_v60 = vld [vmem:[#allocation13 + $0x40] sm:$0xff] }
 0x2f6   :  { %2189 = vmatpush1.msra.mxu1 %v5232_v38  ;;  %2256 = vmatpush1.msra.mxu0 %v5233_v3  ;;  %v5241_v42 = vld [vmem:[#allocation13 + $0x480] sm:$0xff]  ;;  %v5242_v2 = vld [vmem:[#allocation13 + $0x28] sm:$0xff] }
 0x2f7   :  { %2190 = vmatprep.subr.mxu1 %v5234_v25  ;;  %2257 = vmatprep.subr.mxu0 %v5235_v0  ;;  %v5243_v38 = vld [vmem:[#allocation13 + $0x468] sm:$0xff]  ;;  %v5244_v3 = vld [vmem:[#allocation13 + $0x20] sm:$0xff] }
 0x2f8   :  { %2191 = vmatpush1.msra.mxu1 %v5236_v45  ;;  %2258 = vmatpush1.msra.mxu0 %v5237_v62  ;;  %v5245_v25 = vld [vmem:[#allocation13 + $0x460] sm:$0xff]  ;;  %v5246_v0 = vld [vmem:[#allocation13 + $0x8] sm:$0xff] }
 0x2f9   :  { %2192 = vmatprep.subr.mxu1 %v5238_v6  ;;  %2259 = vmatprep.subr.mxu0 %v5239_v55  ;;  %v5247_v45 = vld [vmem:[#allocation13 + $0x448] sm:$0xff]  ;;  %v5248_v62 = vld [vmem:[#allocation13] sm:$0xff] }
 0x2fa   :  { %2193 = vmatpush1.msra.mxu1 %v5240_v60  ;;  %2260 = vmatpush1.msra.mxu0 %v5241_v42  ;;  %v5249_v6 = vld [vmem:[#allocation13 + $0x440] sm:$0xff]  ;;  %v5250_v55 = vld [vmem:[#allocation13 + $0x3e8] sm:$0xff] }
 0x2fb   :  { %2194 = vmatprep.subr.mxu1 %v5242_v2  ;;  %2261 = vmatprep.subr.mxu0 %v5243_v38  ;;  %v5251_v60 = vld [vmem:[#allocation13 + $0x428] sm:$0xff]  ;;  %v5252_v42 = vld [vmem:[#allocation13 + $0x3e0] sm:$0xff] }
 0x2fc   :  { %2195 = vmatpush1.msra.mxu1 %v5244_v3  ;;  %2262 = vmatpush1.msra.mxu0 %v5245_v25  ;;  %v5253_v2 = vld [vmem:[#allocation13 + $0x420] sm:$0xff]  ;;  %v5254_v38 = vld [vmem:[#allocation13 + $0x3c8] sm:$0xff] }
 0x2fd   :  { %2196 = vmatprep.subr.mxu1 %v5246_v0  ;;  %2263 = vmatprep.subr.mxu0 %v5247_v45  ;;  %v5255_v3 = vld [vmem:[#allocation13 + $0x408] sm:$0xff]  ;;  %v5256_v25 = vld [vmem:[#allocation13 + $0x3c0] sm:$0xff] }
 0x2fe   :  { %2197 = vmatpush1.msra.mxu1 %v5248_v62  ;;  %2264 = vmatpush1.msra.mxu0 %v5249_v6  ;;  %v5257_v0 = vld [vmem:[#allocation13 + $0x400] sm:$0xff]  ;;  %v5258_v45 = vld [vmem:[#allocation13 + $0x3a8] sm:$0xff] }
 0x2ff   :  { %2198 = vmatprep.subr.mxu1 %v5250_v55  ;;  %2265 = vmatprep.subr.mxu0 %v5251_v60  ;;  %v5259_v62 = vld [vmem:[#allocation13 + $0x7e8] sm:$0xff]  ;;  %v5260_v6 = vld [vmem:[#allocation13 + $0x3a0] sm:$0xff] }
 0x300   :  { %2199 = vmatpush2.msra.mxu1 %v5252_v42  ;;  %2266 = vmatpush1.msra.mxu0 %v5253_v2  ;;  %v5261_v55 = vld [vmem:[#allocation13 + $0x7e0] sm:$0xff]  ;;  %v5262_v60 = vld [vmem:[#allocation13 + $0x388] sm:$0xff] }
 0x301   :  { %2200 = vmatprep.subr.mxu1 %v5254_v38  ;;  %2267 = vmatprep.subr.mxu0 %v5255_v3  ;;  %v5263_v42 = vld [vmem:[#allocation13 + $0x7c8] sm:$0xff]  ;;  %v5264_v2 = vld [vmem:[#allocation13 + $0x380] sm:$0xff] }
 0x302   :  { %2201 = vmatpush2.msra.mxu1 %v5256_v25  ;;  %2268 = vmatpush1.msra.mxu0 %v5257_v0  ;;  %v5265_v38 = vld [vmem:[#allocation13 + $0x7c0] sm:$0xff]  ;;  %v5266_v3 = vld [vmem:[#allocation13 + $0x368] sm:$0xff] }
 0x303   :  { %2202 = vmatprep.subr.mxu1 %v5258_v45  ;;  %2269 = vmatprep.subr.mxu0 %v5259_v62  ;;  %v5267_v25 = vld [vmem:[#allocation13 + $0x7a8] sm:$0xff]  ;;  %v5268_v0 = vld [vmem:[#allocation13 + $0x360] sm:$0xff] }
 0x304   :  { %2203 = vmatpush2.msra.mxu1 %v5260_v6  ;;  %2270 = vmatpush2.msra.mxu0 %v5261_v55  ;;  %v5269_v45 = vld [vmem:[#allocation13 + $0x7a0] sm:$0xff]  ;;  %v5270_v62 = vld [vmem:[#allocation13 + $0x348] sm:$0xff] }
 0x305   :  { %2204 = vmatprep.subr.mxu1 %v5262_v60  ;;  %2271 = vmatprep.subr.mxu0 %v5263_v42  ;;  %v5271_v6 = vld [vmem:[#allocation13 + $0x788] sm:$0xff]  ;;  %v5272_v55 = vld [vmem:[#allocation13 + $0x340] sm:$0xff] }
 0x306   :  { %2205 = vmatpush2.msra.mxu1 %v5264_v2  ;;  %2272 = vmatpush2.msra.mxu0 %v5265_v38  ;;  %v5273_v60 = vld [vmem:[#allocation13 + $0x780] sm:$0xff]  ;;  %v5274_v42 = vld [vmem:[#allocation13 + $0x328] sm:$0xff] }
 0x307   :  { %2206 = vmatprep.subr.mxu1 %v5266_v3  ;;  %2273 = vmatprep.subr.mxu0 %v5267_v25  ;;  %v5275_v2 = vld [vmem:[#allocation13 + $0x768] sm:$0xff]  ;;  %v5276_v38 = vld [vmem:[#allocation13 + $0x320] sm:$0xff] }
 0x308   :  { %2207 = vmatpush2.msra.mxu1 %v5268_v0  ;;  %2274 = vmatpush2.msra.mxu0 %v5269_v45  ;;  %v5277_v3 = vld [vmem:[#allocation13 + $0x760] sm:$0xff]  ;;  %v5278_v25 = vld [vmem:[#allocation13 + $0x308] sm:$0xff] }
 0x309   :  { %2208 = vmatprep.subr.mxu1 %v5270_v62  ;;  %2275 = vmatprep.subr.mxu0 %v5271_v6  ;;  %v5279_v0 = vld [vmem:[#allocation13 + $0x748] sm:$0xff]  ;;  %v5280_v45 = vld [vmem:[#allocation13 + $0x300] sm:$0xff] }
 0x30a   :  { %2209 = vmatpush2.msra.mxu1 %v5272_v55  ;;  %2276 = vmatpush2.msra.mxu0 %v5273_v60  ;;  %v5281_v62 = vld [vmem:[#allocation13 + $0x740] sm:$0xff]  ;;  %v5282_v6 = vld [vmem:[#allocation13 + $0x2e8] sm:$0xff] }
 0x30b   :  { %2210 = vmatprep.subr.mxu1 %v5274_v42  ;;  %2277 = vmatprep.subr.mxu0 %v5275_v2  ;;  %v5283_v55 = vld [vmem:[#allocation13 + $0x728] sm:$0xff]  ;;  %v5284_v60 = vld [vmem:[#allocation13 + $0x2e0] sm:$0xff] }
 0x30c   :  { %2211 = vmatpush2.msra.mxu1 %v5276_v38  ;;  %2278 = vmatpush2.msra.mxu0 %v5277_v3  ;;  %v5285_v42 = vld [vmem:[#allocation13 + $0x720] sm:$0xff]  ;;  %v5286_v2 = vld [vmem:[#allocation13 + $0x2c8] sm:$0xff] }
 0x30d   :  { %2212 = vmatprep.subr.mxu1 %v5278_v25  ;;  %2279 = vmatprep.subr.mxu0 %v5279_v0  ;;  %v5287_v38 = vld [vmem:[#allocation13 + $0x708] sm:$0xff]  ;;  %v5288_v3 = vld [vmem:[#allocation13 + $0x2c0] sm:$0xff] }
 0x30e   :  { %2213 = vmatpush2.msra.mxu1 %v5280_v45  ;;  %2280 = vmatpush2.msra.mxu0 %v5281_v62  ;;  %v5289_v25 = vld [vmem:[#allocation13 + $0x700] sm:$0xff]  ;;  %v5290_v0 = vld [vmem:[#allocation13 + $0x2a8] sm:$0xff] }
 0x30f   :  { %2214 = vmatprep.subr.mxu1 %v5282_v6  ;;  %2281 = vmatprep.subr.mxu0 %v5283_v55  ;;  %v5291_v45 = vld [vmem:[#allocation13 + $0x6e8] sm:$0xff]  ;;  %v5292_v62 = vld [vmem:[#allocation13 + $0x2a0] sm:$0xff] }
 0x310   :  { %2215 = vmatpush2.msra.mxu1 %v5284_v60  ;;  %2282 = vmatpush2.msra.mxu0 %v5285_v42  ;;  %v5293_v6 = vld [vmem:[#allocation13 + $0x6e0] sm:$0xff]  ;;  %v5294_v55 = vld [vmem:[#allocation13 + $0x288] sm:$0xff] }
 0x311   :  { %2216 = vmatprep.subr.mxu1 %v5286_v2  ;;  %2283 = vmatprep.subr.mxu0 %v5287_v38  ;;  %v5295_v60 = vld [vmem:[#allocation13 + $0x6c8] sm:$0xff]  ;;  %v5296_v42 = vld [vmem:[#allocation13 + $0x280] sm:$0xff] }
 0x312   :  { %2217 = vmatpush2.msra.mxu1 %v5288_v3  ;;  %2284 = vmatpush2.msra.mxu0 %v5289_v25  ;;  %v5297_v2 = vld [vmem:[#allocation13 + $0x6c0] sm:$0xff]  ;;  %v5298_v38 = vld [vmem:[#allocation13 + $0x268] sm:$0xff] }
 0x313   :  { %2218 = vmatprep.subr.mxu1 %v5290_v0  ;;  %2285 = vmatprep.subr.mxu0 %v5291_v45  ;;  %v5299_v3 = vld [vmem:[#allocation13 + $0x6a8] sm:$0xff]  ;;  %v5300_v25 = vld [vmem:[#allocation13 + $0x260] sm:$0xff] }
 0x314   :  { %2219 = vmatpush2.msra.mxu1 %v5292_v62  ;;  %2286 = vmatpush2.msra.mxu0 %v5293_v6  ;;  %v5301_v0 = vld [vmem:[#allocation13 + $0x6a0] sm:$0xff]  ;;  %v5302_v45 = vld [vmem:[#allocation13 + $0x248] sm:$0xff] }
 0x315   :  { %2220 = vmatprep.subr.mxu1 %v5294_v55  ;;  %2287 = vmatprep.subr.mxu0 %v5295_v60  ;;  %v5303_v62 = vld [vmem:[#allocation13 + $0x688] sm:$0xff]  ;;  %v5304_v6 = vld [vmem:[#allocation13 + $0x240] sm:$0xff] }
 0x316   :  { %2221 = vmatpush2.msra.mxu1 %v5296_v42  ;;  %2288 = vmatpush2.msra.mxu0 %v5297_v2  ;;  %v5305_v55 = vld [vmem:[#allocation13 + $0x680] sm:$0xff]  ;;  %v5306_v60 = vld [vmem:[#allocation13 + $0x228] sm:$0xff] }
 0x317   :  { %2222 = vmatprep.subr.mxu1 %v5298_v38  ;;  %2289 = vmatprep.subr.mxu0 %v5299_v3  ;;  %v5307_v42 = vld [vmem:[#allocation13 + $0x668] sm:$0xff]  ;;  %v5308_v2 = vld [vmem:[#allocation13 + $0x220] sm:$0xff]  ;;  %v7890_v3 = vld [vmem:[#allocation3 + $0x18] sm:$0x3c] }
 0x318   :  { %2223 = vmatpush2.msra.mxu1 %v5300_v25  ;;  %2290 = vmatpush2.msra.mxu0 %v5301_v0  ;;  %v5309_v38 = vld [vmem:[#allocation13 + $0x660] sm:$0xff]  ;;  %v5310_v25 = vld [vmem:[#allocation13 + $0x208] sm:$0xff] }
 0x319   :  { %2224 = vmatprep.subr.mxu1 %v5302_v45  ;;  %2291 = vmatprep.subr.mxu0 %v5303_v62  ;;  %v5311_v0 = vld [vmem:[#allocation13 + $0x648] sm:$0xff]  ;;  %v5312_v45 = vld [vmem:[#allocation13 + $0x200] sm:$0xff] }
 0x31a   :  { %2225 = vmatpush2.msra.mxu1 %v5304_v6  ;;  %2292 = vmatpush2.msra.mxu0 %v5305_v55  ;;  %v5313_v62 = vld [vmem:[#allocation13 + $0x640] sm:$0xff]  ;;  %v7892_v6 = vld [vmem:[#allocation3 + $0x10] sm:$0xf] }
 0x31b   :  { %2226 = vmatprep.subr.mxu1 %v5306_v60  ;;  %2293 = vmatprep.subr.mxu0 %v5307_v42  ;;  %v5314_v55 = vld [vmem:[#allocation13 + $0x628] sm:$0xff]  ;;  %v9896_v60 = vrot.slane %v7890_v3, 2 }
 0x31c   :  { %2227 = vmatpush2.msra.mxu1 %v5308_v2  ;;  %2294 = vmatpush2.msra.mxu0 %v5309_v38  ;;  %v7896_v42 = vld [vmem:[#allocation3 + $0x10] sm:$0x1e]  ;;  %v5316_v38 = vld [vmem:[#allocation13 + $0x620] sm:$0xff] }
 0x31d   :  { %2228 = vmatprep.subr.mxu1 %v5310_v25  ;;  %2295 = vmatprep.subr.mxu0 %v5311_v0  ;;  %10273 = vst [vmem:[#allocation60_spill] sm:$0xff] %v7896_v42  ;;  %v5315_v2 = vld [vmem:[#allocation13 + $0x9e8] sm:$0xff]  ;;  %v5317_v25 = vld [vmem:[#allocation13 + $0x9e0] sm:$0xff] }
 0x31e   :  { %2229 = vmatpush2.msra.mxu1 %v5312_v45  ;;  %2296 = vmatpush2.msra.mxu0 %v5313_v62  ;;  %v5318_v0 = vld [vmem:[#allocation13 + $0x608] sm:$0xff]  ;;  %v9898_v62 = vrot.slane %v7896_v42, 1 }
 0x31f   :  { %2231 = vmatmul.mubr.f32.vlgmr.msra.gmra.mxu1 %v7892_v6  ;;  %2297 = vmatprep.subr.mxu0 %v5314_v55  ;;  %v5319_v45 = vld [vmem:[#allocation13 + $0x9c8] sm:$0xff]  ;;  %v5320_v55 = vld [vmem:[#allocation13 + $0x600] sm:$0xff] }
 0x320   :  { %2308 = vmatprep.subr.mxu1 %v5315_v2  ;;  %2298 = vmatpush2.msra.mxu0 %v5316_v38  ;;  %v5322_v2 = vld [vmem:[#allocation13 + $0x9a8] sm:$0xff]  ;;  %v5323_v38 = vld [vmem:[#allocation13 + $0x1f8] sm:$0xff] }
 0x321   :  { %2309 = vmatpush1.msra.mxu1 %v5317_v25  ;;  %2372 = vmatprep.mubr.f32.mxu1 %v9896_v60  ;;  %v5324_v25 = vld [vmem:[#allocation13 + $0x9a0] sm:$0xff]  ;;  %v5325_v60 = vld [vmem:[#allocation13 + $0x1f0] sm:$0xff]  ;;  %v5330_v42 = vld [vmem:[#allocation13 + $0x968] sm:$0xff] }
 0x322   :  { %2299 = vmatprep.subr.mxu0 %v5318_v0  ;;  %2310 = vmatprep.subr.mxu1 %v5319_v45  ;;  %v5326_v0 = vld [vmem:[#allocation13 + $0x988] sm:$0xff]  ;;  %v5327_v45 = vld [vmem:[#allocation13 + $0x1d8] sm:$0xff] }
 0x323   :  { %2300 = vmatpush2.msra.mxu0 %v5320_v55  ;;  %2311 = vmatpush1.msra.mxu1 %v5321_v12  ;;  %v5328_v55 = vld [vmem:[#allocation13 + $0x980] sm:$0xff]  ;;  %v5329_v12 = vld [vmem:[#allocation13 + $0x1d0] sm:$0xff] }
 0x324   :  { %2302 = vmatmul.mubr.f32.vlgmr.msra.gmra.mxu0 %v9898_v62  ;;  %2312 = vmatprep.subr.mxu1 %v5322_v2  ;;  %v5331_v62 = vld [vmem:[#allocation13 + $0x1b8] sm:$0xff]  ;;  %v5332_v2 = vld [vmem:[#allocation13 + $0x960] sm:$0xff] }
 0x325   :  { %2379 = vmatprep.subr.mxu0 %v5323_v38  ;;  %2313 = vmatpush1.msra.mxu1 %v5324_v25  ;;  %v5333_v38 = vld [vmem:[#allocation13 + $0x1b0] sm:$0xff]  ;;  %v5334_v25 = vld [vmem:[#allocation13 + $0x948] sm:$0xff] }
 0x326   :  { %2380 = vmatpush1.msra.mxu0 %v5325_v60  ;;  %2443 = vmatprep.mubr.f32.mxu0 %v7876_v52  ;;  %v5335_v60 = vld [vmem:[#allocation13 + $0x198] sm:$0xff]  ;;  %v5336_v52 = vld [vmem:[#allocation13 + $0x940] sm:$0xff] }
 0x327   :  { %2314 = vmatprep.subr.mxu1 %v5326_v0  ;;  %2381 = vmatprep.subr.mxu0 %v5327_v45  ;;  %v5337_v0 = vld [vmem:[#allocation13 + $0x190] sm:$0xff]  ;;  %v5338_v45 = vld [vmem:[#allocation13 + $0x928] sm:$0xff] }
 0x328   :  { %2315 = vmatpush1.msra.mxu1 %v5328_v55  ;;  %2382 = vmatpush1.msra.mxu0 %v5329_v12  ;;  %v5339_v55 = vld [vmem:[#allocation13 + $0x178] sm:$0xff]  ;;  %v5340_v12 = vld [vmem:[#allocation13 + $0x920] sm:$0xff] }
 0x329   :  { %2316 = vmatprep.subr.mxu1 %v5330_v42  ;;  %2383 = vmatprep.subr.mxu0 %v5331_v62  ;;  %v5341_v42 = vld [vmem:[#allocation13 + $0x170] sm:$0xff]  ;;  %v5342_v62 = vld [vmem:[#allocation13 + $0x908] sm:$0xff] }
 0x32a   :  { %2317 = vmatpush1.msra.mxu1 %v5332_v2  ;;  %2384 = vmatpush1.msra.mxu0 %v5333_v38  ;;  %v5343_v2 = vld [vmem:[#allocation13 + $0x158] sm:$0xff]  ;;  %v5344_v38 = vld [vmem:[#allocation13 + $0x900] sm:$0xff] }
 0x32b   :  { %2318 = vmatprep.subr.mxu1 %v5334_v25  ;;  %2385 = vmatprep.subr.mxu0 %v5335_v60  ;;  %v5345_v25 = vld [vmem:[#allocation13 + $0x150] sm:$0xff]  ;;  %v5346_v60 = vld [vmem:[#allocation13 + $0x8e8] sm:$0xff] }
 0x32c   :  { %2319 = vmatpush1.msra.mxu1 %v5336_v52  ;;  %2386 = vmatpush1.msra.mxu0 %v5337_v0  ;;  %v5347_v52 = vld [vmem:[#allocation13 + $0x138] sm:$0xff]  ;;  %v5348_v0 = vld [vmem:[#allocation13 + $0x8e0] sm:$0xff] }
 0x32d   :  { %2320 = vmatprep.subr.mxu1 %v5338_v45  ;;  %2387 = vmatprep.subr.mxu0 %v5339_v55  ;;  %v5349_v45 = vld [vmem:[#allocation13 + $0x130] sm:$0xff]  ;;  %v5350_v55 = vld [vmem:[#allocation13 + $0x8c8] sm:$0xff] }
 0x32e   :  { %2321 = vmatpush1.msra.mxu1 %v5340_v12  ;;  %2388 = vmatpush1.msra.mxu0 %v5341_v42  ;;  %v5351_v12 = vld [vmem:[#allocation13 + $0x118] sm:$0xff]  ;;  %v5352_v42 = vld [vmem:[#allocation13 + $0x8c0] sm:$0xff] }
 0x32f   :  { %2322 = vmatprep.subr.mxu1 %v5342_v62  ;;  %2389 = vmatprep.subr.mxu0 %v5343_v2  ;;  %v5353_v62 = vld [vmem:[#allocation13 + $0x110] sm:$0xff]  ;;  %v5354_v2 = vld [vmem:[#allocation13 + $0x8a8] sm:$0xff] }
 0x330   :  { %2323 = vmatpush1.msra.mxu1 %v5344_v38  ;;  %2390 = vmatpush1.msra.mxu0 %v5345_v25  ;;  %v5355_v38 = vld [vmem:[#allocation13 + $0xf8] sm:$0xff]  ;;  %v5356_v25 = vld [vmem:[#allocation13 + $0x8a0] sm:$0xff] }
 0x331   :  { %2324 = vmatprep.subr.mxu1 %v5346_v60  ;;  %2391 = vmatprep.subr.mxu0 %v5347_v52  ;;  %v5357_v60 = vld [vmem:[#allocation13 + $0xf0] sm:$0xff]  ;;  %v5358_v52 = vld [vmem:[#allocation13 + $0x888] sm:$0xff] }
 0x332   :  { %2325 = vmatpush1.msra.mxu1 %v5348_v0  ;;  %2392 = vmatpush1.msra.mxu0 %v5349_v45  ;;  %v5359_v0 = vld [vmem:[#allocation13 + $0xd8] sm:$0xff]  ;;  %v5360_v45 = vld [vmem:[#allocation13 + $0x880] sm:$0xff] }
 0x333   :  { %2326 = vmatprep.subr.mxu1 %v5350_v55  ;;  %2393 = vmatprep.subr.mxu0 %v5351_v12  ;;  %v5361_v55 = vld [vmem:[#allocation13 + $0xd0] sm:$0xff]  ;;  %v5362_v12 = vld [vmem:[#allocation13 + $0x868] sm:$0xff] }
 0x334   :  { %2327 = vmatpush1.msra.mxu1 %v5352_v42  ;;  %2394 = vmatpush1.msra.mxu0 %v5353_v62  ;;  %v5363_v42 = vld [vmem:[#allocation13 + $0xb8] sm:$0xff]  ;;  %v5364_v62 = vld [vmem:[#allocation13 + $0x860] sm:$0xff] }
 0x335   :  { %2328 = vmatprep.subr.mxu1 %v5354_v2  ;;  %2395 = vmatprep.subr.mxu0 %v5355_v38  ;;  %v5365_v2 = vld [vmem:[#allocation13 + $0xb0] sm:$0xff]  ;;  %v5366_v38 = vld [vmem:[#allocation13 + $0x848] sm:$0xff] }
 0x336   :  { %2329 = vmatpush1.msra.mxu1 %v5356_v25  ;;  %2396 = vmatpush1.msra.mxu0 %v5357_v60  ;;  %v5367_v25 = vld [vmem:[#allocation13 + $0x98] sm:$0xff]  ;;  %v5368_v60 = vld [vmem:[#allocation13 + $0x840] sm:$0xff] }
 0x337   :  { %2330 = vmatprep.subr.mxu1 %v5358_v52  ;;  %2397 = vmatprep.subr.mxu0 %v5359_v0  ;;  %v5369_v52 = vld [vmem:[#allocation13 + $0x90] sm:$0xff]  ;;  %v5370_v0 = vld [vmem:[#allocation13 + $0x828] sm:$0xff] }
 0x338   :  { %2331 = vmatpush1.msra.mxu1 %v5360_v45  ;;  %2398 = vmatpush1.msra.mxu0 %v5361_v55  ;;  %v5371_v45 = vld [vmem:[#allocation13 + $0x78] sm:$0xff]  ;;  %v5372_v55 = vld [vmem:[#allocation13 + $0x820] sm:$0xff] }
 0x339   :  { %2332 = vmatprep.subr.mxu1 %v5362_v12  ;;  %2399 = vmatprep.subr.mxu0 %v5363_v42  ;;  %v5373_v12 = vld [vmem:[#allocation13 + $0x70] sm:$0xff]  ;;  %v5374_v42 = vld [vmem:[#allocation13 + $0x808] sm:$0xff] }
 0x33a   :  { %2333 = vmatpush1.msra.mxu1 %v5364_v62  ;;  %2400 = vmatpush1.msra.mxu0 %v5365_v2  ;;  %v5375_v62 = vld [vmem:[#allocation13 + $0x58] sm:$0xff]  ;;  %v5376_v2 = vld [vmem:[#allocation13 + $0x800] sm:$0xff] }
 0x33b   :  { %2334 = vmatprep.subr.mxu1 %v5366_v38  ;;  %2401 = vmatprep.subr.mxu0 %v5367_v25  ;;  %v5377_v38 = vld [vmem:[#allocation13 + $0x50] sm:$0xff]  ;;  %v5378_v25 = vld [vmem:[#allocation13 + $0xbe8] sm:$0xff] }
 0x33c   :  { %2335 = vmatpush1.msra.mxu1 %v5368_v60  ;;  %2402 = vmatpush1.msra.mxu0 %v5369_v52  ;;  %v5379_v60 = vld [vmem:[#allocation13 + $0x38] sm:$0xff]  ;;  %v5380_v52 = vld [vmem:[#allocation13 + $0xbe0] sm:$0xff] }
 0x33d   :  { %2336 = vmatprep.subr.mxu1 %v5370_v0  ;;  %2403 = vmatprep.subr.mxu0 %v5371_v45  ;;  %v5381_v0 = vld [vmem:[#allocation13 + $0x30] sm:$0xff]  ;;  %v5382_v45 = vld [vmem:[#allocation13 + $0xbc8] sm:$0xff] }
 0x33e   :  { %2337 = vmatpush1.msra.mxu1 %v5372_v55  ;;  %2404 = vmatpush1.msra.mxu0 %v5373_v12  ;;  %v5383_v55 = vld [vmem:[#allocation13 + $0x18] sm:$0xff]  ;;  %v5384_v12 = vld [vmem:[#allocation13 + $0xbc0] sm:$0xff] }
 0x33f   :  { %2338 = vmatprep.subr.mxu1 %v5374_v42  ;;  %2405 = vmatprep.subr.mxu0 %v5375_v62  ;;  %v5385_v42 = vld [vmem:[#allocation13 + $0x10] sm:$0xff]  ;;  %v5386_v62 = vld [vmem:[#allocation13 + $0xba8] sm:$0xff] }
 0x340   :  { %2339 = vmatpush1.msra.mxu1 %v5376_v2  ;;  %2406 = vmatpush1.msra.mxu0 %v5377_v38  ;;  %v5387_v2 = vld [vmem:[#allocation13 + $0x3f8] sm:$0xff]  ;;  %v5388_v38 = vld [vmem:[#allocation13 + $0xba0] sm:$0xff] }
 0x341   :  { %2340 = vmatprep.subr.mxu1 %v5378_v25  ;;  %2407 = vmatprep.subr.mxu0 %v5379_v60  ;;  %v5389_v25 = vld [vmem:[#allocation13 + $0x3f0] sm:$0xff]  ;;  %v5390_v60 = vld [vmem:[#allocation13 + $0xb88] sm:$0xff] }
 0x342   :  { %2341 = vmatpush2.msra.mxu1 %v5380_v52  ;;  %2408 = vmatpush1.msra.mxu0 %v5381_v0  ;;  %v5391_v52 = vld [vmem:[#allocation13 + $0x3d8] sm:$0xff]  ;;  %v5392_v0 = vld [vmem:[#allocation13 + $0xb80] sm:$0xff] }
 0x343   :  { %2342 = vmatprep.subr.mxu1 %v5382_v45  ;;  %2409 = vmatprep.subr.mxu0 %v5383_v55  ;;  %v5393_v45 = vld [vmem:[#allocation13 + $0x3d0] sm:$0xff]  ;;  %v5394_v55 = vld [vmem:[#allocation13 + $0xb68] sm:$0xff] }
 0x344   :  { %2343 = vmatpush2.msra.mxu1 %v5384_v12  ;;  %2410 = vmatpush1.msra.mxu0 %v5385_v42  ;;  %v5395_v12 = vld [vmem:[#allocation13 + $0x3b8] sm:$0xff]  ;;  %v5396_v42 = vld [vmem:[#allocation13 + $0xb60] sm:$0xff] }
 0x345   :  { %2344 = vmatprep.subr.mxu1 %v5386_v62  ;;  %2411 = vmatprep.subr.mxu0 %v5387_v2  ;;  %v5397_v62 = vld [vmem:[#allocation13 + $0x3b0] sm:$0xff]  ;;  %v5398_v2 = vld [vmem:[#allocation13 + $0xb48] sm:$0xff] }
 0x346   :  { %2345 = vmatpush2.msra.mxu1 %v5388_v38  ;;  %2412 = vmatpush2.msra.mxu0 %v5389_v25  ;;  %v5399_v38 = vld [vmem:[#allocation13 + $0x398] sm:$0xff]  ;;  %v5400_v25 = vld [vmem:[#allocation13 + $0xb40] sm:$0xff] }
 0x347   :  { %2346 = vmatprep.subr.mxu1 %v5390_v60  ;;  %2413 = vmatprep.subr.mxu0 %v5391_v52  ;;  %v5401_v60 = vld [vmem:[#allocation13 + $0x390] sm:$0xff]  ;;  %v5402_v52 = vld [vmem:[#allocation13 + $0xb28] sm:$0xff] }
 0x348   :  { %2347 = vmatpush2.msra.mxu1 %v5392_v0  ;;  %2414 = vmatpush2.msra.mxu0 %v5393_v45  ;;  %v5403_v0 = vld [vmem:[#allocation13 + $0x378] sm:$0xff]  ;;  %v5404_v45 = vld [vmem:[#allocation13 + $0xb20] sm:$0xff] }
 0x349   :  { %2348 = vmatprep.subr.mxu1 %v5394_v55  ;;  %2415 = vmatprep.subr.mxu0 %v5395_v12  ;;  %v5405_v55 = vld [vmem:[#allocation13 + $0x370] sm:$0xff]  ;;  %v5406_v12 = vld [vmem:[#allocation13 + $0xb08] sm:$0xff] }
 0x34a   :  { %2349 = vmatpush2.msra.mxu1 %v5396_v42  ;;  %2416 = vmatpush2.msra.mxu0 %v5397_v62  ;;  %v5407_v42 = vld [vmem:[#allocation13 + $0x358] sm:$0xff]  ;;  %v5408_v62 = vld [vmem:[#allocation13 + $0xb00] sm:$0xff] }
 0x34b   :  { %2350 = vmatprep.subr.mxu1 %v5398_v2  ;;  %2417 = vmatprep.subr.mxu0 %v5399_v38  ;;  %v5409_v2 = vld [vmem:[#allocation13 + $0x350] sm:$0xff]  ;;  %v7904_v38 = vld [vmem:[#allocation14] sm:$0xf] }
 0x34c   :  { %2351 = vmatpush2.msra.mxu1 %v5400_v25  ;;  %2418 = vmatpush2.msra.mxu0 %v5401_v60  ;;  %10274 = vst [vmem:[#allocation61_spill] sm:$0xff] %v7904_v38  ;;  %v5410_v25 = vld [vmem:[#allocation13 + $0xae8] sm:$0xff]  ;;  %v5411_v60 = vld [vmem:[#allocation13 + $0x338] sm:$0xff] }
 0x34d   :  { %2352 = vmatprep.subr.mxu1 %v5402_v52  ;;  %2419 = vmatprep.subr.mxu0 %v5403_v0  ;;  %v5412_v52 = vld [vmem:[#allocation13 + $0xae0] sm:$0xff]  ;;  %v5413_v0 = vld [vmem:[#allocation13 + $0x330] sm:$0xff] }
 0x34e   :  { %2353 = vmatpush2.msra.mxu1 %v5404_v45  ;;  %2420 = vmatpush2.msra.mxu0 %v5405_v55  ;;  %v1698_v45 = vpop.f32.mrf.mxu1  ;;  %v5414_v55 = vld [vmem:[#allocation13 + $0xac8] sm:$0xff] }
 0x34f   :  { %2354 = vmatprep.subr.mxu1 %v5406_v12  ;;  %2421 = vmatprep.subr.mxu0 %v5407_v42  ;;  %v5415_v12 = vld [vmem:[#allocation13 + $0x318] sm:$0xff]  ;;  %v7908_v42 = vrot.slane %v7904_v38, %v10230_v20  ;;  %v5422_v20 = vld [vmem:[#allocation13 + $0xa88] sm:$0xff] }
 0x350   :  { %2355 = vmatpush2.msra.mxu1 %v5408_v62  ;;  %2422 = vmatpush2.msra.mxu0 %v5409_v2  ;;  %v5416_v62 = vld [vmem:[#allocation13 + $0xac0] sm:$0xff]  ;;  %v5417_v2 = vld [vmem:[#allocation13 + $0x310] sm:$0xff] }
 0x351   :  { %2356 = vmatprep.subr.mxu1 %v5410_v25  ;;  %2423 = vmatprep.subr.mxu0 %v5411_v60  ;;  %10275 = vst [vmem:[#allocation62_spill] sm:$0xff] %v7908_v42  ;;  %v1769_v25 = vpop.f32.mrf.mxu0  ;;  %v5419_v60 = vld [vmem:[#allocation13 + $0x2f8] sm:$0xff] }
 0x352   :  { %2357 = vmatpush2.msra.mxu1 %v5412_v52  ;;  %2424 = vmatpush2.msra.mxu0 %v5413_v0  ;;  %v7912_v52 = vrot.slane %v7904_v38, %v10231_v36  ;;  %v5420_v0 = vld [vmem:[#allocation13 + $0xaa0] sm:$0xff]  ;;  %v5427_v36 = vld [vmem:[#allocation13 + $0x2b8] sm:$0xff] }
 0x353   :  { %2358 = vmatprep.subr.mxu1 %v5414_v55  ;;  %2425 = vmatprep.subr.mxu0 %v5415_v12  ;;  %v5421_v55 = vld [vmem:[#allocation13 + $0x2f0] sm:$0xff]  ;;  %v1700_v12 = vpop.f32.mrf.mxu1 }
 0x354   :  { %2359 = vmatpush2.msra.mxu1 %v5416_v62  ;;  %2426 = vmatpush2.msra.mxu0 %v5417_v2  ;;  %v1699_v62 = vadd.f32 %v1698_v45, %v7908_v42  ;;  %v5424_v2 = vld [vmem:[#allocation13 + $0xa80] sm:$0xff] }
 0x355   :  { %2360 = vmatprep.subr.mxu1 %v5418_v10  ;;  %2427 = vmatprep.subr.mxu0 %v5419_v60  ;;  %v5425_v10 = vld [vmem:[#allocation13 + $0x2d0] sm:$0xff]  ;;  %v1771_v60 = vpop.f32.mrf.mxu0  ;;  %v5432_v42 = vld [vmem:[#allocation13 + $0xa40] sm:$0xff] }
 0x356   :  { %2361 = vmatpush2.msra.mxu1 %v5420_v0  ;;  %2428 = vmatpush2.msra.mxu0 %v5421_v55  ;;  %v1701_v0 = vadd.f32 %v1700_v12, %v7912_v52  ;;  %v1770_v38 = vadd.f32 %v1769_v25, %v1699_v62  ;;  %v5428_v55 = vld [vmem:[#allocation13 + $0xa60] sm:$0xff]  ;;  %v5435_v25 = vld [vmem:[#allocation13 + $0x278] sm:$0xff] }
 0x357   :  { %2362 = vmatprep.subr.mxu1 %v5422_v20  ;;  %2429 = vmatprep.subr.mxu0 %v5423_v4  ;;  %v5430_v20 = vld [vmem:[#allocation13 + $0xa48] sm:$0xff]  ;;  %v5431_v4 = vld [vmem:[#allocation13 + $0x298] sm:$0xff]  ;;  %v5436_v62 = vld [vmem:[#allocation13 + $0xa20] sm:$0xff] }
 0x358   :  { %2363 = vmatpush2.msra.mxu1 %v5424_v2  ;;  %2430 = vmatpush2.msra.mxu0 %v5425_v10  ;;  %v1772_v2 = vadd.f32 %v1771_v60, %v1701_v0  ;;  %v5433_v10 = vld [vmem:[#allocation13 + $0x290] sm:$0xff]  ;;  %v5439_v60 = vld [vmem:[#allocation13 + $0x258] sm:$0xff]  ;;  %v5440_v0 = vld [vmem:[#allocation13 + $0xa00] sm:$0xff] }
 0x359   :  { %2364 = vmatprep.subr.mxu1 %v5426_v59  ;;  %2431 = vmatprep.subr.mxu0 %v5427_v36  ;;  %v5434_v36 = vld [vmem:[#allocation13 + $0xa28] sm:$0xff] }
 0x35a   :  { %2365 = vmatpush2.msra.mxu1 %v5428_v55  ;;  %2432 = vmatpush2.msra.mxu0 %v5429_v56  ;;  %v5437_v56 = vld [vmem:[#allocation13 + $0x270] sm:$0xff] }
 0x35b   :  { %2366 = vmatprep.subr.mxu1 %v5430_v20  ;;  %2433 = vmatprep.subr.mxu0 %v5431_v4  ;;  %v1840_v45 = vpop.f32.mrf.mxu1  ;;  %v5438_v20 = vld [vmem:[#allocation13 + $0xa08] sm:$0xff] }
 0x35c   :  { %2367 = vmatpush2.msra.mxu1 %v5432_v42  ;;  %2434 = vmatpush2.msra.mxu0 %v5433_v10  ;;  %v1841_v59 = vadd.f32 %v1840_v45, %v1770_v38  ;;  %v2162_v42 = vrot.slane %v7916_v54, 2  ;;  %v5441_v38 = vld [vmem:[#allocation13 + $0x250] sm:$0xff]  ;;  %v5442_v10 = vld [vmem:[#allocation13 + $0x238] sm:$0xff] }
 0x35d   :  { %2368 = vmatprep.subr.mxu1 %v5434_v36  ;;  %2435 = vmatprep.subr.mxu0 %v5435_v25  ;;  %v1842_v12 = vpop.f32.mrf.mxu1  ;;  %v5443_v36 = vld [vmem:[#allocation13 + $0x5f8] sm:$0xff]  ;;  %v2724_v54 = vld [vmem:[#allocation16 + $0x148] sm:$0xff] }
 0x35e   :  { %2369 = vmatpush2.msra.mxu1 %v5436_v62  ;;  %2436 = vmatpush2.msra.mxu0 %v5437_v56  ;;  %v1843_v55 = vadd.f32 %v1842_v12, %v1772_v2  ;;  %v2058_v4 = vmax.f32 %v1841_v59, 0.0  ;;  %v5444_v2 = vld [vmem:[#allocation13 + $0x230] sm:$0xff]  ;;  %v10276_v62 = vrot.slane %v7881_v44, 1  ;;  %v5447_v59 = vld [vmem:[#allocation13 + $0x5d8] sm:$0xff] }
 0x35f   :  { %2370 = vmatprep.subr.mxu1 %v5438_v20  ;;  %2437 = vmatprep.subr.mxu0 %v5439_v60  ;;  %v5445_v12 = vld [vmem:[#allocation13 + $0x5f0] sm:$0xff]  ;;  %v5446_v20 = vld [vmem:[#allocation13 + $0x218] sm:$0xff] }
 0x360   :  { %2371 = vmatpush2.msra.mxu1 %v5440_v0  ;;  %2438 = vmatpush2.msra.mxu0 %v5441_v38  ;;  %v2059_v45 = vmax.f32 %v1843_v55, 0.0  ;;  %v5448_v55 = vld [vmem:[#allocation13 + $0x210] sm:$0xff] }
 0x361   :  { %2373 = vmatmul.mubr.f32.vlgmr.msra.gmra.mxu1 %v2162_v42  ;;  %2439 = vmatprep.subr.mxu0 %v5442_v10  ;;  %v5449_v60 = vld [vmem:[#allocation13 + $0x5d0] sm:$0xff] }
 0x362   :  { %2450 = vmatprep.subr.mxu1 %v5443_v36  ;;  %2440 = vmatpush2.msra.mxu0 %v5444_v2  ;;  %v2064_v25 = vcombine.low %v2058_v4, %v2059_v45  ;;  %v5450_v4 = vld [vmem:[#allocation13 + $0x5b8] sm:$0xff]  ;;  %v5452_v44 = vld [vmem:[#allocation13 + $0x5b0] sm:$0xff] }
 0x363   :  { %2451 = vmatpush1.msra.mxu1 %v5445_v12  ;;  %2514 = vmatprep.mubr.f32.mxu1 %v10276_v62  ;;  %v5451_v45 = vld [vmem:[#allocation13 + $0x9f8] sm:$0xff]  ;;  %v5453_v2 = vld [vmem:[#allocation13 + $0x9f0] sm:$0xff] }
 0x364   :  { %v2071_v56 = vrot.slane %v2064_v25, %v7579_v58  ;;  %2441 = vmatprep.subr.mxu0 %v5446_v20  ;;  %2452 = vmatprep.subr.mxu1 %v5447_v59  ;;  %v10277_v25 = vrot.slane %v7890_v3, 2  ;;  %v5454_v12 = vld [vmem:[#allocation13 + $0x598] sm:$0xff]  ;;  %v5457_v20 = vld [vmem:[#allocation13 + $0x9d0] sm:$0xff] }
 0x365   :  { %2442 = vmatpush2.msra.mxu0 %v5448_v55  ;;  %2453 = vmatpush1.msra.mxu1 %v5449_v60  ;;  %v5458_v59 = vld [vmem:[#allocation13 + $0x578] sm:$0xff]  ;;  %v5460_v3 = vld [vmem:[#allocation13 + $0x570] sm:$0xff] }
 0x366   :  { %v2078_v0 = vrot.slane %v2071_v56, %v7579_v58  ;;  %v2104_v38 = vcombine.high %v2071_v56, %v2071_v56  ;;  %2444 = vmatmul.mubr.f32.vlgmr.msra.gmra.mxu0 %v7892_v6  ;;  %2454 = vmatprep.subr.mxu1 %v5450_v4  ;;  %v5455_v6 = vld [vmem:[#allocation13 + $0x9d8] sm:$0xff]  ;;  %v5456_v56 = vld [vmem:[#allocation13 + $0x590] sm:$0xff] }
 0x367   :  { %2521 = vmatprep.subr.mxu0 %v5451_v45  ;;  %2455 = vmatpush1.msra.mxu1 %v5452_v44  ;;  %v5459_v55 = vld [vmem:[#allocation13 + $0x9b8] sm:$0xff]  ;;  %v5461_v60 = vld [vmem:[#allocation13 + $0x9b0] sm:$0xff] }
 0x368   :  { %2081 = vst.msk [vmem:[#allocation4 + $0x1] ss:$8 sm:$0x3] %vm7583_vm1, %v2078_v0  ;;  %v2111_v10 = vrot.slane %v2104_v38, %v7579_v58  ;;  %v2128_v36 = vcombine.high %v2078_v0, %v2078_v0  ;;  %2522 = vmatpush1.msra.mxu0 %v5453_v2  ;;  %2585 = vmatprep.mubr.f32.mxu0 %v10277_v25  ;;  %v5462_v0 = vld [vmem:[#allocation13 + $0x558] sm:$0xff]  ;;  %v5464_v4 = vld [vmem:[#allocation13 + $0x550] sm:$0xff] }
 0x369   :  { %2456 = vmatprep.subr.mxu1 %v5454_v12  ;;  %2523 = vmatprep.subr.mxu0 %v5455_v6  ;;  %v5463_v38 = vld [vmem:[#allocation13 + $0x998] sm:$0xff]  ;;  %v5465_v45 = vld [vmem:[#allocation13 + $0x990] sm:$0xff] }
 0x36a   :  { %2114 = vst.msk [vmem:[#allocation4 + $0x3] ss:$8 sm:$0x3] %vm7583_vm1, %v2111_v10  ;;  %2131 = vst.msk [vmem:[#allocation4 + $0x5] ss:$8 sm:$0x3] %vm7583_vm1, %v2128_v36  ;;  %v2138_v62 = vcombine.high %v2111_v10, %v2111_v10  ;;  %2457 = vmatpush1.msra.mxu1 %v5456_v56  ;;  %2524 = vmatpush1.msra.mxu0 %v5457_v20 }
 0x36b   :  { %2458 = vmatprep.subr.mxu1 %v5458_v59  ;;  %2525 = vmatprep.subr.mxu0 %v5459_v55  ;;  %v5466_v44 = vld [vmem:[#allocation13 + $0x538] sm:$0xff]  ;;  %v5468_v36 = vld [vmem:[#allocation13 + $0x530] sm:$0xff] }
 0x36c   :  { %2141 = vst.msk [vmem:[#allocation4 + $0x7] ss:$8 sm:$0x3] %vm7583_vm1, %v2138_v62  ;;  %2459 = vmatpush1.msra.mxu1 %v5460_v3  ;;  %2526 = vmatpush1.msra.mxu0 %v5461_v60  ;;  %v5467_v10 = vld [vmem:[#allocation13 + $0x978] sm:$0xff]  ;;  %v5469_v2 = vld [vmem:[#allocation13 + $0x970] sm:$0xff] }
 0x36d   :  { %2460 = vmatprep.subr.mxu1 %v5462_v0  ;;  %2527 = vmatprep.subr.mxu0 %v5463_v38  ;;  %v5470_v25 = vld [vmem:[#allocation13 + $0x518] sm:$0xff]  ;;  %v5472_v6 = vld [vmem:[#allocation13 + $0x510] sm:$0xff] }
 0x36e   :  { %2461 = vmatpush1.msra.mxu1 %v5464_v4  ;;  %2528 = vmatpush1.msra.mxu0 %v5465_v45  ;;  %v5471_v12 = vld [vmem:[#allocation13 + $0x958] sm:$0xff]  ;;  %v5473_v62 = vld [vmem:[#allocation13 + $0x950] sm:$0xff] }
 0x36f   :  { %2462 = vmatprep.subr.mxu1 %v5466_v44  ;;  %2529 = vmatprep.subr.mxu0 %v5467_v10  ;;  %v5474_v56 = vld [vmem:[#allocation13 + $0x4f8] sm:$0xff]  ;;  %v5476_v59 = vld [vmem:[#allocation13 + $0x4f0] sm:$0xff] }
 0x370   :  { %2463 = vmatpush1.msra.mxu1 %v5468_v36  ;;  %2530 = vmatpush1.msra.mxu0 %v5469_v2  ;;  %v5475_v20 = vld [vmem:[#allocation13 + $0x938] sm:$0xff]  ;;  %v5477_v55 = vld [vmem:[#allocation13 + $0x930] sm:$0xff] }
 0x371   :  { %2464 = vmatprep.subr.mxu1 %v5470_v25  ;;  %2531 = vmatprep.subr.mxu0 %v5471_v12  ;;  %v5478_v3 = vld [vmem:[#allocation13 + $0x4d8] sm:$0xff]  ;;  %v5480_v0 = vld [vmem:[#allocation13 + $0x4d0] sm:$0xff] }
 0x372   :  { %2465 = vmatpush1.msra.mxu1 %v5472_v6  ;;  %2532 = vmatpush1.msra.mxu0 %v5473_v62  ;;  %v5479_v60 = vld [vmem:[#allocation13 + $0x918] sm:$0xff]  ;;  %v5481_v38 = vld [vmem:[#allocation13 + $0x910] sm:$0xff] }
 0x373   :  { %2466 = vmatprep.subr.mxu1 %v5474_v56  ;;  %2533 = vmatprep.subr.mxu0 %v5475_v20  ;;  %v5482_v4 = vld [vmem:[#allocation13 + $0x4b8] sm:$0xff]  ;;  %v5484_v44 = vld [vmem:[#allocation13 + $0x4b0] sm:$0xff] }
 0x374   :  { %2467 = vmatpush1.msra.mxu1 %v5476_v59  ;;  %2534 = vmatpush1.msra.mxu0 %v5477_v55  ;;  %v5483_v45 = vld [vmem:[#allocation13 + $0x8f8] sm:$0xff]  ;;  %v5485_v10 = vld [vmem:[#allocation13 + $0x8f0] sm:$0xff] }
 0x375   :  { %2468 = vmatprep.subr.mxu1 %v5478_v3  ;;  %2535 = vmatprep.subr.mxu0 %v5479_v60  ;;  %v5486_v36 = vld [vmem:[#allocation13 + $0x498] sm:$0xff]  ;;  %v5488_v25 = vld [vmem:[#allocation13 + $0x490] sm:$0xff] }
 0x376   :  { %2469 = vmatpush1.msra.mxu1 %v5480_v0  ;;  %2536 = vmatpush1.msra.mxu0 %v5481_v38  ;;  %v5487_v2 = vld [vmem:[#allocation13 + $0x8d8] sm:$0xff]  ;;  %v5489_v12 = vld [vmem:[#allocation13 + $0x8d0] sm:$0xff] }
 0x377   :  { %2470 = vmatprep.subr.mxu1 %v5482_v4  ;;  %2537 = vmatprep.subr.mxu0 %v5483_v45  ;;  %v5490_v6 = vld [vmem:[#allocation13 + $0x478] sm:$0xff]  ;;  %v5492_v56 = vld [vmem:[#allocation13 + $0x470] sm:$0xff] }
 0x378   :  { %2471 = vmatpush1.msra.mxu1 %v5484_v44  ;;  %2538 = vmatpush1.msra.mxu0 %v5485_v10  ;;  %v5491_v62 = vld [vmem:[#allocation13 + $0x8b8] sm:$0xff]  ;;  %v5493_v20 = vld [vmem:[#allocation13 + $0x8b0] sm:$0xff]  ;;  %v10308_v10 = vld [vmem:[#allocation60_spill] sm:$0xff] }
 0x379   :  { %2472 = vmatprep.subr.mxu1 %v5486_v36  ;;  %2539 = vmatprep.subr.mxu0 %v5487_v2  ;;  %v5494_v59 = vld [vmem:[#allocation13 + $0x458] sm:$0xff]  ;;  %v5496_v3 = vld [vmem:[#allocation13 + $0x450] sm:$0xff]  ;;  %v10309_v36 = vrot.slane %v10308_v10, 1  ;;  %v10310_v2 = vld [vmem:[#allocation56_spill] sm:$0xff] }
 0x37a   :  { %2473 = vmatpush1.msra.mxu1 %v5488_v25  ;;  %2540 = vmatpush1.msra.mxu0 %v5489_v12  ;;  %v5495_v55 = vld [vmem:[#allocation13 + $0x898] sm:$0xff]  ;;  %v5497_v60 = vld [vmem:[#allocation13 + $0x890] sm:$0xff] }
 0x37b   :  { %2474 = vmatprep.subr.mxu1 %v5490_v6  ;;  %2541 = vmatprep.subr.mxu0 %v5491_v62  ;;  %v5498_v0 = vld [vmem:[#allocation13 + $0x438] sm:$0xff]  ;;  %v5500_v4 = vld [vmem:[#allocation13 + $0x430] sm:$0xff] }
 0x37c   :  { %2475 = vmatpush1.msra.mxu1 %v5492_v56  ;;  %2542 = vmatpush1.msra.mxu0 %v5493_v20  ;;  %v5499_v38 = vld [vmem:[#allocation13 + $0x878] sm:$0xff]  ;;  %v5501_v45 = vld [vmem:[#allocation13 + $0x870] sm:$0xff]  ;;  %v2739_v56 = vld [vmem:[#allocation16 + $0x1c0] sm:$0xff] }
 0x37d   :  { %2476 = vmatprep.subr.mxu1 %v5494_v59  ;;  %2543 = vmatprep.subr.mxu0 %v5495_v55  ;;  %v2740_v12 = vld [vmem:[#allocation16 + $0x1c8] sm:$0xff] }
 0x37e   :  { %2477 = vmatpush1.msra.mxu1 %v5496_v3  ;;  %2544 = vmatpush1.msra.mxu0 %v5497_v60  ;;  %v10311_v62 = vld [vmem:[#allocation57_spill] sm:$0xff]  ;;  %v10312_v59 = vld [vmem:[#allocation58_spill] sm:$0xff] }
 0x37f   :  { %2478 = vmatprep.subr.mxu1 %v5498_v0  ;;  %2545 = vmatprep.subr.mxu0 %v5499_v38  ;;  %v2736_v55 = vld [vmem:[#allocation16 + $0x1a8] sm:$0xff]  ;;  %v10313_v0 = vld [vmem:[#allocation59_spill] sm:$0xff]  ;;  %v2735_v38 = vld [vmem:[#allocation16 + $0x1a0] sm:$0xff] }
 0x380   :  { %2479 = vmatpush1.msra.mxu1 %v5500_v4  ;;  %2546 = vmatpush1.msra.mxu0 %v5501_v45  ;;  %v2872_v3 = vld [vmem:[#allocation16 + $0x5e8] sm:$0xff]  ;;  %v2871_v4 = vld [vmem:[#allocation16 + $0x5e0] sm:$0xff] }
 0x381   :  { %2480 = vmatprep.subr.mxu1 %v7662_v41  ;;  %2547 = vmatprep.subr.mxu0 %v7664_v49  ;;  %v10278_v41 = vld [vmem:[#allocation27_spill] sm:$0xff]  ;;  %v10279_v49 = vld [vmem:[#allocation37_spill] sm:$0xff] }
 0x382   :  { %2481 = vmatpush1.msra.mxu1 %v7666_v14  ;;  %2548 = vmatpush1.msra.mxu0 %v7668_v47  ;;  %v10280_v14 = vld [vmem:[#allocation28_spill] sm:$0xff]  ;;  %v10281_v47 = vld [vmem:[#allocation38_spill] sm:$0xff] }
 0x383   :  { %2482 = vmatprep.subr.mxu1 %v7670_v7  ;;  %2549 = vmatprep.subr.mxu0 %v7672_v8  ;;  %v10282_v7 = vld [vmem:[#allocation29_spill] sm:$0xff]  ;;  %v10283_v8 = vld [vmem:[#allocation39_spill] sm:$0xff] }
 0x384   :  { %2483 = vmatpush2.msra.mxu1 %v7676_v1  ;;  %2550 = vmatpush1.msra.mxu0 %v7678_v5  ;;  %v10284_v1 = vld [vmem:[#allocation30_spill] sm:$0xff]  ;;  %v10285_v5 = vld [vmem:[#allocation40_spill] sm:$0xff] }
 0x385   :  { %2484 = vmatprep.subr.mxu1 %v7682_v9  ;;  %2551 = vmatprep.subr.mxu0 %v7684_v13  ;;  %v10286_v9 = vld [vmem:[#allocation31_spill] sm:$0xff]  ;;  %v1911_v13 = vpop.f32.mrf.mxu0  ;;  %v2700_v10 = vld [vmem:[#allocation16 + $0x88] sm:$0xff] }
 0x386   :  { %2485 = vmatpush2.msra.mxu1 %v7688_v15  ;;  %2552 = vmatpush1.msra.mxu0 %v7690_v16  ;;  %v10287_v15 = vld [vmem:[#allocation41_spill] sm:$0xff]  ;;  %v10288_v16 = vld [vmem:[#allocation32_spill] sm:$0xff] }
 0x387   :  { %2486 = vmatprep.subr.mxu1 %v7694_v17  ;;  %2553 = vmatprep.subr.mxu0 %v7696_v18  ;;  %v10289_v17 = vld [vmem:[#allocation26_spill] sm:$0xff]  ;;  %v10290_v18 = vld [vmem:[#allocation61_spill] sm:$0xff] }
 0x388   :  { %2487 = vmatpush2.msra.mxu1 %v7700_v19  ;;  %2554 = vmatpush2.msra.mxu0 %v7702_v22  ;;  %v7991_v19 = vrot.slane %v10290_v18, %v10289_v17  ;;  %v10291_v22 = vld [vmem:[#allocation42_spill] sm:$0xff] }
 0x389   :  { %2488 = vmatprep.subr.mxu1 %v7706_v53  ;;  %2555 = vmatprep.subr.mxu0 %v7708_v24  ;;  %v10292_v53 = vld [vmem:[#allocation33_spill] sm:$0xff]  ;;  %v10293_v24 = vld [vmem:[#allocation43_spill] sm:$0xff] }
 0x38a   :  { %2489 = vmatpush2.msra.mxu1 %v7712_v26  ;;  %2556 = vmatpush2.msra.mxu0 %v7714_v29  ;;  %v10294_v26 = vld [vmem:[#allocation34_spill] sm:$0xff]  ;;  %v10295_v29 = vld [vmem:[#allocation36_spill] sm:$0xff] }
 0x38b   :  { %2490 = vmatprep.subr.mxu1 %v7718_v31  ;;  %2557 = vmatprep.subr.mxu0 %v7720_v34  ;;  %v7999_v31 = vrot.slane %v10290_v18, %v10295_v29  ;;  %v10296_v34 = vld [vmem:[#allocation44_spill] sm:$0xff] }
 0x38c   :  { %2491 = vmatpush2.msra.mxu1 %v7724_v61  ;;  %2558 = vmatpush2.msra.mxu0 %v7726_v40  ;;  %v10297_v61 = vld [vmem:[#allocation45_spill] sm:$0xff] }
 0x38d   :  { %2492 = vmatprep.subr.mxu1 %v7730_v57  ;;  %2559 = vmatprep.subr.mxu0 %v7732_v46  ;;  %v1913_v57 = vpop.f32.mrf.mxu0  ;;  %v10298_v46 = vld [vmem:[#allocation46_spill] sm:$0xff]  ;;  %v2859_v18 = vld [vmem:[#allocation16 + $0x580] sm:$0xff] }
 0x38e   :  { %2493 = vmatpush2.msra.mxu1 %v7736_v23  ;;  %2560 = vmatpush2.msra.mxu0 %v7738_v21  ;;  %v10299_v23 = vld [vmem:[#allocation47_spill] sm:$0xff]  ;;  %v1912_v21 = vadd.f32 %v1911_v13, %v7991_v19  ;;  %v2863_v13 = vld [vmem:[#allocation16 + $0x5a0] sm:$0xff] }
 0x38f   :  { %2494 = vmatprep.subr.mxu1 %v7742_v48  ;;  %2561 = vmatprep.subr.mxu0 %v7744_v51  ;;  %v10300_v48 = vld [vmem:[#allocation48_spill] sm:$0xff]  ;;  %v10301_v51 = vld [vmem:[#allocation49_spill] sm:$0xff] }
 0x390   :  { %2495 = vmatpush2.msra.mxu1 %v7748_v50  ;;  %2562 = vmatpush2.msra.mxu0 %v7750_v27  ;;  %v10302_v50 = vld [vmem:[#allocation50_spill] sm:$0xff]  ;;  %v10303_v27 = vld [vmem:[#allocation51_spill] sm:$0xff] }
 0x391   :  { %2496 = vmatprep.subr.mxu1 %v7754_v63  ;;  %2563 = vmatprep.subr.mxu0 %v7756_v28  ;;  %v1914_v28 = vadd.f32 %v1913_v57, %v7999_v31 }
 0x392   :  { %2497 = vmatpush2.msra.mxu1 %v7760_v30  ;;  %2564 = vmatpush2.msra.mxu0 %v7762_v32  ;;  %v10304_v30 = vld [vmem:[#allocation52_spill] sm:$0xff]  ;;  %v10305_v32 = vld [vmem:[#allocation53_spill] sm:$0xff] }
 0x393   :  { %2498 = vmatprep.subr.mxu1 %v7766_v33  ;;  %2565 = vmatprep.subr.mxu0 %v7768_v35  ;;  %v2744_v35 = vld [vmem:[#allocation16 + $0x1e8] sm:$0xff] }
 0x394   :  { %2499 = vmatpush2.msra.mxu1 %v7772_v37  ;;  %2566 = vmatpush2.msra.mxu0 %v7774_v11  ;;  %v10306_v37 = vld [vmem:[#allocation54_spill] sm:$0xff]  ;;  %v10307_v11 = vld [vmem:[#allocation55_spill] sm:$0xff] }
 0x395   :  { %2500 = vmatprep.subr.mxu1 %v7778_v39  ;;  %2567 = vmatprep.subr.mxu0 %v10278_v41  ;;  %v2743_v39 = vld [vmem:[#allocation16 + $0x1e0] sm:$0xff] }
 0x396   :  { %2501 = vmatpush2.msra.mxu1 %v10279_v49  ;;  %2568 = vmatpush2.msra.mxu0 %v10280_v14  ;;  %v2732_v49 = vld [vmem:[#allocation16 + $0x188] sm:$0xff] }
 0x397   :  { %2502 = vmatprep.subr.mxu1 %v10281_v47  ;;  %2569 = vmatprep.subr.mxu0 %v10282_v7  ;;  %v2868_v14 = vld [vmem:[#allocation16 + $0x5c8] sm:$0xff]  ;;  %v2731_v47 = vld [vmem:[#allocation16 + $0x180] sm:$0xff] }
 0x398   :  { %2503 = vmatpush2.msra.mxu1 %v10283_v8  ;;  %2570 = vmatpush2.msra.mxu0 %v10284_v1  ;;  %v2867_v7 = vld [vmem:[#allocation16 + $0x5c0] sm:$0xff]  ;;  %v2728_v1 = vld [vmem:[#allocation16 + $0x168] sm:$0xff] }
 0x399   :  { %2504 = vmatprep.subr.mxu1 %v10285_v5  ;;  %2571 = vmatprep.subr.mxu0 %v10286_v9  ;;  %v2864_v5 = vld [vmem:[#allocation16 + $0x5a8] sm:$0xff]  ;;  %v2727_v9 = vld [vmem:[#allocation16 + $0x160] sm:$0xff] }
 0x39a   :  { %2505 = vmatpush2.msra.mxu1 %v10287_v15  ;;  %2572 = vmatpush2.msra.mxu0 %v10288_v16  ;;  %v2723_v16 = vld [vmem:[#allocation16 + $0x140] sm:$0xff] }
 0x39b   :  { %2506 = vmatprep.subr.mxu1 %v10291_v22  ;;  %2573 = vmatprep.subr.mxu0 %v10292_v53 }
 0x39c   :  { %2507 = vmatpush2.msra.mxu1 %v10293_v24  ;;  %2574 = vmatpush2.msra.mxu0 %v10294_v26  ;;  %v2720_v24 = vld [vmem:[#allocation16 + $0x128] sm:$0xff] }
 0x39d   :  { %2508 = vmatprep.subr.mxu1 %v10296_v34  ;;  %2575 = vmatprep.subr.mxu0 %v10297_v61  ;;  %v1982_v40 = vpop.f32.mrf.mxu1  ;;  %v2856_v26 = vld [vmem:[#allocation16 + $0x568] sm:$0xff]  ;;  %v2719_v34 = vld [vmem:[#allocation16 + $0x120] sm:$0xff] }
 0x39e   :  { %2509 = vmatpush2.msra.mxu1 %v10298_v46  ;;  %2576 = vmatpush2.msra.mxu0 %v10299_v23  ;;  %v1983_v33 = vadd.f32 %v1982_v40, %v1912_v21  ;;  %v2855_v61 = vld [vmem:[#allocation16 + $0x560] sm:$0xff]  ;;  %v2716_v46 = vld [vmem:[#allocation16 + $0x108] sm:$0xff] }
 0x39f   :  { %2510 = vmatprep.subr.mxu1 %v10300_v48  ;;  %2577 = vmatprep.subr.mxu0 %v10301_v51  ;;  %v1984_v63 = vpop.f32.mrf.mxu1  ;;  %v2852_v23 = vld [vmem:[#allocation16 + $0x548] sm:$0xff]  ;;  %v2715_v21 = vld [vmem:[#allocation16 + $0x100] sm:$0xff] }
 0x3a0   :  { %2511 = vmatpush2.msra.mxu1 %v10302_v50  ;;  %2578 = vmatpush2.msra.mxu0 %v10303_v27  ;;  %v1985_v25 = vadd.f32 %v1984_v63, %v1914_v28  ;;  %v2851_v48 = vld [vmem:[#allocation16 + $0x540] sm:$0xff]  ;;  %v2712_v50 = vld [vmem:[#allocation16 + $0xe8] sm:$0xff] }
 0x3a1   :  { %2512 = vmatprep.subr.mxu1 %v10304_v30  ;;  %2579 = vmatprep.subr.mxu0 %v10305_v32  ;;  %v2848_v27 = vld [vmem:[#allocation16 + $0x528] sm:$0xff]  ;;  %v2711_v63 = vld [vmem:[#allocation16 + $0xe0] sm:$0xff] }
 0x3a2   :  { %2513 = vmatpush2.msra.mxu1 %v10306_v37  ;;  %2580 = vmatpush2.msra.mxu0 %v10307_v11  ;;  %v2053_v44 = vpop.f32.mrf.mxu0  ;;  %v2847_v28 = vld [vmem:[#allocation16 + $0x520] sm:$0xff]  ;;  %v2708_v30 = vld [vmem:[#allocation16 + $0xc8] sm:$0xff] }
 0x3a3   :  { %2515 = vmatmul.mubr.f32.vlgmr.msra.gmra.mxu1 %v10309_v36  ;;  %2581 = vmatprep.subr.mxu0 %v10310_v2  ;;  %v2054_v6 = vadd.f32 %v2053_v44, %v1983_v33  ;;  %v2844_v32 = vld [vmem:[#allocation16 + $0x508] sm:$0xff]  ;;  %v2707_v33 = vld [vmem:[#allocation16 + $0xc0] sm:$0xff] }
 0x3a4   :  { %3125 = vmatprep.subr.mxu1 %v2744_v35  ;;  %2582 = vmatpush2.msra.mxu0 %v10311_v62  ;;  %v2055_v20 = vpop.f32.mrf.mxu0  ;;  %v2843_v35 = vld [vmem:[#allocation16 + $0x500] sm:$0xff]  ;;  %v2704_v37 = vld [vmem:[#allocation16 + $0xa8] sm:$0xff] }
 0x3a5   :  { %3126 = vmatpush1.msra.mxu1 %v2743_v39  ;;  %2583 = vmatprep.subr.mxu0 %v10312_v59  ;;  %v2056_v60 = vadd.f32 %v2055_v20, %v1985_v25  ;;  %v2060_v45 = vmax.f32 %v2054_v6, 0.0  ;;  %v2840_v11 = vld [vmem:[#allocation16 + $0x4e8] sm:$0xff]  ;;  %v2703_v39 = vld [vmem:[#allocation16 + $0xa0] sm:$0xff] }
 0x3a6   :  { %3127 = vmatprep.subr.mxu1 %v2740_v12  ;;  %2584 = vmatpush2.msra.mxu0 %v10313_v0  ;;  %v2839_v44 = vld [vmem:[#allocation16 + $0x4e0] sm:$0xff]  ;;  %v2836_v36 = vld [vmem:[#allocation16 + $0x4c8] sm:$0xff] }
 0x3a7   :  { %3128 = vmatpush1.msra.mxu1 %v2739_v56  ;;  %2586 = vmatmul.mubr.f32.vlgmr.msra.gmra.mxu0 %v2162_v42  ;;  %v2061_v41 = vmax.f32 %v2056_v60, 0.0  ;;  %v2860_v42 = vld [vmem:[#allocation16 + $0x588] sm:$0xff]  ;;  %v2699_v2 = vld [vmem:[#allocation16 + $0x80] sm:$0xff] }
 0x3a8   :  { %3129 = vmatprep.subr.mxu1 %v2736_v55  ;;  %3196 = vmatprep.subr.mxu0 %v2872_v3  ;;  %v2835_v25 = vld [vmem:[#allocation16 + $0x4c0] sm:$0xff]  ;;  %v2696_v12 = vld [vmem:[#allocation16 + $0x68] sm:$0xff] }
 0x3a9   :  { %3130 = vmatpush1.msra.mxu1 %v2735_v38  ;;  %3197 = vmatpush1.msra.mxu0 %v2871_v4  ;;  %v2085_v8 = vcombine.low %v2060_v45, %v2061_v41  ;;  %v2832_v6 = vld [vmem:[#allocation16 + $0x4a8] sm:$0xff]  ;;  %v2695_v62 = vld [vmem:[#allocation16 + $0x60] sm:$0xff] }
 0x3aa   :  { %3131 = vmatprep.subr.mxu1 %v2732_v49  ;;  %3198 = vmatprep.subr.mxu0 %v2868_v14  ;;  %v2831_v56 = vld [vmem:[#allocation16 + $0x4a0] sm:$0xff]  ;;  %v2692_v20 = vld [vmem:[#allocation16 + $0x48] sm:$0xff] }
 0x3ab   :  { %v2092_v15 = vrot.slane %v2085_v8, %v7579_v58  ;;  %3132 = vmatpush1.msra.mxu1 %v2731_v47  ;;  %3199 = vmatpush1.msra.mxu0 %v2867_v7  ;;  %v2828_v59 = vld [vmem:[#allocation16 + $0x488] sm:$0xff]  ;;  %v2691_v3 = vld [vmem:[#allocation16 + $0x40] sm:$0xff] }
 0x3ac   :  { %3133 = vmatprep.subr.mxu1 %v2728_v1  ;;  %3200 = vmatprep.subr.mxu0 %v2864_v5  ;;  %v2827_v0 = vld [vmem:[#allocation16 + $0x480] sm:$0xff]  ;;  %v2688_v38 = vld [vmem:[#allocation16 + $0x28] sm:$0xff] }
 0x3ad   :  { %v2099_v22 = vrot.slane %v2092_v15, %v7579_v58  ;;  %v2116_v53 = vcombine.high %v2092_v15, %v2092_v15  ;;  %3134 = vmatpush1.msra.mxu1 %v2727_v9  ;;  %3201 = vmatpush1.msra.mxu0 %v2863_v13  ;;  %v2824_v45 = vld [vmem:[#allocation16 + $0x468] sm:$0xff]  ;;  %v2687_v41 = vld [vmem:[#allocation16 + $0x20] sm:$0xff] }
 0x3ae   :  { %3135 = vmatprep.subr.mxu1 %v2724_v54  ;;  %3202 = vmatprep.subr.mxu0 %v2860_v42  ;;  %v2823_v14 = vld [vmem:[#allocation16 + $0x460] sm:$0xff]  ;;  %v2684_v47 = vld [vmem:[#allocation16 + $0x8] sm:$0xff] }
 0x3af   :  { %2102 = vst.msk [vmem:[#allocation4 + $0x2] ss:$8 sm:$0x3] %vm7583_vm1, %v2099_v22  ;;  %v2123_v40 = vrot.slane %v2116_v53, %v7579_v58  ;;  %v2133_v57 = vcombine.high %v2099_v22, %v2099_v22  ;;  %3136 = vmatpush1.msra.mxu1 %v2723_v16  ;;  %3203 = vmatpush1.msra.mxu0 %v2859_v18  ;;  %v2820_v7 = vld [vmem:[#allocation16 + $0x448] sm:$0xff]  ;;  %v2683_v8 = vld [vmem:[#allocation16] sm:$0xff] }
 0x3b0   :  { %3137 = vmatprep.subr.mxu1 %v2720_v24  ;;  %3204 = vmatprep.subr.mxu0 %v2856_v26  ;;  %v2819_v5 = vld [vmem:[#allocation16 + $0x440] sm:$0xff]  ;;  %v2808_v9 = vld [vmem:[#allocation16 + $0x3e8] sm:$0xff] }
 0x3b1   :  { %2126 = vst.msk [vmem:[#allocation4 + $0x4] ss:$8 sm:$0x3] %vm7583_vm1, %v2123_v40  ;;  %2136 = vst.msk [vmem:[#allocation4 + $0x6] ss:$8 sm:$0x3] %vm7583_vm1, %v2133_v57  ;;  %v2143_v51 = vcombine.high %v2123_v40, %v2123_v40  ;;  %3138 = vmatpush1.msra.mxu1 %v2719_v34  ;;  %3205 = vmatpush1.msra.mxu0 %v2855_v61 }
 0x3b2   :  { %3139 = vmatprep.subr.mxu1 %v2716_v46  ;;  %3206 = vmatprep.subr.mxu0 %v2852_v23  ;;  %v2816_v13 = vld [vmem:[#allocation16 + $0x428] sm:$0xff]  ;;  %v2807_v54 = vld [vmem:[#allocation16 + $0x3e0] sm:$0xff] }
 0x3b3   :  { %2146 = vst.msk [vmem:[#allocation4 + $0x10] ss:$8 sm:$0x3] %vm7583_vm1, %v2143_v51  ;;  %3140 = vmatpush1.msra.mxu1 %v2715_v21  ;;  %3207 = vmatpush1.msra.mxu0 %v2851_v48  ;;  %v2815_v42 = vld [vmem:[#allocation16 + $0x420] sm:$0xff]  ;;  %v2804_v16 = vld [vmem:[#allocation16 + $0x3c8] sm:$0xff] }
 0x3b4   :  { %3141 = vmatprep.subr.mxu1 %v2712_v50  ;;  %3208 = vmatprep.subr.mxu0 %v2848_v27  ;;  %v2812_v18 = vld [vmem:[#allocation16 + $0x408] sm:$0xff]  ;;  %v2803_v22 = vld [vmem:[#allocation16 + $0x3c0] sm:$0xff] }
 0x3b5   :  { %3142 = vmatpush1.msra.mxu1 %v2711_v63  ;;  %3209 = vmatpush1.msra.mxu0 %v2847_v28  ;;  %v2811_v53 = vld [vmem:[#allocation16 + $0x400] sm:$0xff]  ;;  %v2800_v24 = vld [vmem:[#allocation16 + $0x3a8] sm:$0xff] }
 0x3b6   :  { %3143 = vmatprep.subr.mxu1 %v2708_v30  ;;  %3210 = vmatprep.subr.mxu0 %v2844_v32  ;;  %v2936_v26 = vld [vmem:[#allocation16 + $0x7e8] sm:$0xff]  ;;  %v2799_v34 = vld [vmem:[#allocation16 + $0x3a0] sm:$0xff] }
 0x3b7   :  { %3144 = vmatpush1.msra.mxu1 %v2707_v33  ;;  %3211 = vmatpush1.msra.mxu0 %v2843_v35  ;;  %v2935_v61 = vld [vmem:[#allocation16 + $0x7e0] sm:$0xff]  ;;  %v2796_v40 = vld [vmem:[#allocation16 + $0x388] sm:$0xff] }
 0x3b8   :  { %3145 = vmatprep.subr.mxu1 %v2704_v37  ;;  %3212 = vmatprep.subr.mxu0 %v2840_v11  ;;  %v8034_v60 = vld [vmem:[#allocation4 + $0x8] sm:$0xff]  ;;  %v2932_v57 = vld [vmem:[#allocation16 + $0x7c8] sm:$0xff] }
 0x3b9   :  { %3146 = vmatpush1.msra.mxu1 %v2703_v39  ;;  %3213 = vmatpush1.msra.mxu0 %v2839_v44  ;;  %v3071_v4 = vld [vmem:[#allocation4 + $0x8] sm:$0xfe]  ;;  %v2792_v21 = vld [vmem:[#allocation16 + $0x368] sm:$0xff] }
 0x3ba   :  { %3147 = vmatprep.subr.mxu1 %v2700_v10  ;;  %3214 = vmatprep.subr.mxu0 %v2836_v36  ;;  %v3073_v55 = vld [vmem:[#allocation4 + $0x18] sm:$0x1]  ;;  %v3086_v1 = vrot.slane %v3071_v4, 1  ;;  %v2795_v46 = vld [vmem:[#allocation16 + $0x380] sm:$0xff] }
 0x3bb   :  { %3148 = vmatpush1.msra.mxu1 %v2699_v2  ;;  %3215 = vmatpush1.msra.mxu0 %v2835_v25  ;;  %v3087_v49 = vrot.slane %v3073_v55, 1  ;;  %v2931_v23 = vld [vmem:[#allocation16 + $0x7c0] sm:$0xff]  ;;  %v2928_v48 = vld [vmem:[#allocation16 + $0x7a8] sm:$0xff] }
 0x3bc   :  { %3149 = vmatprep.subr.mxu1 %v2696_v12  ;;  %3216 = vmatprep.subr.mxu0 %v2832_v6  ;;  %v2791_v51 = vld [vmem:[#allocation16 + $0x360] sm:$0xff]  ;;  %v2788_v27 = vld [vmem:[#allocation16 + $0x348] sm:$0xff] }
 0x3bd   :  { %3150 = vmatpush1.msra.mxu1 %v2695_v62  ;;  %3217 = vmatpush1.msra.mxu0 %v2831_v56  ;;  %v8038_v15 = vsel %vm3082_vm2, %v3086_v1, %v3087_v49  ;;  %v2927_v50 = vld [vmem:[#allocation16 + $0x7a0] sm:$0xff]  ;;  %v2924_v63 = vld [vmem:[#allocation16 + $0x788] sm:$0xff] }
 0x3be   :  { %3151 = vmatprep.subr.mxu1 %v2692_v20  ;;  %3218 = vmatprep.subr.mxu0 %v2828_v59  ;;  %v2787_v28 = vld [vmem:[#allocation16 + $0x340] sm:$0xff]  ;;  %v2784_v32 = vld [vmem:[#allocation16 + $0x328] sm:$0xff] }
 0x3bf   :  { %3152 = vmatpush1.msra.mxu1 %v2691_v3  ;;  %3189 = vmatprep.mubr.f32.mxu1 %v8034_v60  ;;  %v2923_v30 = vld [vmem:[#allocation16 + $0x780] sm:$0xff]  ;;  %v2920_v33 = vld [vmem:[#allocation16 + $0x768] sm:$0xff] }
 0x3c0   :  { %3219 = vmatpush1.msra.mxu0 %v2827_v0  ;;  %3153 = vmatprep.subr.mxu1 %v2688_v38  ;;  %v2783_v35 = vld [vmem:[#allocation16 + $0x320] sm:$0xff]  ;;  %v2780_v11 = vld [vmem:[#allocation16 + $0x308] sm:$0xff] }
 0x3c1   :  { %3220 = vmatprep.subr.mxu0 %v2824_v45  ;;  %3154 = vmatpush1.msra.mxu1 %v2687_v41  ;;  %v2919_v37 = vld [vmem:[#allocation16 + $0x760] sm:$0xff]  ;;  %v2916_v39 = vld [vmem:[#allocation16 + $0x748] sm:$0xff] }
 0x3c2   :  { %3221 = vmatpush1.msra.mxu0 %v2823_v14  ;;  %3155 = vmatprep.subr.mxu1 %v2684_v47  ;;  %v2779_v44 = vld [vmem:[#allocation16 + $0x300] sm:$0xff]  ;;  %v2776_v36 = vld [vmem:[#allocation16 + $0x2e8] sm:$0xff] }
 0x3c3   :  { %3222 = vmatprep.subr.mxu0 %v2820_v7  ;;  %3156 = vmatpush1.msra.mxu1 %v2683_v8  ;;  %v2915_v10 = vld [vmem:[#allocation16 + $0x740] sm:$0xff]  ;;  %v2912_v2 = vld [vmem:[#allocation16 + $0x728] sm:$0xff] }
 0x3c4   :  { %3223 = vmatpush1.msra.mxu0 %v2819_v5  ;;  %3157 = vmatprep.subr.mxu1 %v2808_v9  ;;  %v2775_v25 = vld [vmem:[#allocation16 + $0x2e0] sm:$0xff]  ;;  %v2772_v6 = vld [vmem:[#allocation16 + $0x2c8] sm:$0xff] }
 0x3c5   :  { %3224 = vmatprep.subr.mxu0 %v2816_v13  ;;  %3260 = vmatprep.mubr.f32.mxu0 %v8038_v15  ;;  %v2911_v12 = vld [vmem:[#allocation16 + $0x720] sm:$0xff]  ;;  %v2908_v62 = vld [vmem:[#allocation16 + $0x708] sm:$0xff] }
 0x3c6   :  { %3158 = vmatpush2.msra.mxu1 %v2807_v54  ;;  %3225 = vmatpush1.msra.mxu0 %v2815_v42  ;;  %v2771_v56 = vld [vmem:[#allocation16 + $0x2c0] sm:$0xff]  ;;  %v2768_v59 = vld [vmem:[#allocation16 + $0x2a8] sm:$0xff] }
 0x3c7   :  { %3159 = vmatprep.subr.mxu1 %v2804_v16  ;;  %3226 = vmatprep.subr.mxu0 %v2812_v18  ;;  %v2907_v20 = vld [vmem:[#allocation16 + $0x700] sm:$0xff]  ;;  %v2904_v55 = vld [vmem:[#allocation16 + $0x6e8] sm:$0xff] }
 0x3c8   :  { %3160 = vmatpush2.msra.mxu1 %v2803_v22  ;;  %3227 = vmatpush1.msra.mxu0 %v2811_v53  ;;  %v2767_v3 = vld [vmem:[#allocation16 + $0x2a0] sm:$0xff]  ;;  %v2764_v38 = vld [vmem:[#allocation16 + $0x288] sm:$0xff] }
 0x3c9   :  { %3161 = vmatprep.subr.mxu1 %v2800_v24  ;;  %3228 = vmatprep.subr.mxu0 %v2936_v26  ;;  %v2903_v0 = vld [vmem:[#allocation16 + $0x6e0] sm:$0xff]  ;;  %v2900_v4 = vld [vmem:[#allocation16 + $0x6c8] sm:$0xff] }
 0x3ca   :  { %3162 = vmatpush2.msra.mxu1 %v2799_v34  ;;  %3229 = vmatpush2.msra.mxu0 %v2935_v61  ;;  %v2763_v45 = vld [vmem:[#allocation16 + $0x280] sm:$0xff]  ;;  %v2760_v49 = vld [vmem:[#allocation16 + $0x268] sm:$0xff] }
 0x3cb   :  { %3163 = vmatprep.subr.mxu1 %v2796_v40  ;;  %3230 = vmatprep.subr.mxu0 %v2932_v57  ;;  %v2899_v41 = vld [vmem:[#allocation16 + $0x6c0] sm:$0xff]  ;;  %v2896_v14 = vld [vmem:[#allocation16 + $0x6a8] sm:$0xff] }
 0x3cc   :  { %3164 = vmatpush2.msra.mxu1 %v2795_v46  ;;  %3231 = vmatpush2.msra.mxu0 %v2931_v23  ;;  %v2759_v47 = vld [vmem:[#allocation16 + $0x260] sm:$0xff]  ;;  %v2756_v8 = vld [vmem:[#allocation16 + $0x248] sm:$0xff] }
 0x3cd   :  { %3165 = vmatprep.subr.mxu1 %v2792_v21  ;;  %3232 = vmatprep.subr.mxu0 %v2928_v48  ;;  %v2895_v7 = vld [vmem:[#allocation16 + $0x6a0] sm:$0xff]  ;;  %v2892_v1 = vld [vmem:[#allocation16 + $0x688] sm:$0xff]  ;;  %v8041_v21 = vld [vmem:[#allocation4] sm:$0xff] }
 0x3ce   :  { %3166 = vmatpush2.msra.mxu1 %v2791_v51  ;;  %3233 = vmatpush2.msra.mxu0 %v2927_v50  ;;  %v2755_v5 = vld [vmem:[#allocation16 + $0x240] sm:$0xff]  ;;  %v2752_v13 = vld [vmem:[#allocation16 + $0x228] sm:$0xff]  ;;  %v3070_v50 = vld [vmem:[#allocation4] sm:$0xfe] }
 0x3cf   :  { %3167 = vmatprep.subr.mxu1 %v2788_v27  ;;  %3234 = vmatprep.subr.mxu0 %v2924_v63  ;;  %v2891_v9 = vld [vmem:[#allocation16 + $0x680] sm:$0xff]  ;;  %v2888_v54 = vld [vmem:[#allocation16 + $0x668] sm:$0xff] }
 0x3d0   :  { %3168 = vmatpush2.msra.mxu1 %v2787_v28  ;;  %3235 = vmatpush2.msra.mxu0 %v2923_v30  ;;  %v2751_v42 = vld [vmem:[#allocation16 + $0x220] sm:$0xff]  ;;  %v3077_v18 = vld [vmem:[#allocation4 + $0x18] sm:$0x3] }
 0x3d1   :  { %3169 = vmatprep.subr.mxu1 %v2784_v32  ;;  %3236 = vmatprep.subr.mxu0 %v2920_v33  ;;  %v2887_v16 = vld [vmem:[#allocation16 + $0x660] sm:$0xff]  ;;  %v2748_v22 = vld [vmem:[#allocation16 + $0x208] sm:$0xff]  ;;  %v3100_v40 = vrot.slane %v3077_v18, 2  ;;  %v2714_v18 = vld [vmem:[#allocation16 + $0xf8] sm:$0xff] }
 0x3d2   :  { %3170 = vmatpush2.msra.mxu1 %v2783_v35  ;;  %3237 = vmatpush2.msra.mxu0 %v2919_v37  ;;  %v2884_v53 = vld [vmem:[#allocation16 + $0x648] sm:$0xff]  ;;  %v2747_v24 = vld [vmem:[#allocation16 + $0x200] sm:$0xff]  ;;  %v3083_v35 = vrot.slane %v3070_v50, 1 }
 0x3d3   :  { %3171 = vmatprep.subr.mxu1 %v2780_v11  ;;  %3238 = vmatprep.subr.mxu0 %v2916_v39  ;;  %v2883_v26 = vld [vmem:[#allocation16 + $0x640] sm:$0xff]  ;;  %v2880_v61 = vld [vmem:[#allocation16 + $0x628] sm:$0xff]  ;;  %v2746_v11 = vld [vmem:[#allocation16 + $0x1f8] sm:$0xff] }
 0x3d4   :  { %3172 = vmatpush2.msra.mxu1 %v2779_v44  ;;  %3239 = vmatpush2.msra.mxu0 %v2915_v10  ;;  %v3075_v34 = vld [vmem:[#allocation4 + $0x8] sm:$0xfc]  ;;  %v3072_v57 = vld [vmem:[#allocation4 + $0x10] sm:$0x1]  ;;  %v3000_v46 = vld [vmem:[#allocation16 + $0x9e8] sm:$0xff] }
 0x3d5   :  { %3173 = vmatprep.subr.mxu1 %v2776_v36  ;;  %3240 = vmatprep.subr.mxu0 %v2912_v2  ;;  %v2879_v23 = vld [vmem:[#allocation16 + $0x620] sm:$0xff]  ;;  %v3099_v51 = vrot.slane %v3075_v34, 2  ;;  %v2876_v27 = vld [vmem:[#allocation16 + $0x608] sm:$0xff]  ;;  %v3084_v28 = vrot.slane %v3072_v57, 1  ;;  %v2745_v10 = vld [vmem:[#allocation16 + $0x1f0] sm:$0xff] }
 0x3d6   :  { %3174 = vmatpush2.msra.mxu1 %v2775_v25  ;;  %3241 = vmatpush2.msra.mxu0 %v2911_v12  ;;  %v2999_v48 = vld [vmem:[#allocation16 + $0x9e0] sm:$0xff]  ;;  %v2996_v63 = vld [vmem:[#allocation16 + $0x9c8] sm:$0xff]  ;;  %v2742_v2 = vld [vmem:[#allocation16 + $0x1d8] sm:$0xff] }
 0x3d7   :  { %3175 = vmatprep.subr.mxu1 %v2772_v6  ;;  %3242 = vmatprep.subr.mxu0 %v2908_v62  ;;  %v8045_v30 = vsel %vm3095_vm3, %v3099_v51, %v3100_v40  ;;  %v2875_v32 = vld [vmem:[#allocation16 + $0x600] sm:$0xff]  ;;  %v2992_v37 = vld [vmem:[#allocation16 + $0x9a8] sm:$0xff]  ;;  %v8049_v44 = vsel %vm3082_vm2, %v3083_v35, %v3084_v28  ;;  %v2741_v12 = vld [vmem:[#allocation16 + $0x1d0] sm:$0xff] }
 0x3d8   :  { %3176 = vmatpush2.msra.mxu1 %v2771_v56  ;;  %3243 = vmatpush2.msra.mxu0 %v2907_v20  ;;  %v2995_v33 = vld [vmem:[#allocation16 + $0x9c0] sm:$0xff]  ;;  %v2988_v36 = vld [vmem:[#allocation16 + $0x988] sm:$0xff]  ;;  %v2738_v62 = vld [vmem:[#allocation16 + $0x1b8] sm:$0xff] }
 0x3d9   :  { %3177 = vmatprep.subr.mxu1 %v2768_v59  ;;  %3244 = vmatprep.subr.mxu0 %v2904_v55  ;;  %v2991_v39 = vld [vmem:[#allocation16 + $0x9a0] sm:$0xff]  ;;  %v2984_v6 = vld [vmem:[#allocation16 + $0x968] sm:$0xff]  ;;  %v2737_v20 = vld [vmem:[#allocation16 + $0x1b0] sm:$0xff] }
 0x3da   :  { %3178 = vmatpush2.msra.mxu1 %v2767_v3  ;;  %3245 = vmatpush2.msra.mxu0 %v2903_v0  ;;  %v2987_v25 = vld [vmem:[#allocation16 + $0x980] sm:$0xff]  ;;  %v2980_v59 = vld [vmem:[#allocation16 + $0x948] sm:$0xff]  ;;  %v2734_v55 = vld [vmem:[#allocation16 + $0x198] sm:$0xff] }
 0x3db   :  { %3179 = vmatprep.subr.mxu1 %v2764_v38  ;;  %3246 = vmatprep.subr.mxu0 %v2900_v4  ;;  %v2983_v56 = vld [vmem:[#allocation16 + $0x960] sm:$0xff]  ;;  %v2733_v0 = vld [vmem:[#allocation16 + $0x190] sm:$0xff]  ;;  %v2976_v38 = vld [vmem:[#allocation16 + $0x928] sm:$0xff] }
 0x3dc   :  { %3180 = vmatpush2.msra.mxu1 %v2763_v45  ;;  %3247 = vmatpush2.msra.mxu0 %v2899_v41  ;;  %v2979_v3 = vld [vmem:[#allocation16 + $0x940] sm:$0xff]  ;;  %v2730_v4 = vld [vmem:[#allocation16 + $0x178] sm:$0xff]  ;;  %v2729_v45 = vld [vmem:[#allocation16 + $0x170] sm:$0xff] }
 0x3dd   :  { %3181 = vmatprep.subr.mxu1 %v2760_v49  ;;  %3248 = vmatprep.subr.mxu0 %v2896_v14  ;;  %v2972_v41 = vld [vmem:[#allocation16 + $0x908] sm:$0xff]  ;;  %v2726_v49 = vld [vmem:[#allocation16 + $0x158] sm:$0xff]  ;;  %v2971_v14 = vld [vmem:[#allocation16 + $0x900] sm:$0xff] }
 0x3de   :  { %3182 = vmatpush2.msra.mxu1 %v2759_v47  ;;  %3249 = vmatpush2.msra.mxu0 %v2895_v7  ;;  %v2725_v47 = vld [vmem:[#allocation16 + $0x150] sm:$0xff]  ;;  %v2968_v7 = vld [vmem:[#allocation16 + $0x8e8] sm:$0xff]  ;;  %v2955_v34 = vld [vmem:[#allocation16 + $0x880] sm:$0xff] }
 0x3df   :  { %3183 = vmatprep.subr.mxu1 %v2756_v8  ;;  %3250 = vmatprep.subr.mxu0 %v2892_v1  ;;  %v2722_v8 = vld [vmem:[#allocation16 + $0x138] sm:$0xff]  ;;  %v2967_v1 = vld [vmem:[#allocation16 + $0x8e0] sm:$0xff]  ;;  %v2952_v40 = vld [vmem:[#allocation16 + $0x868] sm:$0xff] }
 0x3e0   :  { %3184 = vmatpush2.msra.mxu1 %v2755_v5  ;;  %3251 = vmatpush2.msra.mxu0 %v2891_v9  ;;  %v2721_v5 = vld [vmem:[#allocation16 + $0x130] sm:$0xff]  ;;  %v2964_v9 = vld [vmem:[#allocation16 + $0x8c8] sm:$0xff]  ;;  %v2706_v57 = vld [vmem:[#allocation16 + $0xb8] sm:$0xff] }
 0x3e1   :  { %3185 = vmatprep.subr.mxu1 %v2752_v13  ;;  %3252 = vmatprep.subr.mxu0 %v2888_v54  ;;  %v2718_v13 = vld [vmem:[#allocation16 + $0x118] sm:$0xff]  ;;  %v2963_v54 = vld [vmem:[#allocation16 + $0x8c0] sm:$0xff]  ;;  %v2940_v35 = vld [vmem:[#allocation16 + $0x808] sm:$0xff] }
 0x3e2   :  { %3186 = vmatpush2.msra.mxu1 %v2751_v42  ;;  %3253 = vmatpush2.msra.mxu0 %v2887_v16  ;;  %v2717_v42 = vld [vmem:[#allocation16 + $0x110] sm:$0xff]  ;;  %v2960_v16 = vld [vmem:[#allocation16 + $0x8a8] sm:$0xff]  ;;  %v2702_v51 = vld [vmem:[#allocation16 + $0x98] sm:$0xff] }
 0x3e3   :  { %3187 = vmatprep.subr.mxu1 %v2748_v22  ;;  %3254 = vmatprep.subr.mxu0 %v2884_v53  ;;  %v2959_v22 = vld [vmem:[#allocation16 + $0x8a0] sm:$0xff]  ;;  %v2713_v53 = vld [vmem:[#allocation16 + $0xf0] sm:$0xff]  ;;  %v2698_v28 = vld [vmem:[#allocation16 + $0x78] sm:$0xff] }
 0x3e4   :  { %3188 = vmatpush2.msra.mxu1 %v2747_v24  ;;  %3255 = vmatpush2.msra.mxu0 %v2883_v26  ;;  %v2956_v24 = vld [vmem:[#allocation16 + $0x888] sm:$0xff]  ;;  %v2710_v26 = vld [vmem:[#allocation16 + $0xd8] sm:$0xff]  ;;  %v2947_v50 = vld [vmem:[#allocation16 + $0x840] sm:$0xff] }
 0x3e5   :  { %3190 = vmatmul.mubr.f32.vlgmr.msra.gmra.mxu1 %v8041_v21  ;;  %3256 = vmatprep.subr.mxu0 %v2880_v61  ;;  %v2709_v61 = vld [vmem:[#allocation16 + $0xd0] sm:$0xff] }
 0x3e6   :  { %3267 = vmatprep.subr.mxu1 %v3000_v46  ;;  %3257 = vmatpush2.msra.mxu0 %v2879_v23  ;;  %v2951_v46 = vld [vmem:[#allocation16 + $0x860] sm:$0xff]  ;;  %v2705_v23 = vld [vmem:[#allocation16 + $0xb0] sm:$0xff] }
 0x3e7   :  { %3268 = vmatpush1.msra.mxu1 %v2999_v48  ;;  %3331 = vmatprep.mubr.f32.mxu1 %v8045_v30  ;;  %v2948_v48 = vld [vmem:[#allocation16 + $0x848] sm:$0xff] }
 0x3e8   :  { %3258 = vmatprep.subr.mxu0 %v2876_v27  ;;  %3269 = vmatprep.subr.mxu1 %v2996_v63  ;;  %v2701_v27 = vld [vmem:[#allocation16 + $0x90] sm:$0xff]  ;;  %v2944_v63 = vld [vmem:[#allocation16 + $0x828] sm:$0xff] }
 0x3e9   :  { %3259 = vmatpush2.msra.mxu0 %v2875_v32  ;;  %3270 = vmatpush1.msra.mxu1 %v2995_v33  ;;  %v2943_v32 = vld [vmem:[#allocation16 + $0x820] sm:$0xff]  ;;  %v2697_v33 = vld [vmem:[#allocation16 + $0x70] sm:$0xff] }
 0x3ea   :  { %3261 = vmatmul.mubr.f32.vlgmr.msra.gmra.mxu0 %v8049_v44  ;;  %3271 = vmatprep.subr.mxu1 %v2992_v37  ;;  %v2694_v37 = vld [vmem:[#allocation16 + $0x58] sm:$0xff] }
 0x3eb   :  { %3338 = vmatprep.subr.mxu0 %v2746_v11  ;;  %3272 = vmatpush1.msra.mxu1 %v2991_v39  ;;  %v2939_v11 = vld [vmem:[#allocation16 + $0x800] sm:$0xff]  ;;  %v2693_v39 = vld [vmem:[#allocation16 + $0x50] sm:$0xff] }
 0x3ec   :  { %3339 = vmatpush1.msra.mxu0 %v2745_v10  ;;  %3402 = vmatprep.mubr.f32.mxu0 %v8034_v60  ;;  %v2975_v60 = vld [vmem:[#allocation16 + $0x920] sm:$0xff]  ;;  %v3064_v10 = vld [vmem:[#allocation16 + $0xbe8] sm:$0xff] }
 0x3ed   :  { %3273 = vmatprep.subr.mxu1 %v2988_v36  ;;  %3340 = vmatprep.subr.mxu0 %v2742_v2  ;;  %v2690_v36 = vld [vmem:[#allocation16 + $0x38] sm:$0xff]  ;;  %v3063_v2 = vld [vmem:[#allocation16 + $0xbe0] sm:$0xff] }
 0x3ee   :  { %3274 = vmatpush1.msra.mxu1 %v2987_v25  ;;  %3341 = vmatpush1.msra.mxu0 %v2741_v12  ;;  %v2689_v25 = vld [vmem:[#allocation16 + $0x30] sm:$0xff]  ;;  %v3060_v12 = vld [vmem:[#allocation16 + $0xbc8] sm:$0xff] }
 0x3ef   :  { %3275 = vmatprep.subr.mxu1 %v2984_v6  ;;  %3342 = vmatprep.subr.mxu0 %v2738_v62  ;;  %v2686_v6 = vld [vmem:[#allocation16 + $0x18] sm:$0xff]  ;;  %v3059_v62 = vld [vmem:[#allocation16 + $0xbc0] sm:$0xff] }
 0x3f0   :  { %3276 = vmatpush1.msra.mxu1 %v2983_v56  ;;  %3343 = vmatpush1.msra.mxu0 %v2737_v20  ;;  %v2685_v56 = vld [vmem:[#allocation16 + $0x10] sm:$0xff]  ;;  %v3056_v20 = vld [vmem:[#allocation16 + $0xba8] sm:$0xff] }
 0x3f1   :  { %3277 = vmatprep.subr.mxu1 %v2980_v59  ;;  %3344 = vmatprep.subr.mxu0 %v2734_v55  ;;  %v2810_v59 = vld [vmem:[#allocation16 + $0x3f8] sm:$0xff]  ;;  %v3055_v55 = vld [vmem:[#allocation16 + $0xba0] sm:$0xff] }
 0x3f2   :  { %3278 = vmatpush1.msra.mxu1 %v2979_v3  ;;  %3345 = vmatpush1.msra.mxu0 %v2733_v0  ;;  %v2809_v3 = vld [vmem:[#allocation16 + $0x3f0] sm:$0xff]  ;;  %v3052_v0 = vld [vmem:[#allocation16 + $0xb88] sm:$0xff] }
 0x3f3   :  { %3279 = vmatprep.subr.mxu1 %v2976_v38  ;;  %3346 = vmatprep.subr.mxu0 %v2730_v4  ;;  %v2806_v38 = vld [vmem:[#allocation16 + $0x3d8] sm:$0xff]  ;;  %v3051_v4 = vld [vmem:[#allocation16 + $0xb80] sm:$0xff] }
 0x3f4   :  { %3280 = vmatpush1.msra.mxu1 %v2975_v60  ;;  %3347 = vmatpush1.msra.mxu0 %v2729_v45  ;;  %v2805_v60 = vld [vmem:[#allocation16 + $0x3d0] sm:$0xff]  ;;  %v3048_v45 = vld [vmem:[#allocation16 + $0xb68] sm:$0xff] }
 0x3f5   :  { %3281 = vmatprep.subr.mxu1 %v2972_v41  ;;  %3348 = vmatprep.subr.mxu0 %v2726_v49  ;;  %v2802_v41 = vld [vmem:[#allocation16 + $0x3b8] sm:$0xff]  ;;  %v3047_v49 = vld [vmem:[#allocation16 + $0xb60] sm:$0xff] }
 0x3f6   :  { %3282 = vmatpush1.msra.mxu1 %v2971_v14  ;;  %3349 = vmatpush1.msra.mxu0 %v2725_v47  ;;  %v2801_v14 = vld [vmem:[#allocation16 + $0x3b0] sm:$0xff]  ;;  %v3044_v47 = vld [vmem:[#allocation16 + $0xb48] sm:$0xff] }
 0x3f7   :  { %3283 = vmatprep.subr.mxu1 %v2968_v7  ;;  %3350 = vmatprep.subr.mxu0 %v2722_v8  ;;  %v2798_v7 = vld [vmem:[#allocation16 + $0x398] sm:$0xff]  ;;  %v3043_v8 = vld [vmem:[#allocation16 + $0xb40] sm:$0xff] }
 0x3f8   :  { %3284 = vmatpush1.msra.mxu1 %v2967_v1  ;;  %3351 = vmatpush1.msra.mxu0 %v2721_v5  ;;  %v2797_v1 = vld [vmem:[#allocation16 + $0x390] sm:$0xff]  ;;  %v3040_v5 = vld [vmem:[#allocation16 + $0xb28] sm:$0xff] }
 0x3f9   :  { %3285 = vmatprep.subr.mxu1 %v2964_v9  ;;  %3352 = vmatprep.subr.mxu0 %v2718_v13  ;;  %v2794_v9 = vld [vmem:[#allocation16 + $0x378] sm:$0xff]  ;;  %v3039_v13 = vld [vmem:[#allocation16 + $0xb20] sm:$0xff] }
 0x3fa   :  { %3286 = vmatpush1.msra.mxu1 %v2963_v54  ;;  %3353 = vmatpush1.msra.mxu0 %v2717_v42  ;;  %v2793_v54 = vld [vmem:[#allocation16 + $0x370] sm:$0xff]  ;;  %v3036_v42 = vld [vmem:[#allocation16 + $0xb08] sm:$0xff] }
 0x3fb   :  { %3287 = vmatprep.subr.mxu1 %v2960_v16  ;;  %3354 = vmatprep.subr.mxu0 %v2714_v18  ;;  %v2790_v16 = vld [vmem:[#allocation16 + $0x358] sm:$0xff]  ;;  %v3035_v18 = vld [vmem:[#allocation16 + $0xb00] sm:$0xff] }
 0x3fc   :  { %3288 = vmatpush1.msra.mxu1 %v2959_v22  ;;  %3355 = vmatpush1.msra.mxu0 %v2713_v53  ;;  %v2789_v22 = vld [vmem:[#allocation16 + $0x350] sm:$0xff]  ;;  %v3032_v53 = vld [vmem:[#allocation16 + $0xae8] sm:$0xff] }
 0x3fd   :  { %3289 = vmatprep.subr.mxu1 %v2956_v24  ;;  %3356 = vmatprep.subr.mxu0 %v2710_v26  ;;  %v2786_v24 = vld [vmem:[#allocation16 + $0x338] sm:$0xff]  ;;  %v3031_v26 = vld [vmem:[#allocation16 + $0xae0] sm:$0xff] }
 0x3fe   :  { %3290 = vmatpush1.msra.mxu1 %v2955_v34  ;;  %3357 = vmatpush1.msra.mxu0 %v2709_v61  ;;  %v2785_v34 = vld [vmem:[#allocation16 + $0x330] sm:$0xff]  ;;  %v3028_v61 = vld [vmem:[#allocation16 + $0xac8] sm:$0xff] }
 0x3ff   :  { %3291 = vmatprep.subr.mxu1 %v2952_v40  ;;  %3358 = vmatprep.subr.mxu0 %v2706_v57  ;;  %v2782_v40 = vld [vmem:[#allocation16 + $0x318] sm:$0xff]  ;;  %v3027_v57 = vld [vmem:[#allocation16 + $0xac0] sm:$0xff] }
 0x400   :  { %3292 = vmatpush1.msra.mxu1 %v2951_v46  ;;  %3359 = vmatpush1.msra.mxu0 %v2705_v23  ;;  %v2781_v46 = vld [vmem:[#allocation16 + $0x310] sm:$0xff]  ;;  %v3024_v23 = vld [vmem:[#allocation16 + $0xaa8] sm:$0xff] }
 0x401   :  { %3293 = vmatprep.subr.mxu1 %v2948_v48  ;;  %3360 = vmatprep.subr.mxu0 %v2702_v51  ;;  %v2778_v48 = vld [vmem:[#allocation16 + $0x2f8] sm:$0xff]  ;;  %v2232_v51 = vpop.f32.mrf.mxu1 }
 0x402   :  { %3294 = vmatpush1.msra.mxu1 %v2947_v50  ;;  %3361 = vmatpush1.msra.mxu0 %v2701_v27  ;;  %v3023_v50 = vld [vmem:[#allocation16 + $0xaa0] sm:$0xff]  ;;  %v2777_v27 = vld [vmem:[#allocation16 + $0x2f0] sm:$0xff] }
 0x403   :  { %3295 = vmatprep.subr.mxu1 %v2944_v63  ;;  %3362 = vmatprep.subr.mxu0 %v2698_v28  ;;  %v3020_v63 = vld [vmem:[#allocation16 + $0xa88] sm:$0xff]  ;;  %v2774_v28 = vld [vmem:[#allocation16 + $0x2d8] sm:$0xff] }
 0x404   :  { %3296 = vmatpush1.msra.mxu1 %v2943_v32  ;;  %3363 = vmatpush1.msra.mxu0 %v2697_v33  ;;  %v2303_v32 = vpop.f32.mrf.mxu0  ;;  %v3019_v33 = vld [vmem:[#allocation16 + $0xa80] sm:$0xff] }
 0x405   :  { %3297 = vmatprep.subr.mxu1 %v2940_v35  ;;  %3364 = vmatprep.subr.mxu0 %v2694_v37  ;;  %v2773_v35 = vld [vmem:[#allocation16 + $0x2d0] sm:$0xff]  ;;  %v3016_v37 = vld [vmem:[#allocation16 + $0xa68] sm:$0xff] }
 0x406   :  { %3298 = vmatpush1.msra.mxu1 %v2939_v11  ;;  %3365 = vmatpush1.msra.mxu0 %v2693_v39  ;;  %v2770_v11 = vld [vmem:[#allocation16 + $0x2b8] sm:$0xff]  ;;  %v2234_v39 = vpop.f32.mrf.mxu1 }
 0x407   :  { %3299 = vmatprep.subr.mxu1 %v3064_v10  ;;  %3366 = vmatprep.subr.mxu0 %v2690_v36  ;;  %v3015_v10 = vld [vmem:[#allocation16 + $0xa60] sm:$0xff]  ;;  %v2769_v36 = vld [vmem:[#allocation16 + $0x2b0] sm:$0xff] }
 0x408   :  { %3300 = vmatpush2.msra.mxu1 %v3063_v2  ;;  %3367 = vmatpush1.msra.mxu0 %v2689_v25  ;;  %v10314_v2 = vld [vmem:[#allocation62_spill] sm:$0xff] }
 0x409   :  { %3301 = vmatprep.subr.mxu1 %v3060_v12  ;;  %3368 = vmatprep.subr.mxu0 %v2686_v6  ;;  %v2233_v25 = vadd.f32 %v2232_v51, %v10314_v2  ;;  %v3012_v12 = vld [vmem:[#allocation16 + $0xa48] sm:$0xff]  ;;  %v2766_v6 = vld [vmem:[#allocation16 + $0x298] sm:$0xff]  ;;  %v2865_v51 = vld [vmem:[#allocation16 + $0x5b0] sm:$0xff] }
 0x40a   :  { %3302 = vmatpush2.msra.mxu1 %v3059_v62  ;;  %3369 = vmatpush1.msra.mxu0 %v2685_v56  ;;  %v2305_v62 = vpop.f32.mrf.mxu0  ;;  %v3011_v56 = vld [vmem:[#allocation16 + $0xa40] sm:$0xff]  ;;  %v2854_v2 = vld [vmem:[#allocation16 + $0x558] sm:$0xff] }
 0x40b   :  { %3303 = vmatprep.subr.mxu1 %v3056_v20  ;;  %3370 = vmatprep.subr.mxu0 %v2810_v59  ;;  %v2765_v20 = vld [vmem:[#allocation16 + $0x290] sm:$0xff]  ;;  %v3076_v59 = vld [vmem:[#allocation4 + $0x10] sm:$0x3] }
 0x40c   :  { %3304 = vmatpush2.msra.mxu1 %v3055_v55  ;;  %3371 = vmatpush2.msra.mxu0 %v2809_v3  ;;  %v2235_v55 = vadd.f32 %v2234_v39, %v7912_v52  ;;  %v2304_v3 = vadd.f32 %v2303_v32, %v2233_v25  ;;  %v3003_v52 = vld [vmem:[#allocation16 + $0xa00] sm:$0xff]  ;;  %v2998_v32 = vld [vmem:[#allocation16 + $0x9d8] sm:$0xff] }
 0x40d   :  { %3305 = vmatprep.subr.mxu1 %v3052_v0  ;;  %3372 = vmatprep.subr.mxu0 %v2806_v38  ;;  %v3008_v0 = vld [vmem:[#allocation16 + $0xa28] sm:$0xff]  ;;  %v2762_v38 = vld [vmem:[#allocation16 + $0x278] sm:$0xff] }
 0x40e   :  { %3306 = vmatpush2.msra.mxu1 %v3051_v4  ;;  %3373 = vmatpush2.msra.mxu0 %v2805_v60  ;;  %v3007_v4 = vld [vmem:[#allocation16 + $0xa20] sm:$0xff]  ;;  %v2761_v60 = vld [vmem:[#allocation16 + $0x270] sm:$0xff]  ;;  %v2994_v39 = vld [vmem:[#allocation16 + $0x9b8] sm:$0xff] }
 0x40f   :  { %3307 = vmatprep.subr.mxu1 %v3048_v45  ;;  %3374 = vmatprep.subr.mxu0 %v2802_v41  ;;  %v3074_v41 = vld [vmem:[#allocation4] sm:$0xfc] }
 0x410   :  { %3308 = vmatpush2.msra.mxu1 %v3047_v49  ;;  %3375 = vmatpush2.msra.mxu0 %v2801_v14  ;;  %v2306_v49 = vadd.f32 %v2305_v62, %v2235_v55  ;;  %v3004_v14 = vld [vmem:[#allocation16 + $0xa08] sm:$0xff]  ;;  %v2990_v25 = vld [vmem:[#allocation16 + $0x998] sm:$0xff] }
 0x411   :  { %3309 = vmatprep.subr.mxu1 %v3044_v47  ;;  %3376 = vmatprep.subr.mxu0 %v2798_v7  ;;  %v2758_v47 = vld [vmem:[#allocation16 + $0x258] sm:$0xff] }
 0x412   :  { %3310 = vmatpush2.msra.mxu1 %v3043_v8  ;;  %3377 = vmatpush2.msra.mxu0 %v2797_v1  ;;  %v3097_v8 = vrot.slane %v3076_v59, 2  ;;  %v2757_v1 = vld [vmem:[#allocation16 + $0x250] sm:$0xff]  ;;  %v2986_v62 = vld [vmem:[#allocation16 + $0x978] sm:$0xff] }
 0x413   :  { %3311 = vmatprep.subr.mxu1 %v3040_v5  ;;  %3378 = vmatprep.subr.mxu0 %v2794_v9  ;;  %v3096_v9 = vrot.slane %v3074_v41, 2  ;;  %v2846_v59 = vld [vmem:[#allocation16 + $0x518] sm:$0xff] }
 0x414   :  { %3312 = vmatpush2.msra.mxu1 %v3039_v13  ;;  %3379 = vmatpush2.msra.mxu0 %v2793_v54  ;;  %v2754_v13 = vld [vmem:[#allocation16 + $0x238] sm:$0xff] }
 0x415   :  { %3313 = vmatprep.subr.mxu1 %v3036_v42  ;;  %3380 = vmatprep.subr.mxu0 %v2790_v16  ;;  %v2874_v42 = vld [vmem:[#allocation16 + $0x5f8] sm:$0xff]  ;;  %v2753_v16 = vld [vmem:[#allocation16 + $0x230] sm:$0xff] }
 0x416   :  { %3314 = vmatpush2.msra.mxu1 %v3035_v18  ;;  %3381 = vmatpush2.msra.mxu0 %v2789_v22  ;;  %v8056_v22 = vsel %vm3095_vm3, %v3096_v9, %v3097_v8  ;;  %v2982_v55 = vld [vmem:[#allocation16 + $0x958] sm:$0xff] }
 0x417   :  { %3315 = vmatprep.subr.mxu1 %v3032_v53  ;;  %3382 = vmatprep.subr.mxu0 %v2786_v24  ;;  %v2873_v53 = vld [vmem:[#allocation16 + $0x5f0] sm:$0xff]  ;;  %v2838_v41 = vld [vmem:[#allocation16 + $0x4d8] sm:$0xff] }
 0x418   :  { %3316 = vmatpush2.msra.mxu1 %v3031_v26  ;;  %3383 = vmatpush2.msra.mxu0 %v2785_v34  ;;  %v2750_v26 = vld [vmem:[#allocation16 + $0x218] sm:$0xff] }
 0x419   :  { %3317 = vmatprep.subr.mxu1 %v3028_v61  ;;  %3384 = vmatprep.subr.mxu0 %v2782_v40  ;;  %v2870_v34 = vld [vmem:[#allocation16 + $0x5d8] sm:$0xff]  ;;  %v2749_v40 = vld [vmem:[#allocation16 + $0x210] sm:$0xff] }
 0x41a   :  { %3318 = vmatpush2.msra.mxu1 %v3027_v57  ;;  %3385 = vmatpush2.msra.mxu0 %v2781_v46  ;;  %v2869_v57 = vld [vmem:[#allocation16 + $0x5d0] sm:$0xff]  ;;  %v2866_v46 = vld [vmem:[#allocation16 + $0x5b8] sm:$0xff] }
 0x41b   :  { %3319 = vmatprep.subr.mxu1 %v3024_v23  ;;  %3386 = vmatprep.subr.mxu0 %v2778_v48  ;;  %v3002_v48 = vld [vmem:[#allocation16 + $0x9f8] sm:$0xff] }
 0x41c   :  { %3320 = vmatpush2.msra.mxu1 %v3023_v50  ;;  %3387 = vmatpush2.msra.mxu0 %v2777_v27  ;;  %v3001_v50 = vld [vmem:[#allocation16 + $0x9f0] sm:$0xff]  ;;  %v2970_v8 = vld [vmem:[#allocation16 + $0x8f8] sm:$0xff] }
 0x41d   :  { %3321 = vmatprep.subr.mxu1 %v3020_v63  ;;  %3388 = vmatprep.subr.mxu0 %v2774_v28  ;;  %v2862_v28 = vld [vmem:[#allocation16 + $0x598] sm:$0xff] }
 0x41e   :  { %3322 = vmatpush2.msra.mxu1 %v3019_v33  ;;  %3389 = vmatpush2.msra.mxu0 %v2773_v35  ;;  %v2997_v33 = vld [vmem:[#allocation16 + $0x9d0] sm:$0xff]  ;;  %v2966_v9 = vld [vmem:[#allocation16 + $0x8d8] sm:$0xff] }
 0x41f   :  { %3323 = vmatprep.subr.mxu1 %v3016_v37  ;;  %3390 = vmatprep.subr.mxu0 %v2770_v11  ;;  %v2858_v11 = vld [vmem:[#allocation16 + $0x578] sm:$0xff] }
 0x420   :  { %3324 = vmatpush2.msra.mxu1 %v3015_v10  ;;  %3391 = vmatpush2.msra.mxu0 %v2769_v36  ;;  %v2993_v10 = vld [vmem:[#allocation16 + $0x9b0] sm:$0xff] }
 0x421   :  { %3325 = vmatprep.subr.mxu1 %v3012_v12  ;;  %3392 = vmatprep.subr.mxu0 %v2766_v6  ;;  %v2374_v45 = vpop.f32.mrf.mxu1  ;;  %v2989_v12 = vld [vmem:[#allocation16 + $0x990] sm:$0xff]  ;;  %v2850_v6 = vld [vmem:[#allocation16 + $0x538] sm:$0xff] }
 0x422   :  { %3326 = vmatpush2.msra.mxu1 %v3011_v56  ;;  %3393 = vmatpush2.msra.mxu0 %v2765_v20  ;;  %v2375_v7 = vadd.f32 %v2374_v45, %v2304_v3  ;;  %v2849_v56 = vld [vmem:[#allocation16 + $0x530] sm:$0xff] }
 0x423   :  { %3327 = vmatprep.subr.mxu1 %v3008_v0  ;;  %3394 = vmatprep.subr.mxu0 %v2762_v38  ;;  %v2376_v5 = vpop.f32.mrf.mxu1  ;;  %v2985_v20 = vld [vmem:[#allocation16 + $0x970] sm:$0xff]  ;;  %v2842_v38 = vld [vmem:[#allocation16 + $0x4f8] sm:$0xff] }
 0x424   :  { %3328 = vmatpush2.msra.mxu1 %v3007_v4  ;;  %3395 = vmatpush2.msra.mxu0 %v2761_v60  ;;  %v2377_v54 = vadd.f32 %v2376_v5, %v2306_v49  ;;  %v2592_v18 = vmax.f32 %v2375_v7, 0.0  ;;  %v2845_v3 = vld [vmem:[#allocation16 + $0x510] sm:$0xff]  ;;  %v2978_v4 = vld [vmem:[#allocation16 + $0x938] sm:$0xff] }
 0x425   :  { %3329 = vmatprep.subr.mxu1 %v3004_v14  ;;  %3396 = vmatprep.subr.mxu0 %v2758_v47  ;;  %v2981_v0 = vld [vmem:[#allocation16 + $0x950] sm:$0xff]  ;;  %v2974_v49 = vld [vmem:[#allocation16 + $0x918] sm:$0xff] }
 0x426   :  { %3330 = vmatpush2.msra.mxu1 %v3003_v52  ;;  %3397 = vmatpush2.msra.mxu0 %v2757_v1  ;;  %v2593_v24 = vmax.f32 %v2377_v54, 0.0  ;;  %v2841_v60 = vld [vmem:[#allocation16 + $0x4f0] sm:$0xff]  ;;  %v2834_v7 = vld [vmem:[#allocation16 + $0x4b8] sm:$0xff] }
 0x427   :  { %3332 = vmatmul.mubr.f32.vlgmr.msra.gmra.mxu1 %v8056_v22  ;;  %3398 = vmatprep.subr.mxu0 %v2754_v13  ;;  %v2977_v45 = vld [vmem:[#allocation16 + $0x930] sm:$0xff]  ;;  %v2830_v5 = vld [vmem:[#allocation16 + $0x498] sm:$0xff] }
 0x428   :  { %3409 = vmatprep.subr.mxu1 %v2874_v42  ;;  %3399 = vmatpush2.msra.mxu0 %v2753_v16  ;;  %v2598_v61 = vcombine.low %v2592_v18, %v2593_v24  ;;  %v2837_v14 = vld [vmem:[#allocation16 + $0x4d0] sm:$0xff]  ;;  %v2826_v42 = vld [vmem:[#allocation16 + $0x478] sm:$0xff] }
 0x429   :  { %3410 = vmatpush1.msra.mxu1 %v2873_v53  ;;  %3473 = vmatprep.mubr.f32.mxu1 %v8038_v15  ;;  %v2861_v15 = vld [vmem:[#allocation16 + $0x590] sm:$0xff]  ;;  %v2962_v16 = vld [vmem:[#allocation16 + $0x8b8] sm:$0xff] }
 0x42a   :  { %v2605_v23 = vrot.slane %v2598_v61, %v7579_v58  ;;  %3400 = vmatprep.subr.mxu0 %v2750_v26  ;;  %3411 = vmatprep.subr.mxu1 %v2870_v34  ;;  %v2973_v47 = vld [vmem:[#allocation16 + $0x910] sm:$0xff]  ;;  %v2822_v24 = vld [vmem:[#allocation16 + $0x458] sm:$0xff] }
 0x42b   :  { %3401 = vmatpush2.msra.mxu0 %v2749_v40  ;;  %3412 = vmatpush1.msra.mxu1 %v2869_v57  ;;  %v2833_v52 = vld [vmem:[#allocation16 + $0x4b0] sm:$0xff]  ;;  %v2958_v26 = vld [vmem:[#allocation16 + $0x898] sm:$0xff] }
 0x42c   :  { %v2612_v27 = vrot.slane %v2605_v23, %v7579_v58  ;;  %v2639_v63 = vcombine.high %v2605_v23, %v2605_v23  ;;  %3403 = vmatmul.mubr.f32.vlgmr.msra.gmra.mxu0 %v8041_v21  ;;  %3413 = vmatprep.subr.mxu1 %v2866_v46  ;;  %v2857_v21 = vld [vmem:[#allocation16 + $0x570] sm:$0xff]  ;;  %v2818_v40 = vld [vmem:[#allocation16 + $0x438] sm:$0xff] }
 0x42d   :  { %3480 = vmatprep.subr.mxu0 %v3002_v48  ;;  %3414 = vmatpush1.msra.mxu1 %v2865_v51  ;;  %v2969_v1 = vld [vmem:[#allocation16 + $0x8f0] sm:$0xff]  ;;  %v2954_v57 = vld [vmem:[#allocation16 + $0x878] sm:$0xff] }
 0x42e   :  { %2616 = vst.msk [vmem:[#allocation4 + $0x21] ss:$8 sm:$0x3] %vm7583_vm1, %v2612_v27  ;;  %v2646_v35 = vrot.slane %v2639_v63, %v7579_v58  ;;  %v2663_v37 = vcombine.high %v2612_v27, %v2612_v27  ;;  %3481 = vmatpush1.msra.mxu0 %v3001_v50  ;;  %3544 = vmatprep.mubr.f32.mxu0 %v8045_v30  ;;  %v2853_v30 = vld [vmem:[#allocation16 + $0x550] sm:$0xff]  ;;  %v2814_v48 = vld [vmem:[#allocation16 + $0x418] sm:$0xff] }
 0x42f   :  { %3415 = vmatprep.subr.mxu1 %v2862_v28  ;;  %3482 = vmatprep.subr.mxu0 %v2998_v32  ;;  %v2829_v13 = vld [vmem:[#allocation16 + $0x490] sm:$0xff]  ;;  %v2950_v51 = vld [vmem:[#allocation16 + $0x858] sm:$0xff] }
 0x430   :  { %2649 = vst.msk [vmem:[#allocation4 + $0x23] ss:$8 sm:$0x3] %vm7583_vm1, %v2646_v35  ;;  %2666 = vst.msk [vmem:[#allocation4 + $0x25] ss:$8 sm:$0x3] %vm7583_vm1, %v2663_v37  ;;  %v2673_v36 = vcombine.high %v2646_v35, %v2646_v35  ;;  %3416 = vmatpush1.msra.mxu1 %v2861_v15  ;;  %3483 = vmatpush1.msra.mxu0 %v2997_v33 }
 0x431   :  { %3417 = vmatprep.subr.mxu1 %v2858_v11  ;;  %3484 = vmatprep.subr.mxu0 %v2994_v39  ;;  %v2965_v54 = vld [vmem:[#allocation16 + $0x8d0] sm:$0xff]  ;;  %v2938_v63 = vld [vmem:[#allocation16 + $0x7f8] sm:$0xff] }
 0x432   :  { %2676 = vst.msk [vmem:[#allocation4 + $0x27] ss:$8 sm:$0x3] %vm7583_vm1, %v2673_v36  ;;  %3418 = vmatpush1.msra.mxu1 %v2857_v21  ;;  %3485 = vmatpush1.msra.mxu0 %v2993_v10  ;;  %v2825_v18 = vld [vmem:[#allocation16 + $0x470] sm:$0xff]  ;;  %v2946_v28 = vld [vmem:[#allocation16 + $0x838] sm:$0xff] }
 0x433   :  { %3419 = vmatprep.subr.mxu1 %v2854_v2  ;;  %3486 = vmatprep.subr.mxu0 %v2990_v25  ;;  %v2961_v53 = vld [vmem:[#allocation16 + $0x8b0] sm:$0xff]  ;;  %v2934_v33 = vld [vmem:[#allocation16 + $0x7d8] sm:$0xff] }
 0x434   :  { %3420 = vmatpush1.msra.mxu1 %v2853_v30  ;;  %3487 = vmatpush1.msra.mxu0 %v2989_v12  ;;  %v2821_v34 = vld [vmem:[#allocation16 + $0x450] sm:$0xff]  ;;  %v2942_v35 = vld [vmem:[#allocation16 + $0x818] sm:$0xff] }
 0x435   :  { %3421 = vmatprep.subr.mxu1 %v2850_v6  ;;  %3488 = vmatprep.subr.mxu0 %v2986_v62  ;;  %v2957_v61 = vld [vmem:[#allocation16 + $0x890] sm:$0xff]  ;;  %v2930_v39 = vld [vmem:[#allocation16 + $0x7b8] sm:$0xff] }
 0x436   :  { %3422 = vmatpush1.msra.mxu1 %v2849_v56  ;;  %3489 = vmatpush1.msra.mxu0 %v2985_v20  ;;  %v2817_v46 = vld [vmem:[#allocation16 + $0x430] sm:$0xff]  ;;  %v3066_v21 = vld [vmem:[#allocation16 + $0xbf8] sm:$0xff] }
 0x437   :  { %3423 = vmatprep.subr.mxu1 %v2846_v59  ;;  %3490 = vmatprep.subr.mxu0 %v2982_v55  ;;  %v2953_v23 = vld [vmem:[#allocation16 + $0x870] sm:$0xff]  ;;  %v2926_v2 = vld [vmem:[#allocation16 + $0x798] sm:$0xff] }
 0x438   :  { %3424 = vmatpush1.msra.mxu1 %v2845_v3  ;;  %3491 = vmatpush1.msra.mxu0 %v2981_v0  ;;  %v2813_v50 = vld [vmem:[#allocation16 + $0x410] sm:$0xff]  ;;  %v3062_v25 = vld [vmem:[#allocation16 + $0xbd8] sm:$0xff] }
 0x439   :  { %3425 = vmatprep.subr.mxu1 %v2842_v38  ;;  %3492 = vmatprep.subr.mxu0 %v2978_v4  ;;  %v2949_v27 = vld [vmem:[#allocation16 + $0x850] sm:$0xff]  ;;  %v2922_v6 = vld [vmem:[#allocation16 + $0x778] sm:$0xff] }
 0x43a   :  { %3426 = vmatpush1.msra.mxu1 %v2841_v60  ;;  %3493 = vmatpush1.msra.mxu0 %v2977_v45  ;;  %v2937_v32 = vld [vmem:[#allocation16 + $0x7f0] sm:$0xff]  ;;  %v3058_v62 = vld [vmem:[#allocation16 + $0xbb8] sm:$0xff] }
 0x43b   :  { %3427 = vmatprep.subr.mxu1 %v2838_v41  ;;  %3494 = vmatprep.subr.mxu0 %v2974_v49  ;;  %v2945_v15 = vld [vmem:[#allocation16 + $0x830] sm:$0xff]  ;;  %v2918_v59 = vld [vmem:[#allocation16 + $0x758] sm:$0xff] }
 0x43c   :  { %3428 = vmatpush1.msra.mxu1 %v2837_v14  ;;  %3495 = vmatpush1.msra.mxu0 %v2973_v47  ;;  %v2933_v37 = vld [vmem:[#allocation16 + $0x7d0] sm:$0xff]  ;;  %v3054_v55 = vld [vmem:[#allocation16 + $0xb98] sm:$0xff] }
 0x43d   :  { %3429 = vmatprep.subr.mxu1 %v2834_v7  ;;  %3496 = vmatprep.subr.mxu0 %v2970_v8  ;;  %v2941_v11 = vld [vmem:[#allocation16 + $0x810] sm:$0xff]  ;;  %v2914_v38 = vld [vmem:[#allocation16 + $0x738] sm:$0xff] }
 0x43e   :  { %3430 = vmatpush1.msra.mxu1 %v2833_v52  ;;  %3497 = vmatpush1.msra.mxu0 %v2969_v1  ;;  %v2929_v10 = vld [vmem:[#allocation16 + $0x7b0] sm:$0xff]  ;;  %v3050_v4 = vld [vmem:[#allocation16 + $0xb78] sm:$0xff] }
 0x43f   :  { %3431 = vmatprep.subr.mxu1 %v2830_v5  ;;  %3498 = vmatprep.subr.mxu0 %v2966_v9  ;;  %v3065_v36 = vld [vmem:[#allocation16 + $0xbf0] sm:$0xff]  ;;  %v2910_v41 = vld [vmem:[#allocation16 + $0x718] sm:$0xff] }
 0x440   :  { %3432 = vmatpush1.msra.mxu1 %v2829_v13  ;;  %3499 = vmatpush1.msra.mxu0 %v2965_v54  ;;  %v2925_v30 = vld [vmem:[#allocation16 + $0x790] sm:$0xff]  ;;  %v3046_v49 = vld [vmem:[#allocation16 + $0xb58] sm:$0xff] }
 0x441   :  { %3433 = vmatprep.subr.mxu1 %v2826_v42  ;;  %3500 = vmatprep.subr.mxu0 %v2962_v16  ;;  %v3061_v12 = vld [vmem:[#allocation16 + $0xbd0] sm:$0xff]  ;;  %v2906_v7 = vld [vmem:[#allocation16 + $0x6f8] sm:$0xff] }
 0x442   :  { %3434 = vmatpush1.msra.mxu1 %v2825_v18  ;;  %3501 = vmatpush1.msra.mxu0 %v2961_v53  ;;  %v2921_v56 = vld [vmem:[#allocation16 + $0x770] sm:$0xff]  ;;  %v3042_v8 = vld [vmem:[#allocation16 + $0xb38] sm:$0xff] }
 0x443   :  { %3435 = vmatprep.subr.mxu1 %v2822_v24  ;;  %3502 = vmatprep.subr.mxu0 %v2958_v26  ;;  %v3057_v20 = vld [vmem:[#allocation16 + $0xbb0] sm:$0xff]  ;;  %v2902_v5 = vld [vmem:[#allocation16 + $0x6d8] sm:$0xff] }
 0x444   :  { %3436 = vmatpush1.msra.mxu1 %v2821_v34  ;;  %3503 = vmatpush1.msra.mxu0 %v2957_v61  ;;  %v2917_v3 = vld [vmem:[#allocation16 + $0x750] sm:$0xff]  ;;  %v3038_v9 = vld [vmem:[#allocation16 + $0xb18] sm:$0xff] }
 0x445   :  { %3437 = vmatprep.subr.mxu1 %v2818_v40  ;;  %3504 = vmatprep.subr.mxu0 %v2954_v57  ;;  %v3053_v0 = vld [vmem:[#allocation16 + $0xb90] sm:$0xff]  ;;  %v2898_v42 = vld [vmem:[#allocation16 + $0x6b8] sm:$0xff] }
 0x446   :  { %3438 = vmatpush1.msra.mxu1 %v2817_v46  ;;  %3505 = vmatpush1.msra.mxu0 %v2953_v23  ;;  %v2913_v60 = vld [vmem:[#allocation16 + $0x730] sm:$0xff]  ;;  %v3034_v16 = vld [vmem:[#allocation16 + $0xaf8] sm:$0xff]  ;;  %v2445_v46 = vpop.f32.mrf.mxu0 }
 0x447   :  { %3439 = vmatprep.subr.mxu1 %v2814_v48  ;;  %3506 = vmatprep.subr.mxu0 %v2950_v51  ;;  %v3049_v45 = vld [vmem:[#allocation16 + $0xb70] sm:$0xff]  ;;  %v2894_v24 = vld [vmem:[#allocation16 + $0x698] sm:$0xff] }
 0x448   :  { %3440 = vmatpush1.msra.mxu1 %v2813_v50  ;;  %3507 = vmatpush1.msra.mxu0 %v2949_v27  ;;  %v2909_v14 = vld [vmem:[#allocation16 + $0x710] sm:$0xff]  ;;  %v3030_v26 = vld [vmem:[#allocation16 + $0xad8] sm:$0xff] }
 0x449   :  { %3441 = vmatprep.subr.mxu1 %v2938_v63  ;;  %3508 = vmatprep.subr.mxu0 %v2946_v28  ;;  %v3045_v47 = vld [vmem:[#allocation16 + $0xb50] sm:$0xff]  ;;  %v8077_v40 = vld [vmem:[#allocation16 + $0x678] sm:$0xff] }
 0x44a   :  { %3442 = vmatpush2.msra.mxu1 %v2937_v32  ;;  %3509 = vmatpush1.msra.mxu0 %v2945_v15  ;;  %v2905_v52 = vld [vmem:[#allocation16 + $0x6f0] sm:$0xff]  ;;  %v8079_v57 = vld [vmem:[#allocation16 + $0xab8] sm:$0xff]  ;;  %v2447_v15 = vpop.f32.mrf.mxu0 }
 0x44b   :  { %3443 = vmatprep.subr.mxu1 %v2934_v33  ;;  %3510 = vmatprep.subr.mxu0 %v2942_v35  ;;  %v3041_v1 = vld [vmem:[#allocation16 + $0xb30] sm:$0xff]  ;;  %v8087_v51 = vld [vmem:[#allocation16 + $0x658] sm:$0xff] }
 0x44c   :  { %3444 = vmatpush2.msra.mxu1 %v2933_v37  ;;  %3511 = vmatpush1.msra.mxu0 %v2941_v11  ;;  %v2901_v13 = vld [vmem:[#allocation16 + $0x6d0] sm:$0xff]  ;;  %v8089_v50 = vld [vmem:[#allocation16 + $0xa98] sm:$0xff]  ;;  %v2446_v11 = vadd.f32 %v2445_v46, %v7991_v19  ;;  %v5520_v46 = vld [vmem:[#allocation16 + $0x140] sm:$0xff] }
 0x44d   :  { %3445 = vmatprep.subr.mxu1 %v2930_v39  ;;  %3512 = vmatprep.subr.mxu0 %v3066_v21  ;;  %v3037_v54 = vld [vmem:[#allocation16 + $0xb10] sm:$0xff]  ;;  %v8099_v28 = vld [vmem:[#allocation16 + $0x638] sm:$0xff] }
 0x44e   :  { %3446 = vmatpush2.msra.mxu1 %v2929_v10  ;;  %3513 = vmatpush2.msra.mxu0 %v3065_v36  ;;  %v2897_v18 = vld [vmem:[#allocation16 + $0x6b0] sm:$0xff]  ;;  %v8101_v32 = vld [vmem:[#allocation16 + $0xa78] sm:$0xff] }
 0x44f   :  { %3447 = vmatprep.subr.mxu1 %v2926_v2  ;;  %3514 = vmatprep.subr.mxu0 %v3062_v25  ;;  %v3033_v53 = vld [vmem:[#allocation16 + $0xaf0] sm:$0xff]  ;;  %v8112_v39 = vld [vmem:[#allocation16 + $0x618] sm:$0xff]  ;;  %v2448_v25 = vadd.f32 %v2447_v15, %v7999_v31  ;;  %v5521_v15 = vld [vmem:[#allocation16 + $0x580] sm:$0xff] }
 0x450   :  { %3448 = vmatpush2.msra.mxu1 %v2925_v30  ;;  %3515 = vmatpush2.msra.mxu0 %v3061_v12  ;;  %v8073_v34 = vld [vmem:[#allocation16 + $0x690] sm:$0xff]  ;;  %v8114_v21 = vld [vmem:[#allocation16 + $0xa58] sm:$0xff] }
 0x451   :  { %3449 = vmatprep.subr.mxu1 %v2922_v6  ;;  %3516 = vmatprep.subr.mxu0 %v3058_v62  ;;  %v8075_v61 = vld [vmem:[#allocation16 + $0xad0] sm:$0xff]  ;;  %v8125_v30 = vld [vmem:[#allocation16 + $0xa38] sm:$0xff] }
 0x452   :  { %3450 = vmatpush2.msra.mxu1 %v2921_v56  ;;  %3517 = vmatpush2.msra.mxu0 %v3057_v20  ;;  %v8081_v23 = vld [vmem:[#allocation16 + $0x670] sm:$0xff]  ;;  %v8133_v31 = vld [vmem:[#allocation16 + $0xa18] sm:$0xff] }
 0x453   :  { %3451 = vmatprep.subr.mxu1 %v2918_v59  ;;  %3518 = vmatprep.subr.mxu0 %v3054_v55  ;;  %v8083_v48 = vld [vmem:[#allocation16 + $0xab0] sm:$0xff]  ;;  %v5502_v55 = vld [vmem:[#allocation16 + $0x1e8] sm:$0xff] }
 0x454   :  { %3452 = vmatpush2.msra.mxu1 %v2917_v3  ;;  %3519 = vmatpush2.msra.mxu0 %v3053_v0  ;;  %v8093_v27 = vld [vmem:[#allocation16 + $0x650] sm:$0xff]  ;;  %v5503_v0 = vld [vmem:[#allocation16 + $0x1e0] sm:$0xff] }
 0x455   :  { %3453 = vmatprep.subr.mxu1 %v2914_v38  ;;  %3520 = vmatprep.subr.mxu0 %v3050_v4  ;;  %v8095_v63 = vld [vmem:[#allocation16 + $0xa90] sm:$0xff]  ;;  %v5504_v38 = vld [vmem:[#allocation16 + $0x1c8] sm:$0xff] }
 0x456   :  { %3454 = vmatpush2.msra.mxu1 %v2913_v60  ;;  %3521 = vmatpush2.msra.mxu0 %v3049_v45  ;;  %v8105_v33 = vld [vmem:[#allocation16 + $0x630] sm:$0xff]  ;;  %v5505_v60 = vld [vmem:[#allocation16 + $0x1c0] sm:$0xff]  ;;  %v5506_v45 = vld [vmem:[#allocation16 + $0x1a8] sm:$0xff] }
 0x457   :  { %3455 = vmatprep.subr.mxu1 %v2910_v41  ;;  %3522 = vmatprep.subr.mxu0 %v3046_v49  ;;  %v8107_v35 = vld [vmem:[#allocation16 + $0xa70] sm:$0xff]  ;;  %v5507_v41 = vld [vmem:[#allocation16 + $0x5e8] sm:$0xff] }
 0x458   :  { %3456 = vmatpush2.msra.mxu1 %v2909_v14  ;;  %3523 = vmatpush2.msra.mxu0 %v3045_v47  ;;  %v8118_v10 = vld [vmem:[#allocation16 + $0x610] sm:$0xff]  ;;  %v5508_v14 = vld [vmem:[#allocation16 + $0x1a0] sm:$0xff] }
 0x459   :  { %3457 = vmatprep.subr.mxu1 %v2906_v7  ;;  %3524 = vmatprep.subr.mxu0 %v3042_v8  ;;  %v8120_v36 = vld [vmem:[#allocation16 + $0xa50] sm:$0xff]  ;;  %v5509_v47 = vld [vmem:[#allocation16 + $0x5e0] sm:$0xff]  ;;  %v5510_v8 = vld [vmem:[#allocation16 + $0x188] sm:$0xff] }
 0x45a   :  { %3458 = vmatpush2.msra.mxu1 %v2905_v52  ;;  %3525 = vmatpush2.msra.mxu0 %v3041_v1  ;;  %v8129_v12 = vld [vmem:[#allocation16 + $0xa30] sm:$0xff]  ;;  %v5511_v52 = vld [vmem:[#allocation16 + $0x5c8] sm:$0xff]  ;;  %v5512_v1 = vld [vmem:[#allocation16 + $0x180] sm:$0xff] }
 0x45b   :  { %3459 = vmatprep.subr.mxu1 %v2902_v5  ;;  %3526 = vmatprep.subr.mxu0 %v3038_v9  ;;  %v8137_v20 = vld [vmem:[#allocation16 + $0xa10] sm:$0xff]  ;;  %v5513_v5 = vld [vmem:[#allocation16 + $0x5c0] sm:$0xff] }
 0x45c   :  { %3460 = vmatpush2.msra.mxu1 %v2901_v13  ;;  %3527 = vmatpush2.msra.mxu0 %v3037_v54  ;;  %v5514_v13 = vld [vmem:[#allocation16 + $0x168] sm:$0xff] }
 0x45d   :  { %3461 = vmatprep.subr.mxu1 %v2898_v42  ;;  %3528 = vmatprep.subr.mxu0 %v3034_v16  ;;  %v5515_v54 = vld [vmem:[#allocation16 + $0x5a8] sm:$0xff]  ;;  %v5516_v42 = vld [vmem:[#allocation16 + $0x160] sm:$0xff] }
 0x45e   :  { %3462 = vmatpush2.msra.mxu1 %v2897_v18  ;;  %3529 = vmatpush2.msra.mxu0 %v3033_v53  ;;  %v5517_v16 = vld [vmem:[#allocation16 + $0x5a0] sm:$0xff] }
 0x45f   :  { %3463 = vmatprep.subr.mxu1 %v2894_v24  ;;  %3530 = vmatprep.subr.mxu0 %v3030_v26  ;;  %v5518_v24 = vld [vmem:[#allocation16 + $0x148] sm:$0xff] }
 0x460   :  { %3464 = vmatpush2.msra.mxu1 %v8073_v34  ;;  %3531 = vmatpush2.msra.mxu0 %v8075_v61  ;;  %v5519_v26 = vld [vmem:[#allocation16 + $0x588] sm:$0xff] }
 0x461   :  { %3465 = vmatprep.subr.mxu1 %v8077_v40  ;;  %3532 = vmatprep.subr.mxu0 %v8079_v57 }
 0x462   :  { %3466 = vmatpush2.msra.mxu1 %v8081_v23  ;;  %3533 = vmatpush2.msra.mxu0 %v8083_v48 }
 0x463   :  { %3467 = vmatprep.subr.mxu1 %v8087_v51  ;;  %3534 = vmatprep.subr.mxu0 %v8089_v50  ;;  %v2516_v37 = vpop.f32.mrf.mxu1 }
 0x464   :  { %3468 = vmatpush2.msra.mxu1 %v8093_v27  ;;  %3535 = vmatpush2.msra.mxu0 %v8095_v63  ;;  %v2517_v19 = vadd.f32 %v2516_v37, %v2446_v11  ;;  %v5522_v11 = vld [vmem:[#allocation16 + $0x128] sm:$0xff] }
 0x465   :  { %3469 = vmatprep.subr.mxu1 %v8099_v28  ;;  %3536 = vmatprep.subr.mxu0 %v8101_v32  ;;  %v2518_v2 = vpop.f32.mrf.mxu1 }
 0x466   :  { %3470 = vmatpush2.msra.mxu1 %v8105_v33  ;;  %3537 = vmatpush2.msra.mxu0 %v8107_v35  ;;  %v2519_v62 = vadd.f32 %v2518_v2, %v2448_v25  ;;  %v5523_v2 = vld [vmem:[#allocation16 + $0x568] sm:$0xff]  ;;  %v5524_v25 = vld [vmem:[#allocation16 + $0x120] sm:$0xff] }
 0x467   :  { %3471 = vmatprep.subr.mxu1 %v8112_v39  ;;  %3538 = vmatprep.subr.mxu0 %v8114_v21  ;;  %v2587_v6 = vpop.f32.mrf.mxu0 }
 0x468   :  { %3472 = vmatpush2.msra.mxu1 %v8118_v10  ;;  %3539 = vmatpush2.msra.mxu0 %v8120_v36  ;;  %v2588_v56 = vadd.f32 %v2587_v6, %v2517_v19  ;;  %v5525_v19 = vld [vmem:[#allocation16 + $0x560] sm:$0xff]  ;;  %v5526_v6 = vld [vmem:[#allocation16 + $0x108] sm:$0xff] }
 0x469   :  { %3474 = vmatmul.mubr.f32.vlgmr.msra.gmra.mxu1 %v8049_v44  ;;  %3540 = vmatprep.subr.mxu0 %v8125_v30  ;;  %v2589_v59 = vpop.f32.mrf.mxu0 }
 0x46a   :  { %3757 = vmatprep.subr.mxu1 %v5502_v55  ;;  %3541 = vmatpush2.msra.mxu0 %v8129_v12  ;;  %v2590_v3 = vadd.f32 %v2589_v59, %v2519_v62  ;;  %v2594_v4 = vmax.f32 %v2588_v56, 0.0  ;;  %v5527_v62 = vld [vmem:[#allocation16 + $0x548] sm:$0xff]  ;;  %v5528_v56 = vld [vmem:[#allocation16 + $0x100] sm:$0xff] }
 0x46b   :  { %3758 = vmatpush1.msra.mxu1 %v5503_v0  ;;  %3542 = vmatprep.subr.mxu0 %v8133_v31  ;;  %v5529_v59 = vld [vmem:[#allocation16 + $0x540] sm:$0xff]  ;;  %v5530_v55 = vld [vmem:[#allocation16 + $0xe8] sm:$0xff] }
 0x46c   :  { %3759 = vmatprep.subr.mxu1 %v5504_v38  ;;  %3543 = vmatpush2.msra.mxu0 %v8137_v20  ;;  %v2595_v44 = vmax.f32 %v2590_v3, 0.0  ;;  %v5531_v3 = vld [vmem:[#allocation16 + $0x528] sm:$0xff]  ;;  %v5532_v0 = vld [vmem:[#allocation16 + $0xe0] sm:$0xff] }
 0x46d   :  { %3760 = vmatpush1.msra.mxu1 %v5505_v60  ;;  %3545 = vmatmul.mubr.f32.vlgmr.msra.gmra.mxu0 %v8056_v22  ;;  %v5533_v38 = vld [vmem:[#allocation16 + $0x520] sm:$0xff] }
 0x46e   :  { %3761 = vmatprep.subr.mxu1 %v5506_v45  ;;  %3828 = vmatprep.subr.mxu0 %v5507_v41  ;;  %v2620_v49 = vcombine.low %v2594_v4, %v2595_v44  ;;  %v5534_v4 = vld [vmem:[#allocation16 + $0xc8] sm:$0xff]  ;;  %v5536_v60 = vld [vmem:[#allocation16 + $0xc0] sm:$0xff] }
 0x46f   :  { %3762 = vmatpush1.msra.mxu1 %v5508_v14  ;;  %3829 = vmatpush1.msra.mxu0 %v5509_v47  ;;  %v5535_v44 = vld [vmem:[#allocation16 + $0x508] sm:$0xff]  ;;  %v5537_v45 = vld [vmem:[#allocation16 + $0x500] sm:$0xff] }
 0x470   :  { %v2627_v7 = vrot.slane %v2620_v49, %v7579_v58  ;;  %3763 = vmatprep.subr.mxu1 %v5510_v8  ;;  %3830 = vmatprep.subr.mxu0 %v5511_v52  ;;  %v5538_v41 = vld [vmem:[#allocation16 + $0xa8] sm:$0xff]  ;;  %v5540_v14 = vld [vmem:[#allocation16 + $0xa0] sm:$0xff] }
 0x471   :  { %3764 = vmatpush1.msra.mxu1 %v5512_v1  ;;  %3831 = vmatpush1.msra.mxu0 %v5513_v5  ;;  %v5539_v49 = vld [vmem:[#allocation16 + $0x4e8] sm:$0xff]  ;;  %v5541_v47 = vld [vmem:[#allocation16 + $0x4e0] sm:$0xff] }
 0x472   :  { %v2634_v22 = vrot.slane %v2627_v7, %v7579_v58  ;;  %v2651_v9 = vcombine.high %v2627_v7, %v2627_v7  ;;  %3765 = vmatprep.subr.mxu1 %v5514_v13  ;;  %3832 = vmatprep.subr.mxu0 %v5515_v54  ;;  %v5542_v7 = vld [vmem:[#allocation16 + $0x88] sm:$0xff]  ;;  %v5544_v52 = vld [vmem:[#allocation16 + $0x80] sm:$0xff] }
 0x473   :  { %3766 = vmatpush1.msra.mxu1 %v5516_v42  ;;  %3833 = vmatpush1.msra.mxu0 %v5517_v16  ;;  %v5543_v8 = vld [vmem:[#allocation16 + $0x4c8] sm:$0xff]  ;;  %v5545_v1 = vld [vmem:[#allocation16 + $0x4c0] sm:$0xff] }
 0x474   :  { %2637 = vst.msk [vmem:[#allocation4 + $0x22] ss:$8 sm:$0x3] %vm7583_vm1, %v2634_v22  ;;  %v2658_v18 = vrot.slane %v2651_v9, %v7579_v58  ;;  %v2668_v53 = vcombine.high %v2634_v22, %v2634_v22  ;;  %3767 = vmatprep.subr.mxu1 %v5518_v24  ;;  %3834 = vmatprep.subr.mxu0 %v5519_v26  ;;  %v5546_v22 = vld [vmem:[#allocation16 + $0x68] sm:$0xff]  ;;  %v5548_v54 = vld [vmem:[#allocation16 + $0x60] sm:$0xff] }
 0x475   :  { %3768 = vmatpush1.msra.mxu1 %v5520_v46  ;;  %3835 = vmatpush1.msra.mxu0 %v5521_v15  ;;  %v5547_v9 = vld [vmem:[#allocation16 + $0x4a8] sm:$0xff]  ;;  %v5549_v42 = vld [vmem:[#allocation16 + $0x4a0] sm:$0xff] }
 0x476   :  { %2661 = vst.msk [vmem:[#allocation4 + $0x24] ss:$8 sm:$0x3] %vm7583_vm1, %v2658_v18  ;;  %2671 = vst.msk [vmem:[#allocation4 + $0x26] ss:$8 sm:$0x3] %vm7583_vm1, %v2668_v53  ;;  %v2678_v37 = vcombine.high %v2658_v18, %v2658_v18  ;;  %3769 = vmatprep.subr.mxu1 %v5522_v11  ;;  %3836 = vmatprep.subr.mxu0 %v5523_v2 }
 0x477   :  { %3770 = vmatpush1.msra.mxu1 %v5524_v25  ;;  %3837 = vmatpush1.msra.mxu0 %v5525_v19  ;;  %v5550_v18 = vld [vmem:[#allocation16 + $0x48] sm:$0xff]  ;;  %v5552_v26 = vld [vmem:[#allocation16 + $0x40] sm:$0xff] }
 0x478   :  { %2681 = vst.msk [vmem:[#allocation4 + $0x30] ss:$8 sm:$0x3] %vm7583_vm1, %v2678_v37  ;;  %3771 = vmatprep.subr.mxu1 %v5526_v6  ;;  %3838 = vmatprep.subr.mxu0 %v5527_v62  ;;  %v5551_v53 = vld [vmem:[#allocation16 + $0x488] sm:$0xff]  ;;  %v5553_v46 = vld [vmem:[#allocation16 + $0x480] sm:$0xff] }
 0x479   :  { %3772 = vmatpush1.msra.mxu1 %v5528_v56  ;;  %3839 = vmatpush1.msra.mxu0 %v5529_v59  ;;  %v5554_v15 = vld [vmem:[#allocation16 + $0x28] sm:$0xff]  ;;  %v5556_v2 = vld [vmem:[#allocation16 + $0x20] sm:$0xff] }
 0x47a   :  { %3773 = vmatprep.subr.mxu1 %v5530_v55  ;;  %3840 = vmatprep.subr.mxu0 %v5531_v3  ;;  %v5555_v11 = vld [vmem:[#allocation16 + $0x468] sm:$0xff]  ;;  %v5557_v25 = vld [vmem:[#allocation16 + $0x460] sm:$0xff] }
 0x47b   :  { %3774 = vmatpush1.msra.mxu1 %v5532_v0  ;;  %3841 = vmatpush1.msra.mxu0 %v5533_v38  ;;  %v5558_v19 = vld [vmem:[#allocation16 + $0x8] sm:$0xff]  ;;  %v5560_v56 = vld [vmem:[#allocation16] sm:$0xff] }
 0x47c   :  { %3775 = vmatprep.subr.mxu1 %v5534_v4  ;;  %3842 = vmatprep.subr.mxu0 %v5535_v44  ;;  %v5559_v62 = vld [vmem:[#allocation16 + $0x448] sm:$0xff]  ;;  %v5561_v59 = vld [vmem:[#allocation16 + $0x440] sm:$0xff] }
 0x47d   :  { %3776 = vmatpush1.msra.mxu1 %v5536_v60  ;;  %3843 = vmatpush1.msra.mxu0 %v5537_v45  ;;  %v8154_v13 = vld [vmem:[#allocation4 + $0x28] sm:$0xff]  ;;  %v5562_v55 = vld [vmem:[#allocation16 + $0x3e8] sm:$0xff] }
 0x47e   :  { %3777 = vmatprep.subr.mxu1 %v5538_v41  ;;  %3844 = vmatprep.subr.mxu0 %v5539_v49  ;;  %v3726_v16 = vld [vmem:[#allocation4 + $0x28] sm:$0xfe]  ;;  %v5563_v3 = vld [vmem:[#allocation16 + $0x428] sm:$0xff] }
 0x47f   :  { %3778 = vmatpush1.msra.mxu1 %v5540_v14  ;;  %3845 = vmatpush1.msra.mxu0 %v5541_v47  ;;  %v3728_v5 = vld [vmem:[#allocation4 + $0x38] sm:$0x1]  ;;  %v3740_v37 = vrot.slane %v3726_v16, 1  ;;  %v5564_v0 = vld [vmem:[#allocation16 + $0x3e0] sm:$0xff] }
 0x480   :  { %3779 = vmatprep.subr.mxu1 %v5542_v7  ;;  %3846 = vmatprep.subr.mxu0 %v5543_v8  ;;  %v3741_v24 = vrot.slane %v3728_v5, 1  ;;  %v5565_v38 = vld [vmem:[#allocation16 + $0x420] sm:$0xff]  ;;  %v5566_v4 = vld [vmem:[#allocation16 + $0x3c8] sm:$0xff] }
 0x481   :  { %3780 = vmatpush1.msra.mxu1 %v5544_v52  ;;  %3847 = vmatpush1.msra.mxu0 %v5545_v1  ;;  %v5567_v44 = vld [vmem:[#allocation16 + $0x408] sm:$0xff]  ;;  %v5568_v60 = vld [vmem:[#allocation16 + $0x3c0] sm:$0xff] }
 0x482   :  { %3781 = vmatprep.subr.mxu1 %v5546_v22  ;;  %3848 = vmatprep.subr.mxu0 %v5547_v9  ;;  %v8158_v6 = vsel %vm3082_vm2, %v3740_v37, %v3741_v24  ;;  %v5569_v45 = vld [vmem:[#allocation16 + $0x400] sm:$0xff]  ;;  %v5570_v41 = vld [vmem:[#allocation16 + $0x3a8] sm:$0xff] }
 0x483   :  { %3782 = vmatpush1.msra.mxu1 %v5548_v54  ;;  %3849 = vmatpush1.msra.mxu0 %v5549_v42  ;;  %v5571_v49 = vld [vmem:[#allocation16 + $0x7e8] sm:$0xff]  ;;  %v5572_v14 = vld [vmem:[#allocation16 + $0x3a0] sm:$0xff] }
 0x484   :  { %3783 = vmatprep.subr.mxu1 %v5550_v18  ;;  %3850 = vmatprep.subr.mxu0 %v5551_v53  ;;  %v5573_v47 = vld [vmem:[#allocation16 + $0x7e0] sm:$0xff]  ;;  %v5574_v7 = vld [vmem:[#allocation16 + $0x388] sm:$0xff] }
 0x485   :  { %3784 = vmatpush1.msra.mxu1 %v5552_v26  ;;  %3821 = vmatprep.mubr.f32.mxu1 %v8154_v13  ;;  %v5575_v8 = vld [vmem:[#allocation16 + $0x7c8] sm:$0xff]  ;;  %v5576_v52 = vld [vmem:[#allocation16 + $0x380] sm:$0xff] }
 0x486   :  { %3851 = vmatpush1.msra.mxu0 %v5553_v46  ;;  %3785 = vmatprep.subr.mxu1 %v5554_v15  ;;  %v5577_v1 = vld [vmem:[#allocation16 + $0x7c0] sm:$0xff]  ;;  %v5578_v5 = vld [vmem:[#allocation16 + $0x368] sm:$0xff] }
 0x487   :  { %3852 = vmatprep.subr.mxu0 %v5555_v11  ;;  %3786 = vmatpush1.msra.mxu1 %v5556_v2  ;;  %v5579_v22 = vld [vmem:[#allocation16 + $0x7a8] sm:$0xff]  ;;  %v5580_v9 = vld [vmem:[#allocation16 + $0x360] sm:$0xff] }
 0x488   :  { %3853 = vmatpush1.msra.mxu0 %v5557_v25  ;;  %3787 = vmatprep.subr.mxu1 %v5558_v19  ;;  %v5581_v54 = vld [vmem:[#allocation16 + $0x7a0] sm:$0xff]  ;;  %v5582_v42 = vld [vmem:[#allocation16 + $0x348] sm:$0xff] }
 0x489   :  { %3854 = vmatprep.subr.mxu0 %v5559_v62  ;;  %3788 = vmatpush1.msra.mxu1 %v5560_v56  ;;  %v5583_v16 = vld [vmem:[#allocation16 + $0x788] sm:$0xff]  ;;  %v5584_v18 = vld [vmem:[#allocation16 + $0x340] sm:$0xff] }
 0x48a   :  { %3855 = vmatpush1.msra.mxu0 %v5561_v59  ;;  %3789 = vmatprep.subr.mxu1 %v5562_v55  ;;  %v5585_v53 = vld [vmem:[#allocation16 + $0x780] sm:$0xff]  ;;  %v5586_v24 = vld [vmem:[#allocation16 + $0x328] sm:$0xff] }
 0x48b   :  { %3856 = vmatprep.subr.mxu0 %v5563_v3  ;;  %3892 = vmatprep.mubr.f32.mxu0 %v8158_v6  ;;  %v5587_v26 = vld [vmem:[#allocation16 + $0x768] sm:$0xff]  ;;  %v5588_v46 = vld [vmem:[#allocation16 + $0x320] sm:$0xff] }
 0x48c   :  { %3790 = vmatpush2.msra.mxu1 %v5564_v0  ;;  %3857 = vmatpush1.msra.mxu0 %v5565_v38  ;;  %v5589_v15 = vld [vmem:[#allocation16 + $0x760] sm:$0xff]  ;;  %v5590_v37 = vld [vmem:[#allocation16 + $0x308] sm:$0xff] }
 0x48d   :  { %3791 = vmatprep.subr.mxu1 %v5566_v4  ;;  %3858 = vmatprep.subr.mxu0 %v5567_v44  ;;  %v5591_v11 = vld [vmem:[#allocation16 + $0x748] sm:$0xff]  ;;  %v5592_v2 = vld [vmem:[#allocation16 + $0x300] sm:$0xff] }
 0x48e   :  { %3792 = vmatpush2.msra.mxu1 %v5568_v60  ;;  %3859 = vmatpush1.msra.mxu0 %v5569_v45  ;;  %v5593_v25 = vld [vmem:[#allocation16 + $0x740] sm:$0xff]  ;;  %v5594_v19 = vld [vmem:[#allocation16 + $0x2e8] sm:$0xff] }
 0x48f   :  { %3793 = vmatprep.subr.mxu1 %v5570_v41  ;;  %3860 = vmatprep.subr.mxu0 %v5571_v49  ;;  %v5595_v62 = vld [vmem:[#allocation16 + $0x728] sm:$0xff]  ;;  %v5596_v56 = vld [vmem:[#allocation16 + $0x2e0] sm:$0xff] }
 0x490   :  { %3794 = vmatpush2.msra.mxu1 %v5572_v14  ;;  %3861 = vmatpush2.msra.mxu0 %v5573_v47  ;;  %v5597_v59 = vld [vmem:[#allocation16 + $0x720] sm:$0xff]  ;;  %v5598_v55 = vld [vmem:[#allocation16 + $0x2c8] sm:$0xff] }
 0x491   :  { %3795 = vmatprep.subr.mxu1 %v5574_v7  ;;  %3862 = vmatprep.subr.mxu0 %v5575_v8  ;;  %v5599_v3 = vld [vmem:[#allocation16 + $0x708] sm:$0xff]  ;;  %v5600_v0 = vld [vmem:[#allocation16 + $0x2c0] sm:$0xff] }
 0x492   :  { %3796 = vmatpush2.msra.mxu1 %v5576_v52  ;;  %3863 = vmatpush2.msra.mxu0 %v5577_v1  ;;  %v5601_v38 = vld [vmem:[#allocation16 + $0x700] sm:$0xff]  ;;  %v5602_v4 = vld [vmem:[#allocation16 + $0x2a8] sm:$0xff] }
 0x493   :  { %3797 = vmatprep.subr.mxu1 %v5578_v5  ;;  %3864 = vmatprep.subr.mxu0 %v5579_v22  ;;  %v5603_v44 = vld [vmem:[#allocation16 + $0x6e8] sm:$0xff]  ;;  %v5604_v60 = vld [vmem:[#allocation16 + $0x2a0] sm:$0xff] }
 0x494   :  { %3798 = vmatpush2.msra.mxu1 %v5580_v9  ;;  %3865 = vmatpush2.msra.mxu0 %v5581_v54  ;;  %v5605_v45 = vld [vmem:[#allocation16 + $0x6e0] sm:$0xff]  ;;  %v5606_v41 = vld [vmem:[#allocation16 + $0x288] sm:$0xff] }
 0x495   :  { %3799 = vmatprep.subr.mxu1 %v5582_v42  ;;  %3866 = vmatprep.subr.mxu0 %v5583_v16  ;;  %v5607_v49 = vld [vmem:[#allocation16 + $0x6c8] sm:$0xff]  ;;  %v5608_v14 = vld [vmem:[#allocation16 + $0x280] sm:$0xff] }
 0x496   :  { %3800 = vmatpush2.msra.mxu1 %v5584_v18  ;;  %3867 = vmatpush2.msra.mxu0 %v5585_v53  ;;  %v5609_v47 = vld [vmem:[#allocation16 + $0x6c0] sm:$0xff]  ;;  %v5610_v7 = vld [vmem:[#allocation16 + $0x268] sm:$0xff] }
 0x497   :  { %3801 = vmatprep.subr.mxu1 %v5586_v24  ;;  %3868 = vmatprep.subr.mxu0 %v5587_v26  ;;  %v5611_v8 = vld [vmem:[#allocation16 + $0x6a8] sm:$0xff]  ;;  %v5612_v52 = vld [vmem:[#allocation16 + $0x260] sm:$0xff] }
 0x498   :  { %3802 = vmatpush2.msra.mxu1 %v5588_v46  ;;  %3869 = vmatpush2.msra.mxu0 %v5589_v15  ;;  %v5613_v1 = vld [vmem:[#allocation16 + $0x6a0] sm:$0xff]  ;;  %v5614_v5 = vld [vmem:[#allocation16 + $0x248] sm:$0xff] }
 0x499   :  { %3803 = vmatprep.subr.mxu1 %v5590_v37  ;;  %3870 = vmatprep.subr.mxu0 %v5591_v11  ;;  %v5615_v22 = vld [vmem:[#allocation16 + $0x688] sm:$0xff]  ;;  %v5616_v54 = vld [vmem:[#allocation16 + $0x240] sm:$0xff] }
 0x49a   :  { %3804 = vmatpush2.msra.mxu1 %v5592_v2  ;;  %3871 = vmatpush2.msra.mxu0 %v5593_v25  ;;  %v3732_v9 = vld [vmem:[#allocation4 + $0x38] sm:$0x3]  ;;  %v5617_v42 = vld [vmem:[#allocation16 + $0x680] sm:$0xff] }
 0x49b   :  { %3805 = vmatprep.subr.mxu1 %v5594_v19  ;;  %3872 = vmatprep.subr.mxu0 %v5595_v62  ;;  %v5618_v16 = vld [vmem:[#allocation16 + $0x228] sm:$0xff]  ;;  %v3730_v53 = vld [vmem:[#allocation4 + $0x28] sm:$0xfc]  ;;  %v3753_v46 = vrot.slane %v3732_v9, 2  ;;  %v3727_v15 = vld [vmem:[#allocation4 + $0x30] sm:$0x1] }
 0x49c   :  { %3806 = vmatpush2.msra.mxu1 %v5596_v56  ;;  %3873 = vmatpush2.msra.mxu0 %v5597_v59  ;;  %v5619_v18 = vld [vmem:[#allocation16 + $0x668] sm:$0xff]  ;;  %v5620_v24 = vld [vmem:[#allocation16 + $0x220] sm:$0xff]  ;;  %v8161_v19 = vld [vmem:[#allocation4 + $0x20] sm:$0xff]  ;;  %v3752_v62 = vrot.slane %v3730_v53, 2 }
 0x49d   :  { %3807 = vmatprep.subr.mxu1 %v5598_v55  ;;  %3874 = vmatprep.subr.mxu0 %v5599_v3  ;;  %v5621_v26 = vld [vmem:[#allocation16 + $0x660] sm:$0xff]  ;;  %v5622_v37 = vld [vmem:[#allocation16 + $0x208] sm:$0xff]  ;;  %v3725_v56 = vld [vmem:[#allocation4 + $0x20] sm:$0xfe]  ;;  %v3738_v55 = vrot.slane %v3727_v15, 1 }
 0x49e   :  { %3808 = vmatpush2.msra.mxu1 %v5600_v0  ;;  %3875 = vmatpush2.msra.mxu0 %v5601_v38  ;;  %v5623_v11 = vld [vmem:[#allocation16 + $0x648] sm:$0xff]  ;;  %v5624_v2 = vld [vmem:[#allocation16 + $0x200] sm:$0xff]  ;;  %v8165_v38 = vsel %vm3095_vm3, %v3752_v62, %v3753_v46  ;;  %v5641_v9 = vld [vmem:[#allocation16 + $0x1d0] sm:$0xff] }
 0x49f   :  { %3809 = vmatprep.subr.mxu1 %v5602_v4  ;;  %3876 = vmatprep.subr.mxu0 %v5603_v44  ;;  %v5625_v25 = vld [vmem:[#allocation16 + $0x640] sm:$0xff]  ;;  %v5626_v59 = vld [vmem:[#allocation16 + $0x628] sm:$0xff]  ;;  %v3737_v44 = vrot.slane %v3725_v56, 1  ;;  %v5651_v15 = vld [vmem:[#allocation16 + $0x178] sm:$0xff] }
 0x4a0   :  { %3810 = vmatpush2.msra.mxu1 %v5604_v60  ;;  %3877 = vmatpush2.msra.mxu0 %v5605_v45  ;;  %v5627_v3 = vld [vmem:[#allocation16 + $0x9e8] sm:$0xff]  ;;  %v5628_v0 = vld [vmem:[#allocation16 + $0x620] sm:$0xff]  ;;  %v5657_v56 = vld [vmem:[#allocation16 + $0x150] sm:$0xff] }
 0x4a1   :  { %3811 = vmatprep.subr.mxu1 %v5606_v41  ;;  %3878 = vmatprep.subr.mxu0 %v5607_v49  ;;  %v5629_v4 = vld [vmem:[#allocation16 + $0x9e0] sm:$0xff]  ;;  %v5630_v60 = vld [vmem:[#allocation16 + $0x608] sm:$0xff] }
 0x4a2   :  { %3812 = vmatpush2.msra.mxu1 %v5608_v14  ;;  %3879 = vmatpush2.msra.mxu0 %v5609_v47  ;;  %v5631_v45 = vld [vmem:[#allocation16 + $0x9c8] sm:$0xff]  ;;  %v5632_v41 = vld [vmem:[#allocation16 + $0x600] sm:$0xff]  ;;  %v8169_v14 = vsel %vm3082_vm2, %v3737_v44, %v3738_v55  ;;  %v5659_v55 = vld [vmem:[#allocation16 + $0x138] sm:$0xff] }
 0x4a3   :  { %3813 = vmatprep.subr.mxu1 %v5610_v7  ;;  %3880 = vmatprep.subr.mxu0 %v5611_v8  ;;  %v5633_v49 = vld [vmem:[#allocation16 + $0x9c0] sm:$0xff]  ;;  %v5634_v47 = vld [vmem:[#allocation16 + $0x9a8] sm:$0xff]  ;;  %v5635_v7 = vld [vmem:[#allocation16 + $0x1f8] sm:$0xff] }
 0x4a4   :  { %3814 = vmatpush2.msra.mxu1 %v5612_v52  ;;  %3881 = vmatpush2.msra.mxu0 %v5613_v1  ;;  %v5636_v8 = vld [vmem:[#allocation16 + $0x9a0] sm:$0xff]  ;;  %v5637_v52 = vld [vmem:[#allocation16 + $0x1f0] sm:$0xff]  ;;  %v5638_v1 = vld [vmem:[#allocation16 + $0x988] sm:$0xff] }
 0x4a5   :  { %3815 = vmatprep.subr.mxu1 %v5614_v5  ;;  %3882 = vmatprep.subr.mxu0 %v5615_v22  ;;  %v5639_v5 = vld [vmem:[#allocation16 + $0x1d8] sm:$0xff]  ;;  %v5640_v22 = vld [vmem:[#allocation16 + $0x980] sm:$0xff]  ;;  %v5646_v53 = vld [vmem:[#allocation16 + $0x948] sm:$0xff] }
 0x4a6   :  { %3816 = vmatpush2.msra.mxu1 %v5616_v54  ;;  %3883 = vmatpush2.msra.mxu0 %v5617_v42  ;;  %v5642_v54 = vld [vmem:[#allocation16 + $0x968] sm:$0xff]  ;;  %v5643_v42 = vld [vmem:[#allocation16 + $0x1b8] sm:$0xff]  ;;  %v5656_v62 = vld [vmem:[#allocation16 + $0x900] sm:$0xff] }
 0x4a7   :  { %3817 = vmatprep.subr.mxu1 %v5618_v16  ;;  %3884 = vmatprep.subr.mxu0 %v5619_v18  ;;  %v5644_v16 = vld [vmem:[#allocation16 + $0x960] sm:$0xff]  ;;  %v5645_v18 = vld [vmem:[#allocation16 + $0x1b0] sm:$0xff]  ;;  %v5650_v46 = vld [vmem:[#allocation16 + $0x928] sm:$0xff] }
 0x4a8   :  { %3818 = vmatpush2.msra.mxu1 %v5620_v24  ;;  %3885 = vmatpush2.msra.mxu0 %v5621_v26  ;;  %v5647_v24 = vld [vmem:[#allocation16 + $0x198] sm:$0xff]  ;;  %v5649_v26 = vld [vmem:[#allocation16 + $0x190] sm:$0xff] }
 0x4a9   :  { %3819 = vmatprep.subr.mxu1 %v5622_v37  ;;  %3886 = vmatprep.subr.mxu0 %v5623_v11  ;;  %v5652_v37 = vld [vmem:[#allocation16 + $0x920] sm:$0xff]  ;;  %v5653_v11 = vld [vmem:[#allocation16 + $0x170] sm:$0xff]  ;;  %v5663_v44 = vld [vmem:[#allocation16 + $0x118] sm:$0xff] }
 0x4aa   :  { %3820 = vmatpush2.msra.mxu1 %v5624_v2  ;;  %3887 = vmatpush2.msra.mxu0 %v5625_v25  ;;  %v5654_v2 = vld [vmem:[#allocation16 + $0x908] sm:$0xff]  ;;  %v5655_v25 = vld [vmem:[#allocation16 + $0x158] sm:$0xff] }
 0x4ab   :  { %3822 = vmatmul.mubr.f32.vlgmr.msra.gmra.mxu1 %v8161_v19  ;;  %3888 = vmatprep.subr.mxu0 %v5626_v59  ;;  %v5658_v59 = vld [vmem:[#allocation16 + $0x8e8] sm:$0xff] }
 0x4ac   :  { %3899 = vmatprep.subr.mxu1 %v5627_v3  ;;  %3889 = vmatpush2.msra.mxu0 %v5628_v0  ;;  %v5660_v3 = vld [vmem:[#allocation16 + $0x8e0] sm:$0xff]  ;;  %v5661_v0 = vld [vmem:[#allocation16 + $0x130] sm:$0xff] }
 0x4ad   :  { %3900 = vmatpush1.msra.mxu1 %v5629_v4  ;;  %3963 = vmatprep.mubr.f32.mxu1 %v8165_v38  ;;  %v5662_v4 = vld [vmem:[#allocation16 + $0x8c8] sm:$0xff] }
 0x4ae   :  { %3890 = vmatprep.subr.mxu0 %v5630_v60  ;;  %3901 = vmatprep.subr.mxu1 %v5631_v45  ;;  %v5664_v60 = vld [vmem:[#allocation16 + $0x8c0] sm:$0xff]  ;;  %v5665_v45 = vld [vmem:[#allocation16 + $0x110] sm:$0xff] }
 0x4af   :  { %3891 = vmatpush2.msra.mxu0 %v5632_v41  ;;  %3902 = vmatpush1.msra.mxu1 %v5633_v49  ;;  %v5666_v41 = vld [vmem:[#allocation16 + $0x8a8] sm:$0xff]  ;;  %v5667_v49 = vld [vmem:[#allocation16 + $0xf8] sm:$0xff] }
 0x4b0   :  { %3893 = vmatmul.mubr.f32.vlgmr.msra.gmra.mxu0 %v8169_v14  ;;  %3903 = vmatprep.subr.mxu1 %v5634_v47  ;;  %v5668_v47 = vld [vmem:[#allocation16 + $0x8a0] sm:$0xff] }
 0x4b1   :  { %3970 = vmatprep.subr.mxu0 %v5635_v7  ;;  %3904 = vmatpush1.msra.mxu1 %v5636_v8  ;;  %v5669_v7 = vld [vmem:[#allocation16 + $0xf0] sm:$0xff]  ;;  %v5670_v8 = vld [vmem:[#allocation16 + $0x888] sm:$0xff] }
 0x4b2   :  { %3971 = vmatpush1.msra.mxu0 %v5637_v52  ;;  %4034 = vmatprep.mubr.f32.mxu0 %v8154_v13  ;;  %v5648_v13 = vld [vmem:[#allocation16 + $0x940] sm:$0xff]  ;;  %v5671_v52 = vld [vmem:[#allocation16 + $0xd8] sm:$0xff] }
 0x4b3   :  { %3905 = vmatprep.subr.mxu1 %v5638_v1  ;;  %3972 = vmatprep.subr.mxu0 %v5639_v5  ;;  %v5672_v1 = vld [vmem:[#allocation16 + $0x880] sm:$0xff]  ;;  %v5673_v5 = vld [vmem:[#allocation16 + $0xd0] sm:$0xff] }
 0x4b4   :  { %3906 = vmatpush1.msra.mxu1 %v5640_v22  ;;  %3973 = vmatpush1.msra.mxu0 %v5641_v9  ;;  %v5674_v22 = vld [vmem:[#allocation16 + $0x868] sm:$0xff]  ;;  %v5675_v9 = vld [vmem:[#allocation16 + $0xb8] sm:$0xff] }
 0x4b5   :  { %3907 = vmatprep.subr.mxu1 %v5642_v54  ;;  %3974 = vmatprep.subr.mxu0 %v5643_v42  ;;  %v5676_v54 = vld [vmem:[#allocation16 + $0x860] sm:$0xff]  ;;  %v5677_v42 = vld [vmem:[#allocation16 + $0xb0] sm:$0xff] }
 0x4b6   :  { %3908 = vmatpush1.msra.mxu1 %v5644_v16  ;;  %3975 = vmatpush1.msra.mxu0 %v5645_v18  ;;  %v5678_v16 = vld [vmem:[#allocation16 + $0x848] sm:$0xff]  ;;  %v5679_v18 = vld [vmem:[#allocation16 + $0x98] sm:$0xff] }
 0x4b7   :  { %3909 = vmatprep.subr.mxu1 %v5646_v53  ;;  %3976 = vmatprep.subr.mxu0 %v5647_v24  ;;  %v5680_v53 = vld [vmem:[#allocation16 + $0x840] sm:$0xff]  ;;  %v5681_v24 = vld [vmem:[#allocation16 + $0x90] sm:$0xff] }
 0x4b8   :  { %3910 = vmatpush1.msra.mxu1 %v5648_v13  ;;  %3977 = vmatpush1.msra.mxu0 %v5649_v26  ;;  %v5682_v13 = vld [vmem:[#allocation16 + $0x828] sm:$0xff]  ;;  %v5683_v26 = vld [vmem:[#allocation16 + $0x78] sm:$0xff] }
 0x4b9   :  { %3911 = vmatprep.subr.mxu1 %v5650_v46  ;;  %3978 = vmatprep.subr.mxu0 %v5651_v15  ;;  %v5684_v46 = vld [vmem:[#allocation16 + $0x820] sm:$0xff]  ;;  %v5685_v15 = vld [vmem:[#allocation16 + $0x70] sm:$0xff] }
 0x4ba   :  { %3912 = vmatpush1.msra.mxu1 %v5652_v37  ;;  %3979 = vmatpush1.msra.mxu0 %v5653_v11  ;;  %v5686_v37 = vld [vmem:[#allocation16 + $0x808] sm:$0xff]  ;;  %v5687_v11 = vld [vmem:[#allocation16 + $0x58] sm:$0xff] }
 0x4bb   :  { %3913 = vmatprep.subr.mxu1 %v5654_v2  ;;  %3980 = vmatprep.subr.mxu0 %v5655_v25  ;;  %v5688_v2 = vld [vmem:[#allocation16 + $0x800] sm:$0xff]  ;;  %v5689_v25 = vld [vmem:[#allocation16 + $0x50] sm:$0xff] }
 0x4bc   :  { %3914 = vmatpush1.msra.mxu1 %v5656_v62  ;;  %3981 = vmatpush1.msra.mxu0 %v5657_v56  ;;  %v5690_v62 = vld [vmem:[#allocation16 + $0xbe8] sm:$0xff]  ;;  %v5691_v56 = vld [vmem:[#allocation16 + $0x38] sm:$0xff] }
 0x4bd   :  { %3915 = vmatprep.subr.mxu1 %v5658_v59  ;;  %3982 = vmatprep.subr.mxu0 %v5659_v55  ;;  %v5692_v59 = vld [vmem:[#allocation16 + $0xbe0] sm:$0xff]  ;;  %v5693_v55 = vld [vmem:[#allocation16 + $0x30] sm:$0xff] }
 0x4be   :  { %3916 = vmatpush1.msra.mxu1 %v5660_v3  ;;  %3983 = vmatpush1.msra.mxu0 %v5661_v0  ;;  %v5694_v3 = vld [vmem:[#allocation16 + $0xbc8] sm:$0xff]  ;;  %v5695_v0 = vld [vmem:[#allocation16 + $0x18] sm:$0xff] }
 0x4bf   :  { %3917 = vmatprep.subr.mxu1 %v5662_v4  ;;  %3984 = vmatprep.subr.mxu0 %v5663_v44  ;;  %v5696_v4 = vld [vmem:[#allocation16 + $0xbc0] sm:$0xff]  ;;  %v5697_v44 = vld [vmem:[#allocation16 + $0x10] sm:$0xff] }
 0x4c0   :  { %3918 = vmatpush1.msra.mxu1 %v5664_v60  ;;  %3985 = vmatpush1.msra.mxu0 %v5665_v45  ;;  %v5698_v60 = vld [vmem:[#allocation16 + $0xba8] sm:$0xff]  ;;  %v5699_v45 = vld [vmem:[#allocation16 + $0x3f8] sm:$0xff] }
 0x4c1   :  { %3919 = vmatprep.subr.mxu1 %v5666_v41  ;;  %3986 = vmatprep.subr.mxu0 %v5667_v49  ;;  %v5700_v41 = vld [vmem:[#allocation16 + $0xba0] sm:$0xff]  ;;  %v5701_v49 = vld [vmem:[#allocation16 + $0x3f0] sm:$0xff] }
 0x4c2   :  { %3920 = vmatpush1.msra.mxu1 %v5668_v47  ;;  %3987 = vmatpush1.msra.mxu0 %v5669_v7  ;;  %v5702_v47 = vld [vmem:[#allocation16 + $0xb88] sm:$0xff]  ;;  %v5703_v7 = vld [vmem:[#allocation16 + $0x3d8] sm:$0xff] }
 0x4c3   :  { %3921 = vmatprep.subr.mxu1 %v5670_v8  ;;  %3988 = vmatprep.subr.mxu0 %v5671_v52  ;;  %v5704_v8 = vld [vmem:[#allocation16 + $0xb80] sm:$0xff]  ;;  %v5705_v52 = vld [vmem:[#allocation16 + $0x3d0] sm:$0xff] }
 0x4c4   :  { %3922 = vmatpush1.msra.mxu1 %v5672_v1  ;;  %3989 = vmatpush1.msra.mxu0 %v5673_v5  ;;  %v5706_v1 = vld [vmem:[#allocation16 + $0xb68] sm:$0xff]  ;;  %v5707_v5 = vld [vmem:[#allocation16 + $0x3b8] sm:$0xff] }
 0x4c5   :  { %3923 = vmatprep.subr.mxu1 %v5674_v22  ;;  %3990 = vmatprep.subr.mxu0 %v5675_v9  ;;  %v5708_v22 = vld [vmem:[#allocation16 + $0xb60] sm:$0xff]  ;;  %v5709_v9 = vld [vmem:[#allocation16 + $0x3b0] sm:$0xff] }
 0x4c6   :  { %3924 = vmatpush1.msra.mxu1 %v5676_v54  ;;  %3991 = vmatpush1.msra.mxu0 %v5677_v42  ;;  %v5710_v54 = vld [vmem:[#allocation16 + $0xb48] sm:$0xff]  ;;  %v5711_v42 = vld [vmem:[#allocation16 + $0x398] sm:$0xff] }
 0x4c7   :  { %3925 = vmatprep.subr.mxu1 %v5678_v16  ;;  %3992 = vmatprep.subr.mxu0 %v5679_v18  ;;  %v5712_v16 = vld [vmem:[#allocation16 + $0xb40] sm:$0xff]  ;;  %v5713_v18 = vld [vmem:[#allocation16 + $0x390] sm:$0xff] }
 0x4c8   :  { %3926 = vmatpush1.msra.mxu1 %v5680_v53  ;;  %3993 = vmatpush1.msra.mxu0 %v5681_v24  ;;  %v5714_v53 = vld [vmem:[#allocation16 + $0xb28] sm:$0xff]  ;;  %v5715_v24 = vld [vmem:[#allocation16 + $0x378] sm:$0xff] }
 0x4c9   :  { %3927 = vmatprep.subr.mxu1 %v5682_v13  ;;  %3994 = vmatprep.subr.mxu0 %v5683_v26  ;;  %v5716_v13 = vld [vmem:[#allocation16 + $0xb20] sm:$0xff]  ;;  %v5717_v26 = vld [vmem:[#allocation16 + $0x370] sm:$0xff] }
 0x4ca   :  { %3928 = vmatpush1.msra.mxu1 %v5684_v46  ;;  %3995 = vmatpush1.msra.mxu0 %v5685_v15  ;;  %v5718_v46 = vld [vmem:[#allocation16 + $0xb08] sm:$0xff]  ;;  %v5719_v15 = vld [vmem:[#allocation16 + $0x358] sm:$0xff] }
 0x4cb   :  { %3929 = vmatprep.subr.mxu1 %v5686_v37  ;;  %3996 = vmatprep.subr.mxu0 %v5687_v11  ;;  %v5720_v37 = vld [vmem:[#allocation16 + $0xb00] sm:$0xff]  ;;  %v5721_v11 = vld [vmem:[#allocation16 + $0x350] sm:$0xff] }
 0x4cc   :  { %3930 = vmatpush1.msra.mxu1 %v5688_v2  ;;  %3997 = vmatpush1.msra.mxu0 %v5689_v25  ;;  %v8173_v2 = vld [vmem:[#allocation17] sm:$0xf]  ;;  %v5722_v25 = vld [vmem:[#allocation16 + $0xae8] sm:$0xff] }
 0x4cd   :  { %3931 = vmatprep.subr.mxu1 %v5690_v62  ;;  %3998 = vmatprep.subr.mxu0 %v5691_v56  ;;  %v5723_v62 = vld [vmem:[#allocation16 + $0x338] sm:$0xff]  ;;  %v5724_v56 = vld [vmem:[#allocation16 + $0xae0] sm:$0xff] }
 0x4ce   :  { %3932 = vmatpush2.msra.mxu1 %v5692_v59  ;;  %3999 = vmatpush1.msra.mxu0 %v5693_v55  ;;  %v5725_v59 = vld [vmem:[#allocation16 + $0x330] sm:$0xff]  ;;  %v3191_v55 = vpop.f32.mrf.mxu1 }
 0x4cf   :  { %3933 = vmatprep.subr.mxu1 %v5694_v3  ;;  %4000 = vmatprep.subr.mxu0 %v5695_v0  ;;  %v5726_v3 = vld [vmem:[#allocation16 + $0xac8] sm:$0xff]  ;;  %v5727_v0 = vld [vmem:[#allocation16 + $0x318] sm:$0xff] }
 0x4d0   :  { %3934 = vmatpush2.msra.mxu1 %v5696_v4  ;;  %4001 = vmatpush1.msra.mxu0 %v5697_v44  ;;  %v10315_v4 = vld [vmem:[#allocation72_spill] sm:$0xff] }
 0x4d1   :  { %3935 = vmatprep.subr.mxu1 %v5698_v60  ;;  %4002 = vmatprep.subr.mxu0 %v5699_v45  ;;  %v8177_v44 = vrot.slane %v8173_v2, %v10315_v4  ;;  %v5728_v60 = vld [vmem:[#allocation16 + $0xac0] sm:$0xff]  ;;  %v5729_v45 = vld [vmem:[#allocation16 + $0x310] sm:$0xff] }
 0x4d2   :  { %3936 = vmatpush2.msra.mxu1 %v5700_v41  ;;  %4003 = vmatpush2.msra.mxu0 %v5701_v49  ;;  %v3262_v41 = vpop.f32.mrf.mxu0  ;;  %v5730_v49 = vld [vmem:[#allocation16 + $0xaa8] sm:$0xff]  ;;  %v8596_v4 = vld [vmem:[%s9747_s9 + $0x230] sm:$0xff] }
 0x4d3   :  { %3937 = vmatprep.subr.mxu1 %v5702_v47  ;;  %4004 = vmatprep.subr.mxu0 %v5703_v7  ;;  %v5731_v47 = vld [vmem:[#allocation16 + $0x2f8] sm:$0xff]  ;;  %v10316_v7 = vld [vmem:[#allocation73_spill] sm:$0xff]  ;;  %10343 = vst [vmem:[#allocation92_spill] sm:$0xff] %v8596_v4 }
 0x4d4   :  { %3938 = vmatpush2.msra.mxu1 %v5704_v8  ;;  %4005 = vmatpush2.msra.mxu0 %v5705_v52  ;;  %v8181_v8 = vrot.slane %v8173_v2, %v10316_v7  ;;  %v5732_v52 = vld [vmem:[#allocation16 + $0xaa0] sm:$0xff]  ;;  %v8608_v7 = vld [vmem:[%s9747_s9 + $0x228] sm:$0xff] }
 0x4d5   :  { %3939 = vmatprep.subr.mxu1 %v5706_v1  ;;  %4006 = vmatprep.subr.mxu0 %v5707_v5  ;;  %v5733_v1 = vld [vmem:[#allocation16 + $0x2f0] sm:$0xff]  ;;  %v3193_v5 = vpop.f32.mrf.mxu1  ;;  %10344 = vst [vmem:[#allocation93_spill] sm:$0xff] %v8608_v7 }
 0x4d6   :  { %3940 = vmatpush2.msra.mxu1 %v5708_v22  ;;  %4007 = vmatpush2.msra.mxu0 %v5709_v9  ;;  %10317 = vst [vmem:[#allocation63_spill] sm:$0xff] %v8181_v8  ;;  %v5734_v22 = vld [vmem:[#allocation16 + $0xa88] sm:$0xff]  ;;  %v5735_v9 = vld [vmem:[#allocation16 + $0x2d8] sm:$0xff] }
 0x4d7   :  { %3941 = vmatprep.subr.mxu1 %v5710_v54  ;;  %4008 = vmatprep.subr.mxu0 %v5711_v42  ;;  %v3192_v54 = vadd.f32 %v3191_v55, %v8177_v44  ;;  %v5736_v42 = vld [vmem:[#allocation16 + $0xa80] sm:$0xff] }
 0x4d8   :  { %3942 = vmatpush2.msra.mxu1 %v5712_v16  ;;  %4009 = vmatpush2.msra.mxu0 %v5713_v18  ;;  %v5737_v16 = vld [vmem:[#allocation16 + $0x2d0] sm:$0xff]  ;;  %v3264_v18 = vpop.f32.mrf.mxu0  ;;  %v5744_v55 = vld [vmem:[#allocation16 + $0xa40] sm:$0xff] }
 0x4d9   :  { %3943 = vmatprep.subr.mxu1 %v5714_v53  ;;  %4010 = vmatprep.subr.mxu0 %v5715_v24  ;;  %v5738_v53 = vld [vmem:[#allocation16 + $0xa68] sm:$0xff]  ;;  %v5739_v24 = vld [vmem:[#allocation16 + $0x2b8] sm:$0xff] }
 0x4da   :  { %3944 = vmatpush2.msra.mxu1 %v5716_v13  ;;  %4011 = vmatpush2.msra.mxu0 %v5717_v26  ;;  %v3731_v13 = vld [vmem:[#allocation4 + $0x30] sm:$0x3]  ;;  %v3194_v26 = vadd.f32 %v3193_v5, %v8181_v8 }
 0x4db   :  { %3945 = vmatprep.subr.mxu1 %v5718_v46  ;;  %4012 = vmatprep.subr.mxu0 %v5719_v15  ;;  %v3263_v46 = vadd.f32 %v3262_v41, %v3192_v54  ;;  %v5740_v15 = vld [vmem:[#allocation16 + $0xa60] sm:$0xff]  ;;  %v5747_v41 = vld [vmem:[#allocation16 + $0x278] sm:$0xff] }
 0x4dc   :  { %3946 = vmatpush2.msra.mxu1 %v5720_v37  ;;  %4013 = vmatpush2.msra.mxu0 %v5721_v11  ;;  %v5741_v37 = vld [vmem:[#allocation16 + $0x2b0] sm:$0xff]  ;;  %v5742_v11 = vld [vmem:[#allocation16 + $0xa48] sm:$0xff]  ;;  %v5752_v54 = vld [vmem:[#allocation16 + $0xa00] sm:$0xff] }
 0x4dd   :  { %3947 = vmatprep.subr.mxu1 %v5722_v25  ;;  %4014 = vmatprep.subr.mxu0 %v5723_v62  ;;  %v5743_v25 = vld [vmem:[#allocation16 + $0x298] sm:$0xff] }
 0x4de   :  { %3948 = vmatpush2.msra.mxu1 %v5724_v56  ;;  %4015 = vmatpush2.msra.mxu0 %v5725_v59  ;;  %v3729_v56 = vld [vmem:[#allocation4 + $0x20] sm:$0xfc]  ;;  %v3265_v59 = vadd.f32 %v3264_v18, %v3194_v26 }
 0x4df   :  { %3949 = vmatprep.subr.mxu1 %v5726_v3  ;;  %4016 = vmatprep.subr.mxu0 %v5727_v0  ;;  %v5745_v3 = vld [vmem:[#allocation16 + $0x290] sm:$0xff] }
 0x4e0   :  { %3950 = vmatpush2.msra.mxu1 %v5728_v60  ;;  %4017 = vmatpush2.msra.mxu0 %v5729_v45  ;;  %v3750_v60 = vrot.slane %v3731_v13, 2  ;;  %v5746_v45 = vld [vmem:[#allocation16 + $0xa28] sm:$0xff]  ;;  %v5755_v13 = vld [vmem:[#allocation16 + $0x5f8] sm:$0xff]  ;;  %v5756_v26 = vld [vmem:[#allocation16 + $0x230] sm:$0xff] }
 0x4e1   :  { %3951 = vmatprep.subr.mxu1 %v5730_v49  ;;  %4018 = vmatprep.subr.mxu0 %v5731_v47  ;;  %v5748_v47 = vld [vmem:[#allocation16 + $0xa20] sm:$0xff] }
 0x4e2   :  { %3952 = vmatpush2.msra.mxu1 %v5732_v52  ;;  %4019 = vmatpush2.msra.mxu0 %v5733_v1  ;;  %v5749_v52 = vld [vmem:[#allocation16 + $0x270] sm:$0xff]  ;;  %v3749_v1 = vrot.slane %v3729_v56, 2  ;;  %v5759_v56 = vld [vmem:[#allocation16 + $0x5d8] sm:$0xff] }
 0x4e3   :  { %3953 = vmatprep.subr.mxu1 %v5734_v22  ;;  %4020 = vmatprep.subr.mxu0 %v5735_v9  ;;  %v5750_v22 = vld [vmem:[#allocation16 + $0xa08] sm:$0xff]  ;;  %v5751_v9 = vld [vmem:[#allocation16 + $0x258] sm:$0xff] }
 0x4e4   :  { %3954 = vmatpush2.msra.mxu1 %v5736_v42  ;;  %4021 = vmatpush2.msra.mxu0 %v5737_v16  ;;  %v5753_v42 = vld [vmem:[#allocation16 + $0x250] sm:$0xff]  ;;  %v8186_v18 = vsel %vm3095_vm3, %v3749_v1, %v3750_v60 }
 0x4e5   :  { %3955 = vmatprep.subr.mxu1 %v5738_v53  ;;  %4022 = vmatprep.subr.mxu0 %v5739_v24  ;;  %v5754_v24 = vld [vmem:[#allocation16 + $0x238] sm:$0xff] }
 0x4e6   :  { %3956 = vmatpush2.msra.mxu1 %v5740_v15  ;;  %4023 = vmatpush2.msra.mxu0 %v5741_v37  ;;  %v5757_v37 = vld [vmem:[#allocation16 + $0x5f0] sm:$0xff] }
 0x4e7   :  { %3957 = vmatprep.subr.mxu1 %v5742_v11  ;;  %4024 = vmatprep.subr.mxu0 %v5743_v25  ;;  %v3333_v62 = vpop.f32.mrf.mxu1 }
 0x4e8   :  { %3958 = vmatpush2.msra.mxu1 %v5744_v55  ;;  %4025 = vmatpush2.msra.mxu0 %v5745_v3  ;;  %v3334_v0 = vadd.f32 %v3333_v62, %v3263_v46  ;;  %v5758_v62 = vld [vmem:[#allocation16 + $0x218] sm:$0xff]  ;;  %v5761_v55 = vld [vmem:[#allocation16 + $0x5d0] sm:$0xff] }
 0x4e9   :  { %3959 = vmatprep.subr.mxu1 %v5746_v45  ;;  %4026 = vmatprep.subr.mxu0 %v5747_v41  ;;  %v3335_v49 = vpop.f32.mrf.mxu1  ;;  %v5763_v41 = vld [vmem:[#allocation16 + $0x9f8] sm:$0xff] }
 0x4ea   :  { %3960 = vmatpush2.msra.mxu1 %v5748_v47  ;;  %4027 = vmatpush2.msra.mxu0 %v5749_v52  ;;  %v3336_v5 = vadd.f32 %v3335_v49, %v3265_v59  ;;  %v3551_v16 = vmax.f32 %v3334_v0, 0.0  ;;  %v5760_v59 = vld [vmem:[#allocation16 + $0x210] sm:$0xff] }
 0x4eb   :  { %3961 = vmatprep.subr.mxu1 %v5750_v22  ;;  %4028 = vmatprep.subr.mxu0 %v5751_v9  ;;  %v5765_v22 = vld [vmem:[#allocation16 + $0x9f0] sm:$0xff] }
 0x4ec   :  { %3962 = vmatpush2.msra.mxu1 %v5752_v54  ;;  %4029 = vmatpush2.msra.mxu0 %v5753_v42  ;;  %v3552_v53 = vmax.f32 %v3336_v5, 0.0  ;;  %v5764_v5 = vld [vmem:[#allocation16 + $0x5b0] sm:$0xff]  ;;  %v5766_v54 = vld [vmem:[#allocation16 + $0x598] sm:$0xff] }
 0x4ed   :  { %3964 = vmatmul.mubr.f32.vlgmr.msra.gmra.mxu1 %v8186_v18  ;;  %4030 = vmatprep.subr.mxu0 %v5754_v24  ;;  %v5767_v42 = vld [vmem:[#allocation16 + $0x9d8] sm:$0xff] }
 0x4ee   :  { %4041 = vmatprep.subr.mxu1 %v5755_v13  ;;  %4031 = vmatpush2.msra.mxu0 %v5756_v26  ;;  %v3557_v46 = vcombine.low %v3551_v16, %v3552_v53  ;;  %v3641_v15 = vcombine.high %v3551_v16, %v3552_v53  ;;  %v5768_v16 = vld [vmem:[#allocation16 + $0x590] sm:$0xff]  ;;  %v5770_v53 = vld [vmem:[#allocation16 + $0x578] sm:$0xff] }
 0x4ef   :  { %4042 = vmatpush1.msra.mxu1 %v5757_v37  ;;  %4105 = vmatprep.mubr.f32.mxu1 %v8158_v6  ;;  %v5762_v6 = vld [vmem:[#allocation16 + $0x5b8] sm:$0xff]  ;;  %v5772_v13 = vld [vmem:[#allocation16 + $0x570] sm:$0xff] }
 0x4f0   :  { %v3564_v11 = vrot.slane %v3557_v46, %v7579_v58  ;;  %v3648_v25 = vrot.slane %v3641_v15, %v7579_v58  ;;  %4032 = vmatprep.subr.mxu0 %v5758_v62  ;;  %4043 = vmatprep.subr.mxu1 %v5759_v56  ;;  %v5771_v24 = vld [vmem:[#allocation16 + $0x9b8] sm:$0xff]  ;;  %v5773_v26 = vld [vmem:[#allocation16 + $0x9b0] sm:$0xff] }
 0x4f1   :  { %4033 = vmatpush2.msra.mxu0 %v5760_v59  ;;  %4044 = vmatpush1.msra.mxu1 %v5761_v55  ;;  %v5774_v46 = vld [vmem:[#allocation16 + $0x558] sm:$0xff]  ;;  %v5776_v37 = vld [vmem:[#allocation16 + $0x550] sm:$0xff] }
 0x4f2   :  { %v3571_v3 = vrot.slane %v3564_v11, %v7579_v58  ;;  %v3597_v0 = vcombine.high %v3564_v11, %v3564_v11  ;;  %v3655_v60 = vrot.slane %v3648_v25, %v7579_v58  ;;  %v3679_v45 = vcombine.high %v3648_v25, %v3648_v25  ;;  %4035 = vmatmul.mubr.f32.vlgmr.msra.gmra.mxu0 %v8161_v19  ;;  %v5775_v15 = vld [vmem:[#allocation16 + $0x998] sm:$0xff]  ;;  %v5777_v11 = vld [vmem:[#allocation16 + $0x990] sm:$0xff] }
 0x4f3   :  { %4045 = vmatprep.subr.mxu1 %v5762_v6  ;;  %4112 = vmatprep.subr.mxu0 %v5763_v41  ;;  %v5778_v25 = vld [vmem:[#allocation16 + $0x538] sm:$0xff]  ;;  %v5780_v56 = vld [vmem:[#allocation16 + $0x530] sm:$0xff] }
 0x4f4   :  { %3574 = vst.msk [vmem:[#allocation5 + $0x1] ss:$8 sm:$0x3] %vm7583_vm1, %v3571_v3  ;;  %v3604_v49 = vrot.slane %v3597_v0, %v7579_v58  ;;  %v3621_v47 = vcombine.high %v3571_v3, %v3571_v3  ;;  %3658 = vst.msk [vmem:[#allocation5 + $0x11] ss:$8 sm:$0x3] %vm7583_vm1, %v3655_v60  ;;  %v3686_v52 = vrot.slane %v3679_v45, %v7579_v58  ;;  %4046 = vmatpush1.msra.mxu1 %v5764_v5 }
 0x4f5   :  { %v3703_v1 = vcombine.high %v3655_v60, %v3655_v60  ;;  %4113 = vmatpush1.msra.mxu0 %v5765_v22  ;;  %4176 = vmatprep.mubr.f32.mxu0 %v8165_v38  ;;  %v5769_v38 = vld [vmem:[#allocation16 + $0x9d0] sm:$0xff]  ;;  %v5779_v62 = vld [vmem:[#allocation16 + $0x978] sm:$0xff] }
 0x4f6   :  { %3607 = vst.msk [vmem:[#allocation5 + $0x3] ss:$8 sm:$0x3] %vm7583_vm1, %v3604_v49  ;;  %3624 = vst.msk [vmem:[#allocation5 + $0x5] ss:$8 sm:$0x3] %vm7583_vm1, %v3621_v47  ;;  %v3631_v19 = vcombine.high %v3604_v49, %v3604_v49  ;;  %v3713_v9 = vcombine.high %v3686_v52, %v3686_v52  ;;  %4047 = vmatprep.subr.mxu1 %v5766_v54  ;;  %4114 = vmatprep.subr.mxu0 %v5767_v42 }
 0x4f7   :  { %3689 = vst.msk [vmem:[#allocation5 + $0x13] ss:$8 sm:$0x3] %vm7583_vm1, %v3686_v52  ;;  %3706 = vst.msk [vmem:[#allocation5 + $0x15] ss:$8 sm:$0x3] %vm7583_vm1, %v3703_v1  ;;  %4048 = vmatpush1.msra.mxu1 %v5768_v16  ;;  %4115 = vmatpush1.msra.mxu0 %v5769_v38 }
 0x4f8   :  { %3634 = vst.msk [vmem:[#allocation5 + $0x7] ss:$8 sm:$0x3] %vm7583_vm1, %v3631_v19  ;;  %3716 = vst.msk [vmem:[#allocation5 + $0x17] ss:$8 sm:$0x3] %vm7583_vm1, %v3713_v9  ;;  %4049 = vmatprep.subr.mxu1 %v5770_v53  ;;  %4116 = vmatprep.subr.mxu0 %v5771_v24 }
 0x4f9   :  { %4050 = vmatpush1.msra.mxu1 %v5772_v13  ;;  %4117 = vmatpush1.msra.mxu0 %v5773_v26  ;;  %v5781_v59 = vld [vmem:[#allocation16 + $0x970] sm:$0xff]  ;;  %v5782_v55 = vld [vmem:[#allocation16 + $0x518] sm:$0xff] }
 0x4fa   :  { %4051 = vmatprep.subr.mxu1 %v5774_v46  ;;  %4118 = vmatprep.subr.mxu0 %v5775_v15  ;;  %v5783_v3 = vld [vmem:[#allocation16 + $0x958] sm:$0xff]  ;;  %v5784_v0 = vld [vmem:[#allocation16 + $0x510] sm:$0xff] }
 0x4fb   :  { %4052 = vmatpush1.msra.mxu1 %v5776_v37  ;;  %4119 = vmatpush1.msra.mxu0 %v5777_v11  ;;  %v5785_v60 = vld [vmem:[#allocation16 + $0x950] sm:$0xff]  ;;  %v5786_v45 = vld [vmem:[#allocation16 + $0x4f8] sm:$0xff] }
 0x4fc   :  { %4053 = vmatprep.subr.mxu1 %v5778_v25  ;;  %4120 = vmatprep.subr.mxu0 %v5779_v62  ;;  %v5787_v6 = vld [vmem:[#allocation16 + $0x938] sm:$0xff]  ;;  %v5788_v41 = vld [vmem:[#allocation16 + $0x4f0] sm:$0xff] }
 0x4fd   :  { %4054 = vmatpush1.msra.mxu1 %v5780_v56  ;;  %4121 = vmatpush1.msra.mxu0 %v5781_v59  ;;  %v5789_v49 = vld [vmem:[#allocation16 + $0x930] sm:$0xff]  ;;  %v5790_v47 = vld [vmem:[#allocation16 + $0x4d8] sm:$0xff] }
 0x4fe   :  { %4055 = vmatprep.subr.mxu1 %v5782_v55  ;;  %4122 = vmatprep.subr.mxu0 %v5783_v3  ;;  %v5791_v52 = vld [vmem:[#allocation16 + $0x918] sm:$0xff]  ;;  %v5792_v1 = vld [vmem:[#allocation16 + $0x4d0] sm:$0xff] }
 0x4ff   :  { %4056 = vmatpush1.msra.mxu1 %v5784_v0  ;;  %4123 = vmatpush1.msra.mxu0 %v5785_v60  ;;  %v5793_v5 = vld [vmem:[#allocation16 + $0x910] sm:$0xff]  ;;  %v5794_v22 = vld [vmem:[#allocation16 + $0x4b8] sm:$0xff] }
 0x500   :  { %4057 = vmatprep.subr.mxu1 %v5786_v45  ;;  %4124 = vmatprep.subr.mxu0 %v5787_v6  ;;  %v5795_v19 = vld [vmem:[#allocation16 + $0x8f8] sm:$0xff]  ;;  %v5796_v9 = vld [vmem:[#allocation16 + $0x4b0] sm:$0xff] }
 0x501   :  { %4058 = vmatpush1.msra.mxu1 %v5788_v41  ;;  %4125 = vmatpush1.msra.mxu0 %v5789_v49  ;;  %v5797_v54 = vld [vmem:[#allocation16 + $0x8f0] sm:$0xff]  ;;  %v5798_v42 = vld [vmem:[#allocation16 + $0x498] sm:$0xff] }
 0x502   :  { %4059 = vmatprep.subr.mxu1 %v5790_v47  ;;  %4126 = vmatprep.subr.mxu0 %v5791_v52  ;;  %v5799_v16 = vld [vmem:[#allocation16 + $0x8d8] sm:$0xff]  ;;  %v5800_v38 = vld [vmem:[#allocation16 + $0x490] sm:$0xff] }
 0x503   :  { %4060 = vmatpush1.msra.mxu1 %v5792_v1  ;;  %4127 = vmatpush1.msra.mxu0 %v5793_v5  ;;  %v5801_v53 = vld [vmem:[#allocation16 + $0x8d0] sm:$0xff]  ;;  %v5802_v24 = vld [vmem:[#allocation16 + $0x478] sm:$0xff] }
 0x504   :  { %4061 = vmatprep.subr.mxu1 %v5794_v22  ;;  %4128 = vmatprep.subr.mxu0 %v5795_v19  ;;  %v5803_v13 = vld [vmem:[#allocation16 + $0x8b8] sm:$0xff]  ;;  %v5804_v26 = vld [vmem:[#allocation16 + $0x470] sm:$0xff] }
 0x505   :  { %4062 = vmatpush1.msra.mxu1 %v5796_v9  ;;  %4129 = vmatpush1.msra.mxu0 %v5797_v54  ;;  %v5805_v46 = vld [vmem:[#allocation16 + $0x8b0] sm:$0xff]  ;;  %v5806_v15 = vld [vmem:[#allocation16 + $0x458] sm:$0xff] }
 0x506   :  { %4063 = vmatprep.subr.mxu1 %v5798_v42  ;;  %4130 = vmatprep.subr.mxu0 %v5799_v16  ;;  %v5807_v37 = vld [vmem:[#allocation16 + $0x898] sm:$0xff]  ;;  %v5808_v11 = vld [vmem:[#allocation16 + $0x450] sm:$0xff] }
 0x507   :  { %4064 = vmatpush1.msra.mxu1 %v5800_v38  ;;  %4131 = vmatpush1.msra.mxu0 %v5801_v53  ;;  %v5809_v25 = vld [vmem:[#allocation16 + $0x890] sm:$0xff]  ;;  %v5810_v62 = vld [vmem:[#allocation16 + $0x438] sm:$0xff] }
 0x508   :  { %4065 = vmatprep.subr.mxu1 %v5802_v24  ;;  %4132 = vmatprep.subr.mxu0 %v5803_v13  ;;  %v5811_v56 = vld [vmem:[#allocation16 + $0x878] sm:$0xff]  ;;  %v5812_v59 = vld [vmem:[#allocation16 + $0x430] sm:$0xff] }
 0x509   :  { %4066 = vmatpush1.msra.mxu1 %v5804_v26  ;;  %4133 = vmatpush1.msra.mxu0 %v5805_v46  ;;  %v5813_v55 = vld [vmem:[#allocation16 + $0x870] sm:$0xff]  ;;  %v5814_v3 = vld [vmem:[#allocation16 + $0x418] sm:$0xff] }
 0x50a   :  { %4067 = vmatprep.subr.mxu1 %v5806_v15  ;;  %4134 = vmatprep.subr.mxu0 %v5807_v37  ;;  %v5815_v0 = vld [vmem:[#allocation16 + $0x858] sm:$0xff]  ;;  %v5816_v60 = vld [vmem:[#allocation16 + $0x410] sm:$0xff] }
 0x50b   :  { %4068 = vmatpush1.msra.mxu1 %v5808_v11  ;;  %4135 = vmatpush1.msra.mxu0 %v5809_v25  ;;  %v5817_v45 = vld [vmem:[#allocation16 + $0x850] sm:$0xff]  ;;  %v5818_v6 = vld [vmem:[#allocation16 + $0x7f8] sm:$0xff] }
 0x50c   :  { %4069 = vmatprep.subr.mxu1 %v5810_v62  ;;  %4136 = vmatprep.subr.mxu0 %v5811_v56  ;;  %v5819_v41 = vld [vmem:[#allocation16 + $0x838] sm:$0xff]  ;;  %v5820_v49 = vld [vmem:[#allocation16 + $0x7f0] sm:$0xff] }
 0x50d   :  { %4070 = vmatpush1.msra.mxu1 %v5812_v59  ;;  %4137 = vmatpush1.msra.mxu0 %v5813_v55  ;;  %v5821_v47 = vld [vmem:[#allocation16 + $0x830] sm:$0xff]  ;;  %v5822_v52 = vld [vmem:[#allocation16 + $0x7d8] sm:$0xff] }
 0x50e   :  { %4071 = vmatprep.subr.mxu1 %v5814_v3  ;;  %4138 = vmatprep.subr.mxu0 %v5815_v0  ;;  %v5823_v1 = vld [vmem:[#allocation16 + $0x818] sm:$0xff]  ;;  %v5824_v5 = vld [vmem:[#allocation16 + $0x7d0] sm:$0xff] }
 0x50f   :  { %4072 = vmatpush1.msra.mxu1 %v5816_v60  ;;  %4139 = vmatpush1.msra.mxu0 %v5817_v45  ;;  %v5825_v22 = vld [vmem:[#allocation16 + $0x810] sm:$0xff]  ;;  %v5826_v19 = vld [vmem:[#allocation16 + $0x7b8] sm:$0xff] }
 0x510   :  { %4073 = vmatprep.subr.mxu1 %v5818_v6  ;;  %4140 = vmatprep.subr.mxu0 %v5819_v41  ;;  %v5827_v9 = vld [vmem:[#allocation16 + $0xbf8] sm:$0xff]  ;;  %v5828_v54 = vld [vmem:[#allocation16 + $0x7b0] sm:$0xff] }
 0x511   :  { %4074 = vmatpush2.msra.mxu1 %v5820_v49  ;;  %4141 = vmatpush1.msra.mxu0 %v5821_v47  ;;  %v5829_v42 = vld [vmem:[#allocation16 + $0xbf0] sm:$0xff]  ;;  %v5830_v16 = vld [vmem:[#allocation16 + $0x798] sm:$0xff] }
 0x512   :  { %4075 = vmatprep.subr.mxu1 %v5822_v52  ;;  %4142 = vmatprep.subr.mxu0 %v5823_v1  ;;  %v5831_v38 = vld [vmem:[#allocation16 + $0xbd8] sm:$0xff]  ;;  %v5832_v53 = vld [vmem:[#allocation16 + $0x790] sm:$0xff] }
 0x513   :  { %4076 = vmatpush2.msra.mxu1 %v5824_v5  ;;  %4143 = vmatpush1.msra.mxu0 %v5825_v22  ;;  %v5833_v24 = vld [vmem:[#allocation16 + $0xbd0] sm:$0xff]  ;;  %v5834_v13 = vld [vmem:[#allocation16 + $0x778] sm:$0xff] }
 0x514   :  { %4077 = vmatprep.subr.mxu1 %v5826_v19  ;;  %4144 = vmatprep.subr.mxu0 %v5827_v9  ;;  %v5835_v26 = vld [vmem:[#allocation16 + $0xbb8] sm:$0xff]  ;;  %v5836_v46 = vld [vmem:[#allocation16 + $0x770] sm:$0xff] }
 0x515   :  { %4078 = vmatpush2.msra.mxu1 %v5828_v54  ;;  %4145 = vmatpush2.msra.mxu0 %v5829_v42  ;;  %v5837_v15 = vld [vmem:[#allocation16 + $0xbb0] sm:$0xff]  ;;  %v5838_v37 = vld [vmem:[#allocation16 + $0x758] sm:$0xff]  ;;  %v3404_v42 = vpop.f32.mrf.mxu0 }
 0x516   :  { %4079 = vmatprep.subr.mxu1 %v5830_v16  ;;  %4146 = vmatprep.subr.mxu0 %v5831_v38  ;;  %v5839_v11 = vld [vmem:[#allocation16 + $0xb98] sm:$0xff]  ;;  %v5840_v25 = vld [vmem:[#allocation16 + $0x750] sm:$0xff] }
 0x517   :  { %4080 = vmatpush2.msra.mxu1 %v5832_v53  ;;  %4147 = vmatpush2.msra.mxu0 %v5833_v24  ;;  %v5841_v62 = vld [vmem:[#allocation16 + $0xb90] sm:$0xff]  ;;  %v5842_v56 = vld [vmem:[#allocation16 + $0x738] sm:$0xff]  ;;  %v8216_v53 = vrot.slane %v8173_v2, %v10289_v17 }
 0x518   :  { %4081 = vmatprep.subr.mxu1 %v5834_v13  ;;  %4148 = vmatprep.subr.mxu0 %v5835_v26  ;;  %v5843_v59 = vld [vmem:[#allocation16 + $0xb78] sm:$0xff]  ;;  %v5844_v55 = vld [vmem:[#allocation16 + $0x730] sm:$0xff]  ;;  %v8222_v26 = vrot.slane %v8173_v2, %v10295_v29 }
 0x519   :  { %4082 = vmatpush2.msra.mxu1 %v5836_v46  ;;  %4149 = vmatpush2.msra.mxu0 %v5837_v15  ;;  %v5845_v3 = vld [vmem:[#allocation16 + $0xb70] sm:$0xff]  ;;  %v5846_v0 = vld [vmem:[#allocation16 + $0x718] sm:$0xff]  ;;  %10318 = vst [vmem:[#allocation64_spill] sm:$0xff] %v8216_v53  ;;  %v3406_v46 = vpop.f32.mrf.mxu0  ;;  %v3405_v15 = vadd.f32 %v3404_v42, %v8216_v53 }
 0x51a   :  { %4083 = vmatprep.subr.mxu1 %v5838_v37  ;;  %4150 = vmatprep.subr.mxu0 %v5839_v11  ;;  %v5847_v60 = vld [vmem:[#allocation16 + $0xb58] sm:$0xff]  ;;  %v5848_v45 = vld [vmem:[#allocation16 + $0x710] sm:$0xff]  ;;  %10319 = vst [vmem:[#allocation65_spill] sm:$0xff] %v8222_v26  ;;  %v8315_v37 = vld [vmem:[%s9747_s9 + $0xb8] sm:$0xff] }
 0x51b   :  { %4084 = vmatpush2.msra.mxu1 %v5840_v25  ;;  %4151 = vmatpush2.msra.mxu0 %v5841_v62  ;;  %v5849_v6 = vld [vmem:[#allocation16 + $0xb50] sm:$0xff]  ;;  %v5850_v41 = vld [vmem:[#allocation16 + $0x6f8] sm:$0xff]  ;;  %v8322_v11 = vld [vmem:[%s9747_s9 + $0x2d8] sm:$0xff] }
 0x51c   :  { %4085 = vmatprep.subr.mxu1 %v5842_v56  ;;  %4152 = vmatprep.subr.mxu0 %v5843_v59  ;;  %v5851_v49 = vld [vmem:[#allocation16 + $0xb38] sm:$0xff]  ;;  %v5852_v47 = vld [vmem:[#allocation16 + $0x6f0] sm:$0xff]  ;;  %10322 = vst [vmem:[#allocation68_spill] sm:$0xff] %v8322_v11 }
 0x51d   :  { %4086 = vmatpush2.msra.mxu1 %v5844_v55  ;;  %4153 = vmatpush2.msra.mxu0 %v5845_v3  ;;  %v5853_v52 = vld [vmem:[#allocation16 + $0xb30] sm:$0xff]  ;;  %v5854_v1 = vld [vmem:[#allocation16 + $0x6d8] sm:$0xff] }
 0x51e   :  { %4087 = vmatprep.subr.mxu1 %v5846_v0  ;;  %4154 = vmatprep.subr.mxu0 %v5847_v60  ;;  %v5855_v5 = vld [vmem:[#allocation16 + $0xb18] sm:$0xff]  ;;  %v5856_v22 = vld [vmem:[#allocation16 + $0x6d0] sm:$0xff] }
 0x51f   :  { %4088 = vmatpush2.msra.mxu1 %v5848_v45  ;;  %4155 = vmatpush2.msra.mxu0 %v5849_v6  ;;  %v5857_v19 = vld [vmem:[#allocation16 + $0xb10] sm:$0xff]  ;;  %v5858_v9 = vld [vmem:[#allocation16 + $0x6b8] sm:$0xff] }
 0x520   :  { %4089 = vmatprep.subr.mxu1 %v5850_v41  ;;  %4156 = vmatprep.subr.mxu0 %v5851_v49  ;;  %v5859_v54 = vld [vmem:[#allocation16 + $0xaf8] sm:$0xff]  ;;  %v5860_v16 = vld [vmem:[#allocation16 + $0x6b0] sm:$0xff] }
 0x521   :  { %4090 = vmatpush2.msra.mxu1 %v5852_v47  ;;  %4157 = vmatpush2.msra.mxu0 %v5853_v52  ;;  %v5861_v38 = vld [vmem:[#allocation16 + $0xaf0] sm:$0xff]  ;;  %v5862_v24 = vld [vmem:[#allocation16 + $0x698] sm:$0xff] }
 0x522   :  { %4091 = vmatprep.subr.mxu1 %v5854_v1  ;;  %4158 = vmatprep.subr.mxu0 %v5855_v5  ;;  %v5863_v13 = vld [vmem:[#allocation16 + $0xad8] sm:$0xff]  ;;  %v8359_v47 = vld [vmem:[%s9747_s9 + $0xa0] sm:$0xff]  ;;  %v8371_v1 = vld [vmem:[%s9747_s9 + $0x98] sm:$0xff] }
 0x523   :  { %4092 = vmatpush2.msra.mxu1 %v5856_v22  ;;  %4159 = vmatpush2.msra.mxu0 %v5857_v19  ;;  %v8330_v55 = vld [vmem:[%s9747_s9 + $0xb0] sm:$0xff]  ;;  %v8342_v0 = vld [vmem:[%s9747_s9 + $0xa8] sm:$0xff]  ;;  %v8364_v52 = vld [vmem:[%s9747_s9 + $0x2c0] sm:$0xff] }
 0x524   :  { %4093 = vmatprep.subr.mxu1 %v5858_v9  ;;  %4160 = vmatprep.subr.mxu0 %v5859_v54  ;;  %v8335_v3 = vld [vmem:[%s9747_s9 + $0x2d0] sm:$0xff]  ;;  %v8347_v60 = vld [vmem:[%s9747_s9 + $0x2c8] sm:$0xff]  ;;  %10325 = vst [vmem:[#allocation74_spill] sm:$0xff] %v8364_v52  ;;  %v8376_v5 = vld [vmem:[%s9747_s9 + $0x2b8] sm:$0xff] }
 0x525   :  { %4094 = vmatpush2.msra.mxu1 %v5860_v16  ;;  %4161 = vmatpush2.msra.mxu0 %v5861_v38  ;;  %10323 = vst [vmem:[#allocation69_spill] sm:$0xff] %v8335_v3  ;;  %10324 = vst [vmem:[#allocation70_spill] sm:$0xff] %v8347_v60  ;;  %v8391_v9 = vld [vmem:[%s9747_s9 + $0x90] sm:$0xff]  ;;  %v8403_v42 = vld [vmem:[%s9747_s9 + $0x88] sm:$0xff] }
 0x526   :  { %4095 = vmatprep.subr.mxu1 %v5862_v24  ;;  %4162 = vmatprep.subr.mxu0 %v5863_v13  ;;  %10326 = vst [vmem:[#allocation75_spill] sm:$0xff] %v8376_v5  ;;  %v8396_v54 = vld [vmem:[%s9747_s9 + $0x2b0] sm:$0xff]  ;;  %v8408_v16 = vld [vmem:[%s9747_s9 + $0x2a8] sm:$0xff]  ;;  %v8419_v38 = vld [vmem:[%s9747_s9 + $0x80] sm:$0xff] }
 0x527   :  { %4096 = vmatpush2.msra.mxu1 %v8073_v34  ;;  %4163 = vmatpush2.msra.mxu0 %v8075_v61  ;;  %v3407_v34 = vadd.f32 %v3406_v46, %v8222_v26  ;;  %10327 = vst [vmem:[#allocation76_spill] sm:$0xff] %v8396_v54  ;;  %10328 = vst [vmem:[#allocation77_spill] sm:$0xff] %v8408_v16  ;;  %v8424_v24 = vld [vmem:[%s9747_s9 + $0x2a0] sm:$0xff]  ;;  %v8431_v13 = vld [vmem:[%s9747_s9 + $0x78] sm:$0xff] }
 0x528   :  { %4097 = vmatprep.subr.mxu1 %v8077_v40  ;;  %4164 = vmatprep.subr.mxu0 %v8079_v57  ;;  %v8243_v57 = vld [vmem:[%s9747_s9 + $0xf8] sm:$0xff]  ;;  %10329 = vst [vmem:[#allocation78_spill] sm:$0xff] %v8424_v24  ;;  %v8601_v26 = vld [vmem:[%s9747_s9 + $0x8] sm:$0xff] }
 0x529   :  { %4098 = vmatpush2.msra.mxu1 %v8081_v23  ;;  %4165 = vmatpush2.msra.mxu0 %v8083_v48  ;;  %v3475_v17 = vpop.f32.mrf.mxu1  ;;  %v8436_v46 = vld [vmem:[%s9747_s9 + $0x298] sm:$0xff] }
 0x52a   :  { %4099 = vmatprep.subr.mxu1 %v8087_v51  ;;  %4166 = vmatprep.subr.mxu0 %v8089_v50  ;;  %v3476_v61 = vadd.f32 %v3475_v17, %v3405_v15  ;;  %v8250_v51 = vld [vmem:[%s9747_s9 + $0xf0] sm:$0xff]  ;;  %10330 = vst [vmem:[#allocation79_spill] sm:$0xff] %v8436_v46 }
 0x52b   :  { %4100 = vmatpush2.msra.mxu1 %v8093_v27  ;;  %4167 = vmatpush2.msra.mxu0 %v8095_v63  ;;  %v3477_v29 = vpop.f32.mrf.mxu1  ;;  %v8257_v27 = vld [vmem:[%s9747_s9 + $0xe8] sm:$0xff]  ;;  %v8443_v17 = vld [vmem:[%s9747_s9 + $0x70] sm:$0xff] }
 0x52c   :  { %4101 = vmatprep.subr.mxu1 %v8099_v28  ;;  %4168 = vmatprep.subr.mxu0 %v8101_v32  ;;  %v3478_v23 = vadd.f32 %v3477_v29, %v3407_v34  ;;  %v8264_v28 = vld [vmem:[%s9747_s9 + $0xe0] sm:$0xff]  ;;  %v8448_v15 = vld [vmem:[%s9747_s9 + $0x290] sm:$0xff]  ;;  %v8455_v29 = vld [vmem:[%s9747_s9 + $0x68] sm:$0xff] }
 0x52d   :  { %4102 = vmatpush2.msra.mxu1 %v8105_v33  ;;  %4169 = vmatpush2.msra.mxu0 %v8107_v35  ;;  %v3546_v40 = vpop.f32.mrf.mxu0  ;;  %v8271_v33 = vld [vmem:[%s9747_s9 + $0xd8] sm:$0xff]  ;;  %10331 = vst [vmem:[#allocation80_spill] sm:$0xff] %v8448_v15  ;;  %v8460_v34 = vld [vmem:[%s9747_s9 + $0x288] sm:$0xff] }
 0x52e   :  { %4103 = vmatprep.subr.mxu1 %v8112_v39  ;;  %4170 = vmatprep.subr.mxu0 %v8114_v21  ;;  %v3547_v48 = vadd.f32 %v3546_v40, %v3476_v61  ;;  %v4451_v35 = vld [vmem:[%s9747_s9 + $0x2f8] sm:$0xff]  ;;  %v8281_v21 = vld [vmem:[%s9747_s9 + $0xd0] sm:$0xff]  ;;  %10332 = vst [vmem:[#allocation81_spill] sm:$0xff] %v8460_v34  ;;  %v8467_v61 = vld [vmem:[%s9747_s9 + $0x60] sm:$0xff] }
 0x52f   :  { %4104 = vmatpush2.msra.mxu1 %v8118_v10  ;;  %4171 = vmatpush2.msra.mxu0 %v8120_v36  ;;  %v3548_v50 = vpop.f32.mrf.mxu0  ;;  %v4450_v10 = vld [vmem:[%s9747_s9 + $0x2f0] sm:$0xff]  ;;  %v8472_v40 = vld [vmem:[%s9747_s9 + $0x280] sm:$0xff] }
 0x530   :  { %4106 = vmatmul.mubr.f32.vlgmr.msra.gmra.mxu1 %v8169_v14  ;;  %4172 = vmatprep.subr.mxu0 %v8125_v30  ;;  %v3549_v63 = vadd.f32 %v3548_v50, %v3478_v23  ;;  %v3553_v32 = vmax.f32 %v3547_v48, 0.0  ;;  %10333 = vst [vmem:[#allocation82_spill] sm:$0xff] %v8472_v40  ;;  %v8479_v23 = vld [vmem:[%s9747_s9 + $0x58] sm:$0xff]  ;;  %v8491_v50 = vld [vmem:[%s9747_s9 + $0x50] sm:$0xff] }
 0x531   :  { %4610 = vmatprep.subr.mxu1 %v8243_v57  ;;  %4173 = vmatpush2.msra.mxu0 %v8129_v12  ;;  %v8291_v12 = vld [vmem:[%s9747_s9 + $0xc8] sm:$0xff]  ;;  %v8484_v48 = vld [vmem:[%s9747_s9 + $0x278] sm:$0xff] }
 0x532   :  { %4611 = vmatpush1.msra.mxu1 %v8250_v51  ;;  %4174 = vmatprep.subr.mxu0 %v8133_v31  ;;  %v3554_v39 = vmax.f32 %v3549_v63, 0.0  ;;  %v8296_v31 = vld [vmem:[%s9747_s9 + $0x2e8] sm:$0xff]  ;;  %10334 = vst [vmem:[#allocation83_spill] sm:$0xff] %v8484_v48  ;;  %v8496_v63 = vld [vmem:[%s9747_s9 + $0x270] sm:$0xff] }
 0x533   :  { %4612 = vmatprep.subr.mxu1 %v8257_v27  ;;  %4175 = vmatpush2.msra.mxu0 %v8137_v20  ;;  %10320 = vst [vmem:[#allocation66_spill] sm:$0xff] %v8296_v31  ;;  %v8302_v20 = vld [vmem:[%s9747_s9 + $0xc0] sm:$0xff]  ;;  %10335 = vst [vmem:[#allocation84_spill] sm:$0xff] %v8496_v63 }
 0x534   :  { %4613 = vmatpush1.msra.mxu1 %v8264_v28  ;;  %4177 = vmatmul.mubr.f32.vlgmr.msra.gmra.mxu0 %v8186_v18  ;;  %v3578_v36 = vcombine.low %v3553_v32, %v3554_v39  ;;  %v3660_v30 = vcombine.high %v3553_v32, %v3554_v39  ;;  %v8310_v18 = vld [vmem:[%s9747_s9 + $0x2e0] sm:$0xff]  ;;  %v8503_v32 = vld [vmem:[%s9747_s9 + $0x48] sm:$0xff] }
 0x535   :  { %4614 = vmatprep.subr.mxu1 %v8271_v33  ;;  %4687 = vmatprep.subr.mxu0 %v4451_v35  ;;  %10321 = vst [vmem:[#allocation67_spill] sm:$0xff] %v8310_v18  ;;  %v8508_v35 = vld [vmem:[%s9747_s9 + $0x268] sm:$0xff]  ;;  %v8515_v39 = vld [vmem:[%s9747_s9 + $0x40] sm:$0xff] }
 0x536   :  { %4615 = vmatpush1.msra.mxu1 %v8281_v21  ;;  %4688 = vmatpush1.msra.mxu0 %v4450_v10  ;;  %v3585_v14 = vrot.slane %v3578_v36, %v7579_v58  ;;  %v3667_v2 = vrot.slane %v3660_v30, %v7579_v58  ;;  %10336 = vst [vmem:[#allocation85_spill] sm:$0xff] %v8508_v35  ;;  %v8520_v10 = vld [vmem:[%s9747_s9 + $0x260] sm:$0xff]  ;;  %v8527_v36 = vld [vmem:[%s9747_s9 + $0x38] sm:$0xff] }
 0x537   :  { %4616 = vmatprep.subr.mxu1 %v8291_v12  ;;  %4689 = vmatprep.subr.mxu0 %v8296_v31  ;;  %10337 = vst [vmem:[#allocation86_spill] sm:$0xff] %v8520_v10  ;;  %v8532_v30 = vld [vmem:[%s9747_s9 + $0x258] sm:$0xff]  ;;  %v8905_v31 = vld [vmem:[%s9747_s9 + $0x140] sm:$0xff] }
 0x538   :  { %v3592_v25 = vrot.slane %v3585_v14, %v7579_v58  ;;  %v3609_v62 = vcombine.high %v3585_v14, %v3585_v14  ;;  %v3674_v56 = vrot.slane %v3667_v2, %v7579_v58  ;;  %v3691_v59 = vcombine.high %v3667_v2, %v3667_v2  ;;  %4617 = vmatpush1.msra.mxu1 %v8302_v20  ;;  %v8539_v14 = vld [vmem:[%s9747_s9 + $0x30] sm:$0xff] }
 0x539   :  { %4690 = vmatpush1.msra.mxu0 %v8310_v18  ;;  %4618 = vmatprep.subr.mxu1 %v8315_v37  ;;  %10338 = vst [vmem:[#allocation87_spill] sm:$0xff] %v8532_v30  ;;  %v8544_v2 = vld [vmem:[%s9747_s9 + $0x250] sm:$0xff]  ;;  %v8893_v18 = vld [vmem:[%s9747_s9 + $0x148] sm:$0xff]  ;;  %10379 = vst [vmem:[#allocation127_spill] sm:$0xff] %v8905_v31 }
 0x53a   :  { %3595 = vst.msk [vmem:[#allocation5 + $0x2] ss:$8 sm:$0x3] %vm7583_vm1, %v3592_v25  ;;  %v3616_v45 = vrot.slane %v3609_v62, %v7579_v58  ;;  %v3626_v6 = vcombine.high %v3592_v25, %v3592_v25  ;;  %3677 = vst.msk [vmem:[#allocation5 + $0x12] ss:$8 sm:$0x3] %vm7583_vm1, %v3674_v56  ;;  %v3698_v41 = vrot.slane %v3691_v59, %v7579_v58  ;;  %4691 = vmatprep.subr.mxu0 %v8322_v11 }
 0x53b   :  { %v3708_v49 = vcombine.high %v3674_v56, %v3674_v56  ;;  %4619 = vmatpush1.msra.mxu1 %v8330_v55  ;;  %4692 = vmatpush1.msra.mxu0 %v8335_v3  ;;  %10339 = vst [vmem:[#allocation88_spill] sm:$0xff] %v8544_v2  ;;  %v8551_v25 = vld [vmem:[%s9747_s9 + $0x28] sm:$0xff]  ;;  %v8565_v59 = vld [vmem:[%s9747_s9 + $0x20] sm:$0xff]  ;;  %v8881_v11 = vld [vmem:[%s9747_s9 + $0x150] sm:$0xff] }
 0x53c   :  { %3619 = vst.msk [vmem:[#allocation5 + $0x4] ss:$8 sm:$0x3] %vm7583_vm1, %v3616_v45  ;;  %3629 = vst.msk [vmem:[#allocation5 + $0x6] ss:$8 sm:$0x3] %vm7583_vm1, %v3626_v6  ;;  %v3636_v22 = vcombine.high %v3616_v45, %v3616_v45  ;;  %v3718_v19 = vcombine.high %v3698_v41, %v3698_v41  ;;  %4620 = vmatprep.subr.mxu1 %v8342_v0  ;;  %4693 = vmatprep.subr.mxu0 %v8347_v60 }
 0x53d   :  { %3701 = vst.msk [vmem:[#allocation5 + $0x14] ss:$8 sm:$0x3] %vm7583_vm1, %v3698_v41  ;;  %3711 = vst.msk [vmem:[#allocation5 + $0x16] ss:$8 sm:$0x3] %vm7583_vm1, %v3708_v49  ;;  %4621 = vmatpush1.msra.mxu1 %v8359_v47  ;;  %4694 = vmatpush1.msra.mxu0 %v8364_v52 }
 0x53e   :  { %3639 = vst.msk [vmem:[#allocation5 + $0x10] ss:$8 sm:$0x3] %vm7583_vm1, %v3636_v22  ;;  %3721 = vst.msk [vmem:[#allocation5 + $0x20] ss:$8 sm:$0x3] %vm7583_vm1, %v3718_v19  ;;  %4622 = vmatprep.subr.mxu1 %v8371_v1  ;;  %4695 = vmatprep.subr.mxu0 %v8376_v5 }
 0x53f   :  { %4623 = vmatpush1.msra.mxu1 %v8391_v9  ;;  %4696 = vmatpush1.msra.mxu0 %v8396_v54  ;;  %v8556_v62 = vld [vmem:[%s9747_s9 + $0x248] sm:$0xff]  ;;  %v8572_v6 = vld [vmem:[%s9747_s9 + $0x240] sm:$0xff]  ;;  %v8577_v41 = vld [vmem:[%s9747_s9 + $0x18] sm:$0xff]  ;;  %10375 = vst [vmem:[#allocation123_spill] sm:$0xff] %v8881_v11 }
 0x540   :  { %4624 = vmatprep.subr.mxu1 %v8403_v42  ;;  %4697 = vmatprep.subr.mxu0 %v8408_v16  ;;  %10340 = vst [vmem:[#allocation89_spill] sm:$0xff] %v8556_v62  ;;  %10341 = vst [vmem:[#allocation90_spill] sm:$0xff] %v8572_v6  ;;  %v8584_v22 = vld [vmem:[%s9747_s9 + $0x238] sm:$0xff]  ;;  %v8589_v19 = vld [vmem:[%s9747_s9 + $0x10] sm:$0xff] }
 0x541   :  { %4625 = vmatpush1.msra.mxu1 %v8419_v38  ;;  %4698 = vmatpush1.msra.mxu0 %v8424_v24  ;;  %10342 = vst [vmem:[#allocation91_spill] sm:$0xff] %v8584_v22  ;;  %v8785_v24 = vld [vmem:[%s9747_s9 + $0x190] sm:$0xff]  ;;  %v8797_v16 = vld [vmem:[%s9747_s9 + $0x188] sm:$0xff]  ;;  %v8809_v54 = vld [vmem:[%s9747_s9 + $0x180] sm:$0xff] }
 0x542   :  { %4626 = vmatprep.subr.mxu1 %v8431_v13  ;;  %4699 = vmatprep.subr.mxu0 %v8436_v46  ;;  %v8773_v46 = vld [vmem:[%s9747_s9 + $0x198] sm:$0xff]  ;;  %10361 = vst [vmem:[#allocation109_spill] sm:$0xff] %v8797_v16  ;;  %10363 = vst [vmem:[#allocation111_spill] sm:$0xff] %v8809_v54  ;;  %v8833_v52 = vld [vmem:[%s9747_s9 + $0x170] sm:$0xff] }
 0x543   :  { %4627 = vmatpush1.msra.mxu1 %v8443_v17  ;;  %4700 = vmatpush1.msra.mxu0 %v8448_v15  ;;  %v4550_v45 = vld [vmem:[#allocation5 + $0x8] sm:$0xff]  ;;  %v8761_v15 = vld [vmem:[%s9747_s9 + $0x1a0] sm:$0xff]  ;;  %v8821_v5 = vld [vmem:[%s9747_s9 + $0x178] sm:$0xff]  ;;  %10367 = vst [vmem:[#allocation115_spill] sm:$0xff] %v8833_v52 }
 0x544   :  { %4628 = vmatprep.subr.mxu1 %v8455_v29  ;;  %4701 = vmatprep.subr.mxu0 %v8460_v34  ;;  %v4554_v49 = vld [vmem:[#allocation5 + $0x8] sm:$0xfe]  ;;  %v8749_v34 = vld [vmem:[%s9747_s9 + $0x1a8] sm:$0xff]  ;;  %10365 = vst [vmem:[#allocation113_spill] sm:$0xff] %v8821_v5  ;;  %v8857_v3 = vld [vmem:[%s9747_s9 + $0x160] sm:$0xff] }
 0x545   :  { %4629 = vmatpush1.msra.mxu1 %v8467_v61  ;;  %4702 = vmatpush1.msra.mxu0 %v8472_v40  ;;  %v8558_v56 = vld [vmem:[#allocation5 + $0x18] sm:$0xff]  ;;  %v4570_v53 = vrot.slane %v4554_v49, 1  ;;  %v8632_v49 = vld [vmem:[%s9747_s9 + $0x218] sm:$0xff]  ;;  %v8737_v40 = vld [vmem:[%s9747_s9 + $0x1b0] sm:$0xff]  ;;  %10371 = vst [vmem:[#allocation119_spill] sm:$0xff] %v8857_v3 }
 0x546   :  { %4630 = vmatprep.subr.mxu1 %v8479_v23  ;;  %4703 = vmatprep.subr.mxu0 %v8484_v48  ;;  %10346 = vst [vmem:[#allocation95_spill] sm:$0xff] %v8632_v49  ;;  %v8725_v48 = vld [vmem:[%s9747_s9 + $0x1b8] sm:$0xff]  ;;  %v8845_v60 = vld [vmem:[%s9747_s9 + $0x168] sm:$0xff]  ;;  %10377 = vst [vmem:[#allocation125_spill] sm:$0xff] %v8893_v18 }
 0x547   :  { %4631 = vmatpush1.msra.mxu1 %v8491_v50  ;;  %4704 = vmatpush1.msra.mxu0 %v8496_v63  ;;  %v8713_v63 = vld [vmem:[%s9747_s9 + $0x1c0] sm:$0xff]  ;;  %10369 = vst [vmem:[#allocation117_spill] sm:$0xff] %v8845_v60  ;;  %v8917_v58 = vld [vmem:[%s9747_s9 + $0x138] sm:$0xff]  ;;  %v4555_v8 = vld [vmem:[#allocation5 + $0x20] sm:$0x1] }
 0x548   :  { %4632 = vmatprep.subr.mxu1 %v8503_v32  ;;  %4705 = vmatprep.subr.mxu0 %v8508_v35  ;;  %v8701_v35 = vld [vmem:[%s9747_s9 + $0x1c8] sm:$0xff]  ;;  %10381 = vst [vmem:[#allocation129_spill] sm:$0xff] %v8917_v58 }
 0x549   :  { %4633 = vmatpush1.msra.mxu1 %v8515_v39  ;;  %4706 = vmatpush1.msra.mxu0 %v8520_v10  ;;  %v8677_v10 = vld [vmem:[%s9747_s9 + $0x1d8] sm:$0xff] }
 0x54a   :  { %4634 = vmatprep.subr.mxu1 %v8527_v36  ;;  %4707 = vmatprep.subr.mxu0 %v8532_v30  ;;  %v8642_v30 = vld [vmem:[%s9747_s9 + $0x1f0] sm:$0xff] }
 0x54b   :  { %4635 = vmatpush1.msra.mxu1 %v8539_v14  ;;  %4708 = vmatpush1.msra.mxu0 %v8544_v2 }
 0x54c   :  { %4636 = vmatprep.subr.mxu1 %v8551_v25  ;;  %4709 = vmatprep.subr.mxu0 %v8556_v62  ;;  %v8625_v62 = vld [vmem:[%s9747_s9 + $0x1f8] sm:$0xff] }
 0x54d   :  { %4637 = vmatpush1.msra.mxu1 %v8565_v59  ;;  %4674 = vmatprep.mubr.f32.mxu1 %v4550_v45  ;;  %v8613_v45 = vld [vmem:[%s9747_s9] sm:$0xff] }
 0x54e   :  { %4710 = vmatpush1.msra.mxu0 %v8572_v6  ;;  %4638 = vmatprep.subr.mxu1 %v8577_v41  ;;  %v8620_v6 = vld [vmem:[%s9747_s9 + $0x220] sm:$0xff] }
 0x54f   :  { %4711 = vmatprep.subr.mxu0 %v8584_v22  ;;  %4639 = vmatpush1.msra.mxu1 %v8589_v19  ;;  %10345 = vst [vmem:[#allocation94_spill] sm:$0xff] %v8620_v6  ;;  %v10347_v22 = vrot.slane %v8558_v56, 1 }
 0x550   :  { %4712 = vmatpush1.msra.mxu0 %v8596_v4  ;;  %4640 = vmatprep.subr.mxu1 %v8601_v26  ;;  %v8647_v4 = vld [vmem:[%s9747_s9 + $0x210] sm:$0xff] }
 0x551   :  { %v4572_v2 = vsel %vm3082_vm2, %v4570_v53, %v10347_v22  ;;  %4713 = vmatprep.subr.mxu0 %v8608_v7  ;;  %4641 = vmatpush1.msra.mxu1 %v8613_v45  ;;  %10348 = vst [vmem:[#allocation96_spill] sm:$0xff] %v8647_v4  ;;  %v8654_v53 = vld [vmem:[%s9747_s9 + $0x1e8] sm:$0xff]  ;;  %v8665_v7 = vld [vmem:[%s9747_s9 + $0x1e0] sm:$0xff] }
 0x552   :  { %4714 = vmatpush1.msra.mxu0 %v8620_v6  ;;  %4642 = vmatprep.subr.mxu1 %v8625_v62  ;;  %v8659_v22 = vld [vmem:[%s9747_s9 + $0x208] sm:$0xff]  ;;  %v8670_v6 = vld [vmem:[%s9747_s9 + $0x200] sm:$0xff] }
 0x553   :  { %10349 = vst [vmem:[#allocation97_spill] sm:$0xff] %v8659_v22  ;;  %4715 = vmatprep.subr.mxu0 %v8632_v49  ;;  %4751 = vmatprep.mubr.f32.mxu0 %v4572_v2  ;;  %10350 = vst [vmem:[#allocation98_spill] sm:$0xff] %v8670_v6  ;;  %v8682_v2 = vld [vmem:[%s9747_s9 + $0x3f8] sm:$0xff]  ;;  %v8689_v49 = vld [vmem:[%s9747_s9 + $0x1d0] sm:$0xff] }
 0x554   :  { %4643 = vmatpush2.msra.mxu1 %v8642_v30  ;;  %4716 = vmatpush1.msra.mxu0 %v8647_v4  ;;  %10351 = vst [vmem:[#allocation99_spill] sm:$0xff] %v8682_v2  ;;  %v8694_v4 = vld [vmem:[%s9747_s9 + $0x3f0] sm:$0xff] }
 0x555   :  { %4644 = vmatprep.subr.mxu1 %v8654_v53  ;;  %4717 = vmatprep.subr.mxu0 %v8659_v22  ;;  %10352 = vst [vmem:[#allocation100_spill] sm:$0xff] %v8694_v4  ;;  %v8706_v22 = vld [vmem:[%s9747_s9 + $0x3e8] sm:$0xff] }
 0x556   :  { %4645 = vmatpush2.msra.mxu1 %v8665_v7  ;;  %4718 = vmatpush1.msra.mxu0 %v8670_v6  ;;  %10353 = vst [vmem:[#allocation101_spill] sm:$0xff] %v8706_v22  ;;  %v8718_v6 = vld [vmem:[%s9747_s9 + $0x3e0] sm:$0xff] }
 0x557   :  { %4646 = vmatprep.subr.mxu1 %v8677_v10  ;;  %4719 = vmatprep.subr.mxu0 %v8682_v2  ;;  %10354 = vst [vmem:[#allocation102_spill] sm:$0xff] %v8718_v6  ;;  %v8730_v2 = vld [vmem:[%s9747_s9 + $0x3d8] sm:$0xff] }
 0x558   :  { %4647 = vmatpush2.msra.mxu1 %v8689_v49  ;;  %4720 = vmatpush2.msra.mxu0 %v8694_v4  ;;  %10355 = vst [vmem:[#allocation103_spill] sm:$0xff] %v8730_v2  ;;  %v8742_v4 = vld [vmem:[%s9747_s9 + $0x3d0] sm:$0xff] }
 0x559   :  { %4648 = vmatprep.subr.mxu1 %v8701_v35  ;;  %4721 = vmatprep.subr.mxu0 %v8706_v22  ;;  %10356 = vst [vmem:[#allocation104_spill] sm:$0xff] %v8742_v4  ;;  %v8754_v22 = vld [vmem:[%s9747_s9 + $0x3c8] sm:$0xff] }
 0x55a   :  { %4649 = vmatpush2.msra.mxu1 %v8713_v63  ;;  %4722 = vmatpush2.msra.mxu0 %v8718_v6  ;;  %10357 = vst [vmem:[#allocation105_spill] sm:$0xff] %v8754_v22  ;;  %v8766_v6 = vld [vmem:[%s9747_s9 + $0x3c0] sm:$0xff] }
 0x55b   :  { %4650 = vmatprep.subr.mxu1 %v8725_v48  ;;  %4723 = vmatprep.subr.mxu0 %v8730_v2  ;;  %10358 = vst [vmem:[#allocation106_spill] sm:$0xff] %v8766_v6  ;;  %v8778_v2 = vld [vmem:[%s9747_s9 + $0x3b8] sm:$0xff] }
 0x55c   :  { %4651 = vmatpush2.msra.mxu1 %v8737_v40  ;;  %4724 = vmatpush2.msra.mxu0 %v8742_v4  ;;  %10359 = vst [vmem:[#allocation107_spill] sm:$0xff] %v8778_v2  ;;  %v8790_v4 = vld [vmem:[%s9747_s9 + $0x3b0] sm:$0xff] }
 0x55d   :  { %4652 = vmatprep.subr.mxu1 %v8749_v34  ;;  %4725 = vmatprep.subr.mxu0 %v8754_v22  ;;  %10360 = vst [vmem:[#allocation108_spill] sm:$0xff] %v8790_v4  ;;  %v8802_v22 = vld [vmem:[%s9747_s9 + $0x3a8] sm:$0xff] }
 0x55e   :  { %4653 = vmatpush2.msra.mxu1 %v8761_v15  ;;  %4726 = vmatpush2.msra.mxu0 %v8766_v6  ;;  %10362 = vst [vmem:[#allocation110_spill] sm:$0xff] %v8802_v22  ;;  %v8814_v6 = vld [vmem:[%s9747_s9 + $0x3a0] sm:$0xff] }
 0x55f   :  { %4654 = vmatprep.subr.mxu1 %v8773_v46  ;;  %4727 = vmatprep.subr.mxu0 %v8778_v2  ;;  %10364 = vst [vmem:[#allocation112_spill] sm:$0xff] %v8814_v6  ;;  %v8826_v2 = vld [vmem:[%s9747_s9 + $0x398] sm:$0xff] }
 0x560   :  { %4655 = vmatpush2.msra.mxu1 %v8785_v24  ;;  %4728 = vmatpush2.msra.mxu0 %v8790_v4  ;;  %10366 = vst [vmem:[#allocation114_spill] sm:$0xff] %v8826_v2  ;;  %v8838_v4 = vld [vmem:[%s9747_s9 + $0x390] sm:$0xff] }
 0x561   :  { %4656 = vmatprep.subr.mxu1 %v8797_v16  ;;  %4729 = vmatprep.subr.mxu0 %v8802_v22  ;;  %10368 = vst [vmem:[#allocation116_spill] sm:$0xff] %v8838_v4  ;;  %v8850_v22 = vld [vmem:[%s9747_s9 + $0x388] sm:$0xff] }
 0x562   :  { %4657 = vmatpush2.msra.mxu1 %v8809_v54  ;;  %4730 = vmatpush2.msra.mxu0 %v8814_v6  ;;  %10370 = vst [vmem:[#allocation118_spill] sm:$0xff] %v8850_v22  ;;  %v8862_v6 = vld [vmem:[%s9747_s9 + $0x380] sm:$0xff] }
 0x563   :  { %4658 = vmatprep.subr.mxu1 %v8821_v5  ;;  %4731 = vmatprep.subr.mxu0 %v8826_v2  ;;  %10372 = vst [vmem:[#allocation120_spill] sm:$0xff] %v8862_v6  ;;  %v8874_v2 = vld [vmem:[%s9747_s9 + $0x378] sm:$0xff]  ;;  %v4558_v5 = vld [vmem:[#allocation5 + $0x8] sm:$0xfc] }
 0x564   :  { %4659 = vmatpush2.msra.mxu1 %v8833_v52  ;;  %4732 = vmatpush2.msra.mxu0 %v8838_v4  ;;  %10374 = vst [vmem:[#allocation122_spill] sm:$0xff] %v8874_v2  ;;  %v8886_v4 = vld [vmem:[%s9747_s9 + $0x370] sm:$0xff]  ;;  %v4588_v16 = vrot.slane %v4558_v5, 2 }
 0x565   :  { %4660 = vmatprep.subr.mxu1 %v8845_v60  ;;  %4733 = vmatprep.subr.mxu0 %v8850_v22  ;;  %10376 = vst [vmem:[#allocation124_spill] sm:$0xff] %v8886_v4  ;;  %v8898_v22 = vld [vmem:[%s9747_s9 + $0x368] sm:$0xff] }
 0x566   :  { %4661 = vmatpush2.msra.mxu1 %v8857_v3  ;;  %4734 = vmatpush2.msra.mxu0 %v8862_v6  ;;  %10378 = vst [vmem:[#allocation126_spill] sm:$0xff] %v8898_v22  ;;  %v8910_v6 = vld [vmem:[%s9747_s9 + $0x360] sm:$0xff]  ;;  %v4549_v3 = vld [vmem:[#allocation5] sm:$0xff] }
 0x567   :  { %4662 = vmatprep.subr.mxu1 %v8869_v43  ;;  %4735 = vmatprep.subr.mxu0 %v8874_v2  ;;  %10380 = vst [vmem:[#allocation128_spill] sm:$0xff] %v8910_v6  ;;  %v8922_v2 = vld [vmem:[%s9747_s9 + $0x358] sm:$0xff]  ;;  %v9040_v60 = vld [vmem:[%s9747_s9 + $0x308] sm:$0xff] }
 0x568   :  { %4663 = vmatpush2.msra.mxu1 %v8881_v11  ;;  %4736 = vmatpush2.msra.mxu0 %v8886_v4  ;;  %10382 = vst [vmem:[#allocation130_spill] sm:$0xff] %v8922_v2  ;;  %v8929_v11 = vld [vmem:[%s9747_s9 + $0x130] sm:$0xff]  ;;  %v9022_v43 = vld [vmem:[%s9747_s9 + $0x4f8] sm:$0xff]  ;;  %10400 = vst [vmem:[#allocation33_spill] sm:$0xff] %v9040_v60 }
 0x569   :  { %4664 = vmatprep.subr.mxu1 %v8893_v18  ;;  %4737 = vmatprep.subr.mxu0 %v8898_v22  ;;  %10383 = vst [vmem:[#allocation131_spill] sm:$0xff] %v8929_v11  ;;  %v8934_v4 = vld [vmem:[%s9747_s9 + $0x350] sm:$0xff]  ;;  %v8941_v18 = vld [vmem:[%s9747_s9 + $0x128] sm:$0xff]  ;;  %10398 = vst [vmem:[#allocation61_spill] sm:$0xff] %v9022_v43 }
 0x56a   :  { %10384 = vst [vmem:[#allocation132_spill] sm:$0xff] %v8934_v4  ;;  %4665 = vmatpush2.msra.mxu1 %v8905_v31  ;;  %4738 = vmatpush2.msra.mxu0 %v8910_v6  ;;  %10385 = vst [vmem:[#allocation71_spill] sm:$0xff] %v8941_v18  ;;  %v8946_v22 = vld [vmem:[%s9747_s9 + $0x348] sm:$0xff]  ;;  %v8953_v31 = vld [vmem:[%s9747_s9 + $0x120] sm:$0xff] }
 0x56b   :  { %10386 = vst [vmem:[#allocation27_spill] sm:$0xff] %v8946_v22  ;;  %4666 = vmatprep.subr.mxu1 %v8917_v58  ;;  %4739 = vmatprep.subr.mxu0 %v8922_v2  ;;  %10387 = vst [vmem:[#allocation37_spill] sm:$0xff] %v8953_v31  ;;  %v8958_v6 = vld [vmem:[%s9747_s9 + $0x340] sm:$0xff]  ;;  %v8965_v58 = vld [vmem:[%s9747_s9 + $0x118] sm:$0xff] }
 0x56c   :  { %10388 = vst [vmem:[#allocation28_spill] sm:$0xff] %v8958_v6  ;;  %4667 = vmatpush2.msra.mxu1 %v8929_v11  ;;  %4740 = vmatpush2.msra.mxu0 %v8934_v4  ;;  %10389 = vst [vmem:[#allocation38_spill] sm:$0xff] %v8965_v58  ;;  %v8970_v2 = vld [vmem:[%s9747_s9 + $0x338] sm:$0xff]  ;;  %v8977_v11 = vld [vmem:[%s9747_s9 + $0x110] sm:$0xff] }
 0x56d   :  { %10390 = vst [vmem:[#allocation29_spill] sm:$0xff] %v8970_v2  ;;  %4668 = vmatprep.subr.mxu1 %v8941_v18  ;;  %4741 = vmatprep.subr.mxu0 %v8946_v22  ;;  %10391 = vst [vmem:[#allocation39_spill] sm:$0xff] %v8977_v11  ;;  %v8982_v4 = vld [vmem:[%s9747_s9 + $0x330] sm:$0xff]  ;;  %v8989_v18 = vld [vmem:[%s9747_s9 + $0x108] sm:$0xff] }
 0x56e   :  { %10392 = vst [vmem:[#allocation30_spill] sm:$0xff] %v8982_v4  ;;  %4669 = vmatpush2.msra.mxu1 %v8953_v31  ;;  %4742 = vmatpush2.msra.mxu0 %v8958_v6  ;;  %10393 = vst [vmem:[#allocation40_spill] sm:$0xff] %v8989_v18  ;;  %v8994_v22 = vld [vmem:[%s9747_s9 + $0x328] sm:$0xff]  ;;  %v9001_v31 = vld [vmem:[%s9747_s9 + $0x100] sm:$0xff] }
 0x56f   :  { %10394 = vst [vmem:[#allocation31_spill] sm:$0xff] %v8994_v22  ;;  %4670 = vmatprep.subr.mxu1 %v8965_v58  ;;  %4743 = vmatprep.subr.mxu0 %v8970_v2  ;;  %10395 = vst [vmem:[#allocation41_spill] sm:$0xff] %v9001_v31  ;;  %v9006_v6 = vld [vmem:[%s9747_s9 + $0x320] sm:$0xff]  ;;  %v9013_v58 = vld [vmem:[%s9747_s9 + $0x318] sm:$0xff] }
 0x570   :  { %10396 = vst [vmem:[#allocation32_spill] sm:$0xff] %v9006_v6  ;;  %4671 = vmatpush2.msra.mxu1 %v8977_v11  ;;  %4744 = vmatpush2.msra.mxu0 %v8982_v4  ;;  %10397 = vst [vmem:[#allocation26_spill] sm:$0xff] %v9013_v58  ;;  %v9015_v2 = vld [vmem:[#allocation5 + $0x10] sm:$0xff]  ;;  %v9027_v4 = vld [vmem:[%s9747_s9 + $0x310] sm:$0xff] }
 0x571   :  { %4672 = vmatprep.subr.mxu1 %v8989_v18  ;;  %4745 = vmatprep.subr.mxu0 %v8994_v22  ;;  %v4556_v11 = vld [vmem:[#allocation5 + $0x28] sm:$0x1]  ;;  %v4553_v18 = vld [vmem:[#allocation5] sm:$0xfe]  ;;  %v4568_v52 = vrot.slane %v9015_v2, 1 }
 0x572   :  { %4673 = vmatpush2.msra.mxu1 %v9001_v31  ;;  %4746 = vmatpush2.msra.mxu0 %v9006_v6  ;;  %v9034_v22 = vld [vmem:[%s9747_s9 + $0x4f0] sm:$0xff]  ;;  %v9045_v31 = vld [vmem:[%s9747_s9 + $0x4e8] sm:$0xff]  ;;  %v9050_v6 = vld [vmem:[%s9747_s9 + $0x300] sm:$0xff]  ;;  %v4567_v54 = vrot.slane %v4553_v18, 1 }
 0x573   :  { %10399 = vst [vmem:[#allocation42_spill] sm:$0xff] %v9034_v22  ;;  %4675 = vmatmul.mubr.f32.vlgmr.msra.gmra.mxu1 %v4549_v3  ;;  %4747 = vmatprep.subr.mxu0 %v9013_v58  ;;  %10401 = vst [vmem:[#allocation43_spill] sm:$0xff] %v9045_v31  ;;  %v9058_v3 = vld [vmem:[%s9747_s9 + $0x4e0] sm:$0xff]  ;;  %v4575_v58 = vrot.slane %v4556_v11, 1  ;;  %v9076_v18 = vld [vmem:[%s9747_s9 + $0x4d0] sm:$0xff] }
 0x574   :  { %4764 = vmatprep.subr.mxu1 %v9022_v43  ;;  %4680 = vmatprep.mubr.f32.mxu1 %v8558_v56  ;;  %10402 = vst [vmem:[#allocation34_spill] sm:$0xff] %v9058_v3  ;;  %v9068_v43 = vld [vmem:[%s9747_s9 + $0x4d8] sm:$0xff]  ;;  %v4569_v11 = vsel %vm3082_vm2, %v4567_v54, %v4568_v52  ;;  %v10404_v54 = vrot.slane %v8558_v56, 2 }
 0x575   :  { %4748 = vmatpush2.msra.mxu0 %v9027_v4  ;;  %4765 = vmatpush1.msra.mxu1 %v9034_v22  ;;  %v4573_v22 = vrot.slane %v4555_v8, 1  ;;  %v9094_v8 = vld [vmem:[%s9747_s9 + $0x4c0] sm:$0xff] }
 0x576   :  { %4749 = vmatprep.subr.mxu0 %v9040_v60  ;;  %4766 = vmatprep.subr.mxu1 %v9045_v31  ;;  %v10403_v31 = vrot.slane %v8558_v56, 1  ;;  %v4590_v5 = vsel %vm3095_vm3, %v4588_v16, %v10404_v54  ;;  %v9114_v16 = vld [vmem:[%s9747_s9 + $0x4a8] sm:$0xff]  ;;  %v9414_v54 = vld [vmem:[%s9747_s9 + $0x550] sm:$0xff] }
 0x577   :  { %4750 = vmatpush2.msra.mxu0 %v9050_v6  ;;  %4767 = vmatpush1.msra.mxu1 %v9058_v3  ;;  %v9085_v3 = vld [vmem:[%s9747_s9 + $0x4c8] sm:$0xff]  ;;  %10413 = vst [vmem:[#allocation51_spill] sm:$0xff] %v9414_v54 }
 0x578   :  { %4681 = vmatmul.mubr.f32.gmra.mxu1 %v9015_v2  ;;  %4752 = vmatmul.mubr.f32.vlgmr.msra.gmra.mxu0 %v4569_v11  ;;  %v4576_v60 = vsel %vm3082_vm2, %v10403_v31, %v4575_v58  ;;  %v9100_v58 = vld [vmem:[%s9747_s9 + $0x4b8] sm:$0xff]  ;;  %v4574_v31 = vsel %vm3082_vm2, %v4568_v52, %v4573_v22  ;;  %v9120_v52 = vld [vmem:[%s9747_s9 + $0x4a0] sm:$0xff]  ;;  %v9134_v22 = vld [vmem:[%s9747_s9 + $0x490] sm:$0xff]  ;;  %v3823_v11 = vpop.f32.mrf.mxu1 }
 0x579   :  { %4768 = vmatprep.subr.mxu1 %v9068_v43  ;;  %4757 = vmatprep.mubr.f32.mxu0 %v4576_v60  ;;  %v9107_v60 = vld [vmem:[%s9747_s9 + $0x4b0] sm:$0xff] }
 0x57a   :  { %4769 = vmatpush1.msra.mxu1 %v9076_v18  ;;  %4828 = vmatprep.mubr.f32.mxu1 %v4590_v5  ;;  %v9428_v5 = vld [vmem:[%s9747_s9 + $0x540] sm:$0xff] }
 0x57b   :  { %4770 = vmatprep.subr.mxu1 %v9085_v3  ;;  %4896 = vmatprep.subr.mxu0 %v8243_v57  ;;  %v9127_v57 = vld [vmem:[%s9747_s9 + $0x498] sm:$0xff]  ;;  %10415 = vst [vmem:[#allocation53_spill] sm:$0xff] %v9428_v5 }
 0x57c   :  { %4771 = vmatpush1.msra.mxu1 %v9094_v8  ;;  %4758 = vmatmul.mubr.f32.gmra.mxu0 %v4574_v31  ;;  %v9436_v31 = vld [vmem:[%s9747_s9 + $0x538] sm:$0xff] }
 0x57d   :  { %4772 = vmatprep.subr.mxu1 %v9100_v58  ;;  %4897 = vmatpush1.msra.mxu0 %v8250_v51  ;;  %v9141_v51 = vld [vmem:[%s9747_s9 + $0x488] sm:$0xff]  ;;  %10416 = vst [vmem:[#allocation54_spill] sm:$0xff] %v9436_v31 }
 0x57e   :  { %4773 = vmatpush1.msra.mxu1 %v9107_v60  ;;  %4898 = vmatprep.subr.mxu0 %v8257_v27  ;;  %v9148_v27 = vld [vmem:[%s9747_s9 + $0x480] sm:$0xff] }
 0x57f   :  { %4774 = vmatprep.subr.mxu1 %v9114_v16  ;;  %4899 = vmatpush1.msra.mxu0 %v8264_v28  ;;  %v9155_v28 = vld [vmem:[%s9747_s9 + $0x478] sm:$0xff] }
 0x580   :  { %4775 = vmatpush1.msra.mxu1 %v9120_v52  ;;  %4900 = vmatprep.subr.mxu0 %v8271_v33  ;;  %v9162_v33 = vld [vmem:[%s9747_s9 + $0x470] sm:$0xff] }
 0x581   :  { %4776 = vmatprep.subr.mxu1 %v9127_v57  ;;  %4901 = vmatpush1.msra.mxu0 %v8281_v21  ;;  %v9169_v21 = vld [vmem:[%s9747_s9 + $0x468] sm:$0xff] }
 0x582   :  { %4777 = vmatpush1.msra.mxu1 %v9134_v22  ;;  %4902 = vmatprep.subr.mxu0 %v8291_v12  ;;  %v9176_v12 = vld [vmem:[%s9747_s9 + $0x460] sm:$0xff] }
 0x583   :  { %4778 = vmatprep.subr.mxu1 %v9141_v51  ;;  %4903 = vmatpush1.msra.mxu0 %v8302_v20  ;;  %v9183_v20 = vld [vmem:[%s9747_s9 + $0x458] sm:$0xff] }
 0x584   :  { %4779 = vmatpush1.msra.mxu1 %v9148_v27  ;;  %4904 = vmatprep.subr.mxu0 %v8315_v37  ;;  %v9190_v37 = vld [vmem:[%s9747_s9 + $0x450] sm:$0xff] }
 0x585   :  { %4780 = vmatprep.subr.mxu1 %v9155_v28  ;;  %4905 = vmatpush1.msra.mxu0 %v8330_v55  ;;  %v9197_v55 = vld [vmem:[%s9747_s9 + $0x448] sm:$0xff] }
 0x586   :  { %4781 = vmatpush1.msra.mxu1 %v9162_v33  ;;  %4906 = vmatprep.subr.mxu0 %v8342_v0  ;;  %v9204_v0 = vld [vmem:[%s9747_s9 + $0x440] sm:$0xff] }
 0x587   :  { %4782 = vmatprep.subr.mxu1 %v9169_v21  ;;  %4907 = vmatpush1.msra.mxu0 %v8359_v47  ;;  %v9211_v47 = vld [vmem:[%s9747_s9 + $0x438] sm:$0xff] }
 0x588   :  { %4783 = vmatpush1.msra.mxu1 %v9176_v12  ;;  %4908 = vmatprep.subr.mxu0 %v8371_v1  ;;  %v9218_v1 = vld [vmem:[%s9747_s9 + $0x430] sm:$0xff] }
 0x589   :  { %4784 = vmatprep.subr.mxu1 %v9183_v20  ;;  %4909 = vmatpush1.msra.mxu0 %v8391_v9  ;;  %v9225_v9 = vld [vmem:[%s9747_s9 + $0x428] sm:$0xff] }
 0x58a   :  { %4785 = vmatpush1.msra.mxu1 %v9190_v37  ;;  %4910 = vmatprep.subr.mxu0 %v8403_v42  ;;  %v9232_v42 = vld [vmem:[%s9747_s9 + $0x420] sm:$0xff] }
 0x58b   :  { %4786 = vmatprep.subr.mxu1 %v9197_v55  ;;  %4911 = vmatpush1.msra.mxu0 %v8419_v38  ;;  %v9239_v38 = vld [vmem:[%s9747_s9 + $0x418] sm:$0xff] }
 0x58c   :  { %4787 = vmatpush1.msra.mxu1 %v9204_v0  ;;  %4912 = vmatprep.subr.mxu0 %v8431_v13  ;;  %v9246_v13 = vld [vmem:[%s9747_s9 + $0x410] sm:$0xff] }
 0x58d   :  { %4788 = vmatprep.subr.mxu1 %v9211_v47  ;;  %4913 = vmatpush1.msra.mxu0 %v8443_v17  ;;  %v9253_v17 = vld [vmem:[%s9747_s9 + $0x408] sm:$0xff] }
 0x58e   :  { %4789 = vmatpush1.msra.mxu1 %v9218_v1  ;;  %4914 = vmatprep.subr.mxu0 %v8455_v29  ;;  %v9260_v29 = vld [vmem:[%s9747_s9 + $0x400] sm:$0xff] }
 0x58f   :  { %4790 = vmatprep.subr.mxu1 %v9225_v9  ;;  %4915 = vmatpush1.msra.mxu0 %v8467_v61  ;;  %v9267_v61 = vld [vmem:[%s9747_s9 + $0x5f8] sm:$0xff] }
 0x590   :  { %4791 = vmatpush1.msra.mxu1 %v9232_v42  ;;  %4916 = vmatprep.subr.mxu0 %v8479_v23  ;;  %v9274_v23 = vld [vmem:[%s9747_s9 + $0x5f0] sm:$0xff] }
 0x591   :  { %4792 = vmatprep.subr.mxu1 %v9239_v38  ;;  %4917 = vmatpush1.msra.mxu0 %v8491_v50  ;;  %v9281_v50 = vld [vmem:[%s9747_s9 + $0x5e8] sm:$0xff] }
 0x592   :  { %4793 = vmatpush1.msra.mxu1 %v9246_v13  ;;  %4918 = vmatprep.subr.mxu0 %v8503_v32  ;;  %v9288_v32 = vld [vmem:[%s9747_s9 + $0x5e0] sm:$0xff] }
 0x593   :  { %4794 = vmatprep.subr.mxu1 %v9253_v17  ;;  %4919 = vmatpush1.msra.mxu0 %v8515_v39  ;;  %v9295_v39 = vld [vmem:[%s9747_s9 + $0x5d8] sm:$0xff] }
 0x594   :  { %4795 = vmatpush1.msra.mxu1 %v9260_v29  ;;  %4920 = vmatprep.subr.mxu0 %v8527_v36  ;;  %v9302_v36 = vld [vmem:[%s9747_s9 + $0x5d0] sm:$0xff] }
 0x595   :  { %4796 = vmatprep.subr.mxu1 %v9267_v61  ;;  %4921 = vmatpush1.msra.mxu0 %v8539_v14  ;;  %v9309_v14 = vld [vmem:[%s9747_s9 + $0x5c8] sm:$0xff] }
 0x596   :  { %4797 = vmatpush2.msra.mxu1 %v9274_v23  ;;  %4922 = vmatprep.subr.mxu0 %v8551_v25  ;;  %v9316_v25 = vld [vmem:[%s9747_s9 + $0x5c0] sm:$0xff] }
 0x597   :  { %4798 = vmatprep.subr.mxu1 %v9281_v50  ;;  %4923 = vmatpush1.msra.mxu0 %v8565_v59  ;;  %v9323_v59 = vld [vmem:[%s9747_s9 + $0x5b8] sm:$0xff] }
 0x598   :  { %4799 = vmatpush2.msra.mxu1 %v9288_v32  ;;  %4924 = vmatprep.subr.mxu0 %v8577_v41  ;;  %v9330_v41 = vld [vmem:[%s9747_s9 + $0x5b0] sm:$0xff] }
 0x599   :  { %4800 = vmatprep.subr.mxu1 %v9295_v39  ;;  %4925 = vmatpush1.msra.mxu0 %v8589_v19  ;;  %v9337_v19 = vld [vmem:[%s9747_s9 + $0x5a8] sm:$0xff] }
 0x59a   :  { %4801 = vmatpush2.msra.mxu1 %v9302_v36  ;;  %4926 = vmatprep.subr.mxu0 %v8601_v26  ;;  %v9344_v26 = vld [vmem:[%s9747_s9 + $0x5a0] sm:$0xff] }
 0x59b   :  { %4802 = vmatprep.subr.mxu1 %v9309_v14  ;;  %4927 = vmatpush1.msra.mxu0 %v8613_v45  ;;  %v9351_v45 = vld [vmem:[%s9747_s9 + $0x598] sm:$0xff] }
 0x59c   :  { %4803 = vmatpush2.msra.mxu1 %v9316_v25  ;;  %4928 = vmatprep.subr.mxu0 %v8625_v62  ;;  %v9358_v62 = vld [vmem:[%s9747_s9 + $0x590] sm:$0xff] }
 0x59d   :  { %4804 = vmatprep.subr.mxu1 %v9323_v59  ;;  %4929 = vmatpush2.msra.mxu0 %v8642_v30  ;;  %10405 = vst [vmem:[#allocation36_spill] sm:$0xff] %v9358_v62  ;;  %v9365_v30 = vld [vmem:[%s9747_s9 + $0x588] sm:$0xff] }
 0x59e   :  { %4805 = vmatpush2.msra.mxu1 %v9330_v41  ;;  %4930 = vmatprep.subr.mxu0 %v8654_v53  ;;  %10406 = vst [vmem:[#allocation44_spill] sm:$0xff] %v9365_v30  ;;  %v9372_v53 = vld [vmem:[%s9747_s9 + $0x580] sm:$0xff] }
 0x59f   :  { %4806 = vmatprep.subr.mxu1 %v9337_v19  ;;  %4931 = vmatpush2.msra.mxu0 %v8665_v7  ;;  %10407 = vst [vmem:[#allocation45_spill] sm:$0xff] %v9372_v53  ;;  %v9379_v7 = vld [vmem:[%s9747_s9 + $0x578] sm:$0xff] }
 0x5a0   :  { %4807 = vmatpush2.msra.mxu1 %v9344_v26  ;;  %4932 = vmatprep.subr.mxu0 %v8677_v10  ;;  %10408 = vst [vmem:[#allocation46_spill] sm:$0xff] %v9379_v7  ;;  %v9386_v10 = vld [vmem:[%s9747_s9 + $0x570] sm:$0xff] }
 0x5a1   :  { %4808 = vmatprep.subr.mxu1 %v9351_v45  ;;  %4933 = vmatpush2.msra.mxu0 %v8689_v49  ;;  %10409 = vst [vmem:[#allocation47_spill] sm:$0xff] %v9386_v10  ;;  %v9393_v49 = vld [vmem:[%s9747_s9 + $0x568] sm:$0xff] }
 0x5a2   :  { %4809 = vmatpush2.msra.mxu1 %v9358_v62  ;;  %4934 = vmatprep.subr.mxu0 %v8701_v35  ;;  %10410 = vst [vmem:[#allocation48_spill] sm:$0xff] %v9393_v49  ;;  %v9400_v35 = vld [vmem:[%s9747_s9 + $0x560] sm:$0xff] }
 0x5a3   :  { %4810 = vmatprep.subr.mxu1 %v9365_v30  ;;  %4935 = vmatpush2.msra.mxu0 %v8713_v63  ;;  %10411 = vst [vmem:[#allocation49_spill] sm:$0xff] %v9400_v35  ;;  %v9407_v63 = vld [vmem:[%s9747_s9 + $0x558] sm:$0xff] }
 0x5a4   :  { %4811 = vmatpush2.msra.mxu1 %v9372_v53  ;;  %4936 = vmatprep.subr.mxu0 %v8725_v48  ;;  %10412 = vst [vmem:[#allocation50_spill] sm:$0xff] %v9407_v63  ;;  %v3894_v48 = vpop.f32.mrf.mxu0  ;;  %v10432_v30 = vld [vmem:[#allocation125_spill] sm:$0xff] }
 0x5a5   :  { %4812 = vmatprep.subr.mxu1 %v9379_v7  ;;  %4937 = vmatpush2.msra.mxu0 %v8737_v40  ;;  %v9421_v40 = vld [vmem:[%s9747_s9 + $0x548] sm:$0xff]  ;;  %v10434_v62 = vld [vmem:[#allocation129_spill] sm:$0xff] }
 0x5a6   :  { %4813 = vmatpush2.msra.mxu1 %v9386_v10  ;;  %4938 = vmatprep.subr.mxu0 %v8749_v34  ;;  %10414 = vst [vmem:[#allocation52_spill] sm:$0xff] %v9421_v40  ;;  %v3825_v34 = vpop.f32.mrf.mxu1  ;;  %v10424_v10 = vld [vmem:[#allocation115_spill] sm:$0xff] }
 0x5a7   :  { %4814 = vmatprep.subr.mxu1 %v9393_v49  ;;  %4939 = vmatpush2.msra.mxu0 %v8761_v15  ;;  %v3824_v15 = vadd.f32 %v3823_v11, %v8177_v44  ;;  %v10420_v44 = vld [vmem:[#allocation63_spill] sm:$0xff] }
 0x5a8   :  { %4815 = vmatpush2.msra.mxu1 %v9400_v35  ;;  %4940 = vmatprep.subr.mxu0 %v8773_v46  ;;  %v10417_v46 = vld [vmem:[#allocation109_spill] sm:$0xff]  ;;  %v3896_v35 = vpop.f32.mrf.mxu0  ;;  %v3826_v11 = vadd.f32 %v3825_v34, %v10420_v44  ;;  %v9451_v49 = vld [vmem:[%s9747_s9 + $0x528] sm:$0xff]  ;;  %v4560_v44 = vld [vmem:[#allocation5 + $0x28] sm:$0x3] }
 0x5a9   :  { %4816 = vmatprep.subr.mxu1 %v9407_v63  ;;  %4941 = vmatpush2.msra.mxu0 %v8785_v24  ;;  %v9443_v63 = vld [vmem:[%s9747_s9 + $0x530] sm:$0xff]  ;;  %10421 = vst [vmem:[#allocation60_spill] sm:$0xff] %v9451_v49  ;;  %v9465_v34 = vld [vmem:[%s9747_s9 + $0x518] sm:$0xff] }
 0x5aa   :  { %4817 = vmatpush2.msra.mxu1 %v9414_v54  ;;  %4942 = vmatprep.subr.mxu0 %v10417_v46  ;;  %10418 = vst [vmem:[#allocation55_spill] sm:$0xff] %v9443_v63  ;;  %v10419_v24 = vld [vmem:[#allocation111_spill] sm:$0xff]  ;;  %v3895_v54 = vadd.f32 %v3894_v48, %v3824_v15  ;;  %v10422_v46 = vld [vmem:[#allocation113_spill] sm:$0xff]  ;;  %v3897_v48 = vadd.f32 %v3896_v35, %v3826_v11  ;;  %10425 = vst [vmem:[#allocation57_spill] sm:$0xff] %v9465_v34 }
 0x5ab   :  { %4818 = vmatprep.subr.mxu1 %v9421_v40  ;;  %4943 = vmatpush2.msra.mxu0 %v10419_v24  ;;  %v9458_v40 = vld [vmem:[%s9747_s9 + $0x520] sm:$0xff]  ;;  %v10427_v11 = vld [vmem:[#allocation119_spill] sm:$0xff] }
 0x5ac   :  { %4819 = vmatpush2.msra.mxu1 %v9428_v5  ;;  %4944 = vmatprep.subr.mxu0 %v10422_v46  ;;  %10423 = vst [vmem:[#allocation56_spill] sm:$0xff] %v9458_v40  ;;  %v10426_v46 = vld [vmem:[#allocation117_spill] sm:$0xff] }
 0x5ad   :  { %4820 = vmatprep.subr.mxu1 %v9436_v31  ;;  %v3965_v24 = vpop.f32.mrf.mxu1  ;;  %4945 = vmatpush2.msra.mxu0 %v10424_v10  ;;  %v9472_v31 = vld [vmem:[%s9747_s9 + $0x510] sm:$0xff]  ;;  %v4557_v10 = vld [vmem:[#allocation5] sm:$0xfc]  ;;  %v9487_v5 = vld [vmem:[%s9747_s9 + $0x500] sm:$0xff] }
 0x5ae   :  { %4821 = vmatpush2.msra.mxu1 %v9443_v63  ;;  %v3966_v15 = vadd.f32 %v3965_v24, %v3895_v54  ;;  %4946 = vmatprep.subr.mxu0 %v10426_v46  ;;  %v4586_v63 = vrot.slane %v9015_v2, 2  ;;  %v9480_v54 = vld [vmem:[%s9747_s9 + $0x508] sm:$0xff]  ;;  %10430 = vst [vmem:[#allocation59_spill] sm:$0xff] %v9487_v5  ;;  %v4585_v7 = vrot.slane %v4557_v10, 2 }
 0x5af   :  { %4822 = vmatprep.subr.mxu1 %v9451_v49  ;;  %v3967_v35 = vpop.f32.mrf.mxu1  ;;  %4947 = vmatpush2.msra.mxu0 %v10427_v11  ;;  %10428 = vst [vmem:[#allocation58_spill] sm:$0xff] %v9480_v54  ;;  %v4559_v46 = vld [vmem:[#allocation5 + $0x20] sm:$0x3]  ;;  %v10429_v49 = vld [vmem:[#allocation121_spill] sm:$0xff]  ;;  %v4593_v11 = vrot.slane %v4560_v44, 2  ;;  %v10431_v2 = vld [vmem:[#allocation123_spill] sm:$0xff] }
 0x5b0   :  { %4823 = vmatpush2.msra.mxu1 %v9458_v40  ;;  %v3968_v24 = vadd.f32 %v3967_v35, %v3897_v48  ;;  %4948 = vmatprep.subr.mxu0 %v10429_v49  ;;  %v4183_v40 = vmax.f32 %v3966_v15, 0.0  ;;  %v4591_v49 = vrot.slane %v4559_v46, 2  ;;  %v10433_v48 = vld [vmem:[#allocation127_spill] sm:$0xff]  ;;  %v4587_v35 = vsel %vm3095_vm3, %v4585_v7, %v4586_v63 }
 0x5b1   :  { %4824 = vmatprep.subr.mxu1 %v9465_v34  ;;  %4949 = vmatpush2.msra.mxu0 %v10431_v2  ;;  %v10435_v15 = vrot.slane %v8558_v56, 2  ;;  %v10437_v56 = vld [vmem:[#allocation66_spill] sm:$0xff]  ;;  %v10438_v7 = vld [vmem:[#allocation131_spill] sm:$0xff] }
 0x5b2   :  { %4825 = vmatpush2.msra.mxu1 %v9472_v31  ;;  %v4184_v53 = vmax.f32 %v3968_v24, 0.0  ;;  %4950 = vmatprep.subr.mxu0 %v10432_v30  ;;  %v5864_v30 = vld [vmem:[%s9747_s9 + $0x2f8] sm:$0xff] }
 0x5b3   :  { %4826 = vmatprep.subr.mxu1 %v9480_v54  ;;  %4951 = vmatpush2.msra.mxu0 %v10433_v48  ;;  %v4594_v10 = vsel %vm3095_vm3, %v10435_v15, %v4593_v11  ;;  %v10436_v24 = vld [vmem:[#allocation25_spill] sm:$0xff] }
 0x5b4   :  { %4827 = vmatpush2.msra.mxu1 %v9487_v5  ;;  %v4189_v34 = vcombine.low %v4183_v40, %v4184_v53  ;;  %v4274_v44 = vcombine.high %v4183_v40, %v4184_v53  ;;  %4952 = vmatprep.subr.mxu0 %v10434_v62  ;;  %v5865_v53 = vld [vmem:[%s9747_s9 + $0x2f0] sm:$0xff]  ;;  %v4592_v62 = vsel %vm3095_vm3, %v4586_v63, %v4591_v49 }
 0x5b5   :  { %4829 = vmatmul.mubr.f32.vlgmr.msra.gmra.mxu1 %v4587_v35  ;;  %4973 = vmatprep.subr.mxu1 %v5864_v30 }
 0x5b6   :  { %4834 = vmatprep.mubr.f32.mxu1 %v4594_v10  ;;  %v4196_v46 = vrot.slane %v4189_v34, %v10436_v24  ;;  %v4281_v2 = vrot.slane %v4274_v44, %v10436_v24  ;;  %4974 = vmatpush1.msra.mxu1 %v5865_v53  ;;  %v10439_v34 = vld [vmem:[#allocation67_spill] sm:$0xff]  ;;  %v10440_v44 = vld [vmem:[#allocation68_spill] sm:$0xff] }
 0x5b7   :  { %4975 = vmatprep.subr.mxu1 %v10437_v56  ;;  %4953 = vmatpush2.msra.mxu0 %v10438_v7  ;;  %v10444_v53 = vld [vmem:[#allocation71_spill] sm:$0xff]  ;;  %v10445_v7 = vld [vmem:[#allocation74_spill] sm:$0xff] }
 0x5b8   :  { %v4203_v40 = vrot.slane %v4196_v46, %v10436_v24  ;;  %v4230_v11 = vcombine.high %v4196_v46, %v4196_v46  ;;  %v4288_v48 = vrot.slane %v4281_v2, %v10436_v24  ;;  %v4312_v35 = vcombine.high %v4281_v2, %v4281_v2  ;;  %4976 = vmatpush1.msra.mxu1 %v10439_v34  ;;  %v10442_v46 = vld [vmem:[#allocation69_spill] sm:$0xff]  ;;  %v10443_v2 = vld [vmem:[#allocation70_spill] sm:$0xff]  ;;  %v10450_v34 = vld [vmem:[#allocation39_spill] sm:$0xff] }
 0x5b9   :  { %4835 = vmatmul.mubr.f32.gmra.mxu1 %v4592_v62  ;;  %4977 = vmatprep.subr.mxu1 %v10440_v44  ;;  %v10451_v44 = vld [vmem:[#allocation77_spill] sm:$0xff] }
 0x5ba   :  { %4207 = vst.msk [vmem:[#allocation5 + $0x31] ss:$8 sm:$0x3] %vm7583_vm1, %v4203_v40  ;;  %v4237_v63 = vrot.slane %v4230_v11, %v10436_v24  ;;  %v4254_v49 = vcombine.high %v4203_v40, %v4203_v40  ;;  %4291 = vst.msk [vmem:[#allocation5 + $0x41] ss:$8 sm:$0x3] %vm7583_vm1, %v4288_v48  ;;  %v4319_v10 = vrot.slane %v4312_v35, %v10436_v24  ;;  %4978 = vmatpush1.msra.mxu1 %v10442_v46 }
 0x5bb   :  { %v4336_v30 = vcombine.high %v4288_v48, %v4288_v48  ;;  %4979 = vmatprep.subr.mxu1 %v10443_v2  ;;  %4954 = vmatprep.subr.mxu0 %v10444_v53  ;;  %v10446_v40 = vld [vmem:[#allocation37_spill] sm:$0xff]  ;;  %v10447_v11 = vld [vmem:[#allocation75_spill] sm:$0xff]  ;;  %v10448_v48 = vld [vmem:[#allocation38_spill] sm:$0xff] }
 0x5bc   :  { %4240 = vst.msk [vmem:[#allocation5 + $0x33] ss:$8 sm:$0x3] %vm7583_vm1, %v4237_v63  ;;  %4257 = vst.msk [vmem:[#allocation5 + $0x35] ss:$8 sm:$0x3] %vm7583_vm1, %v4254_v49  ;;  %v4264_v62 = vcombine.high %v4237_v63, %v4237_v63  ;;  %v4346_v56 = vcombine.high %v4319_v10, %v4319_v10  ;;  %4980 = vmatpush1.msra.mxu1 %v10445_v7  ;;  %4955 = vmatpush2.msra.mxu0 %v10446_v40 }
 0x5bd   :  { %4322 = vst.msk [vmem:[#allocation5 + $0x43] ss:$8 sm:$0x3] %vm7583_vm1, %v4319_v10  ;;  %4339 = vst.msk [vmem:[#allocation5 + $0x45] ss:$8 sm:$0x3] %vm7583_vm1, %v4336_v30  ;;  %4981 = vmatprep.subr.mxu1 %v10447_v11  ;;  %4956 = vmatprep.subr.mxu0 %v10448_v48 }
 0x5be   :  { %4267 = vst.msk [vmem:[#allocation5 + $0x37] ss:$8 sm:$0x3] %vm7583_vm1, %v4264_v62  ;;  %4349 = vst.msk [vmem:[#allocation5 + $0x47] ss:$8 sm:$0x3] %vm7583_vm1, %v4346_v56  ;;  %4957 = vmatpush2.msra.mxu0 %v10450_v34 }
 0x5bf   :  { %v10449_v35 = vld [vmem:[#allocation76_spill] sm:$0xff]  ;;  %v10453_v49 = vld [vmem:[#allocation78_spill] sm:$0xff]  ;;  %v10454_v10 = vld [vmem:[#allocation41_spill] sm:$0xff] }
 0x5c0   :  { %4982 = vmatpush1.msra.mxu1 %v10449_v35  ;;  %v10452_v63 = vld [vmem:[#allocation40_spill] sm:$0xff]  ;;  %v10455_v30 = vld [vmem:[#allocation79_spill] sm:$0xff]  ;;  %v10456_v46 = vld [vmem:[#allocation61_spill] sm:$0xff] }
 0x5c1   :  { %4983 = vmatprep.subr.mxu1 %v10451_v44  ;;  %4958 = vmatprep.subr.mxu0 %v10452_v63  ;;  %v10457_v2 = vld [vmem:[#allocation80_spill] sm:$0xff]  ;;  %v10458_v53 = vld [vmem:[#allocation81_spill] sm:$0xff]  ;;  %v10459_v62 = vld [vmem:[#allocation82_spill] sm:$0xff] }
 0x5c2   :  { %4984 = vmatpush1.msra.mxu1 %v10453_v49  ;;  %4959 = vmatpush2.msra.mxu0 %v10454_v10  ;;  %v10460_v56 = vld [vmem:[#allocation83_spill] sm:$0xff]  ;;  %v10461_v7 = vld [vmem:[#allocation84_spill] sm:$0xff]  ;;  %v10462_v40 = vld [vmem:[#allocation85_spill] sm:$0xff] }
 0x5c3   :  { %4985 = vmatprep.subr.mxu1 %v10455_v30  ;;  %5050 = vmatprep.subr.mxu0 %v10456_v46  ;;  %v10463_v11 = vld [vmem:[#allocation86_spill] sm:$0xff]  ;;  %v10464_v48 = vld [vmem:[#allocation87_spill] sm:$0xff]  ;;  %v10465_v35 = vld [vmem:[#allocation88_spill] sm:$0xff] }
 0x5c4   :  { %4986 = vmatpush1.msra.mxu1 %v10457_v2  ;;  %v10466_v34 = vld [vmem:[#allocation89_spill] sm:$0xff]  ;;  %v10467_v44 = vld [vmem:[#allocation90_spill] sm:$0xff]  ;;  %v10468_v63 = vld [vmem:[#allocation91_spill] sm:$0xff] }
 0x5c5   :  { %4987 = vmatprep.subr.mxu1 %v10458_v53  ;;  %v10469_v49 = vld [vmem:[#allocation92_spill] sm:$0xff]  ;;  %v10470_v10 = vld [vmem:[#allocation93_spill] sm:$0xff]  ;;  %v10471_v30 = vld [vmem:[#allocation94_spill] sm:$0xff] }
 0x5c6   :  { %4988 = vmatpush1.msra.mxu1 %v10459_v62  ;;  %v10472_v46 = vld [vmem:[#allocation95_spill] sm:$0xff]  ;;  %v10473_v2 = vld [vmem:[#allocation96_spill] sm:$0xff]  ;;  %v10474_v53 = vld [vmem:[#allocation97_spill] sm:$0xff] }
 0x5c7   :  { %4989 = vmatprep.subr.mxu1 %v10460_v56  ;;  %v10475_v62 = vld [vmem:[#allocation98_spill] sm:$0xff]  ;;  %v10476_v56 = vld [vmem:[#allocation99_spill] sm:$0xff] }
 0x5c8   :  { %4990 = vmatpush1.msra.mxu1 %v10461_v7  ;;  %v10477_v7 = vld [vmem:[#allocation100_spill] sm:$0xff] }
 0x5c9   :  { %4991 = vmatprep.subr.mxu1 %v10462_v40  ;;  %v10478_v40 = vld [vmem:[#allocation101_spill] sm:$0xff] }
 0x5ca   :  { %4992 = vmatpush1.msra.mxu1 %v10463_v11  ;;  %v10479_v11 = vld [vmem:[#allocation102_spill] sm:$0xff] }
 0x5cb   :  { %4993 = vmatprep.subr.mxu1 %v10464_v48  ;;  %v10480_v48 = vld [vmem:[#allocation103_spill] sm:$0xff] }
 0x5cc   :  { %4994 = vmatpush1.msra.mxu1 %v10465_v35  ;;  %v10481_v35 = vld [vmem:[#allocation104_spill] sm:$0xff] }
 0x5cd   :  { %4995 = vmatprep.subr.mxu1 %v10466_v34  ;;  %v10482_v34 = vld [vmem:[#allocation105_spill] sm:$0xff] }
 0x5ce   :  { %4996 = vmatpush1.msra.mxu1 %v10467_v44  ;;  %v10483_v44 = vld [vmem:[#allocation106_spill] sm:$0xff] }
 0x5cf   :  { %4997 = vmatprep.subr.mxu1 %v10468_v63  ;;  %v10484_v63 = vld [vmem:[#allocation107_spill] sm:$0xff] }
 0x5d0   :  { %4998 = vmatpush1.msra.mxu1 %v10469_v49  ;;  %v10485_v49 = vld [vmem:[#allocation108_spill] sm:$0xff] }
 0x5d1   :  { %4999 = vmatprep.subr.mxu1 %v10470_v10  ;;  %v10486_v10 = vld [vmem:[#allocation110_spill] sm:$0xff] }
 0x5d2   :  { %5000 = vmatpush1.msra.mxu1 %v10471_v30  ;;  %v10487_v30 = vld [vmem:[#allocation112_spill] sm:$0xff] }
 0x5d3   :  { %5001 = vmatprep.subr.mxu1 %v10472_v46  ;;  %v10488_v46 = vld [vmem:[#allocation114_spill] sm:$0xff] }
 0x5d4   :  { %5002 = vmatpush1.msra.mxu1 %v10473_v2  ;;  %v10489_v2 = vld [vmem:[#allocation116_spill] sm:$0xff] }
 0x5d5   :  { %5003 = vmatprep.subr.mxu1 %v10474_v53  ;;  %v10490_v53 = vld [vmem:[#allocation118_spill] sm:$0xff] }
 0x5d6   :  { %5004 = vmatpush1.msra.mxu1 %v10475_v62  ;;  %v10491_v62 = vld [vmem:[#allocation120_spill] sm:$0xff] }
 0x5d7   :  { %5005 = vmatprep.subr.mxu1 %v10476_v56  ;;  %v10492_v56 = vld [vmem:[#allocation122_spill] sm:$0xff] }
 0x5d8   :  { %5006 = vmatpush2.msra.mxu1 %v10477_v7  ;;  %v10493_v7 = vld [vmem:[#allocation124_spill] sm:$0xff] }
 0x5d9   :  { %5007 = vmatprep.subr.mxu1 %v10478_v40  ;;  %v10494_v40 = vld [vmem:[#allocation126_spill] sm:$0xff] }
 0x5da   :  { %5008 = vmatpush2.msra.mxu1 %v10479_v11  ;;  %v10495_v11 = vld [vmem:[#allocation128_spill] sm:$0xff] }
 0x5db   :  { %5009 = vmatprep.subr.mxu1 %v10480_v48  ;;  %v10496_v48 = vld [vmem:[#allocation130_spill] sm:$0xff] }
 0x5dc   :  { %5010 = vmatpush2.msra.mxu1 %v10481_v35  ;;  %v10497_v35 = vld [vmem:[#allocation132_spill] sm:$0xff] }
 0x5dd   :  { %5011 = vmatprep.subr.mxu1 %v10482_v34  ;;  %v10498_v34 = vld [vmem:[#allocation27_spill] sm:$0xff] }
 0x5de   :  { %5012 = vmatpush2.msra.mxu1 %v10483_v44  ;;  %v4036_v44 = vpop.f32.mrf.mxu0 }
 0x5df   :  { %5013 = vmatprep.subr.mxu1 %v10484_v63  ;;  %v10499_v63 = vld [vmem:[#allocation28_spill] sm:$0xff] }
 0x5e0   :  { %5014 = vmatpush2.msra.mxu1 %v10485_v49  ;;  %v10500_v49 = vld [vmem:[#allocation29_spill] sm:$0xff] }
 0x5e1   :  { %5015 = vmatprep.subr.mxu1 %v10486_v10  ;;  %v10501_v10 = vld [vmem:[#allocation30_spill] sm:$0xff] }
 0x5e2   :  { %5016 = vmatpush2.msra.mxu1 %v10487_v30  ;;  %v10502_v30 = vld [vmem:[#allocation31_spill] sm:$0xff] }
 0x5e3   :  { %5017 = vmatprep.subr.mxu1 %v10488_v46  ;;  %v4038_v46 = vpop.f32.mrf.mxu0 }
 0x5e4   :  { %5018 = vmatpush2.msra.mxu1 %v10489_v2 }
 0x5e5   :  { %5019 = vmatprep.subr.mxu1 %v10490_v53  ;;  %v10503_v53 = vld [vmem:[#allocation32_spill] sm:$0xff] }
 0x5e6   :  { %5020 = vmatpush2.msra.mxu1 %v10491_v62  ;;  %v10504_v62 = vld [vmem:[#allocation64_spill] sm:$0xff] }
 0x5e7   :  { %5021 = vmatprep.subr.mxu1 %v10492_v56  ;;  %v4037_v56 = vadd.f32 %v4036_v44, %v10504_v62 }
 0x5e8   :  { %5022 = vmatpush2.msra.mxu1 %v10493_v7  ;;  %v10505_v7 = vld [vmem:[#allocation26_spill] sm:$0xff] }
 0x5e9   :  { %5023 = vmatprep.subr.mxu1 %v10494_v40 }
 0x5ea   :  { %5024 = vmatpush2.msra.mxu1 %v10495_v11  ;;  %v10506_v11 = vld [vmem:[#allocation65_spill] sm:$0xff] }
 0x5eb   :  { %5025 = vmatprep.subr.mxu1 %v10496_v48  ;;  %v4039_v48 = vadd.f32 %v4038_v46, %v10506_v11 }
 0x5ec   :  { %5026 = vmatpush2.msra.mxu1 %v10497_v35 }
 0x5ed   :  { %5027 = vmatprep.subr.mxu1 %v10498_v34  ;;  %v10507_v34 = vld [vmem:[#allocation33_spill] sm:$0xff] }
 0x5ee   :  { %5028 = vmatpush2.msra.mxu1 %v10499_v63 }
 0x5ef   :  { %5029 = vmatprep.subr.mxu1 %v10500_v49 }
 0x5f0   :  { %5030 = vmatpush2.msra.mxu1 %v10501_v10  ;;  %v4107_v2 = vpop.f32.mrf.mxu1 }
 0x5f1   :  { %5031 = vmatprep.subr.mxu1 %v10502_v30  ;;  %v4108_v35 = vadd.f32 %v4107_v2, %v4037_v56 }
 0x5f2   :  { %5032 = vmatpush2.msra.mxu1 %v10503_v53  ;;  %v4109_v40 = vpop.f32.mrf.mxu1 }
 0x5f3   :  { %5033 = vmatprep.subr.mxu1 %v10505_v7  ;;  %v4110_v49 = vadd.f32 %v4109_v40, %v4039_v48 }
 0x5f4   :  { %5034 = vmatpush2.msra.mxu1 %v9027_v4  ;;  %v4178_v63 = vpop.f32.mrf.mxu0 }
 0x5f5   :  { %5035 = vmatprep.subr.mxu1 %v10507_v34  ;;  %v4179_v10 = vadd.f32 %v4178_v63, %v4108_v35 }
 0x5f6   :  { %5036 = vmatpush2.msra.mxu1 %v9050_v6  ;;  %v4180_v30 = vpop.f32.mrf.mxu0 }
 0x5f7   :  { %v4181_v5 = vadd.f32 %v4180_v30, %v4110_v49  ;;  %v4185_v53 = vmax.f32 %v4179_v10, 0.0 }
 0x5f9   :  { %v4186_v54 = vmax.f32 %v4181_v5, 0.0 }
 0x5fb   :  { %v4211_v44 = vcombine.low %v4185_v53, %v4186_v54  ;;  %v4293_v62 = vcombine.high %v4185_v53, %v4186_v54 }
 0x5fd   :  { %v4218_v7 = vrot.slane %v4211_v44, %v10436_v24  ;;  %v4300_v4 = vrot.slane %v4293_v62, %v10436_v24 }
 0x5ff   :  { %v4225_v46 = vrot.slane %v4218_v7, %v10436_v24  ;;  %v4242_v2 = vcombine.high %v4218_v7, %v4218_v7  ;;  %v4307_v56 = vrot.slane %v4300_v4, %v10436_v24  ;;  %v4324_v11 = vcombine.high %v4300_v4, %v4300_v4  ;;  %v10508_v7 = vld [vmem:[#allocation42_spill] sm:$0xff] }
 0x601   :  { %4228 = vst.msk [vmem:[#allocation5 + $0x32] ss:$8 sm:$0x3] %vm7583_vm1, %v4225_v46  ;;  %v4249_v6 = vrot.slane %v4242_v2, %v10436_v24  ;;  %v4259_v40 = vcombine.high %v4225_v46, %v4225_v46  ;;  %4310 = vst.msk [vmem:[#allocation5 + $0x42] ss:$8 sm:$0x3] %vm7583_vm1, %v4307_v56  ;;  %v4331_v5 = vrot.slane %v4324_v11, %v10436_v24 }
 0x602   :  { %v4341_v54 = vcombine.high %v4307_v56, %v4307_v56  ;;  %v10509_v56 = vld [vmem:[#allocation43_spill] sm:$0xff] }
 0x603   :  { %4252 = vst.msk [vmem:[#allocation5 + $0x34] ss:$8 sm:$0x3] %vm7583_vm1, %v4249_v6  ;;  %4262 = vst.msk [vmem:[#allocation5 + $0x36] ss:$8 sm:$0x3] %vm7583_vm1, %v4259_v40  ;;  %v4269_v48 = vcombine.high %v4249_v6, %v4249_v6  ;;  %v4351_v35 = vcombine.high %v4331_v5, %v4331_v5 }
 0x604   :  { %4334 = vst.msk [vmem:[#allocation5 + $0x44] ss:$8 sm:$0x3] %vm7583_vm1, %v4331_v5  ;;  %4344 = vst.msk [vmem:[#allocation5 + $0x46] ss:$8 sm:$0x3] %vm7583_vm1, %v4341_v54 }
 0x605   :  { %4272 = vst.msk [vmem:[#allocation5 + $0x40] ss:$8 sm:$0x3] %vm7583_vm1, %v4269_v48  ;;  %4354 = vst.msk [vmem:[#allocation5 + $0x50] ss:$8 sm:$0x3] %vm7583_vm1, %v4351_v35 }
 0x606   :  { %v10510_v5 = vld [vmem:[#allocation34_spill] sm:$0xff] }
 0x60a   :  { %v4847_v24 = vld [vmem:[#allocation5 + $0x38] sm:$0xff]  ;;  %v4846_v34 = vld [vmem:[#allocation5 + $0x30] sm:$0xff] }
 0x60b   :  { %v4851_v63 = vld [vmem:[#allocation5 + $0x38] sm:$0xfe]  ;;  %4960 = vmatprep.mubr.f32.mxu0 %v4847_v24  ;;  %v4850_v49 = vld [vmem:[#allocation5 + $0x30] sm:$0xfe] }
 0x60c   :  { %v4855_v10 = vld [vmem:[#allocation5 + $0x38] sm:$0xfc]  ;;  %4961 = vmatmul.mubr.f32.vlgmr.msra.gmra.mxu0 %v4846_v34  ;;  %v9623_v30 = vld [vmem:[#allocation5 + $0x48] sm:$0xff]  ;;  %v9625_v53 = vld [vmem:[#allocation5 + $0x40] sm:$0xff]  ;;  %v4867_v44 = vrot.slane %v4851_v63, 1  ;;  %v4864_v2 = vrot.slane %v4850_v49, 1 }
 0x60d   :  { %v4853_v62 = vld [vmem:[#allocation5 + $0x58] sm:$0x1]  ;;  %5051 = vmatpush1.msra.mxu0 %v10508_v7  ;;  %v4868_v4 = vrot.slane %v9623_v30, 1  ;;  %v4886_v15 = vrot.slane %v9623_v30, 2  ;;  %4966 = vmatprep.mubr.f32.mxu0 %v9623_v30  ;;  %v4865_v46 = vrot.slane %v9625_v53, 1  ;;  %v4885_v11 = vrot.slane %v4855_v10, 2 }
 0x60e   :  { %5052 = vmatprep.subr.mxu0 %v10509_v56  ;;  %v4872_v6 = vrot.slane %v4853_v62, 1  ;;  %v4852_v40 = vld [vmem:[#allocation5 + $0x50] sm:$0x1] }
 0x60f   :  { %5053 = vmatpush1.msra.mxu0 %v10510_v5  ;;  %v4869_v54 = vsel %vm3082_vm2, %v4867_v44, %v4868_v4  ;;  %v4866_v48 = vsel %vm3082_vm2, %v4864_v2, %v4865_v46  ;;  %v4887_v35 = vsel %vm3095_vm3, %v4885_v11, %v4886_v15  ;;  %v4870_v24 = vrot.slane %v4852_v40, 1 }
 0x610   :  { %5054 = vmatprep.subr.mxu0 %v9068_v43  ;;  %4967 = vmatmul.mubr.f32.gmra.mxu0 %v9625_v53  ;;  %v4873_v34 = vsel %vm3082_vm2, %v4868_v4, %v4872_v6 }
 0x611   :  { %5037 = vmatprep.mubr.f32.mxu1 %v4869_v54  ;;  %5055 = vmatpush1.msra.mxu0 %v9076_v18  ;;  %v4871_v43 = vsel %vm3082_vm2, %v4865_v46, %v4870_v24  ;;  %v10512_v18 = vld [vmem:[#allocation44_spill] sm:$0xff] }
 0x612   :  { %5038 = vmatmul.mubr.f32.vlgmr.msra.gmra.mxu1 %v4866_v48  ;;  %5056 = vmatprep.subr.mxu0 %v9085_v3  ;;  %v10511_v3 = vld [vmem:[#allocation36_spill] sm:$0xff] }
 0x613   :  { %5114 = vmatprep.mubr.f32.mxu0 %v4887_v35  ;;  %5043 = vmatprep.mubr.f32.mxu1 %v4873_v34 }
 0x614   :  { %5057 = vmatpush1.msra.mxu0 %v9094_v8  ;;  %v10513_v8 = vld [vmem:[#allocation45_spill] sm:$0xff] }
 0x615   :  { %5058 = vmatprep.subr.mxu0 %v9100_v58  ;;  %v10514_v58 = vld [vmem:[#allocation46_spill] sm:$0xff] }
 0x616   :  { %5059 = vmatpush1.msra.mxu0 %v9107_v60  ;;  %5044 = vmatmul.mubr.f32.gmra.mxu1 %v4871_v43  ;;  %v10515_v60 = vld [vmem:[#allocation47_spill] sm:$0xff] }
 0x617   :  { %5060 = vmatprep.subr.mxu0 %v9114_v16  ;;  %v10516_v16 = vld [vmem:[#allocation48_spill] sm:$0xff] }
 0x618   :  { %5061 = vmatpush1.msra.mxu0 %v9120_v52  ;;  %v10517_v52 = vld [vmem:[#allocation49_spill] sm:$0xff] }
 0x619   :  { %5062 = vmatprep.subr.mxu0 %v9127_v57  ;;  %v10518_v57 = vld [vmem:[#allocation50_spill] sm:$0xff] }
 0x61a   :  { %5063 = vmatpush1.msra.mxu0 %v9134_v22  ;;  %v10519_v22 = vld [vmem:[#allocation51_spill] sm:$0xff] }
 0x61b   :  { %5064 = vmatprep.subr.mxu0 %v9141_v51  ;;  %v10520_v51 = vld [vmem:[#allocation52_spill] sm:$0xff] }
 0x61c   :  { %5065 = vmatpush1.msra.mxu0 %v9148_v27  ;;  %v10521_v27 = vld [vmem:[#allocation53_spill] sm:$0xff] }
 0x61d   :  { %5066 = vmatprep.subr.mxu0 %v9155_v28  ;;  %v10522_v28 = vld [vmem:[#allocation54_spill] sm:$0xff] }
 0x61e   :  { %5067 = vmatpush1.msra.mxu0 %v9162_v33  ;;  %v10523_v33 = vld [vmem:[#allocation55_spill] sm:$0xff] }
 0x61f   :  { %5068 = vmatprep.subr.mxu0 %v9169_v21  ;;  %v4857_v21 = vld [vmem:[#allocation5 + $0x58] sm:$0x3] }
 0x620   :  { %5069 = vmatpush1.msra.mxu0 %v9176_v12  ;;  %v10524_v12 = vld [vmem:[#allocation60_spill] sm:$0xff] }
 0x621   :  { %5070 = vmatprep.subr.mxu0 %v9183_v20  ;;  %v4854_v20 = vld [vmem:[#allocation5 + $0x30] sm:$0xfc] }
 0x622   :  { %5071 = vmatpush1.msra.mxu0 %v9190_v37  ;;  %v4883_v37 = vrot.slane %v9625_v53, 2 }
 0x623   :  { %5072 = vmatprep.subr.mxu0 %v9197_v55  ;;  %v10525_v55 = vld [vmem:[#allocation56_spill] sm:$0xff] }
 0x624   :  { %5073 = vmatpush1.msra.mxu0 %v9204_v0  ;;  %v10526_v0 = vld [vmem:[#allocation57_spill] sm:$0xff] }
 0x625   :  { %5074 = vmatprep.subr.mxu0 %v9211_v47  ;;  %v4890_v47 = vrot.slane %v4857_v21, 2 }
 0x626   :  { %5075 = vmatpush1.msra.mxu0 %v9218_v1  ;;  %v4856_v1 = vld [vmem:[#allocation5 + $0x50] sm:$0x3] }
 0x627   :  { %5076 = vmatprep.subr.mxu0 %v9225_v9  ;;  %v4882_v9 = vrot.slane %v4854_v20, 2 }
 0x628   :  { %5077 = vmatpush1.msra.mxu0 %v9232_v42  ;;  %v10527_v42 = vld [vmem:[#allocation58_spill] sm:$0xff] }
 0x629   :  { %5078 = vmatprep.subr.mxu0 %v9239_v38  ;;  %v10528_v38 = vld [vmem:[#allocation59_spill] sm:$0xff] }
 0x62a   :  { %5079 = vmatpush1.msra.mxu0 %v9246_v13  ;;  %v4884_v13 = vsel %vm3095_vm3, %v4882_v9, %v4883_v37 }
 0x62b   :  { %5080 = vmatprep.subr.mxu0 %v9253_v17  ;;  %v4888_v17 = vrot.slane %v4856_v1, 2 }
 0x62c   :  { %5081 = vmatpush1.msra.mxu0 %v9260_v29  ;;  %v4891_v29 = vsel %vm3095_vm3, %v4886_v15, %v4890_v47 }
 0x62d   :  { %5082 = vmatprep.subr.mxu0 %v9267_v61  ;;  %v4889_v61 = vsel %vm3095_vm3, %v4883_v37, %v4888_v17 }
 0x62e   :  { %5083 = vmatpush2.msra.mxu0 %v9274_v23 }
 0x62f   :  { %5084 = vmatprep.subr.mxu0 %v9281_v50  ;;  %v4548_v50 = vld [vmem:[#allocation19] sm:$0x3] }
 0x630   :  { %5085 = vmatpush2.msra.mxu0 %v9288_v32 }
 0x631   :  { %5086 = vmatprep.subr.mxu0 %v9295_v39 }
 0x632   :  { %5087 = vmatpush2.msra.mxu0 %v9302_v36  ;;  %v10529_v36 = vld [vmem:[#allocation72_spill] sm:$0xff] }
 0x633   :  { %5088 = vmatprep.subr.mxu0 %v9309_v14  ;;  %v4676_v23 = vpop.f32.mrf.mxu1  ;;  %v4603_v14 = vrot.slane %v4548_v50, %v10529_v36 }
 0x634   :  { %5089 = vmatpush2.msra.mxu0 %v9316_v25 }
 0x635   :  { %5090 = vmatprep.subr.mxu0 %v9323_v59  ;;  %v4678_v32 = vpop.f32.mrf.mxu1 }
 0x636   :  { %5091 = vmatpush2.msra.mxu0 %v9330_v41  ;;  %v10530_v41 = vld [vmem:[#allocation73_spill] sm:$0xff] }
 0x637   :  { %5092 = vmatprep.subr.mxu0 %v9337_v19  ;;  %v4607_v19 = vrot.slane %v4548_v50, %v10530_v41 }
 0x638   :  { %5093 = vmatpush2.msra.mxu0 %v9344_v26  ;;  %v4753_v39 = vpop.f32.mrf.mxu0  ;;  %v4682_v25 = vpop.f32.mrf.mxu1  ;;  %v4677_v26 = vadd.f32 %v4676_v23, %v4603_v14 }
 0x639   :  { %5094 = vmatprep.subr.mxu0 %v9351_v45  ;;  %v4679_v63 = vadd.f32 %v4678_v32, %v4607_v19  ;;  %v4683_v30 = vadd.f32 %v4682_v25, %v4603_v14 }
 0x63a   :  { %5095 = vmatpush2.msra.mxu0 %v10511_v3  ;;  %v4755_v59 = vpop.f32.mrf.mxu0  ;;  %v4684_v45 = vpop.f32.mrf.mxu1  ;;  %v4754_v49 = vadd.f32 %v4753_v39, %v4677_v26 }
 0x63b   :  { %5096 = vmatprep.subr.mxu0 %v10512_v18  ;;  %v4756_v53 = vadd.f32 %v4755_v59, %v4679_v63  ;;  %v4685_v4 = vadd.f32 %v4684_v45, %v4607_v19 }
 0x63c   :  { %5097 = vmatpush2.msra.mxu0 %v10513_v8 }
 0x63d   :  { %5098 = vmatprep.subr.mxu0 %v10514_v58 }
 0x63e   :  { %5099 = vmatpush2.msra.mxu0 %v10515_v60 }
 0x63f   :  { %5100 = vmatprep.subr.mxu0 %v10516_v16 }
 0x640   :  { %5101 = vmatpush2.msra.mxu0 %v10517_v52 }
 0x641   :  { %5102 = vmatprep.subr.mxu0 %v10518_v57 }
 0x642   :  { %5103 = vmatpush2.msra.mxu0 %v10519_v22 }
 0x643   :  { %5104 = vmatprep.subr.mxu0 %v10520_v51 }
 0x644   :  { %5105 = vmatpush2.msra.mxu0 %v10521_v27 }
 0x645   :  { %5106 = vmatprep.subr.mxu0 %v10522_v28 }
 0x646   :  { %5107 = vmatpush2.msra.mxu0 %v10523_v33 }
 0x647   :  { %5108 = vmatprep.subr.mxu0 %v10524_v12 }
 0x648   :  { %5109 = vmatpush2.msra.mxu0 %v10525_v55 }
 0x649   :  { %5110 = vmatprep.subr.mxu0 %v10526_v0 }
 0x64a   :  { %5111 = vmatpush2.msra.mxu0 %v9472_v31  ;;  %v4759_v31 = vpop.f32.mrf.mxu0 }
 0x64b   :  { %5112 = vmatprep.subr.mxu0 %v10527_v42  ;;  %v4760_v15 = vadd.f32 %v4759_v31, %v4683_v30 }
 0x64c   :  { %5113 = vmatpush2.msra.mxu0 %v10528_v38  ;;  %v4761_v62 = vpop.f32.mrf.mxu0 }
 0x64d   :  { %5115 = vmatmul.mubr.f32.vlgmr.msra.gmra.mxu0 %v4884_v13  ;;  %v4762_v56 = vadd.f32 %v4761_v62, %v4685_v4 }
 0x64e   :  { %5120 = vmatprep.mubr.f32.mxu0 %v4891_v29 }
 0x651   :  { %5121 = vmatmul.mubr.f32.gmra.mxu0 %v4889_v61 }
 0x675   :  { %v4830_v10 = vpop.f32.mrf.mxu1 }
 0x676   :  { %v4831_v44 = vadd.f32 %v4830_v10, %v4754_v49 }
 0x677   :  { %v4832_v7 = vpop.f32.mrf.mxu1 }
 0x678   :  { %4841 = vst [vmem:[%s9749_s11] sm:$0xff] %v4831_v44  ;;  %v4833_v46 = vadd.f32 %v4832_v7, %v4756_v53 }
 0x679   :  { %v4836_v2 = vpop.f32.mrf.mxu1 }
 0x67a   :  { %4843 = vst.msk [vmem:[%s9749_s11 + $0x8] sm:$0xff] %vm4842_vm4, %v4833_v46  ;;  %v4837_v11 = vadd.f32 %v4836_v2, %v4760_v15 }
 0x67b   :  { %v4838_v6 = vpop.f32.mrf.mxu1 }
 0x67c   :  { %4844 = vst [vmem:[%s9749_s11 + $0x10] sm:$0xff] %v4837_v11  ;;  %v4839_v40 = vadd.f32 %v4838_v6, %v4762_v56 }
 0x67e   :  { %4845 = vst.msk [vmem:[%s9749_s11 + $0x18] sm:$0xff] %vm4842_vm4, %v4839_v40 }
 0x6cc   :  { %v4962_v5 = vpop.f32.mrf.mxu0 }
 0x6cd   :  { %v4963_v34 = vadd.f32 %v4962_v5, %v4603_v14 }
 0x6ce   :  { %v4964_v54 = vpop.f32.mrf.mxu0 }
 0x6cf   :  { %v4965_v18 = vadd.f32 %v4964_v54, %v4607_v19 }
 0x6d0   :  { %v4968_v35 = vpop.f32.mrf.mxu0 }
 0x6d1   :  { %v4969_v60 = vadd.f32 %v4968_v35, %v4603_v14 }
 0x6d2   :  { %v5039_v48 = vpop.f32.mrf.mxu1  ;;  %v4970_v43 = vpop.f32.mrf.mxu0 }
 0x6d3   :  { %v5040_v8 = vadd.f32 %v5039_v48, %v4963_v34  ;;  %v4971_v51 = vadd.f32 %v4970_v43, %v4607_v19 }
 0x6d4   :  { %v5041_v24 = vpop.f32.mrf.mxu1 }
 0x6d5   :  { %v5042_v16 = vadd.f32 %v5041_v24, %v4965_v18 }
 0x6d6   :  { %v5045_v3 = vpop.f32.mrf.mxu1 }
 0x6d7   :  { %v5046_v27 = vadd.f32 %v5045_v3, %v4969_v60 }
 0x6d8   :  { %v5047_v57 = vpop.f32.mrf.mxu1 }
 0x6d9   :  { %v5048_v21 = vadd.f32 %v5047_v57, %v4971_v51 }
 0x70d   :  { %v5116_v58 = vpop.f32.mrf.mxu0 }
 0x70e   :  { %v5117_v52 = vadd.f32 %v5116_v58, %v5040_v8 }
 0x70f   :  { %v5118_v22 = vpop.f32.mrf.mxu0 }
 0x710   :  { %5170 = vst [vmem:[%s9749_s11 + $0x20] sm:$0xff] %v5117_v52  ;;  %v5119_v28 = vadd.f32 %v5118_v22, %v5042_v16 }
 0x711   :  { %v5122_v33 = vpop.f32.mrf.mxu0 }
 0x712   :  { %5171 = vst.msk [vmem:[%s9749_s11 + $0x28] sm:$0xff] %vm4842_vm4, %v5119_v28  ;;  %v5123_v12 = vadd.f32 %v5122_v33, %v5046_v27 }
 0x713   :  { %v5124_v20 = vpop.f32.mrf.mxu0 }
 0x714   :  { %5172 = vst [vmem:[%s9749_s11 + $0x30] sm:$0xff] %v5123_v12  ;;  %v5125_v37 = vadd.f32 %v5124_v20, %v5048_v21 }
 0x716   :  { %5173 = vst.msk [vmem:[%s9749_s11 + $0x38] sm:$0xff] %vm4842_vm4, %v5125_v37 }
 0x717   :  { %5136 = vsyncpa [#allocation7], 1 }
 0x718   :  { %5137 = vsyncpa [#allocation9], 1 }
 0x719   :  { %5138 = vsyncpa [#allocation12], 1 }
 0x71a   :  { %5139 = vsyncpa [#allocation15], 1 }
 0x71b   :  { %5140 = vsyncpa [#allocation18], 1 }

</bundles_post_ra>
